<compile_context>
chip_gen: v7x
topology: tpu7x:2x2x1
jax: 0.10.0
libtpu: 0.0.40
codegen_flags: <defaults>
</compile_context>

<pallas_src>
import jax
import jax.numpy as jnp
from jax import lax
from jax.experimental import pallas as pl
from jax.experimental.pallas import tpu as pltpu

# ---- hyper-parameters consistent with TrXL(d_model=16, nhead=2, nlayers=2) ----
D_MODEL = 16
N_HEAD = 2
HEAD_DIM = D_MODEL // N_HEAD          # 8  (d_model // nhead, as in TrXL.__init__)
N_LAYERS = 2
EMBED_DIM = 512                       # hard-coded self.embedding_dim = 512 in TrXL.__init__
MEM_LEN = 64                          # GTrXL default memory_len
D_OUT = 1
LN_EPS = 1e-5
DTYPE = jnp.float32


def make_trxl_kernel(B, S):
    """Build the single fused Pallas kernel for the whole TrXL forward."""
    E, H, D = EMBED_DIM, N_HEAD, HEAD_DIM
    HD = H * D
    M = MEM_LEN
    F = M + S                          # full_seq = memory_len + cur_seq
    R = B * S                          # batch folded into the matmul row dimension
    L = N_LAYERS
    scale = 1.0 / (D ** 0.5)
    f32 = jnp.float32

    def layer_norm(x, g, b):
        mu = jnp.mean(x, axis=-1, keepdims=True)
        var = jnp.mean((x - mu) * (x - mu), axis=-1, keepdims=True)
        return (x - mu) * lax.rsqrt(var + LN_EPS) * g + b

    def kernel(src_ref, r_ref, embw_ref, embb_ref,
               wq_ref, wkv_ref, wo_ref, wm1_ref, wm2_ref,
               bqkv_ref, pke_ref, uv_ref, pw_ref, pb_ref, out_ref):
        # --- GTrXL embedding fc_block: Linear(d_model -> E) + ReLU ---
        x = jnp.dot(src_ref[...], embw_ref[...], preferred_element_type=f32)
        x = jnp.maximum(x + embb_ref[...], 0.0)                       # (R, E)

        uv = uv_ref[...]                                              # (2, HD): rows [u; v]

        # Additive causal/memory mask (shared by all layers & heads):
        # key j is visible to query i iff j <= i + M.
        row = lax.broadcasted_iota(jnp.int32, (S, F), 0)
        col = lax.broadcasted_iota(jnp.int32, (S, F), 1)
        mask_bias = jnp.where(col > row + M, jnp.float32(-1e30), jnp.float32(0.0))

        for l in range(L):                 # static unroll; all layer weights resident in VMEM
            pke = pke_ref[l]               # (7, E): ln1_g, ln1_b, ln2_g, ln2_b, b_proj, b_m1, b_m2
            ln1_g, ln1_b = pke[0:1], pke[1:2]
            ln2_g, ln2_b = pke[2:3], pke[3:4]
            b_proj, b_m1, b_m2 = pke[4:5], pke[5:6], pke[6:7]
            bqkv = bqkv_ref[l]             # (1, 3*HD): [b_q | b_k | b_v]
            b_q, b_kv = bqkv[:, :HD], bqkv[:, HD:]

            # LayerNorm1(concat(memory, x)): memory is all zeros on the first forward call,
            # so LN(0) == ln1_b and every memory row yields the same key/value row.
            # No zero tensor is DMA'd and no (M, E) LayerNorm is computed.
            x1 = layer_norm(x, ln1_g, ln1_b)                          # (R, E)

            # q from the UN-normalized input (DI-engine AttentionXL); fused k|v projection.
            q = jnp.dot(x, wq_ref[l], preferred_element_type=f32) + b_q        # (R, HD)
            kv = jnp.dot(x1, wkv_ref[l], preferred_element_type=f32) + b_kv    # (R, 2*HD)
            kv_mem = jnp.dot(ln1_b, wkv_ref[l], preferred_element_type=f32) + b_kv  # (1, 2*HD)
            r_l = r_ref[l]                                            # (HD, F) precomputed pos proj

            # --- position term for both heads, then ONE rel-shift pass over stacked heads ---
            p0_list = []
            for h in range(H):
                sl = slice(h * D, (h + 1) * D)
                qv = q[:, sl] + uv[1:2, sl]                           # (R, D)
                p0_list.append(jnp.dot(qv, r_l[sl, :],
                                       preferred_element_type=f32).reshape(B, S, F))
            p0_cat = jnp.concatenate(p0_list, axis=0)                 # (H*B, S, F)
            # Transformer-XL relative shift: row i rotated left by (S-1-i); the wrapped tail
            # lands only on masked columns (j > i + M).  Batched over heads AND batch.
            rows = []
            for i in range(S):
                c = S - 1 - i
                slab = p0_cat[:, i:i + 1, :]                          # (H*B, 1, F)
                if c:
                    slab = jnp.concatenate([slab[..., c:], slab[..., :c]], axis=-1)
                rows.append(slab)
            pshift_cat = jnp.concatenate(rows, axis=1)                # (H*B, S, F)

            head_outs = []
            for h in range(H):                                        # H == 2, static unroll
                sl = slice(h * D, (h + 1) * D)
                slv = slice(HD + h * D, HD + (h + 1) * D)
                qh = q[:, sl]                                         # (R, D)
                kh = kv[:, sl].reshape(B, S, D)
                vh = kv[:, slv].reshape(B, S, D)
                k_mem = kv_mem[:, sl]                                 # (1, D) shared by all memory slots
                v_mem = kv_mem[:, slv]                                # (1, D)
                uh = uv[0:1, sl]

                # content term (q + u) . k over [memory | current] keys
                qu = qh + uh                                          # (R, D)
                c_cur = jnp.einsum('bsd,btd->bst', qu.reshape(B, S, D), kh,
                                   preferred_element_type=f32)        # (B,S,S)
                c_mem = jnp.sum(qu * k_mem, axis=-1, keepdims=True).reshape(B, S, 1)
                content = jnp.concatenate(
                    [jnp.broadcast_to(c_mem, (B, S, M)), c_cur], axis=-1)       # (B,S,F)

                scores = (content + pshift_cat[h * B:(h + 1) * B]) * scale + mask_bias
                smax = jnp.max(scores, axis=-1, keepdims=True)
                p = jnp.exp(scores - smax)
                attn = p / jnp.sum(p, axis=-1, keepdims=True)         # exact softmax division

                # value mix: every memory column shares v_mem, current columns use v_cur
                a_mem = jnp.sum(attn[..., :M], axis=-1, keepdims=True)          # (B,S,1)
                oh = a_mem * v_mem.reshape(1, 1, D) \
                    + jnp.einsum('bst,btd->bsd', attn[..., M:], vh,
                                 preferred_element_type=f32)                    # (B,S,D)
                head_outs.append(oh)

            attn_vec = jnp.concatenate(head_outs, axis=-1).reshape(R, HD)       # (R, HD)
            a1 = jnp.dot(attn_vec, wo_ref[l], preferred_element_type=f32) + b_proj
            a1 = jnp.maximum(a1, 0.0)                  # ReLU after attention projection (GTrXL)
            o1 = x + a1                                # residual (gru_gating=False)

            x2 = layer_norm(o1, ln2_g, ln2_b)
            # MLP weights stored bf16 (HBM/DMA reduction); bf16 x bf16 -> f32 on the MXU.
            m = jnp.dot(x2.astype(jnp.bfloat16), wm1_ref[l],
                        preferred_element_type=f32) + b_m1
            m = jnp.maximum(m, 0.0)                    # fc_block 1: Linear + ReLU
            m = jnp.dot(m.astype(jnp.bfloat16), wm2_ref[l],
                        preferred_element_type=f32) + b_m2
            m = jnp.maximum(m, 0.0)                    # fc_block 2: Linear + ReLU
            x = o1 + m                                 # second residual

        # logit[:, -1, :] followed by the TrXL projector Linear(E -> d_out), d_out == 1.
        last = x.reshape(B, S, E)[:, S - 1:S, :].reshape(B, E)                   # (B, E)
        out_ref[...] = jnp.sum(last * pw_ref[...], axis=-1, keepdims=True) + pb_ref[...]

    return kernel


def _pos_embedding(S):
    """Sinusoidal positional embedding over full_seq, positions descending F-1 .. 0."""
    F = MEM_LEN + S
    pos_seq = jnp.arange(F - 1, -1, -1, dtype=DTYPE)
    inv_freq = 1.0 / (10000.0 ** (jnp.arange(0, EMBED_DIM, 2, dtype=DTYPE) / EMBED_DIM))
    sinusoid = jnp.outer(pos_seq, inv_freq)
    return jnp.concatenate([jnp.sin(sinusoid), jnp.cos(sinusoid)], axis=-1)      # (F, E)


def pack_params(params):
    """One-time packing (OUTSIDE the jitted per-call path) of per-layer parameters."""
    HD = N_HEAD * HEAD_DIM
    layers = params["layers"]
    stack = lambda f: jnp.stack([f(lp) for lp in layers])
    return dict(
        emb_w=params["emb_w"],                                       # (d_model, E)
        emb_b=params["emb_b"],                                       # (1, E)
        w_q=stack(lambda lp: lp["w_q"]),                             # (L, E, HD)   in-out oriented
        w_kv=stack(lambda lp: lp["w_kv"]),                           # (L, E, 2*HD) fused [k | v]
        w_o=stack(lambda lp: lp["w_proj"]),                          # (L, HD, E)
        w_m1=stack(lambda lp: lp["w_m1"]).astype(jnp.bfloat16),      # (L, E, E) bf16 storage
        w_m2=stack(lambda lp: lp["w_m2"]).astype(jnp.bfloat16),      # (L, E, E) bf16 storage
        w_pos=stack(lambda lp: lp["w_pos"]),                         # (L, E, HD)  wrapper-only
        b_pos=stack(lambda lp: lp["b_pos"]),                         # (L, 1, HD)  wrapper-only
        b_qkv=stack(lambda lp: jnp.concatenate([lp["b_q"], lp["b_kv"]], axis=-1)),   # (L,1,3HD)
        pack_e=stack(lambda lp: jnp.concatenate(
            [lp["ln1_g"], lp["ln1_b"], lp["ln2_g"], lp["ln2_b"],
             lp["b_proj"], lp["b_m1"], lp["b_m2"]], axis=0)),                         # (L, 7, E)
        uv=jnp.concatenate([params["u"].reshape(1, HD),
                            params["v"].reshape(1, HD)], axis=0),                     # (2, HD)
        proj_w=params["proj_w"].T,                                   # (d_out, E) == (1, E)
        proj_b=params["proj_b"],                                     # (1, d_out)
    )


def trxl_forward(packed, src, tgt=None, has_mask=False):
    """TrXL.forward: src is batch-first (B, S, d_model); tgt/has_mask unused (as in PyTorch)."""
    del tgt, has_mask
    B, S, _ = src.shape

    # Tiny per-call precompute (plain XLA, outside the kernel): per-layer/per-head relative
    # position projections r_l = (pos_emb @ W_pos_l + b_pos_l)^T  ->  (L, HD, F)  (~9 KiB),
    # replacing the 147 KiB pos_emb DMA and L in-kernel pos matmuls.
    pos_emb = _pos_embedding(S)                                        # (F, E) constant
    r = jnp.einsum('fe,leh->lhf', pos_emb, packed["w_pos"])
    r = (r + jnp.transpose(packed["b_pos"], (0, 2, 1))).astype(DTYPE)  # (L, HD, F)

    src2d = src.reshape(B * S, D_MODEL)
    kernel = make_trxl_kernel(B, S)
    return pl.pallas_call(
        kernel,
        out_shape=jax.ShapeDtypeStruct((B, D_OUT), DTYPE),
        compiler_params=pltpu.CompilerParams(vmem_limit_bytes=32 * 1024 * 1024),
    )(src2d, r, packed["emb_w"], packed["emb_b"],
      packed["w_q"], packed["w_kv"], packed["w_o"], packed["w_m1"], packed["w_m2"],
      packed["b_qkv"], packed["pack_e"], packed["uv"],
      packed["proj_w"], packed["proj_b"])


def init_params(key):
    """Deterministic synthetic parameters matching the module's shapes (PyTorch layout)."""
    def lin(k, fan_in, fan_out):
        k1, k2 = jax.random.split(k)
        w = (jax.random.normal(k1, (fan_in, fan_out), DTYPE) * 0.05).astype(DTYPE)
        b = (jax.random.normal(k2, (1, fan_out), DTYPE) * 0.01).astype(DTYPE)
        return w, b

    keys = jax.random.split(key, 4 + N_LAYERS)
    HD = N_HEAD * HEAD_DIM
    params = {}
    params["emb_w"], params["emb_b"] = lin(keys[0], D_MODEL, EMBED_DIM)        # GTrXL embedding
    params["proj_w"], params["proj_b"] = lin(keys[1], EMBED_DIM, D_OUT)        # TrXL projector
    params["u"] = (jax.random.normal(keys[2], (N_HEAD, HEAD_DIM), DTYPE) * 0.05)
    params["v"] = (jax.random.normal(keys[3], (N_HEAD, HEAD_DIM), DTYPE) * 0.05)

    layers = []
    for li in range(N_LAYERS):
        lk = jax.random.split(keys[4 + li], 6)
        w_kv, b_kv = lin(lk[0], EMBED_DIM, 2 * HD)
        w_q, b_q = lin(lk[1], EMBED_DIM, HD)
        w_pos, b_pos = lin(lk[2], EMBED_DIM, HD)
        w_proj, b_proj = lin(lk[3], HD, EMBED_DIM)
        w_m1, b_m1 = lin(lk[4], EMBED_DIM, EMBED_DIM)
        w_m2, b_m2 = lin(lk[5], EMBED_DIM, EMBED_DIM)
        layers.append(dict(
            w_kv=w_kv, b_kv=b_kv, w_q=w_q, b_q=b_q, w_pos=w_pos, b_pos=b_pos,
            w_proj=w_proj, b_proj=b_proj,
            ln1_g=jnp.ones((1, EMBED_DIM), DTYPE), ln1_b=jnp.zeros((1, EMBED_DIM), DTYPE),
            ln2_g=jnp.ones((1, EMBED_DIM), DTYPE), ln2_b=jnp.zeros((1, EMBED_DIM), DTYPE),
            w_m1=w_m1, b_m1=b_m1, w_m2=w_m2, b_m2=b_m2,
        ))
    params["layers"] = layers
    return params


if __name__ == "__main__":
    key = jax.random.PRNGKey(0)
    pkey, skey, tkey = jax.random.split(key, 3)
    params = init_params(pkey)
    packed = pack_params(params)       # one-time packing, outside the jitted per-call path

    B, S = 2, 8
    src = jax.random.normal(skey, (B, S, D_MODEL), DTYPE)
    tgt = jax.random.normal(tkey, (B, S, D_MODEL), DTYPE)   # unused by the forward, like PyTorch

    out = jax.jit(trxl_forward)(packed, src, tgt)
    out = jax.block_until_ready(out)

    assert out.shape == (B, D_OUT), out.shape
    assert bool(jnp.all(jnp.isfinite(out)))
    print("KERNEL_OK")
</pallas_src>

<mosaic_0001>
module attributes {stable_mosaic.version = 11 : i64} {
  func.func @kernel(%arg0: memref<16x16xf32, #tpu.memory_space<vmem>>, %arg1: memref<2x16x72xf32, #tpu.memory_space<vmem>>, %arg2: memref<16x512xf32, #tpu.memory_space<vmem>>, %arg3: memref<1x512xf32, #tpu.memory_space<vmem>>, %arg4: memref<2x512x16xf32, #tpu.memory_space<vmem>>, %arg5: memref<2x512x32xf32, #tpu.memory_space<vmem>>, %arg6: memref<2x16x512xf32, #tpu.memory_space<vmem>>, %arg7: memref<2x512x512xbf16, #tpu.memory_space<vmem>>, %arg8: memref<2x512x512xbf16, #tpu.memory_space<vmem>>, %arg9: memref<2x1x48xf32, #tpu.memory_space<vmem>>, %arg10: memref<2x7x512xf32, #tpu.memory_space<vmem>>, %arg11: memref<2x16xf32, #tpu.memory_space<vmem>>, %arg12: memref<1x512xf32, #tpu.memory_space<vmem>>, %arg13: memref<1x1xf32, #tpu.memory_space<vmem>>, %arg14: memref<2x1xf32, #tpu.memory_space<vmem>>) attributes {dimension_semantics = [], scalar_prefetch = 0 : i64, scratch_operands = 0 : i64, tpu.core_type = #tpu.core_type<tc>} {
    %c0 = arith.constant 0 : index
    %c0_0 = arith.constant 0 : index
    %0 = vector.load %arg0[%c0, %c0_0] : memref<16x16xf32, #tpu.memory_space<vmem>>, vector<16x16xf32>
    %c0_1 = arith.constant 0 : index
    %c0_2 = arith.constant 0 : index
    %1 = vector.load %arg2[%c0_1, %c0_2] : memref<16x512xf32, #tpu.memory_space<vmem>>, vector<16x512xf32>
    %cst = arith.constant dense<0.000000e+00> : vector<16x512xf32>
    %2 = tpu.matmul %0, %1, %cst {dimension_numbers = #tpu.dot_dimension_numbers<[1], [0], [0], [1], [0, 0, 1, 1], [], []>} : vector<16x16xf32>, vector<16x512xf32>, vector<16x512xf32> -> vector<16x512xf32>
    %c0_3 = arith.constant 0 : index
    %c0_4 = arith.constant 0 : index
    %3 = vector.load %arg3[%c0_3, %c0_4] : memref<1x512xf32, #tpu.memory_space<vmem>>, vector<1x512xf32>
    %4 = vector.broadcast %3 : vector<1x512xf32> to vector<16x512xf32>
    %5 = arith.addf %2, %4 : vector<16x512xf32>
    %cst_5 = arith.constant 0.000000e+00 : f32
    %6 = vector.broadcast %cst_5 : f32 to vector<16x512xf32>
    %7 = arith.maximumf %5, %6 : vector<16x512xf32>
    %c0_6 = arith.constant 0 : index
    %c0_7 = arith.constant 0 : index
    %8 = vector.load %arg11[%c0_6, %c0_7] : memref<2x16xf32, #tpu.memory_space<vmem>>, vector<2x16xf32>
    %9 = tpu.iota {dimensions = array<i32: 0>} : vector<8x72xi32>
    %10 = tpu.iota {dimensions = array<i32: 1>} : vector<8x72xi32>
    %c64_i32 = arith.constant 64 : i32
    %11 = vector.broadcast %c64_i32 : i32 to vector<8x72xi32>
    %12 = arith.addi %9, %11 : vector<8x72xi32>
    %13 = arith.cmpi sgt, %10, %12 : vector<8x72xi32>
    %cst_8 = arith.constant -1.000000e+30 : f32
    %cst_9 = arith.constant 0.000000e+00 : f32
    %14 = vector.broadcast %cst_8 : f32 to vector<8x72xf32>
    %15 = vector.broadcast %cst_9 : f32 to vector<8x72xf32>
    %16 = arith.select %13, %14, %15 : vector<8x72xi1>, vector<8x72xf32>
    %c0_10 = arith.constant 0 : index
    %c0_11 = arith.constant 0 : index
    %c0_12 = arith.constant 0 : index
    %17 = vector.load %arg10[%c0_10, %c0_11, %c0_12] : memref<2x7x512xf32, #tpu.memory_space<vmem>>, vector<1x7x512xf32>
    %18 = vector.shape_cast %17 : vector<1x7x512xf32> to vector<7x512xf32>
    %19 = vector.extract_strided_slice %18 {offsets = [0, 0], sizes = [1, 512], strides = [1, 1]} : vector<7x512xf32> to vector<1x512xf32>
    %20 = vector.extract_strided_slice %18 {offsets = [1, 0], sizes = [1, 512], strides = [1, 1]} : vector<7x512xf32> to vector<1x512xf32>
    %21 = vector.extract_strided_slice %18 {offsets = [2, 0], sizes = [1, 512], strides = [1, 1]} : vector<7x512xf32> to vector<1x512xf32>
    %22 = vector.extract_strided_slice %18 {offsets = [3, 0], sizes = [1, 512], strides = [1, 1]} : vector<7x512xf32> to vector<1x512xf32>
    %23 = vector.extract_strided_slice %18 {offsets = [4, 0], sizes = [1, 512], strides = [1, 1]} : vector<7x512xf32> to vector<1x512xf32>
    %24 = vector.extract_strided_slice %18 {offsets = [5, 0], sizes = [1, 512], strides = [1, 1]} : vector<7x512xf32> to vector<1x512xf32>
    %25 = vector.extract_strided_slice %18 {offsets = [6, 0], sizes = [1, 512], strides = [1, 1]} : vector<7x512xf32> to vector<1x512xf32>
    %c0_13 = arith.constant 0 : index
    %c0_14 = arith.constant 0 : index
    %c0_15 = arith.constant 0 : index
    %26 = vector.load %arg9[%c0_13, %c0_14, %c0_15] : memref<2x1x48xf32, #tpu.memory_space<vmem>>, vector<1x1x48xf32>
    %27 = vector.shape_cast %26 : vector<1x1x48xf32> to vector<1x48xf32>
    %28 = vector.extract_strided_slice %27 {offsets = [0, 0], sizes = [1, 16], strides = [1, 1]} : vector<1x48xf32> to vector<1x16xf32>
    %29 = vector.extract_strided_slice %27 {offsets = [0, 16], sizes = [1, 32], strides = [1, 1]} : vector<1x48xf32> to vector<1x32xf32>
    %cst_16 = arith.constant dense<0.000000e+00> : vector<16xf32>
    %30 = vector.multi_reduction <add>, %7, %cst_16 [1] : vector<16x512xf32> to vector<16xf32>
    %31 = vector.shape_cast %30 : vector<16xf32> to vector<16x1xf32>
    %cst_17 = arith.constant 5.120000e+02 : f32
    %32 = vector.broadcast %cst_17 : f32 to vector<16x1xf32>
    %33 = arith.divf %31, %32 : vector<16x1xf32>
    %34 = vector.broadcast %33 : vector<16x1xf32> to vector<16x512xf32>
    %35 = arith.subf %7, %34 : vector<16x512xf32>
    %36 = vector.broadcast %33 : vector<16x1xf32> to vector<16x512xf32>
    %37 = arith.subf %7, %36 : vector<16x512xf32>
    %38 = arith.mulf %35, %37 : vector<16x512xf32>
    %cst_18 = arith.constant dense<0.000000e+00> : vector<16xf32>
    %39 = vector.multi_reduction <add>, %38, %cst_18 [1] : vector<16x512xf32> to vector<16xf32>
    %40 = vector.shape_cast %39 : vector<16xf32> to vector<16x1xf32>
    %cst_19 = arith.constant 5.120000e+02 : f32
    %41 = vector.broadcast %cst_19 : f32 to vector<16x1xf32>
    %42 = arith.divf %40, %41 : vector<16x1xf32>
    %43 = vector.broadcast %33 : vector<16x1xf32> to vector<16x512xf32>
    %44 = arith.subf %7, %43 : vector<16x512xf32>
    %cst_20 = arith.constant 9.99999974E-6 : f32
    %45 = vector.broadcast %cst_20 : f32 to vector<16x1xf32>
    %46 = arith.addf %42, %45 : vector<16x1xf32>
    %47 = math.rsqrt %46 : vector<16x1xf32>
    %48 = vector.broadcast %47 : vector<16x1xf32> to vector<16x512xf32>
    %49 = arith.mulf %44, %48 : vector<16x512xf32>
    %50 = vector.broadcast %19 : vector<1x512xf32> to vector<16x512xf32>
    %51 = arith.mulf %49, %50 : vector<16x512xf32>
    %52 = vector.broadcast %20 : vector<1x512xf32> to vector<16x512xf32>
    %53 = arith.addf %51, %52 : vector<16x512xf32>
    %c0_21 = arith.constant 0 : index
    %c0_22 = arith.constant 0 : index
    %c0_23 = arith.constant 0 : index
    %54 = vector.load %arg4[%c0_21, %c0_22, %c0_23] : memref<2x512x16xf32, #tpu.memory_space<vmem>>, vector<1x512x16xf32>
    %55 = vector.shape_cast %54 : vector<1x512x16xf32> to vector<512x16xf32>
    %cst_24 = arith.constant dense<0.000000e+00> : vector<16x16xf32>
    %56 = tpu.matmul %7, %55, %cst_24 {dimension_numbers = #tpu.dot_dimension_numbers<[1], [0], [0], [1], [0, 0, 1, 1], [], []>} : vector<16x512xf32>, vector<512x16xf32>, vector<16x16xf32> -> vector<16x16xf32>
    %57 = vector.broadcast %28 : vector<1x16xf32> to vector<16x16xf32>
    %58 = arith.addf %56, %57 : vector<16x16xf32>
    %c0_25 = arith.constant 0 : index
    %c0_26 = arith.constant 0 : index
    %c0_27 = arith.constant 0 : index
    %59 = vector.load %arg5[%c0_25, %c0_26, %c0_27] : memref<2x512x32xf32, #tpu.memory_space<vmem>>, vector<1x512x32xf32>
    %60 = vector.shape_cast %59 : vector<1x512x32xf32> to vector<512x32xf32>
    %cst_28 = arith.constant dense<0.000000e+00> : vector<16x32xf32>
    %61 = tpu.matmul %53, %60, %cst_28 {dimension_numbers = #tpu.dot_dimension_numbers<[1], [0], [0], [1], [0, 0, 1, 1], [], []>} : vector<16x512xf32>, vector<512x32xf32>, vector<16x32xf32> -> vector<16x32xf32>
    %62 = vector.broadcast %29 : vector<1x32xf32> to vector<16x32xf32>
    %63 = arith.addf %61, %62 : vector<16x32xf32>
    %c0_29 = arith.constant 0 : index
    %c0_30 = arith.constant 0 : index
    %c0_31 = arith.constant 0 : index
    %64 = vector.load %arg5[%c0_29, %c0_30, %c0_31] : memref<2x512x32xf32, #tpu.memory_space<vmem>>, vector<1x512x32xf32>
    %65 = vector.shape_cast %64 : vector<1x512x32xf32> to vector<512x32xf32>
    %cst_32 = arith.constant dense<0.000000e+00> : vector<1x32xf32>
    %66 = tpu.matmul %20, %65, %cst_32 {dimension_numbers = #tpu.dot_dimension_numbers<[1], [0], [0], [1], [0, 0, 1, 1], [], []>} : vector<1x512xf32>, vector<512x32xf32>, vector<1x32xf32> -> vector<1x32xf32>
    %67 = arith.addf %66, %29 : vector<1x32xf32>
    %c0_33 = arith.constant 0 : index
    %c0_34 = arith.constant 0 : index
    %c0_35 = arith.constant 0 : index
    %68 = vector.load %arg1[%c0_33, %c0_34, %c0_35] : memref<2x16x72xf32, #tpu.memory_space<vmem>>, vector<1x16x72xf32>
    %69 = vector.shape_cast %68 : vector<1x16x72xf32> to vector<16x72xf32>
    %70 = vector.extract_strided_slice %58 {offsets = [0, 0], sizes = [16, 8], strides = [1, 1]} : vector<16x16xf32> to vector<16x8xf32>
    %71 = vector.extract_strided_slice %8 {offsets = [1, 0], sizes = [1, 8], strides = [1, 1]} : vector<2x16xf32> to vector<1x8xf32>
    %72 = vector.broadcast %71 : vector<1x8xf32> to vector<16x8xf32>
    %73 = arith.addf %70, %72 : vector<16x8xf32>
    %74 = vector.extract_strided_slice %69 {offsets = [0, 0], sizes = [8, 72], strides = [1, 1]} : vector<16x72xf32> to vector<8x72xf32>
    %cst_36 = arith.constant dense<0.000000e+00> : vector<16x72xf32>
    %75 = tpu.matmul %73, %74, %cst_36 {dimension_numbers = #tpu.dot_dimension_numbers<[1], [0], [0], [1], [0, 0, 1, 1], [], []>} : vector<16x8xf32>, vector<8x72xf32>, vector<16x72xf32> -> vector<16x72xf32>
    %76 = vector.shape_cast %75 : vector<16x72xf32> to vector<2x8x72xf32>
    %77 = vector.extract_strided_slice %58 {offsets = [0, 8], sizes = [16, 8], strides = [1, 1]} : vector<16x16xf32> to vector<16x8xf32>
    %78 = vector.extract_strided_slice %8 {offsets = [1, 8], sizes = [1, 8], strides = [1, 1]} : vector<2x16xf32> to vector<1x8xf32>
    %79 = vector.broadcast %78 : vector<1x8xf32> to vector<16x8xf32>
    %80 = arith.addf %77, %79 : vector<16x8xf32>
    %81 = vector.extract_strided_slice %69 {offsets = [8, 0], sizes = [8, 72], strides = [1, 1]} : vector<16x72xf32> to vector<8x72xf32>
    %cst_37 = arith.constant dense<0.000000e+00> : vector<16x72xf32>
    %82 = tpu.matmul %80, %81, %cst_37 {dimension_numbers = #tpu.dot_dimension_numbers<[1], [0], [0], [1], [0, 0, 1, 1], [], []>} : vector<16x8xf32>, vector<8x72xf32>, vector<16x72xf32> -> vector<16x72xf32>
    %83 = vector.shape_cast %82 : vector<16x72xf32> to vector<2x8x72xf32>
    %84 = tpu.concatenate %76, %83 in 0 : vector<2x8x72xf32>, vector<2x8x72xf32> -> vector<4x8x72xf32>
    %85 = vector.extract_strided_slice %84 {offsets = [0, 0, 0], sizes = [4, 1, 72], strides = [1, 1, 1]} : vector<4x8x72xf32> to vector<4x1x72xf32>
    %86 = vector.extract_strided_slice %85 {offsets = [0, 0, 7], sizes = [4, 1, 65], strides = [1, 1, 1]} : vector<4x1x72xf32> to vector<4x1x65xf32>
    %87 = vector.extract_strided_slice %85 {offsets = [0, 0, 0], sizes = [4, 1, 7], strides = [1, 1, 1]} : vector<4x1x72xf32> to vector<4x1x7xf32>
    %88 = tpu.concatenate %86, %87 in 2 : vector<4x1x65xf32>, vector<4x1x7xf32> -> vector<4x1x72xf32>
    %89 = vector.extract_strided_slice %84 {offsets = [0, 1, 0], sizes = [4, 1, 72], strides = [1, 1, 1]} : vector<4x8x72xf32> to vector<4x1x72xf32>
    %90 = vector.extract_strided_slice %89 {offsets = [0, 0, 6], sizes = [4, 1, 66], strides = [1, 1, 1]} : vector<4x1x72xf32> to vector<4x1x66xf32>
    %91 = vector.extract_strided_slice %89 {offsets = [0, 0, 0], sizes = [4, 1, 6], strides = [1, 1, 1]} : vector<4x1x72xf32> to vector<4x1x6xf32>
    %92 = tpu.concatenate %90, %91 in 2 : vector<4x1x66xf32>, vector<4x1x6xf32> -> vector<4x1x72xf32>
    %93 = vector.extract_strided_slice %84 {offsets = [0, 2, 0], sizes = [4, 1, 72], strides = [1, 1, 1]} : vector<4x8x72xf32> to vector<4x1x72xf32>
    %94 = vector.extract_strided_slice %93 {offsets = [0, 0, 5], sizes = [4, 1, 67], strides = [1, 1, 1]} : vector<4x1x72xf32> to vector<4x1x67xf32>
    %95 = vector.extract_strided_slice %93 {offsets = [0, 0, 0], sizes = [4, 1, 5], strides = [1, 1, 1]} : vector<4x1x72xf32> to vector<4x1x5xf32>
    %96 = tpu.concatenate %94, %95 in 2 : vector<4x1x67xf32>, vector<4x1x5xf32> -> vector<4x1x72xf32>
    %97 = vector.extract_strided_slice %84 {offsets = [0, 3, 0], sizes = [4, 1, 72], strides = [1, 1, 1]} : vector<4x8x72xf32> to vector<4x1x72xf32>
    %98 = vector.extract_strided_slice %97 {offsets = [0, 0, 4], sizes = [4, 1, 68], strides = [1, 1, 1]} : vector<4x1x72xf32> to vector<4x1x68xf32>
    %99 = vector.extract_strided_slice %97 {offsets = [0, 0, 0], sizes = [4, 1, 4], strides = [1, 1, 1]} : vector<4x1x72xf32> to vector<4x1x4xf32>
    %100 = tpu.concatenate %98, %99 in 2 : vector<4x1x68xf32>, vector<4x1x4xf32> -> vector<4x1x72xf32>
    %101 = vector.extract_strided_slice %84 {offsets = [0, 4, 0], sizes = [4, 1, 72], strides = [1, 1, 1]} : vector<4x8x72xf32> to vector<4x1x72xf32>
    %102 = vector.extract_strided_slice %101 {offsets = [0, 0, 3], sizes = [4, 1, 69], strides = [1, 1, 1]} : vector<4x1x72xf32> to vector<4x1x69xf32>
    %103 = vector.extract_strided_slice %101 {offsets = [0, 0, 0], sizes = [4, 1, 3], strides = [1, 1, 1]} : vector<4x1x72xf32> to vector<4x1x3xf32>
    %104 = tpu.concatenate %102, %103 in 2 : vector<4x1x69xf32>, vector<4x1x3xf32> -> vector<4x1x72xf32>
    %105 = vector.extract_strided_slice %84 {offsets = [0, 5, 0], sizes = [4, 1, 72], strides = [1, 1, 1]} : vector<4x8x72xf32> to vector<4x1x72xf32>
    %106 = vector.extract_strided_slice %105 {offsets = [0, 0, 2], sizes = [4, 1, 70], strides = [1, 1, 1]} : vector<4x1x72xf32> to vector<4x1x70xf32>
    %107 = vector.extract_strided_slice %105 {offsets = [0, 0, 0], sizes = [4, 1, 2], strides = [1, 1, 1]} : vector<4x1x72xf32> to vector<4x1x2xf32>
    %108 = tpu.concatenate %106, %107 in 2 : vector<4x1x70xf32>, vector<4x1x2xf32> -> vector<4x1x72xf32>
    %109 = vector.extract_strided_slice %84 {offsets = [0, 6, 0], sizes = [4, 1, 72], strides = [1, 1, 1]} : vector<4x8x72xf32> to vector<4x1x72xf32>
    %110 = vector.extract_strided_slice %109 {offsets = [0, 0, 1], sizes = [4, 1, 71], strides = [1, 1, 1]} : vector<4x1x72xf32> to vector<4x1x71xf32>
    %111 = vector.extract_strided_slice %109 {offsets = [0, 0, 0], sizes = [4, 1, 1], strides = [1, 1, 1]} : vector<4x1x72xf32> to vector<4x1x1xf32>
    %112 = tpu.concatenate %110, %111 in 2 : vector<4x1x71xf32>, vector<4x1x1xf32> -> vector<4x1x72xf32>
    %113 = vector.extract_strided_slice %84 {offsets = [0, 7, 0], sizes = [4, 1, 72], strides = [1, 1, 1]} : vector<4x8x72xf32> to vector<4x1x72xf32>
    %114 = tpu.concatenate %88, %92, %96, %100, %104, %108, %112, %113 in 1 : vector<4x1x72xf32>, vector<4x1x72xf32>, vector<4x1x72xf32>, vector<4x1x72xf32>, vector<4x1x72xf32>, vector<4x1x72xf32>, vector<4x1x72xf32>, vector<4x1x72xf32> -> vector<4x8x72xf32>
    %115 = vector.extract_strided_slice %58 {offsets = [0, 0], sizes = [16, 8], strides = [1, 1]} : vector<16x16xf32> to vector<16x8xf32>
    %116 = vector.extract_strided_slice %63 {offsets = [0, 0], sizes = [16, 8], strides = [1, 1]} : vector<16x32xf32> to vector<16x8xf32>
    %117 = vector.shape_cast %116 : vector<16x8xf32> to vector<2x8x8xf32>
    %118 = vector.extract_strided_slice %63 {offsets = [0, 16], sizes = [16, 8], strides = [1, 1]} : vector<16x32xf32> to vector<16x8xf32>
    %119 = vector.shape_cast %118 : vector<16x8xf32> to vector<2x8x8xf32>
    %120 = vector.extract_strided_slice %67 {offsets = [0, 0], sizes = [1, 8], strides = [1, 1]} : vector<1x32xf32> to vector<1x8xf32>
    %121 = vector.extract_strided_slice %67 {offsets = [0, 16], sizes = [1, 8], strides = [1, 1]} : vector<1x32xf32> to vector<1x8xf32>
    %122 = vector.extract_strided_slice %8 {offsets = [0, 0], sizes = [1, 8], strides = [1, 1]} : vector<2x16xf32> to vector<1x8xf32>
    %123 = vector.broadcast %122 : vector<1x8xf32> to vector<16x8xf32>
    %124 = arith.addf %115, %123 : vector<16x8xf32>
    %125 = vector.shape_cast %124 : vector<16x8xf32> to vector<2x8x8xf32>
    "tpu.trace_start"() <{level = 10 : i32, message = "bsd,btd->bst"}> : () -> ()
    %cst_38 = arith.constant dense<0.000000e+00> : vector<2x8x8xf32>
    %126 = tpu.matmul %125, %117, %cst_38 {dimension_numbers = #tpu.dot_dimension_numbers<[2], [2], [1], [1], [0, 0, 0, 1, 1, 1], [0], [0]>} : vector<2x8x8xf32>, vector<2x8x8xf32>, vector<2x8x8xf32> -> vector<2x8x8xf32>
    "tpu.trace_stop"() : () -> ()
    %127 = vector.broadcast %120 : vector<1x8xf32> to vector<16x8xf32>
    %128 = arith.mulf %124, %127 : vector<16x8xf32>
    %cst_39 = arith.constant dense<0.000000e+00> : vector<16xf32>
    %129 = vector.multi_reduction <add>, %128, %cst_39 [1] : vector<16x8xf32> to vector<16xf32>
    %130 = vector.shape_cast %129 : vector<16xf32> to vector<16x1xf32>
    %131 = vector.shape_cast %130 : vector<16x1xf32> to vector<2x8x1xf32>
    %132 = vector.shape_cast %131 : vector<2x8x1xf32> to vector<2x8x1xf32>
    %133 = vector.broadcast %132 : vector<2x8x1xf32> to vector<2x8x64xf32>
    %134 = tpu.concatenate %133, %126 in 2 : vector<2x8x64xf32>, vector<2x8x8xf32> -> vector<2x8x72xf32>
    %135 = vector.extract_strided_slice %114 {offsets = [0, 0, 0], sizes = [2, 8, 72], strides = [1, 1, 1]} : vector<4x8x72xf32> to vector<2x8x72xf32>
    %136 = arith.addf %134, %135 : vector<2x8x72xf32>
    %cst_40 = arith.constant 0.353553385 : f32
    %137 = vector.broadcast %cst_40 : f32 to vector<2x8x72xf32>
    %138 = arith.mulf %136, %137 : vector<2x8x72xf32>
    %139 = vector.shape_cast %16 : vector<8x72xf32> to vector<1x8x72xf32>
    %140 = vector.broadcast %139 : vector<1x8x72xf32> to vector<2x8x72xf32>
    %141 = arith.addf %138, %140 : vector<2x8x72xf32>
    %cst_41 = arith.constant dense<0xFF800000> : vector<2x8xf32>
    %142 = vector.multi_reduction <maximumf>, %141, %cst_41 [2] : vector<2x8x72xf32> to vector<2x8xf32>
    %143 = vector.shape_cast %142 : vector<2x8xf32> to vector<2x8x1xf32>
    %144 = vector.broadcast %143 : vector<2x8x1xf32> to vector<2x8x72xf32>
    %145 = arith.subf %141, %144 : vector<2x8x72xf32>
    %146 = math.exp %145 : vector<2x8x72xf32>
    %cst_42 = arith.constant dense<0.000000e+00> : vector<2x8xf32>
    %147 = vector.multi_reduction <add>, %146, %cst_42 [2] : vector<2x8x72xf32> to vector<2x8xf32>
    %148 = vector.shape_cast %147 : vector<2x8xf32> to vector<2x8x1xf32>
    %149 = vector.broadcast %148 : vector<2x8x1xf32> to vector<2x8x72xf32>
    %150 = arith.divf %146, %149 : vector<2x8x72xf32>
    %151 = vector.extract_strided_slice %150 {offsets = [0, 0, 0], sizes = [2, 8, 64], strides = [1, 1, 1]} : vector<2x8x72xf32> to vector<2x8x64xf32>
    %cst_43 = arith.constant dense<0.000000e+00> : vector<2x8xf32>
    %152 = vector.multi_reduction <add>, %151, %cst_43 [2] : vector<2x8x64xf32> to vector<2x8xf32>
    %153 = vector.shape_cast %152 : vector<2x8xf32> to vector<2x8x1xf32>
    %154 = vector.shape_cast %121 : vector<1x8xf32> to vector<1x1x8xf32>
    %155 = vector.broadcast %153 : vector<2x8x1xf32> to vector<2x8x8xf32>
    %156 = vector.broadcast %154 : vector<1x1x8xf32> to vector<2x8x8xf32>
    %157 = arith.mulf %155, %156 : vector<2x8x8xf32>
    %158 = vector.extract_strided_slice %150 {offsets = [0, 0, 64], sizes = [2, 8, 8], strides = [1, 1, 1]} : vector<2x8x72xf32> to vector<2x8x8xf32>
    "tpu.trace_start"() <{level = 10 : i32, message = "bst,btd->bsd"}> : () -> ()
    %cst_44 = arith.constant dense<0.000000e+00> : vector<2x8x8xf32>
    %159 = tpu.matmul %158, %119, %cst_44 {dimension_numbers = #tpu.dot_dimension_numbers<[2], [1], [1], [2], [0, 0, 0, 1, 1, 2], [0], [0]>} : vector<2x8x8xf32>, vector<2x8x8xf32>, vector<2x8x8xf32> -> vector<2x8x8xf32>
    "tpu.trace_stop"() : () -> ()
    %160 = arith.addf %157, %159 : vector<2x8x8xf32>
    %161 = vector.extract_strided_slice %58 {offsets = [0, 8], sizes = [16, 8], strides = [1, 1]} : vector<16x16xf32> to vector<16x8xf32>
    %162 = vector.extract_strided_slice %63 {offsets = [0, 8], sizes = [16, 8], strides = [1, 1]} : vector<16x32xf32> to vector<16x8xf32>
    %163 = vector.shape_cast %162 : vector<16x8xf32> to vector<2x8x8xf32>
    %164 = vector.extract_strided_slice %63 {offsets = [0, 24], sizes = [16, 8], strides = [1, 1]} : vector<16x32xf32> to vector<16x8xf32>
    %165 = vector.shape_cast %164 : vector<16x8xf32> to vector<2x8x8xf32>
    %166 = vector.extract_strided_slice %67 {offsets = [0, 8], sizes = [1, 8], strides = [1, 1]} : vector<1x32xf32> to vector<1x8xf32>
    %167 = vector.extract_strided_slice %67 {offsets = [0, 24], sizes = [1, 8], strides = [1, 1]} : vector<1x32xf32> to vector<1x8xf32>
    %168 = vector.extract_strided_slice %8 {offsets = [0, 8], sizes = [1, 8], strides = [1, 1]} : vector<2x16xf32> to vector<1x8xf32>
    %169 = vector.broadcast %168 : vector<1x8xf32> to vector<16x8xf32>
    %170 = arith.addf %161, %169 : vector<16x8xf32>
    %171 = vector.shape_cast %170 : vector<16x8xf32> to vector<2x8x8xf32>
    "tpu.trace_start"() <{level = 10 : i32, message = "bsd,btd->bst"}> : () -> ()
    %cst_45 = arith.constant dense<0.000000e+00> : vector<2x8x8xf32>
    %172 = tpu.matmul %171, %163, %cst_45 {dimension_numbers = #tpu.dot_dimension_numbers<[2], [2], [1], [1], [0, 0, 0, 1, 1, 1], [0], [0]>} : vector<2x8x8xf32>, vector<2x8x8xf32>, vector<2x8x8xf32> -> vector<2x8x8xf32>
    "tpu.trace_stop"() : () -> ()
    %173 = vector.broadcast %166 : vector<1x8xf32> to vector<16x8xf32>
    %174 = arith.mulf %170, %173 : vector<16x8xf32>
    %cst_46 = arith.constant dense<0.000000e+00> : vector<16xf32>
    %175 = vector.multi_reduction <add>, %174, %cst_46 [1] : vector<16x8xf32> to vector<16xf32>
    %176 = vector.shape_cast %175 : vector<16xf32> to vector<16x1xf32>
    %177 = vector.shape_cast %176 : vector<16x1xf32> to vector<2x8x1xf32>
    %178 = vector.shape_cast %177 : vector<2x8x1xf32> to vector<2x8x1xf32>
    %179 = vector.broadcast %178 : vector<2x8x1xf32> to vector<2x8x64xf32>
    %180 = tpu.concatenate %179, %172 in 2 : vector<2x8x64xf32>, vector<2x8x8xf32> -> vector<2x8x72xf32>
    %181 = vector.extract_strided_slice %114 {offsets = [2, 0, 0], sizes = [2, 8, 72], strides = [1, 1, 1]} : vector<4x8x72xf32> to vector<2x8x72xf32>
    %182 = arith.addf %180, %181 : vector<2x8x72xf32>
    %cst_47 = arith.constant 0.353553385 : f32
    %183 = vector.broadcast %cst_47 : f32 to vector<2x8x72xf32>
    %184 = arith.mulf %182, %183 : vector<2x8x72xf32>
    %185 = vector.shape_cast %16 : vector<8x72xf32> to vector<1x8x72xf32>
    %186 = vector.broadcast %185 : vector<1x8x72xf32> to vector<2x8x72xf32>
    %187 = arith.addf %184, %186 : vector<2x8x72xf32>
    %cst_48 = arith.constant dense<0xFF800000> : vector<2x8xf32>
    %188 = vector.multi_reduction <maximumf>, %187, %cst_48 [2] : vector<2x8x72xf32> to vector<2x8xf32>
    %189 = vector.shape_cast %188 : vector<2x8xf32> to vector<2x8x1xf32>
    %190 = vector.broadcast %189 : vector<2x8x1xf32> to vector<2x8x72xf32>
    %191 = arith.subf %187, %190 : vector<2x8x72xf32>
    %192 = math.exp %191 : vector<2x8x72xf32>
    %cst_49 = arith.constant dense<0.000000e+00> : vector<2x8xf32>
    %193 = vector.multi_reduction <add>, %192, %cst_49 [2] : vector<2x8x72xf32> to vector<2x8xf32>
    %194 = vector.shape_cast %193 : vector<2x8xf32> to vector<2x8x1xf32>
    %195 = vector.broadcast %194 : vector<2x8x1xf32> to vector<2x8x72xf32>
    %196 = arith.divf %192, %195 : vector<2x8x72xf32>
    %197 = vector.extract_strided_slice %196 {offsets = [0, 0, 0], sizes = [2, 8, 64], strides = [1, 1, 1]} : vector<2x8x72xf32> to vector<2x8x64xf32>
    %cst_50 = arith.constant dense<0.000000e+00> : vector<2x8xf32>
    %198 = vector.multi_reduction <add>, %197, %cst_50 [2] : vector<2x8x64xf32> to vector<2x8xf32>
    %199 = vector.shape_cast %198 : vector<2x8xf32> to vector<2x8x1xf32>
    %200 = vector.shape_cast %167 : vector<1x8xf32> to vector<1x1x8xf32>
    %201 = vector.broadcast %199 : vector<2x8x1xf32> to vector<2x8x8xf32>
    %202 = vector.broadcast %200 : vector<1x1x8xf32> to vector<2x8x8xf32>
    %203 = arith.mulf %201, %202 : vector<2x8x8xf32>
    %204 = vector.extract_strided_slice %196 {offsets = [0, 0, 64], sizes = [2, 8, 8], strides = [1, 1, 1]} : vector<2x8x72xf32> to vector<2x8x8xf32>
    "tpu.trace_start"() <{level = 10 : i32, message = "bst,btd->bsd"}> : () -> ()
    %cst_51 = arith.constant dense<0.000000e+00> : vector<2x8x8xf32>
    %205 = tpu.matmul %204, %165, %cst_51 {dimension_numbers = #tpu.dot_dimension_numbers<[2], [1], [1], [2], [0, 0, 0, 1, 1, 2], [0], [0]>} : vector<2x8x8xf32>, vector<2x8x8xf32>, vector<2x8x8xf32> -> vector<2x8x8xf32>
    "tpu.trace_stop"() : () -> ()
    %206 = arith.addf %203, %205 : vector<2x8x8xf32>
    %207 = tpu.concatenate %160, %206 in 2 : vector<2x8x8xf32>, vector<2x8x8xf32> -> vector<2x8x16xf32>
    %208 = vector.shape_cast %207 : vector<2x8x16xf32> to vector<16x16xf32>
    %c0_52 = arith.constant 0 : index
    %c0_53 = arith.constant 0 : index
    %c0_54 = arith.constant 0 : index
    %209 = vector.load %arg6[%c0_52, %c0_53, %c0_54] : memref<2x16x512xf32, #tpu.memory_space<vmem>>, vector<1x16x512xf32>
    %210 = vector.shape_cast %209 : vector<1x16x512xf32> to vector<16x512xf32>
    %cst_55 = arith.constant dense<0.000000e+00> : vector<16x512xf32>
    %211 = tpu.matmul %208, %210, %cst_55 {dimension_numbers = #tpu.dot_dimension_numbers<[1], [0], [0], [1], [0, 0, 1, 1], [], []>} : vector<16x16xf32>, vector<16x512xf32>, vector<16x512xf32> -> vector<16x512xf32>
    %212 = vector.broadcast %23 : vector<1x512xf32> to vector<16x512xf32>
    %213 = arith.addf %211, %212 : vector<16x512xf32>
    %cst_56 = arith.constant 0.000000e+00 : f32
    %214 = vector.broadcast %cst_56 : f32 to vector<16x512xf32>
    %215 = arith.maximumf %213, %214 : vector<16x512xf32>
    %216 = arith.addf %7, %215 : vector<16x512xf32>
    %cst_57 = arith.constant dense<0.000000e+00> : vector<16xf32>
    %217 = vector.multi_reduction <add>, %216, %cst_57 [1] : vector<16x512xf32> to vector<16xf32>
    %218 = vector.shape_cast %217 : vector<16xf32> to vector<16x1xf32>
    %cst_58 = arith.constant 5.120000e+02 : f32
    %219 = vector.broadcast %cst_58 : f32 to vector<16x1xf32>
    %220 = arith.divf %218, %219 : vector<16x1xf32>
    %221 = vector.broadcast %220 : vector<16x1xf32> to vector<16x512xf32>
    %222 = arith.subf %216, %221 : vector<16x512xf32>
    %223 = vector.broadcast %220 : vector<16x1xf32> to vector<16x512xf32>
    %224 = arith.subf %216, %223 : vector<16x512xf32>
    %225 = arith.mulf %222, %224 : vector<16x512xf32>
    %cst_59 = arith.constant dense<0.000000e+00> : vector<16xf32>
    %226 = vector.multi_reduction <add>, %225, %cst_59 [1] : vector<16x512xf32> to vector<16xf32>
    %227 = vector.shape_cast %226 : vector<16xf32> to vector<16x1xf32>
    %cst_60 = arith.constant 5.120000e+02 : f32
    %228 = vector.broadcast %cst_60 : f32 to vector<16x1xf32>
    %229 = arith.divf %227, %228 : vector<16x1xf32>
    %230 = vector.broadcast %220 : vector<16x1xf32> to vector<16x512xf32>
    %231 = arith.subf %216, %230 : vector<16x512xf32>
    %cst_61 = arith.constant 9.99999974E-6 : f32
    %232 = vector.broadcast %cst_61 : f32 to vector<16x1xf32>
    %233 = arith.addf %229, %232 : vector<16x1xf32>
    %234 = math.rsqrt %233 : vector<16x1xf32>
    %235 = vector.broadcast %234 : vector<16x1xf32> to vector<16x512xf32>
    %236 = arith.mulf %231, %235 : vector<16x512xf32>
    %237 = vector.broadcast %21 : vector<1x512xf32> to vector<16x512xf32>
    %238 = arith.mulf %236, %237 : vector<16x512xf32>
    %239 = vector.broadcast %22 : vector<1x512xf32> to vector<16x512xf32>
    %240 = arith.addf %238, %239 : vector<16x512xf32>
    %241 = arith.truncf %240 : vector<16x512xf32> to vector<16x512xbf16>
    %c0_62 = arith.constant 0 : index
    %c0_63 = arith.constant 0 : index
    %c0_64 = arith.constant 0 : index
    %242 = vector.load %arg7[%c0_62, %c0_63, %c0_64] : memref<2x512x512xbf16, #tpu.memory_space<vmem>>, vector<1x512x512xbf16>
    %243 = vector.shape_cast %242 : vector<1x512x512xbf16> to vector<512x512xbf16>
    %cst_65 = arith.constant dense<0.000000e+00> : vector<16x512xf32>
    %244 = tpu.matmul %241, %243, %cst_65 {dimension_numbers = #tpu.dot_dimension_numbers<[1], [0], [0], [1], [0, 0, 1, 1], [], []>} : vector<16x512xbf16>, vector<512x512xbf16>, vector<16x512xf32> -> vector<16x512xf32>
    %245 = vector.broadcast %24 : vector<1x512xf32> to vector<16x512xf32>
    %246 = arith.addf %244, %245 : vector<16x512xf32>
    %cst_66 = arith.constant 0.000000e+00 : f32
    %247 = vector.broadcast %cst_66 : f32 to vector<16x512xf32>
    %248 = arith.maximumf %246, %247 : vector<16x512xf32>
    %249 = arith.truncf %248 : vector<16x512xf32> to vector<16x512xbf16>
    %c0_67 = arith.constant 0 : index
    %c0_68 = arith.constant 0 : index
    %c0_69 = arith.constant 0 : index
    %250 = vector.load %arg8[%c0_67, %c0_68, %c0_69] : memref<2x512x512xbf16, #tpu.memory_space<vmem>>, vector<1x512x512xbf16>
    %251 = vector.shape_cast %250 : vector<1x512x512xbf16> to vector<512x512xbf16>
    %cst_70 = arith.constant dense<0.000000e+00> : vector<16x512xf32>
    %252 = tpu.matmul %249, %251, %cst_70 {dimension_numbers = #tpu.dot_dimension_numbers<[1], [0], [0], [1], [0, 0, 1, 1], [], []>} : vector<16x512xbf16>, vector<512x512xbf16>, vector<16x512xf32> -> vector<16x512xf32>
    %253 = vector.broadcast %25 : vector<1x512xf32> to vector<16x512xf32>
    %254 = arith.addf %252, %253 : vector<16x512xf32>
    %cst_71 = arith.constant 0.000000e+00 : f32
    %255 = vector.broadcast %cst_71 : f32 to vector<16x512xf32>
    %256 = arith.maximumf %254, %255 : vector<16x512xf32>
    %257 = arith.addf %216, %256 : vector<16x512xf32>
    %c1 = arith.constant 1 : index
    %c0_72 = arith.constant 0 : index
    %c0_73 = arith.constant 0 : index
    %258 = vector.load %arg10[%c1, %c0_72, %c0_73] : memref<2x7x512xf32, #tpu.memory_space<vmem>>, vector<1x7x512xf32>
    %259 = vector.shape_cast %258 : vector<1x7x512xf32> to vector<7x512xf32>
    %260 = vector.extract_strided_slice %259 {offsets = [0, 0], sizes = [1, 512], strides = [1, 1]} : vector<7x512xf32> to vector<1x512xf32>
    %261 = vector.extract_strided_slice %259 {offsets = [1, 0], sizes = [1, 512], strides = [1, 1]} : vector<7x512xf32> to vector<1x512xf32>
    %262 = vector.extract_strided_slice %259 {offsets = [2, 0], sizes = [1, 512], strides = [1, 1]} : vector<7x512xf32> to vector<1x512xf32>
    %263 = vector.extract_strided_slice %259 {offsets = [3, 0], sizes = [1, 512], strides = [1, 1]} : vector<7x512xf32> to vector<1x512xf32>
    %264 = vector.extract_strided_slice %259 {offsets = [4, 0], sizes = [1, 512], strides = [1, 1]} : vector<7x512xf32> to vector<1x512xf32>
    %265 = vector.extract_strided_slice %259 {offsets = [5, 0], sizes = [1, 512], strides = [1, 1]} : vector<7x512xf32> to vector<1x512xf32>
    %266 = vector.extract_strided_slice %259 {offsets = [6, 0], sizes = [1, 512], strides = [1, 1]} : vector<7x512xf32> to vector<1x512xf32>
    %c1_74 = arith.constant 1 : index
    %c0_75 = arith.constant 0 : index
    %c0_76 = arith.constant 0 : index
    %267 = vector.load %arg9[%c1_74, %c0_75, %c0_76] : memref<2x1x48xf32, #tpu.memory_space<vmem>>, vector<1x1x48xf32>
    %268 = vector.shape_cast %267 : vector<1x1x48xf32> to vector<1x48xf32>
    %269 = vector.extract_strided_slice %268 {offsets = [0, 0], sizes = [1, 16], strides = [1, 1]} : vector<1x48xf32> to vector<1x16xf32>
    %270 = vector.extract_strided_slice %268 {offsets = [0, 16], sizes = [1, 32], strides = [1, 1]} : vector<1x48xf32> to vector<1x32xf32>
    %cst_77 = arith.constant dense<0.000000e+00> : vector<16xf32>
    %271 = vector.multi_reduction <add>, %257, %cst_77 [1] : vector<16x512xf32> to vector<16xf32>
    %272 = vector.shape_cast %271 : vector<16xf32> to vector<16x1xf32>
    %cst_78 = arith.constant 5.120000e+02 : f32
    %273 = vector.broadcast %cst_78 : f32 to vector<16x1xf32>
    %274 = arith.divf %272, %273 : vector<16x1xf32>
    %275 = vector.broadcast %274 : vector<16x1xf32> to vector<16x512xf32>
    %276 = arith.subf %257, %275 : vector<16x512xf32>
    %277 = vector.broadcast %274 : vector<16x1xf32> to vector<16x512xf32>
    %278 = arith.subf %257, %277 : vector<16x512xf32>
    %279 = arith.mulf %276, %278 : vector<16x512xf32>
    %cst_79 = arith.constant dense<0.000000e+00> : vector<16xf32>
    %280 = vector.multi_reduction <add>, %279, %cst_79 [1] : vector<16x512xf32> to vector<16xf32>
    %281 = vector.shape_cast %280 : vector<16xf32> to vector<16x1xf32>
    %cst_80 = arith.constant 5.120000e+02 : f32
    %282 = vector.broadcast %cst_80 : f32 to vector<16x1xf32>
    %283 = arith.divf %281, %282 : vector<16x1xf32>
    %284 = vector.broadcast %274 : vector<16x1xf32> to vector<16x512xf32>
    %285 = arith.subf %257, %284 : vector<16x512xf32>
    %cst_81 = arith.constant 9.99999974E-6 : f32
    %286 = vector.broadcast %cst_81 : f32 to vector<16x1xf32>
    %287 = arith.addf %283, %286 : vector<16x1xf32>
    %288 = math.rsqrt %287 : vector<16x1xf32>
    %289 = vector.broadcast %288 : vector<16x1xf32> to vector<16x512xf32>
    %290 = arith.mulf %285, %289 : vector<16x512xf32>
    %291 = vector.broadcast %260 : vector<1x512xf32> to vector<16x512xf32>
    %292 = arith.mulf %290, %291 : vector<16x512xf32>
    %293 = vector.broadcast %261 : vector<1x512xf32> to vector<16x512xf32>
    %294 = arith.addf %292, %293 : vector<16x512xf32>
    %c1_82 = arith.constant 1 : index
    %c0_83 = arith.constant 0 : index
    %c0_84 = arith.constant 0 : index
    %295 = vector.load %arg4[%c1_82, %c0_83, %c0_84] : memref<2x512x16xf32, #tpu.memory_space<vmem>>, vector<1x512x16xf32>
    %296 = vector.shape_cast %295 : vector<1x512x16xf32> to vector<512x16xf32>
    %cst_85 = arith.constant dense<0.000000e+00> : vector<16x16xf32>
    %297 = tpu.matmul %257, %296, %cst_85 {dimension_numbers = #tpu.dot_dimension_numbers<[1], [0], [0], [1], [0, 0, 1, 1], [], []>} : vector<16x512xf32>, vector<512x16xf32>, vector<16x16xf32> -> vector<16x16xf32>
    %298 = vector.broadcast %269 : vector<1x16xf32> to vector<16x16xf32>
    %299 = arith.addf %297, %298 : vector<16x16xf32>
    %c1_86 = arith.constant 1 : index
    %c0_87 = arith.constant 0 : index
    %c0_88 = arith.constant 0 : index
    %300 = vector.load %arg5[%c1_86, %c0_87, %c0_88] : memref<2x512x32xf32, #tpu.memory_space<vmem>>, vector<1x512x32xf32>
    %301 = vector.shape_cast %300 : vector<1x512x32xf32> to vector<512x32xf32>
    %cst_89 = arith.constant dense<0.000000e+00> : vector<16x32xf32>
    %302 = tpu.matmul %294, %301, %cst_89 {dimension_numbers = #tpu.dot_dimension_numbers<[1], [0], [0], [1], [0, 0, 1, 1], [], []>} : vector<16x512xf32>, vector<512x32xf32>, vector<16x32xf32> -> vector<16x32xf32>
    %303 = vector.broadcast %270 : vector<1x32xf32> to vector<16x32xf32>
    %304 = arith.addf %302, %303 : vector<16x32xf32>
    %c1_90 = arith.constant 1 : index
    %c0_91 = arith.constant 0 : index
    %c0_92 = arith.constant 0 : index
    %305 = vector.load %arg5[%c1_90, %c0_91, %c0_92] : memref<2x512x32xf32, #tpu.memory_space<vmem>>, vector<1x512x32xf32>
    %306 = vector.shape_cast %305 : vector<1x512x32xf32> to vector<512x32xf32>
    %cst_93 = arith.constant dense<0.000000e+00> : vector<1x32xf32>
    %307 = tpu.matmul %261, %306, %cst_93 {dimension_numbers = #tpu.dot_dimension_numbers<[1], [0], [0], [1], [0, 0, 1, 1], [], []>} : vector<1x512xf32>, vector<512x32xf32>, vector<1x32xf32> -> vector<1x32xf32>
    %308 = arith.addf %307, %270 : vector<1x32xf32>
    %c1_94 = arith.constant 1 : index
    %c0_95 = arith.constant 0 : index
    %c0_96 = arith.constant 0 : index
    %309 = vector.load %arg1[%c1_94, %c0_95, %c0_96] : memref<2x16x72xf32, #tpu.memory_space<vmem>>, vector<1x16x72xf32>
    %310 = vector.shape_cast %309 : vector<1x16x72xf32> to vector<16x72xf32>
    %311 = vector.extract_strided_slice %299 {offsets = [0, 0], sizes = [16, 8], strides = [1, 1]} : vector<16x16xf32> to vector<16x8xf32>
    %312 = vector.extract_strided_slice %8 {offsets = [1, 0], sizes = [1, 8], strides = [1, 1]} : vector<2x16xf32> to vector<1x8xf32>
    %313 = vector.broadcast %312 : vector<1x8xf32> to vector<16x8xf32>
    %314 = arith.addf %311, %313 : vector<16x8xf32>
    %315 = vector.extract_strided_slice %310 {offsets = [0, 0], sizes = [8, 72], strides = [1, 1]} : vector<16x72xf32> to vector<8x72xf32>
    %cst_97 = arith.constant dense<0.000000e+00> : vector<16x72xf32>
    %316 = tpu.matmul %314, %315, %cst_97 {dimension_numbers = #tpu.dot_dimension_numbers<[1], [0], [0], [1], [0, 0, 1, 1], [], []>} : vector<16x8xf32>, vector<8x72xf32>, vector<16x72xf32> -> vector<16x72xf32>
    %317 = vector.shape_cast %316 : vector<16x72xf32> to vector<2x8x72xf32>
    %318 = vector.extract_strided_slice %299 {offsets = [0, 8], sizes = [16, 8], strides = [1, 1]} : vector<16x16xf32> to vector<16x8xf32>
    %319 = vector.extract_strided_slice %8 {offsets = [1, 8], sizes = [1, 8], strides = [1, 1]} : vector<2x16xf32> to vector<1x8xf32>
    %320 = vector.broadcast %319 : vector<1x8xf32> to vector<16x8xf32>
    %321 = arith.addf %318, %320 : vector<16x8xf32>
    %322 = vector.extract_strided_slice %310 {offsets = [8, 0], sizes = [8, 72], strides = [1, 1]} : vector<16x72xf32> to vector<8x72xf32>
    %cst_98 = arith.constant dense<0.000000e+00> : vector<16x72xf32>
    %323 = tpu.matmul %321, %322, %cst_98 {dimension_numbers = #tpu.dot_dimension_numbers<[1], [0], [0], [1], [0, 0, 1, 1], [], []>} : vector<16x8xf32>, vector<8x72xf32>, vector<16x72xf32> -> vector<16x72xf32>
    %324 = vector.shape_cast %323 : vector<16x72xf32> to vector<2x8x72xf32>
    %325 = tpu.concatenate %317, %324 in 0 : vector<2x8x72xf32>, vector<2x8x72xf32> -> vector<4x8x72xf32>
    %326 = vector.extract_strided_slice %325 {offsets = [0, 0, 0], sizes = [4, 1, 72], strides = [1, 1, 1]} : vector<4x8x72xf32> to vector<4x1x72xf32>
    %327 = vector.extract_strided_slice %326 {offsets = [0, 0, 7], sizes = [4, 1, 65], strides = [1, 1, 1]} : vector<4x1x72xf32> to vector<4x1x65xf32>
    %328 = vector.extract_strided_slice %326 {offsets = [0, 0, 0], sizes = [4, 1, 7], strides = [1, 1, 1]} : vector<4x1x72xf32> to vector<4x1x7xf32>
    %329 = tpu.concatenate %327, %328 in 2 : vector<4x1x65xf32>, vector<4x1x7xf32> -> vector<4x1x72xf32>
    %330 = vector.extract_strided_slice %325 {offsets = [0, 1, 0], sizes = [4, 1, 72], strides = [1, 1, 1]} : vector<4x8x72xf32> to vector<4x1x72xf32>
    %331 = vector.extract_strided_slice %330 {offsets = [0, 0, 6], sizes = [4, 1, 66], strides = [1, 1, 1]} : vector<4x1x72xf32> to vector<4x1x66xf32>
    %332 = vector.extract_strided_slice %330 {offsets = [0, 0, 0], sizes = [4, 1, 6], strides = [1, 1, 1]} : vector<4x1x72xf32> to vector<4x1x6xf32>
    %333 = tpu.concatenate %331, %332 in 2 : vector<4x1x66xf32>, vector<4x1x6xf32> -> vector<4x1x72xf32>
    %334 = vector.extract_strided_slice %325 {offsets = [0, 2, 0], sizes = [4, 1, 72], strides = [1, 1, 1]} : vector<4x8x72xf32> to vector<4x1x72xf32>
    %335 = vector.extract_strided_slice %334 {offsets = [0, 0, 5], sizes = [4, 1, 67], strides = [1, 1, 1]} : vector<4x1x72xf32> to vector<4x1x67xf32>
    %336 = vector.extract_strided_slice %334 {offsets = [0, 0, 0], sizes = [4, 1, 5], strides = [1, 1, 1]} : vector<4x1x72xf32> to vector<4x1x5xf32>
    %337 = tpu.concatenate %335, %336 in 2 : vector<4x1x67xf32>, vector<4x1x5xf32> -> vector<4x1x72xf32>
    %338 = vector.extract_strided_slice %325 {offsets = [0, 3, 0], sizes = [4, 1, 72], strides = [1, 1, 1]} : vector<4x8x72xf32> to vector<4x1x72xf32>
    %339 = vector.extract_strided_slice %338 {offsets = [0, 0, 4], sizes = [4, 1, 68], strides = [1, 1, 1]} : vector<4x1x72xf32> to vector<4x1x68xf32>
    %340 = vector.extract_strided_slice %338 {offsets = [0, 0, 0], sizes = [4, 1, 4], strides = [1, 1, 1]} : vector<4x1x72xf32> to vector<4x1x4xf32>
    %341 = tpu.concatenate %339, %340 in 2 : vector<4x1x68xf32>, vector<4x1x4xf32> -> vector<4x1x72xf32>
    %342 = vector.extract_strided_slice %325 {offsets = [0, 4, 0], sizes = [4, 1, 72], strides = [1, 1, 1]} : vector<4x8x72xf32> to vector<4x1x72xf32>
    %343 = vector.extract_strided_slice %342 {offsets = [0, 0, 3], sizes = [4, 1, 69], strides = [1, 1, 1]} : vector<4x1x72xf32> to vector<4x1x69xf32>
    %344 = vector.extract_strided_slice %342 {offsets = [0, 0, 0], sizes = [4, 1, 3], strides = [1, 1, 1]} : vector<4x1x72xf32> to vector<4x1x3xf32>
    %345 = tpu.concatenate %343, %344 in 2 : vector<4x1x69xf32>, vector<4x1x3xf32> -> vector<4x1x72xf32>
    %346 = vector.extract_strided_slice %325 {offsets = [0, 5, 0], sizes = [4, 1, 72], strides = [1, 1, 1]} : vector<4x8x72xf32> to vector<4x1x72xf32>
    %347 = vector.extract_strided_slice %346 {offsets = [0, 0, 2], sizes = [4, 1, 70], strides = [1, 1, 1]} : vector<4x1x72xf32> to vector<4x1x70xf32>
    %348 = vector.extract_strided_slice %346 {offsets = [0, 0, 0], sizes = [4, 1, 2], strides = [1, 1, 1]} : vector<4x1x72xf32> to vector<4x1x2xf32>
    %349 = tpu.concatenate %347, %348 in 2 : vector<4x1x70xf32>, vector<4x1x2xf32> -> vector<4x1x72xf32>
    %350 = vector.extract_strided_slice %325 {offsets = [0, 6, 0], sizes = [4, 1, 72], strides = [1, 1, 1]} : vector<4x8x72xf32> to vector<4x1x72xf32>
    %351 = vector.extract_strided_slice %350 {offsets = [0, 0, 1], sizes = [4, 1, 71], strides = [1, 1, 1]} : vector<4x1x72xf32> to vector<4x1x71xf32>
    %352 = vector.extract_strided_slice %350 {offsets = [0, 0, 0], sizes = [4, 1, 1], strides = [1, 1, 1]} : vector<4x1x72xf32> to vector<4x1x1xf32>
    %353 = tpu.concatenate %351, %352 in 2 : vector<4x1x71xf32>, vector<4x1x1xf32> -> vector<4x1x72xf32>
    %354 = vector.extract_strided_slice %325 {offsets = [0, 7, 0], sizes = [4, 1, 72], strides = [1, 1, 1]} : vector<4x8x72xf32> to vector<4x1x72xf32>
    %355 = tpu.concatenate %329, %333, %337, %341, %345, %349, %353, %354 in 1 : vector<4x1x72xf32>, vector<4x1x72xf32>, vector<4x1x72xf32>, vector<4x1x72xf32>, vector<4x1x72xf32>, vector<4x1x72xf32>, vector<4x1x72xf32>, vector<4x1x72xf32> -> vector<4x8x72xf32>
    %356 = vector.extract_strided_slice %299 {offsets = [0, 0], sizes = [16, 8], strides = [1, 1]} : vector<16x16xf32> to vector<16x8xf32>
    %357 = vector.extract_strided_slice %304 {offsets = [0, 0], sizes = [16, 8], strides = [1, 1]} : vector<16x32xf32> to vector<16x8xf32>
    %358 = vector.shape_cast %357 : vector<16x8xf32> to vector<2x8x8xf32>
    %359 = vector.extract_strided_slice %304 {offsets = [0, 16], sizes = [16, 8], strides = [1, 1]} : vector<16x32xf32> to vector<16x8xf32>
    %360 = vector.shape_cast %359 : vector<16x8xf32> to vector<2x8x8xf32>
    %361 = vector.extract_strided_slice %308 {offsets = [0, 0], sizes = [1, 8], strides = [1, 1]} : vector<1x32xf32> to vector<1x8xf32>
    %362 = vector.extract_strided_slice %308 {offsets = [0, 16], sizes = [1, 8], strides = [1, 1]} : vector<1x32xf32> to vector<1x8xf32>
    %363 = vector.extract_strided_slice %8 {offsets = [0, 0], sizes = [1, 8], strides = [1, 1]} : vector<2x16xf32> to vector<1x8xf32>
    %364 = vector.broadcast %363 : vector<1x8xf32> to vector<16x8xf32>
    %365 = arith.addf %356, %364 : vector<16x8xf32>
    %366 = vector.shape_cast %365 : vector<16x8xf32> to vector<2x8x8xf32>
    "tpu.trace_start"() <{level = 10 : i32, message = "bsd,btd->bst"}> : () -> ()
    %cst_99 = arith.constant dense<0.000000e+00> : vector<2x8x8xf32>
    %367 = tpu.matmul %366, %358, %cst_99 {dimension_numbers = #tpu.dot_dimension_numbers<[2], [2], [1], [1], [0, 0, 0, 1, 1, 1], [0], [0]>} : vector<2x8x8xf32>, vector<2x8x8xf32>, vector<2x8x8xf32> -> vector<2x8x8xf32>
    "tpu.trace_stop"() : () -> ()
    %368 = vector.broadcast %361 : vector<1x8xf32> to vector<16x8xf32>
    %369 = arith.mulf %365, %368 : vector<16x8xf32>
    %cst_100 = arith.constant dense<0.000000e+00> : vector<16xf32>
    %370 = vector.multi_reduction <add>, %369, %cst_100 [1] : vector<16x8xf32> to vector<16xf32>
    %371 = vector.shape_cast %370 : vector<16xf32> to vector<16x1xf32>
    %372 = vector.shape_cast %371 : vector<16x1xf32> to vector<2x8x1xf32>
    %373 = vector.shape_cast %372 : vector<2x8x1xf32> to vector<2x8x1xf32>
    %374 = vector.broadcast %373 : vector<2x8x1xf32> to vector<2x8x64xf32>
    %375 = tpu.concatenate %374, %367 in 2 : vector<2x8x64xf32>, vector<2x8x8xf32> -> vector<2x8x72xf32>
    %376 = vector.extract_strided_slice %355 {offsets = [0, 0, 0], sizes = [2, 8, 72], strides = [1, 1, 1]} : vector<4x8x72xf32> to vector<2x8x72xf32>
    %377 = arith.addf %375, %376 : vector<2x8x72xf32>
    %cst_101 = arith.constant 0.353553385 : f32
    %378 = vector.broadcast %cst_101 : f32 to vector<2x8x72xf32>
    %379 = arith.mulf %377, %378 : vector<2x8x72xf32>
    %380 = vector.shape_cast %16 : vector<8x72xf32> to vector<1x8x72xf32>
    %381 = vector.broadcast %380 : vector<1x8x72xf32> to vector<2x8x72xf32>
    %382 = arith.addf %379, %381 : vector<2x8x72xf32>
    %cst_102 = arith.constant dense<0xFF800000> : vector<2x8xf32>
    %383 = vector.multi_reduction <maximumf>, %382, %cst_102 [2] : vector<2x8x72xf32> to vector<2x8xf32>
    %384 = vector.shape_cast %383 : vector<2x8xf32> to vector<2x8x1xf32>
    %385 = vector.broadcast %384 : vector<2x8x1xf32> to vector<2x8x72xf32>
    %386 = arith.subf %382, %385 : vector<2x8x72xf32>
    %387 = math.exp %386 : vector<2x8x72xf32>
    %cst_103 = arith.constant dense<0.000000e+00> : vector<2x8xf32>
    %388 = vector.multi_reduction <add>, %387, %cst_103 [2] : vector<2x8x72xf32> to vector<2x8xf32>
    %389 = vector.shape_cast %388 : vector<2x8xf32> to vector<2x8x1xf32>
    %390 = vector.broadcast %389 : vector<2x8x1xf32> to vector<2x8x72xf32>
    %391 = arith.divf %387, %390 : vector<2x8x72xf32>
    %392 = vector.extract_strided_slice %391 {offsets = [0, 0, 0], sizes = [2, 8, 64], strides = [1, 1, 1]} : vector<2x8x72xf32> to vector<2x8x64xf32>
    %cst_104 = arith.constant dense<0.000000e+00> : vector<2x8xf32>
    %393 = vector.multi_reduction <add>, %392, %cst_104 [2] : vector<2x8x64xf32> to vector<2x8xf32>
    %394 = vector.shape_cast %393 : vector<2x8xf32> to vector<2x8x1xf32>
    %395 = vector.shape_cast %362 : vector<1x8xf32> to vector<1x1x8xf32>
    %396 = vector.broadcast %394 : vector<2x8x1xf32> to vector<2x8x8xf32>
    %397 = vector.broadcast %395 : vector<1x1x8xf32> to vector<2x8x8xf32>
    %398 = arith.mulf %396, %397 : vector<2x8x8xf32>
    %399 = vector.extract_strided_slice %391 {offsets = [0, 0, 64], sizes = [2, 8, 8], strides = [1, 1, 1]} : vector<2x8x72xf32> to vector<2x8x8xf32>
    "tpu.trace_start"() <{level = 10 : i32, message = "bst,btd->bsd"}> : () -> ()
    %cst_105 = arith.constant dense<0.000000e+00> : vector<2x8x8xf32>
    %400 = tpu.matmul %399, %360, %cst_105 {dimension_numbers = #tpu.dot_dimension_numbers<[2], [1], [1], [2], [0, 0, 0, 1, 1, 2], [0], [0]>} : vector<2x8x8xf32>, vector<2x8x8xf32>, vector<2x8x8xf32> -> vector<2x8x8xf32>
    "tpu.trace_stop"() : () -> ()
    %401 = arith.addf %398, %400 : vector<2x8x8xf32>
    %402 = vector.extract_strided_slice %299 {offsets = [0, 8], sizes = [16, 8], strides = [1, 1]} : vector<16x16xf32> to vector<16x8xf32>
    %403 = vector.extract_strided_slice %304 {offsets = [0, 8], sizes = [16, 8], strides = [1, 1]} : vector<16x32xf32> to vector<16x8xf32>
    %404 = vector.shape_cast %403 : vector<16x8xf32> to vector<2x8x8xf32>
    %405 = vector.extract_strided_slice %304 {offsets = [0, 24], sizes = [16, 8], strides = [1, 1]} : vector<16x32xf32> to vector<16x8xf32>
    %406 = vector.shape_cast %405 : vector<16x8xf32> to vector<2x8x8xf32>
    %407 = vector.extract_strided_slice %308 {offsets = [0, 8], sizes = [1, 8], strides = [1, 1]} : vector<1x32xf32> to vector<1x8xf32>
    %408 = vector.extract_strided_slice %308 {offsets = [0, 24], sizes = [1, 8], strides = [1, 1]} : vector<1x32xf32> to vector<1x8xf32>
    %409 = vector.extract_strided_slice %8 {offsets = [0, 8], sizes = [1, 8], strides = [1, 1]} : vector<2x16xf32> to vector<1x8xf32>
    %410 = vector.broadcast %409 : vector<1x8xf32> to vector<16x8xf32>
    %411 = arith.addf %402, %410 : vector<16x8xf32>
    %412 = vector.shape_cast %411 : vector<16x8xf32> to vector<2x8x8xf32>
    "tpu.trace_start"() <{level = 10 : i32, message = "bsd,btd->bst"}> : () -> ()
    %cst_106 = arith.constant dense<0.000000e+00> : vector<2x8x8xf32>
    %413 = tpu.matmul %412, %404, %cst_106 {dimension_numbers = #tpu.dot_dimension_numbers<[2], [2], [1], [1], [0, 0, 0, 1, 1, 1], [0], [0]>} : vector<2x8x8xf32>, vector<2x8x8xf32>, vector<2x8x8xf32> -> vector<2x8x8xf32>
    "tpu.trace_stop"() : () -> ()
    %414 = vector.broadcast %407 : vector<1x8xf32> to vector<16x8xf32>
    %415 = arith.mulf %411, %414 : vector<16x8xf32>
    %cst_107 = arith.constant dense<0.000000e+00> : vector<16xf32>
    %416 = vector.multi_reduction <add>, %415, %cst_107 [1] : vector<16x8xf32> to vector<16xf32>
    %417 = vector.shape_cast %416 : vector<16xf32> to vector<16x1xf32>
    %418 = vector.shape_cast %417 : vector<16x1xf32> to vector<2x8x1xf32>
    %419 = vector.shape_cast %418 : vector<2x8x1xf32> to vector<2x8x1xf32>
    %420 = vector.broadcast %419 : vector<2x8x1xf32> to vector<2x8x64xf32>
    %421 = tpu.concatenate %420, %413 in 2 : vector<2x8x64xf32>, vector<2x8x8xf32> -> vector<2x8x72xf32>
    %422 = vector.extract_strided_slice %355 {offsets = [2, 0, 0], sizes = [2, 8, 72], strides = [1, 1, 1]} : vector<4x8x72xf32> to vector<2x8x72xf32>
    %423 = arith.addf %421, %422 : vector<2x8x72xf32>
    %cst_108 = arith.constant 0.353553385 : f32
    %424 = vector.broadcast %cst_108 : f32 to vector<2x8x72xf32>
    %425 = arith.mulf %423, %424 : vector<2x8x72xf32>
    %426 = vector.shape_cast %16 : vector<8x72xf32> to vector<1x8x72xf32>
    %427 = vector.broadcast %426 : vector<1x8x72xf32> to vector<2x8x72xf32>
    %428 = arith.addf %425, %427 : vector<2x8x72xf32>
    %cst_109 = arith.constant dense<0xFF800000> : vector<2x8xf32>
    %429 = vector.multi_reduction <maximumf>, %428, %cst_109 [2] : vector<2x8x72xf32> to vector<2x8xf32>
    %430 = vector.shape_cast %429 : vector<2x8xf32> to vector<2x8x1xf32>
    %431 = vector.broadcast %430 : vector<2x8x1xf32> to vector<2x8x72xf32>
    %432 = arith.subf %428, %431 : vector<2x8x72xf32>
    %433 = math.exp %432 : vector<2x8x72xf32>
    %cst_110 = arith.constant dense<0.000000e+00> : vector<2x8xf32>
    %434 = vector.multi_reduction <add>, %433, %cst_110 [2] : vector<2x8x72xf32> to vector<2x8xf32>
    %435 = vector.shape_cast %434 : vector<2x8xf32> to vector<2x8x1xf32>
    %436 = vector.broadcast %435 : vector<2x8x1xf32> to vector<2x8x72xf32>
    %437 = arith.divf %433, %436 : vector<2x8x72xf32>
    %438 = vector.extract_strided_slice %437 {offsets = [0, 0, 0], sizes = [2, 8, 64], strides = [1, 1, 1]} : vector<2x8x72xf32> to vector<2x8x64xf32>
    %cst_111 = arith.constant dense<0.000000e+00> : vector<2x8xf32>
    %439 = vector.multi_reduction <add>, %438, %cst_111 [2] : vector<2x8x64xf32> to vector<2x8xf32>
    %440 = vector.shape_cast %439 : vector<2x8xf32> to vector<2x8x1xf32>
    %441 = vector.shape_cast %408 : vector<1x8xf32> to vector<1x1x8xf32>
    %442 = vector.broadcast %440 : vector<2x8x1xf32> to vector<2x8x8xf32>
    %443 = vector.broadcast %441 : vector<1x1x8xf32> to vector<2x8x8xf32>
    %444 = arith.mulf %442, %443 : vector<2x8x8xf32>
    %445 = vector.extract_strided_slice %437 {offsets = [0, 0, 64], sizes = [2, 8, 8], strides = [1, 1, 1]} : vector<2x8x72xf32> to vector<2x8x8xf32>
    "tpu.trace_start"() <{level = 10 : i32, message = "bst,btd->bsd"}> : () -> ()
    %cst_112 = arith.constant dense<0.000000e+00> : vector<2x8x8xf32>
    %446 = tpu.matmul %445, %406, %cst_112 {dimension_numbers = #tpu.dot_dimension_numbers<[2], [1], [1], [2], [0, 0, 0, 1, 1, 2], [0], [0]>} : vector<2x8x8xf32>, vector<2x8x8xf32>, vector<2x8x8xf32> -> vector<2x8x8xf32>
    "tpu.trace_stop"() : () -> ()
    %447 = arith.addf %444, %446 : vector<2x8x8xf32>
    %448 = tpu.concatenate %401, %447 in 2 : vector<2x8x8xf32>, vector<2x8x8xf32> -> vector<2x8x16xf32>
    %449 = vector.shape_cast %448 : vector<2x8x16xf32> to vector<16x16xf32>
    %c1_113 = arith.constant 1 : index
    %c0_114 = arith.constant 0 : index
    %c0_115 = arith.constant 0 : index
    %450 = vector.load %arg6[%c1_113, %c0_114, %c0_115] : memref<2x16x512xf32, #tpu.memory_space<vmem>>, vector<1x16x512xf32>
    %451 = vector.shape_cast %450 : vector<1x16x512xf32> to vector<16x512xf32>
    %cst_116 = arith.constant dense<0.000000e+00> : vector<16x512xf32>
    %452 = tpu.matmul %449, %451, %cst_116 {dimension_numbers = #tpu.dot_dimension_numbers<[1], [0], [0], [1], [0, 0, 1, 1], [], []>} : vector<16x16xf32>, vector<16x512xf32>, vector<16x512xf32> -> vector<16x512xf32>
    %453 = vector.broadcast %264 : vector<1x512xf32> to vector<16x512xf32>
    %454 = arith.addf %452, %453 : vector<16x512xf32>
    %cst_117 = arith.constant 0.000000e+00 : f32
    %455 = vector.broadcast %cst_117 : f32 to vector<16x512xf32>
    %456 = arith.maximumf %454, %455 : vector<16x512xf32>
    %457 = arith.addf %257, %456 : vector<16x512xf32>
    %cst_118 = arith.constant dense<0.000000e+00> : vector<16xf32>
    %458 = vector.multi_reduction <add>, %457, %cst_118 [1] : vector<16x512xf32> to vector<16xf32>
    %459 = vector.shape_cast %458 : vector<16xf32> to vector<16x1xf32>
    %cst_119 = arith.constant 5.120000e+02 : f32
    %460 = vector.broadcast %cst_119 : f32 to vector<16x1xf32>
    %461 = arith.divf %459, %460 : vector<16x1xf32>
    %462 = vector.broadcast %461 : vector<16x1xf32> to vector<16x512xf32>
    %463 = arith.subf %457, %462 : vector<16x512xf32>
    %464 = vector.broadcast %461 : vector<16x1xf32> to vector<16x512xf32>
    %465 = arith.subf %457, %464 : vector<16x512xf32>
    %466 = arith.mulf %463, %465 : vector<16x512xf32>
    %cst_120 = arith.constant dense<0.000000e+00> : vector<16xf32>
    %467 = vector.multi_reduction <add>, %466, %cst_120 [1] : vector<16x512xf32> to vector<16xf32>
    %468 = vector.shape_cast %467 : vector<16xf32> to vector<16x1xf32>
    %cst_121 = arith.constant 5.120000e+02 : f32
    %469 = vector.broadcast %cst_121 : f32 to vector<16x1xf32>
    %470 = arith.divf %468, %469 : vector<16x1xf32>
    %471 = vector.broadcast %461 : vector<16x1xf32> to vector<16x512xf32>
    %472 = arith.subf %457, %471 : vector<16x512xf32>
    %cst_122 = arith.constant 9.99999974E-6 : f32
    %473 = vector.broadcast %cst_122 : f32 to vector<16x1xf32>
    %474 = arith.addf %470, %473 : vector<16x1xf32>
    %475 = math.rsqrt %474 : vector<16x1xf32>
    %476 = vector.broadcast %475 : vector<16x1xf32> to vector<16x512xf32>
    %477 = arith.mulf %472, %476 : vector<16x512xf32>
    %478 = vector.broadcast %262 : vector<1x512xf32> to vector<16x512xf32>
    %479 = arith.mulf %477, %478 : vector<16x512xf32>
    %480 = vector.broadcast %263 : vector<1x512xf32> to vector<16x512xf32>
    %481 = arith.addf %479, %480 : vector<16x512xf32>
    %482 = arith.truncf %481 : vector<16x512xf32> to vector<16x512xbf16>
    %c1_123 = arith.constant 1 : index
    %c0_124 = arith.constant 0 : index
    %c0_125 = arith.constant 0 : index
    %483 = vector.load %arg7[%c1_123, %c0_124, %c0_125] : memref<2x512x512xbf16, #tpu.memory_space<vmem>>, vector<1x512x512xbf16>
    %484 = vector.shape_cast %483 : vector<1x512x512xbf16> to vector<512x512xbf16>
    %cst_126 = arith.constant dense<0.000000e+00> : vector<16x512xf32>
    %485 = tpu.matmul %482, %484, %cst_126 {dimension_numbers = #tpu.dot_dimension_numbers<[1], [0], [0], [1], [0, 0, 1, 1], [], []>} : vector<16x512xbf16>, vector<512x512xbf16>, vector<16x512xf32> -> vector<16x512xf32>
    %486 = vector.broadcast %265 : vector<1x512xf32> to vector<16x512xf32>
    %487 = arith.addf %485, %486 : vector<16x512xf32>
    %cst_127 = arith.constant 0.000000e+00 : f32
    %488 = vector.broadcast %cst_127 : f32 to vector<16x512xf32>
    %489 = arith.maximumf %487, %488 : vector<16x512xf32>
    %490 = arith.truncf %489 : vector<16x512xf32> to vector<16x512xbf16>
    %c1_128 = arith.constant 1 : index
    %c0_129 = arith.constant 0 : index
    %c0_130 = arith.constant 0 : index
    %491 = vector.load %arg8[%c1_128, %c0_129, %c0_130] : memref<2x512x512xbf16, #tpu.memory_space<vmem>>, vector<1x512x512xbf16>
    %492 = vector.shape_cast %491 : vector<1x512x512xbf16> to vector<512x512xbf16>
    %cst_131 = arith.constant dense<0.000000e+00> : vector<16x512xf32>
    %493 = tpu.matmul %490, %492, %cst_131 {dimension_numbers = #tpu.dot_dimension_numbers<[1], [0], [0], [1], [0, 0, 1, 1], [], []>} : vector<16x512xbf16>, vector<512x512xbf16>, vector<16x512xf32> -> vector<16x512xf32>
    %494 = vector.broadcast %266 : vector<1x512xf32> to vector<16x512xf32>
    %495 = arith.addf %493, %494 : vector<16x512xf32>
    %cst_132 = arith.constant 0.000000e+00 : f32
    %496 = vector.broadcast %cst_132 : f32 to vector<16x512xf32>
    %497 = arith.maximumf %495, %496 : vector<16x512xf32>
    %498 = arith.addf %457, %497 : vector<16x512xf32>
    %499 = vector.shape_cast %498 : vector<16x512xf32> to vector<2x8x512xf32>
    %500 = vector.extract_strided_slice %499 {offsets = [0, 7, 0], sizes = [2, 1, 512], strides = [1, 1, 1]} : vector<2x8x512xf32> to vector<2x1x512xf32>
    %501 = vector.shape_cast %500 : vector<2x1x512xf32> to vector<2x512xf32>
    %c0_133 = arith.constant 0 : index
    %c0_134 = arith.constant 0 : index
    %502 = vector.load %arg12[%c0_133, %c0_134] : memref<1x512xf32, #tpu.memory_space<vmem>>, vector<1x512xf32>
    %503 = vector.broadcast %502 : vector<1x512xf32> to vector<2x512xf32>
    %504 = arith.mulf %501, %503 : vector<2x512xf32>
    %cst_135 = arith.constant dense<0.000000e+00> : vector<2xf32>
    %505 = vector.multi_reduction <add>, %504, %cst_135 [1] : vector<2x512xf32> to vector<2xf32>
    %506 = vector.shape_cast %505 : vector<2xf32> to vector<2x1xf32>
    %c0_136 = arith.constant 0 : index
    %c0_137 = arith.constant 0 : index
    %507 = vector.load %arg13[%c0_136, %c0_137] : memref<1x1xf32, #tpu.memory_space<vmem>>, vector<1x1xf32>
    %508 = vector.broadcast %507 : vector<1x1xf32> to vector<2x1xf32>
    %509 = arith.addf %506, %508 : vector<2x1xf32>
    %c0_138 = arith.constant 0 : index
    %c0_139 = arith.constant 0 : index
    %510 = vector.load %arg14[%c0_138, %c0_139] : memref<2x1xf32, #tpu.memory_space<vmem>>, vector<2x1xf32>
    tpu.vector_store %arg14[%c0_138, %c0_139], %509 {strides = array<i32>} : memref<2x1xf32, #tpu.memory_space<vmem>>, vector<2x1xf32>,
    return
  }
}

</mosaic_0001>

<bundles_post_ra>
// kernel: trxl_forward.1
= control target key start
LH: loop header
LB: loop body
LE: loop exit
PB: predicated region body
PF: predicated region fallthrough
CT: control target
= control target key end

     0   :  { %s14766_s0 = inlined_call_operand.vmem [shape: f32[16,16], index: 0, kind: input, shape index: {}]   ;;  %s14767_s1 = inlined_call_operand.vmem [shape: f32[2,16,72], index: 1, kind: input, shape index: {}]   ;;  %s14768_s2 = inlined_call_operand.vmem [shape: f32[16,512], index: 2, kind: input, shape index: {}]   ;;  %s14769_s3 = inlined_call_operand.vmem [shape: f32[1,512], index: 3, kind: input, shape index: {}]   ;;  %s14770_s4 = inlined_call_operand.vmem [shape: f32[2,512,16], index: 4, kind: input, shape index: {}]   ;;  %s14771_s5 = inlined_call_operand.vmem [shape: f32[2,512,32], index: 5, kind: input, shape index: {}]   ;;  %s14772_s6 = inlined_call_operand.vmem [shape: f32[2,16,512], index: 6, kind: input, shape index: {}]   ;;  %s14773_s7 = inlined_call_operand.vmem [shape: bf16[2,512,512], index: 7, kind: input, shape index: {}]   ;;  %s14774_s8 = inlined_call_operand.hbm [shape: bf16[2,512,512], index: 8, kind: input, shape index: {}]   ;;  %s14775_s9 = inlined_call_operand.vmem [shape: f32[2,1,48], index: 9, kind: input, shape index: {}]   ;;  %s14776_s10 = inlined_call_operand.vmem [shape: f32[2,7,512], index: 10, kind: input, shape index: {}]   ;;  %s14777_s11 = inlined_call_operand.vmem [shape: f32[2,16], index: 11, kind: input, shape index: {}]   ;;  %s14778_s12 = inlined_call_operand.vmem [shape: f32[1,512], index: 12, kind: input, shape index: {}]   ;;  %s14779_s13 = inlined_call_operand.<no memory space> [shape: f32[1,1], index: 13, kind: input, shape index: {}]   ;;  %s14780_s14 = inlined_call_operand.vmem [shape: f32[2,1], index: 14, kind: output, shape index: {}]  }
   0x1   :  { %v19_v0 = vstv %s14779_s13 }
   0x2   :  { %20 = vst [vmem:[#allocation2] sm:$0x1] %v19_v0 }
   0x3   :  { %21 = vsyncpa [#allocation4], 0  ;;  %s11387_s15 = smov [#allocation3]   ;;  %s11363_s19 = scalar_lea.hbm %s14774_s8, 32768 }
   0x4   :  { %s43_s16 = sshll.u32 %s11387_s15, 4  ;;  %p11364_p0 = scmp.ne.s32.totalorder %s14774_s8, %s11363_s19  ;;  %s44_s16 = int_to_ptr.vmem [resolvable:$true] %s43_s16 }
   0x5   :  { %p11367_p1 = scmp.lt.u32.totalorder %s11363_s19, %s14774_s8 }
   0x7   :  { %p11369_p2 = pnand %p11367_p1, %p11364_p0 }
   0x9   :  { %11372 = shalt.err (!%p11369_p2)
}
   0xa   :  { %s11373_s13 = scalar_lea.vmem %s44_s16, 32768  ;;  %p11378_p4 = scmp.lt.s32.totalorder %s44_s16, %s44_s16 }
   0xb   :  { %p11374_p3 = scmp.ne.s32.totalorder %s44_s16, %s11373_s13  ;;  %p11379_p5 = scmp.lt.s32.totalorder %s11373_s13, %s11373_s13 }
   0xd   :  { %p11380_p6 = por %p11379_p5, %p11378_p4 }
   0xf   :  { %p11381_p7 = pnand %p11380_p6, %p11374_p3 }
  0x11   :  { %11384 = shalt.err (!%p11381_p7)
}
  0x12   :  { %s11388_s24 = smov 256   ;;  %s14822_s25 = smov 16  }
  0x13   :  { %49 = dma.hbm_to_vmem [thread:$0]  %s14774_s8, 32768, %s44_s16, [#allocation4], %s11388_s24, %s11388_s24, %s14822_s25  }
  0x14   :  { %11385 = dma.done.wait [#allocation4], 32768  }
  0x15   :  { %11386 = vsyncadd [#allocation4], 4294934528  ;;  %v14782_v1 = vmov 0.0   ;;  %v66_v2 = vld [vmem:[%s14768_s2 + $0x8] sm:$0xff]  ;;  %v68_v4 = vld [vmem:[%s14768_s2 + $0x18] sm:$0xff]  ;;  %vm14811_vm0 = vcmask 130048  }
  0x16   :  { %166 = vmatprep.mubr.f32.mxu0 %v14782_v1  ;;  %243 = vmatprep.mubr.f32.mxu1 %v14782_v1  ;;  %v70_v3 = vld [vmem:[%s14768_s2 + $0x28] sm:$0xff]  ;;  %v72_v6 = vld [vmem:[%s14768_s2 + $0x38] sm:$0xff]  ;;  %v65_v7 = vld [vmem:[%s14768_s2] sm:$0xff]  ;;  %s11392_s21 = smov 112   ;;  %vm14814_vm1 = vcmask 64512   ;;  %vm14812_vm2 = vmmov 0  }
  0x17   :  { %v10035_v5 = vpack.c.bf16 %v70_v3, %v66_v2  ;;  %v69_v8 = vld [vmem:[%s14768_s2 + $0x20] sm:$0xff]  ;;  %v10039_v9 = vpack.c.bf16 %v72_v6, %v68_v4  ;;  %v67_v11 = vld [vmem:[%s14768_s2 + $0x10] sm:$0xff]  ;;  %v395_v16 = vld [vmem:[%s14770_s4 + $0x88] sm:$0xff]  ;;  %s11394_s18 = smov 65   ;;  %s11397_s8 = smov 122   ;;  %vm1197_vm3 = vcmask 539648  }
  0x18   :  { %v10037_v10 = vpack.c.bf16 %v69_v8, %v65_v7  ;;  %v71_v12 = vld [vmem:[%s14768_s2 + $0x30] sm:$0xff]  ;;  %v63_v14 = vld [vmem:[%s14766_s0] sm:$0xff]  ;;  %v427_v19 = vld [vmem:[%s14770_s4 + $0x188] sm:$0xff]  ;;  %s11395_s2 = smov 121   ;;  %s11398_s16 = smov 67   ;;  %vm1226_vm4 = vcmask 547840  }
  0x19   :  { %10036 = vmatprep.subr.bf16.mxu0 %v10035_v5  ;;  %v10041_v13 = vpack.c.bf16 %v71_v12, %v67_v11  ;;  %v394_v15 = vld [vmem:[%s14770_s4 + $0x80] sm:$0xff]  ;;  %10040 = vmatprep.subr.bf16.mxu1 %v10039_v9  ;;  %v379_v22 = vld [vmem:[%s14770_s4 + $0x8] sm:$0xff]  ;;  %v396_v28 = vld [vmem:[%s14770_s4 + $0x90] sm:$0xff]  ;;  %s11399_s19 = smov 123   ;;  %s11400_s20 = smov 68   ;;  %vm1168_vm5 = vcmask 531456  }
  0x1a   :  { %10038 = vmatpush1.bf16.msra.mxu0 %v10037_v10  ;;  %v10043_v17 = vpack.c.bf16 %v395_v16, %v394_v15  ;;  %v426_v18 = vld [vmem:[%s14770_s4 + $0x180] sm:$0xff]  ;;  %v411_v24 = vld [vmem:[%s14770_s4 + $0x108] sm:$0xff]  ;;  %v397_v29 = vld [vmem:[%s14770_s4 + $0x98] sm:$0xff]  ;;  %s11401_s22 = smov 124   ;;  %s14840_s23 = smov 69   ;;  %vm1347_vm6 = vcmask 1040384  }
  0x1b   :  { %v378_v20 = vld [vmem:[%s14770_s4] sm:$0xff]  ;;  %10042 = vmatpush1.bf16.msra.mxu1 %v10041_v13  ;;  %v10075_v21 = vpack.c.bf16 %v427_v19, %v426_v18  ;;  %v64_v25 = vld [vmem:[%s14766_s0 + $0x8] sm:$0xff]  ;;  %v428_v30 = vld [vmem:[%s14770_s4 + $0x190] sm:$0xff]  ;;  %v10047_v31 = vpack.c.bf16 %v397_v29, %v396_v28  ;;  %s11396_s0 = smov 66   ;;  %s14836_s13 = smov 125   ;;  %vm1255_vm7 = vcmask 556032  }
  0x1c   :  { %v410_v23 = vld [vmem:[%s14770_s4 + $0x100] sm:$0xff]  ;;  %10044 = vmatprep.subr.bf16.mxu0 %v10043_v17  ;;  %v10045_v26 = vpack.c.bf16 %v379_v22, %v378_v20  ;;  %v429_v32 = vld [vmem:[%s14770_s4 + $0x198] sm:$0xff]  ;;  %v380_v33 = vld [vmem:[%s14770_s4 + $0x10] sm:$0xff]  ;;  %s14834_s24 = smov 126   ;;  %s14832_s26 = smov 70   ;;  %vm14815_vm8 = vcmask 564224  }
  0x1d   :  { %v10077_v27 = vpack.c.bf16 %v411_v24, %v410_v23  ;;  %8617 = vmatmul.mubr.msk.f32.vlgmr.msra.gmra.mrb[0].mxu0 %vm14811_vm0, %v63_v14  ;;  %10076 = vmatprep.subr.bf16.mxu1 %v10075_v21  ;;  %v381_v34 = vld [vmem:[%s14770_s4 + $0x18] sm:$0xff]  ;;  %v10079_v35 = vpack.c.bf16 %v429_v32, %v428_v30  ;;  %v412_v36 = vld [vmem:[%s14770_s4 + $0x110] sm:$0xff]  ;;  %v398_v38 = vld [vmem:[%s14770_s4 + $0xa0] sm:$0xff]  ;;  %s14830_s27 = smov 127   ;;  %s14828_s28 = smov 71   ;;  %vm1342_vm9 = vcmask 580608  }
  0x1e   :  { %8619 = vmatmul.mubr.msk.f32.vlgmr.msra.gmra.mrb[0].mxu1 %vm14811_vm0, %v63_v14  ;;  %172 = vmatprep.mubr.f32.mxu0 %v14782_v1  ;;  %v413_v37 = vld [vmem:[%s14770_s4 + $0x118] sm:$0xff]  ;;  %v10049_v39 = vpack.c.bf16 %v381_v34, %v380_v33  ;;  %v399_v40 = vld [vmem:[%s14770_s4 + $0xa8] sm:$0xff]  ;;  %v430_v41 = vld [vmem:[%s14770_s4 + $0x1a0] sm:$0xff]  ;;  %vm1352_vm10 = vcmask 1041408   ;;  %vm1313_vm11 = vcmask 572416   ;;  %vm1357_vm12 = vcmask 1042432  }
  0x1f   :  { %249 = vmatprep.mubr.f32.mxu1 %v14782_v1  ;;  %10046 = vmatpush3.bf16.msra.mxu0 %v10045_v26  ;;  %v431_v42 = vld [vmem:[%s14770_s4 + $0x1a8] sm:$0xff]  ;;  %v10081_v43 = vpack.c.bf16 %v413_v37, %v412_v36  ;;  %v10051_v44 = vpack.c.bf16 %v399_v40, %v398_v38  ;;  %v382_v45 = vld [vmem:[%s14770_s4 + $0x20] sm:$0xff]  ;;  %v400_v50 = vld [vmem:[%s14770_s4 + $0xb0] sm:$0xff]  ;;  %vm14821_vm13 = vcmask 1043456   ;;  %vm14819_vm14 = vcmask 1045504   ;;  %s14824_s29 = smov 104  }
  0x20   :  { %10078 = vmatpush3.bf16.msra.mxu1 %v10077_v27  ;;  %10048 = vmatprep.subr.bf16.mxu0 %v10047_v31  ;;  %v383_v46 = vld [vmem:[%s14770_s4 + $0x28] sm:$0xff]  ;;  %v414_v47 = vld [vmem:[%s14770_s4 + $0x120] sm:$0xff]  ;;  %v10083_v48 = vpack.c.bf16 %v431_v42, %v430_v41  ;;  %v401_v51 = vld [vmem:[%s14770_s4 + $0xb8] sm:$0xff]  ;;  %vm14820_vm15 = vcmask 1044480   ;;  %s14838_s30 = smov 24  }
  0x21   :  { %8618 = vmatmul.mubr.msk.f32.gmra.mrb[2].mxu0 %vm14811_vm0, %v64_v25  ;;  %10080 = vmatprep.subr.bf16.mxu1 %v10079_v35  ;;  %v415_v49 = vld [vmem:[%s14770_s4 + $0x128] sm:$0xff]  ;;  %v432_v52 = vld [vmem:[%s14770_s4 + $0x1b0] sm:$0xff]  ;;  %v433_v53 = vld [vmem:[%s14770_s4 + $0x1b8] sm:$0xff]  ;;  %v10053_v54 = vpack.c.bf16 %v383_v46, %v382_v45  ;;  %v10055_v56 = vpack.c.bf16 %v401_v51, %v400_v50 }
  0x22   :  { %8620 = vmatmul.mubr.msk.f32.gmra.mrb[2].mxu1 %vm14811_vm0, %v64_v25  ;;  %v10085_v55 = vpack.c.bf16 %v415_v49, %v414_v47  ;;  %v384_v57 = vld [vmem:[%s14770_s4 + $0x30] sm:$0xff]  ;;  %v385_v58 = vld [vmem:[%s14770_s4 + $0x38] sm:$0xff]  ;;  %v10087_v60 = vpack.c.bf16 %v433_v53, %v432_v52  ;;  %v402_v62 = vld [vmem:[%s14770_s4 + $0xc0] sm:$0xff]  ;;  %v14781_v49 = vlaneseq  ;;  %vm14818_vm0 = vcmask 1046528  }
  0x23   :  { %10050 = vmatpush3.bf16.msra.mxu0 %v10049_v39  ;;  %v416_v59 = vld [vmem:[%s14770_s4 + $0x130] sm:$0xff]  ;;  %v417_v61 = vld [vmem:[%s14770_s4 + $0x138] sm:$0xff]  ;;  %v403_v63 = vld [vmem:[%s14770_s4 + $0xc8] sm:$0xff]  ;;  %v10057_v3 = vpack.c.bf16 %v385_v58, %v384_v57 }
  0x24   :  { %10082 = vmatpush3.bf16.msra.mxu1 %v10081_v43  ;;  %10052 = vmatprep.subr.bf16.mxu0 %v10051_v44  ;;  %v434_v0 = vld [vmem:[%s14770_s4 + $0x1c0] sm:$0xff]  ;;  %v435_v2 = vld [vmem:[%s14770_s4 + $0x1c8] sm:$0xff]  ;;  %v10089_v5 = vpack.c.bf16 %v417_v61, %v416_v59  ;;  %v10059_v6 = vpack.c.bf16 %v403_v63, %v402_v62  ;;  %v404_v11 = vld [vmem:[%s14770_s4 + $0xd0] sm:$0xff]  ;;  %v11733_v50 = vshrl.u32 %v14781_v49, 7 }
  0x25   :  { %10084 = vmatprep.subr.bf16.mxu1 %v10083_v48  ;;  %v386_v4 = vld [vmem:[%s14770_s4 + $0x40] sm:$0xff]  ;;  %v387_v7 = vld [vmem:[%s14770_s4 + $0x48] sm:$0xff]  ;;  %v10091_v10 = vpack.c.bf16 %v435_v2, %v434_v0  ;;  %v405_v12 = vld [vmem:[%s14770_s4 + $0xd8] sm:$0xff] }
  0x26   :  { %v418_v8 = vld [vmem:[%s14770_s4 + $0x140] sm:$0xff]  ;;  %v419_v9 = vld [vmem:[%s14770_s4 + $0x148] sm:$0xff]  ;;  %v436_v13 = vld [vmem:[%s14770_s4 + $0x1d0] sm:$0xff]  ;;  %v10061_v17 = vpack.c.bf16 %v387_v7, %v386_v4  ;;  %v10063_v23 = vpack.c.bf16 %v405_v12, %v404_v11  ;;  %14873 = vst [vmem:[#allocation6_spill] sm:$0xff] %v11733_v50  ;;  %v11736_v51 = vsub.s32 0, %v11733_v50  ;;  %v11742_v53 = vsub.s32 2, %v11733_v50 }
  0x27   :  { %10054 = vmatpush3.bf16.msra.mxu0 %v10053_v54  ;;  %v437_v14 = vld [vmem:[%s14770_s4 + $0x1d8] sm:$0xff]  ;;  %v388_v15 = vld [vmem:[%s14770_s4 + $0x50] sm:$0xff]  ;;  %v406_v20 = vld [vmem:[%s14770_s4 + $0xe0] sm:$0xff]  ;;  %v10093_v22 = vpack.c.bf16 %v419_v9, %v418_v8  ;;  %v11745_v54 = vsub.s32 1, %v11733_v50 }
  0x28   :  { %10086 = vmatpush3.bf16.msra.mxu1 %v10085_v55  ;;  %10056 = vmatprep.subr.bf16.mxu0 %v10055_v56  ;;  %v389_v16 = vld [vmem:[%s14770_s4 + $0x58] sm:$0xff]  ;;  %v420_v18 = vld [vmem:[%s14770_s4 + $0x150] sm:$0xff]  ;;  %v407_v21 = vld [vmem:[%s14770_s4 + $0xe8] sm:$0xff]  ;;  %v10095_v26 = vpack.c.bf16 %v437_v14, %v436_v13  ;;  %14874 = vst [vmem:[#allocation7_spill] sm:$0xff] %v11736_v51  ;;  %v11748_v55 = vsub.s32 3, %v11733_v50 }
  0x29   :  { %10088 = vmatprep.subr.bf16.mxu1 %v10087_v60  ;;  %v421_v19 = vld [vmem:[%s14770_s4 + $0x158] sm:$0xff]  ;;  %v438_v24 = vld [vmem:[%s14770_s4 + $0x1e0] sm:$0xff]  ;;  %v439_v25 = vld [vmem:[%s14770_s4 + $0x1e8] sm:$0xff]  ;;  %v10065_v27 = vpack.c.bf16 %v389_v16, %v388_v15  ;;  %v10067_v29 = vpack.c.bf16 %v407_v21, %v406_v20  ;;  %14875 = vst [vmem:[#allocation8_spill] sm:$0xff] %v11742_v53 }
  0x2a   :  { %v10097_v28 = vpack.c.bf16 %v421_v19, %v420_v18  ;;  %v10099_v30 = vpack.c.bf16 %v439_v25, %v438_v24  ;;  %v390_v31 = vld [vmem:[%s14770_s4 + $0x60] sm:$0xff]  ;;  %v391_v32 = vld [vmem:[%s14770_s4 + $0x68] sm:$0xff]  ;;  %v408_v37 = vld [vmem:[%s14770_s4 + $0xf0] sm:$0xff]  ;;  %14876 = vst [vmem:[#allocation9_spill] sm:$0xff] %v11745_v54 }
  0x2b   :  { %10058 = vmatpush3.bf16.msra.mxu0 %v10057_v3  ;;  %v422_v33 = vld [vmem:[%s14770_s4 + $0x160] sm:$0xff]  ;;  %v10069_v34 = vpack.c.bf16 %v391_v32, %v390_v31  ;;  %v423_v35 = vld [vmem:[%s14770_s4 + $0x168] sm:$0xff]  ;;  %v409_v38 = vld [vmem:[%s14770_s4 + $0xf8] sm:$0xff]  ;;  %14877 = vst [vmem:[#allocation10_spill] sm:$0xff] %v11748_v55 }
  0x2c   :  { %10090 = vmatpush3.bf16.msra.mxu1 %v10089_v5  ;;  %10060 = vmatprep.subr.bf16.mxu0 %v10059_v6  ;;  %v10101_v36 = vpack.c.bf16 %v423_v35, %v422_v33  ;;  %v440_v39 = vld [vmem:[%s14770_s4 + $0x1f0] sm:$0xff]  ;;  %v10071_v40 = vpack.c.bf16 %v409_v38, %v408_v37  ;;  %v441_v41 = vld [vmem:[%s14770_s4 + $0x1f8] sm:$0xff]  ;;  %v73_v52 = vld [vmem:[%s14769_s3] sm:$0xf]  ;;  %s14826_s3 = smov 64  }
  0x2d   :  { %10092 = vmatprep.subr.bf16.mxu1 %v10091_v10  ;;  %v392_v42 = vld [vmem:[%s14770_s4 + $0x70] sm:$0xff]  ;;  %v393_v43 = vld [vmem:[%s14770_s4 + $0x78] sm:$0xff]  ;;  %v10103_v44 = vpack.c.bf16 %v441_v41, %v440_v39  ;;  %v78_v56 = vrot.slane %v73_v52, %v11736_v51  ;;  %v86_v57 = vrot.slane %v73_v52, %v11742_v53  ;;  %v82_v58 = vrot.slane %v73_v52, %v11745_v54  ;;  %v647_v31 = vld [vmem:[%s14771_s5 + $0x188] sm:$0xff] }
  0x2e   :  { %v10073_v45 = vpack.c.bf16 %v393_v43, %v392_v42  ;;  %v424_v46 = vld [vmem:[%s14770_s4 + $0x170] sm:$0xff]  ;;  %v425_v47 = vld [vmem:[%s14770_s4 + $0x178] sm:$0xff]  ;;  %v90_v59 = vrot.slane %v73_v52, %v11748_v55  ;;  %v598_v32 = vld [vmem:[%s14771_s5] sm:$0xff] }
  0x2f   :  { %10062 = vmatpush3.bf16.msra.mxu0 %v10061_v17  ;;  %v10105_v48 = vpack.c.bf16 %v425_v47, %v424_v46  ;;  %v599_v33 = vld [vmem:[%s14771_s5 + $0x8] sm:$0xff]  ;;  %v616_v38 = vld [vmem:[%s14771_s5 + $0x90] sm:$0xff]  ;;  %v649_v42 = vld [vmem:[%s14771_s5 + $0x198] sm:$0xff] }
  0x30   :  { %10094 = vmatpush3.bf16.msra.mxu1 %v10093_v22  ;;  %10064 = vmatprep.subr.bf16.mxu0 %v10063_v23  ;;  %v11808_v35 = vpack.c.bf16 %v599_v33, %v598_v32  ;;  %v631_v37 = vld [vmem:[%s14771_s5 + $0x108] sm:$0xff]  ;;  %v648_v41 = vld [vmem:[%s14771_s5 + $0x190] sm:$0xff]  ;;  %v601_v46 = vld [vmem:[%s14771_s5 + $0x18] sm:$0xff] }
  0x31   :  { %10096 = vmatprep.subr.bf16.mxu1 %v10095_v26  ;;  %v632_v47 = vld [vmem:[%s14771_s5 + $0x110] sm:$0xff]  ;;  %v633_v52 = vld [vmem:[%s14771_s5 + $0x118] sm:$0xff] }
  0x33   :  { %10066 = vmatpush3.bf16.msra.mxu0 %v10065_v27  ;;  %v614_v27 = vld [vmem:[%s14771_s5 + $0x80] sm:$0xff] }
  0x34   :  { %10098 = vmatpush3.bf16.msra.mxu1 %v10097_v28  ;;  %10068 = vmatprep.subr.bf16.mxu0 %v10067_v29  ;;  %v615_v28 = vld [vmem:[%s14771_s5 + $0x88] sm:$0xff]  ;;  %v646_v29 = vld [vmem:[%s14771_s5 + $0x180] sm:$0xff] }
  0x35   :  { %10100 = vmatprep.subr.bf16.mxu1 %v10099_v30  ;;  %v11795_v30 = vpack.c.bf16 %v615_v28, %v614_v27 }
  0x37   :  { %10070 = vmatpush3.bf16.msra.mxu0 %v10069_v34  ;;  %v11806_v34 = vpack.c.bf16 %v647_v31, %v646_v29 }
  0x38   :  { %10102 = vmatpush3.bf16.msra.mxu1 %v10101_v36  ;;  %10072 = vmatprep.subr.bf16.mxu0 %v10071_v40  ;;  %v630_v36 = vld [vmem:[%s14771_s5 + $0x100] sm:$0xff]  ;;  %v617_v40 = vld [vmem:[%s14771_s5 + $0x98] sm:$0xff] }
  0x39   :  { %10104 = vmatprep.subr.bf16.mxu1 %v10103_v44  ;;  %v11820_v39 = vpack.c.bf16 %v631_v37, %v630_v36  ;;  %v11833_v43 = vpack.c.bf16 %v617_v40, %v616_v38  ;;  %v11835_v44 = vpack.c.bf16 %v649_v42, %v648_v41 }
  0x3b   :  { %10074 = vmatpush3.bf16.msra.mxu0 %v10073_v45  ;;  %v600_v45 = vld [vmem:[%s14771_s5 + $0x10] sm:$0xff] }
  0x3c   :  { %10106 = vmatpush3.bf16.msra.mxu1 %v10105_v48  ;;  %10108 = vmatprep.subr.bf16.mxu0 %v11795_v30  ;;  %v11847_v48 = vpack.c.bf16 %v601_v46, %v600_v45  ;;  %v620_v46 = vld [vmem:[%s14771_s5 + $0xb0] sm:$0xff] }
  0x3d   :  { %10140 = vmatprep.subr.bf16.mxu1 %v11806_v34 }
  0xf0   :  { %v168_v60 = vpop.f32.mrb[0].mxu0 }
  0xf1   :  { %v169_v61 = vadd.f32 %v168_v60, %v78_v56  ;;  %v245_v62 = vpop.f32.mrb[0].mxu1  ;;  %v170_v63 = vpop.f32.mrb[1].mxu0  ;;  %v650_v60 = vld [vmem:[%s14771_s5 + $0x1a0] sm:$0xff] }
  0xf2   :  { %v246_v0 = vadd.f32 %v245_v62, %v86_v57  ;;  %v171_v2 = vadd.f32 %v170_v63, %v82_v58  ;;  %v247_v3 = vpop.f32.mrb[1].mxu1  ;;  %v602_v62 = vld [vmem:[%s14771_s5 + $0x20] sm:$0xff] }
  0xf3   :  { %v11754_v4 = vmax.f32 %v169_v61, 0.0  ;;  %v248_v5 = vadd.f32 %v247_v3, %v90_v59  ;;  %v651_v61 = vld [vmem:[%s14771_s5 + $0x1a8] sm:$0xff] }
  0xf4   :  { %v11756_v6 = vmax.f32 %v246_v0, 0.0  ;;  %v11758_v7 = vmax.f32 %v171_v2, 0.0  ;;  %v174_v8 = vpop.f32.mrb[2].mxu0  ;;  %v11873_v63 = vpack.c.bf16 %v651_v61, %v650_v60  ;;  %v603_v0 = vld [vmem:[%s14771_s5 + $0x28] sm:$0xff]  ;;  %v634_v2 = vld [vmem:[%s14771_s5 + $0x120] sm:$0xff]  ;;  %v604_v60 = vld [vmem:[%s14771_s5 + $0x30] sm:$0xff] }
  0xf5   :  { %14878 = vst [vmem:[#allocation11_spill] sm:$0xff] %v11754_v4  ;;  %v11760_v9 = vmax.f32 %v248_v5, 0.0  ;;  %v175_v10 = vadd.f32 %v174_v8, %v78_v56  ;;  %v176_v11 = vpop.f32.mrb[3].mxu0  ;;  %v251_v12 = vpop.f32.mrb[2].mxu1  ;;  %v618_v56 = vld [vmem:[%s14771_s5 + $0xa0] sm:$0xff]  ;;  %v635_v3 = vld [vmem:[%s14771_s5 + $0x128] sm:$0xff]  ;;  %v11885_v5 = vpack.c.bf16 %v603_v0, %v602_v62 }
  0xf6   :  { %14879 = vst [vmem:[#allocation12_spill] sm:$0xff] %v11756_v6  ;;  %14880 = vst [vmem:[#allocation13_spill] sm:$0xff] %v11758_v7  ;;  %v177_v13 = vadd.f32 %v176_v11, %v82_v58  ;;  %v252_v14 = vadd.f32 %v251_v12, %v86_v57  ;;  %512 = vmatprep.mubr.f32.mxu0 %v11758_v7  ;;  %v253_v15 = vpop.f32.mrb[3].mxu1  ;;  %v277_v16 = vadd.f32 %v11758_v7, %v11754_v4  ;;  %v619_v57 = vld [vmem:[%s14771_s5 + $0xa8] sm:$0xff]  ;;  %v605_v61 = vld [vmem:[%s14771_s5 + $0x38] sm:$0xff] }
  0xf7   :  { %14881 = vst [vmem:[#allocation14_spill] sm:$0xff] %v11760_v9  ;;  %v11765_v17 = vmax.f32 %v175_v10, 0.0  ;;  %587 = vmatprep.mubr.f32.mxu1 %v11760_v9  ;;  %v254_v18 = vadd.f32 %v253_v15, %v90_v59  ;;  %513 = vmatmul.mubr.f32.vlgmr.msra.gmra.mrb[4].mxu0 %v11754_v4  ;;  %v11860_v58 = vpack.c.bf16 %v633_v52, %v632_v47  ;;  %v621_v47 = vld [vmem:[%s14771_s5 + $0xb8] sm:$0xff]  ;;  %v652_v52 = vld [vmem:[%s14771_s5 + $0x1b0] sm:$0xff] }
  0xf8   :  { %v11769_v19 = vmax.f32 %v177_v13, 0.0  ;;  %v11771_v20 = vmax.f32 %v252_v14, 0.0  ;;  %588 = vmatmul.mubr.f32.vlgmr.msra.gmra.mrb[4].mxu1 %v11756_v6  ;;  %v278_v21 = vadd.f32 %v277_v16, %v11756_v6  ;;  %10110 = vmatpush3.bf16.msra.mxu0 %v11808_v35  ;;  %v11862_v59 = vpack.c.bf16 %v619_v57, %v618_v56  ;;  %v653_v57 = vld [vmem:[%s14771_s5 + $0x1b8] sm:$0xff] }
  0xf9   :  { %14882 = vst [vmem:[#allocation15_spill] sm:$0xff] %v11765_v17  ;;  %v11775_v22 = vmax.f32 %v254_v18, 0.0  ;;  %10142 = vmatpush3.bf16.msra.mxu1 %v11820_v39  ;;  %10112 = vmatprep.subr.bf16.mxu0 %v11833_v43  ;;  %v11889_v8 = vpack.c.bf16 %v635_v3, %v634_v2  ;;  %v11943_v56 = vpack.c.bf16 %v621_v47, %v620_v46  ;;  %v636_v2 = vld [vmem:[%s14771_s5 + $0x130] sm:$0xff]  ;;  %v637_v3 = vld [vmem:[%s14771_s5 + $0x138] sm:$0xff] }
  0xfa   :  { %14883 = vst [vmem:[#allocation16_spill] sm:$0xff] %v11769_v19  ;;  %14884 = vst [vmem:[#allocation17_spill] sm:$0xff] %v11771_v20  ;;  %517 = vmatprep.mubr.f32.mxu0 %v11769_v19  ;;  %v279_v23 = vadd.f32 %v278_v21, %v11760_v9  ;;  %v282_v24 = vadd.f32 %v11769_v19, %v11765_v17  ;;  %10144 = vmatprep.subr.bf16.mxu1 %v11835_v44  ;;  %v608_v46 = vld [vmem:[%s14771_s5 + $0x50] sm:$0xff]  ;;  %v609_v47 = vld [vmem:[%s14771_s5 + $0x58] sm:$0xff] }
  0xfb   :  { %14885 = vst [vmem:[#allocation18_spill] sm:$0xff] %v11775_v22  ;;  %518 = vmatmul.mubr.f32.gmra.mrb[6].mxu0 %v11765_v17  ;;  %592 = vmatprep.mubr.f32.mxu1 %v11775_v22  ;;  %v11954_v62 = vpack.c.bf16 %v653_v57, %v652_v52  ;;  %v11956_v0 = vpack.c.bf16 %v605_v61, %v604_v60  ;;  %v640_v60 = vld [vmem:[%s14771_s5 + $0x150] sm:$0xff]  ;;  %v641_v61 = vld [vmem:[%s14771_s5 + $0x158] sm:$0xff] }
  0xfc   :  { %280 = vadd.xlane.f32.xlu0 %v279_v23  ;;  %593 = vmatmul.mubr.f32.gmra.mrb[6].mxu1 %v11771_v20  ;;  %v283_v25 = vadd.f32 %v282_v24, %v11771_v20  ;;  %v12028_v57 = vpack.c.bf16 %v609_v47, %v608_v46 }
  0xfd   :  { %10114 = vmatpush3.bf16.msra.mxu0 %v11847_v48  ;;  %10146 = vmatpush3.bf16.msra.mxu1 %v11860_v58 }
  0xfe   :  { %v284_v26 = vadd.f32 %v283_v25, %v11775_v22  ;;  %10116 = vmatprep.subr.bf16.mxu0 %v11862_v59  ;;  %10148 = vmatprep.subr.bf16.mxu1 %v11873_v63 }
 0x100   :  { %285 = vadd.xlane.f32.xlu0 %v284_v26 }
 0x101   :  { %10118 = vmatpush3.bf16.msra.mxu0 %v11885_v5  ;;  %10150 = vmatpush3.bf16.msra.mxu1 %v11889_v8 }
 0x102   :  { %10120 = vmatprep.subr.bf16.mxu0 %v11943_v56  ;;  %10152 = vmatprep.subr.bf16.mxu1 %v11954_v62 }
 0x105   :  { %10122 = vmatpush3.bf16.msra.mxu0 %v11956_v0 }
 0x189   :  { %v281_v10 = vpop.xlane.xlu0 %280 }
 0x18a   :  { %v288_v11 = vmul.f32 0.001953125, %v281_v10  ;;  %v11965_v10 = vpack.c.bf16 %v637_v3, %v636_v2  ;;  %v626_v2 = vld [vmem:[%s14771_s5 + $0xe0] sm:$0xff]  ;;  %v12040_v3 = vpack.c.bf16 %v641_v61, %v640_v60  ;;  %v660_v60 = vld [vmem:[%s14771_s5 + $0x1f0] sm:$0xff]  ;;  %v661_v61 = vld [vmem:[%s14771_s5 + $0x1f8] sm:$0xff] }
 0x18c   :  { %v11895_v12 = vsub.f32 %v11754_v4, %v288_v11  ;;  %v11898_v13 = vsub.f32 %v11758_v7, %v288_v11  ;;  %v11901_v14 = vsub.f32 %v11756_v6, %v288_v11  ;;  %v11904_v16 = vsub.f32 %v11760_v9, %v288_v11  ;;  %v622_v11 = vld [vmem:[%s14771_s5 + $0xc0] sm:$0xff]  ;;  %10154 = vmatpush3.bf16.msra.mxu1 %v11965_v10 }
 0x18d   :  { %v286_v15 = vpop.xlane.xlu0 %285 }
 0x18e   :  { %v289_v18 = vmul.f32 0.001953125, %v286_v15  ;;  %v298_v21 = vmul.f32 %v11895_v12, %v11895_v12  ;;  %v299_v23 = vmul.f32 %v11898_v13, %v11898_v13  ;;  %v300_v24 = vmul.f32 %v11901_v14, %v11901_v14  ;;  %v623_v15 = vld [vmem:[%s14771_s5 + $0xc8] sm:$0xff] }
 0x18f   :  { %v301_v29 = vmul.f32 %v11904_v16, %v11904_v16 }
 0x190   :  { %v306_v25 = vadd.f32 %v299_v23, %v298_v21  ;;  %v11913_v26 = vsub.f32 %v11765_v17, %v289_v18  ;;  %v11916_v27 = vsub.f32 %v11769_v19, %v289_v18  ;;  %v11919_v28 = vsub.f32 %v11771_v20, %v289_v18  ;;  %v655_v23 = vld [vmem:[%s14771_s5 + $0x1c8] sm:$0xff] }
 0x191   :  { %v11924_v32 = vsub.f32 %v11775_v22, %v289_v18  ;;  %v654_v18 = vld [vmem:[%s14771_s5 + $0x1c0] sm:$0xff]  ;;  %v11979_v21 = vpack.c.bf16 %v623_v15, %v622_v11  ;;  %v627_v11 = vld [vmem:[%s14771_s5 + $0xe8] sm:$0xff] }
 0x192   :  { %v307_v31 = vadd.f32 %v306_v25, %v300_v24  ;;  %v302_v33 = vmul.f32 %v11913_v26, %v11913_v26  ;;  %v303_v36 = vmul.f32 %v11916_v27, %v11916_v27  ;;  %v304_v38 = vmul.f32 %v11919_v28, %v11919_v28  ;;  %v606_v24 = vld [vmem:[%s14771_s5 + $0x40] sm:$0xff]  ;;  %v607_v25 = vld [vmem:[%s14771_s5 + $0x48] sm:$0xff] }
 0x193   :  { %v305_v41 = vmul.f32 %v11924_v32, %v11924_v32  ;;  %10124 = vmatprep.subr.bf16.mxu0 %v11979_v21  ;;  %v658_v15 = vld [vmem:[%s14771_s5 + $0x1e0] sm:$0xff] }
 0x194   :  { %v308_v37 = vadd.f32 %v307_v31, %v301_v29  ;;  %v311_v40 = vadd.f32 %v303_v36, %v302_v33  ;;  %v11990_v29 = vpack.c.bf16 %v655_v23, %v654_v18  ;;  %v11992_v31 = vpack.c.bf16 %v607_v25, %v606_v24  ;;  %v638_v33 = vld [vmem:[%s14771_s5 + $0x140] sm:$0xff]  ;;  %v639_v36 = vld [vmem:[%s14771_s5 + $0x148] sm:$0xff] }
 0x195   :  { %v659_v18 = vld [vmem:[%s14771_s5 + $0x1e8] sm:$0xff]  ;;  %v12053_v23 = vpack.c.bf16 %v627_v11, %v626_v2  ;;  %v610_v25 = vld [vmem:[%s14771_s5 + $0x60] sm:$0xff]  ;;  %v612_v2 = vld [vmem:[%s14771_s5 + $0x70] sm:$0xff]  ;;  %v12093_v11 = vpack.c.bf16 %v661_v61, %v660_v60 }
 0x196   :  { %309 = vadd.xlane.f32.xlu1 %v308_v37  ;;  %v312_v42 = vadd.f32 %v311_v40, %v304_v38  ;;  %v12001_v37 = vpack.c.bf16 %v639_v36, %v638_v33  ;;  %10156 = vmatprep.subr.bf16.mxu1 %v11990_v29  ;;  %v624_v38 = vld [vmem:[%s14771_s5 + $0xd0] sm:$0xff]  ;;  %v625_v40 = vld [vmem:[%s14771_s5 + $0xd8] sm:$0xff]  ;;  %v12055_v24 = vpack.c.bf16 %v659_v18, %v658_v15  ;;  %v611_v33 = vld [vmem:[%s14771_s5 + $0x68] sm:$0xff] }
 0x197   :  { %10126 = vmatpush3.bf16.msra.mxu0 %v11992_v31  ;;  %v642_v36 = vld [vmem:[%s14771_s5 + $0x160] sm:$0xff]  ;;  %v613_v15 = vld [vmem:[%s14771_s5 + $0x78] sm:$0xff]  ;;  %v644_v18 = vld [vmem:[%s14771_s5 + $0x170] sm:$0xff] }
 0x198   :  { %v313_v45 = vadd.f32 %v312_v42, %v305_v41  ;;  %v656_v41 = vld [vmem:[%s14771_s5 + $0x1d0] sm:$0xff]  ;;  %10158 = vmatpush3.bf16.msra.mxu1 %v12001_v37  ;;  %v12015_v42 = vpack.c.bf16 %v625_v40, %v624_v38  ;;  %v12067_v38 = vpack.c.bf16 %v611_v33, %v610_v25  ;;  %v643_v40 = vld [vmem:[%s14771_s5 + $0x168] sm:$0xff]  ;;  %v645_v25 = vld [vmem:[%s14771_s5 + $0x178] sm:$0xff]  ;;  %v12105_v33 = vpack.c.bf16 %v613_v15, %v612_v2 }
 0x199   :  { %v12080_v46 = vpack.c.bf16 %v643_v40, %v642_v36  ;;  %v12109_v36 = vpack.c.bf16 %v645_v25, %v644_v18  ;;  %v12122_v61 = vld [vmem:[%s14777_s11] sm:$0x3]  ;;  %s11391_s11 = smov 120  }
 0x19a   :  { %314 = vadd.xlane.f32.xlu1 %v313_v45  ;;  %v657_v45 = vld [vmem:[%s14771_s5 + $0x1d8] sm:$0xff]  ;;  %10128 = vmatprep.subr.bf16.mxu0 %v12015_v42  ;;  %14886 = vst [vmem:[#allocation19_spill] sm:$0xff] %v12105_v33  ;;  %14888 = vst [vmem:[#allocation21_spill] sm:$0xff] %v12122_v61 }
 0x19b   :  { %v12026_v52 = vpack.c.bf16 %v657_v45, %v656_v41  ;;  %10130 = vmatpush3.bf16.msra.mxu0 %v12028_v57  ;;  %v628_v41 = vld [vmem:[%s14771_s5 + $0xf0] sm:$0xff]  ;;  %v629_v45 = vld [vmem:[%s14771_s5 + $0xf8] sm:$0xff]  ;;  %14887 = vst [vmem:[#allocation20_spill] sm:$0xff] %v12109_v36 }
 0x19c   :  { %10132 = vmatprep.subr.bf16.mxu0 %v12053_v23  ;;  %v12082_v47 = vpack.c.bf16 %v629_v45, %v628_v41  ;;  %v8621_v45 = vld [vmem:[%s14775_s9] ss:$0 sm:$0xff] }
 0x19d   :  { %10160 = vmatprep.subr.bf16.mxu1 %v12026_v52  ;;  %662 = vrot.lane.b32.xlu0 %v8621_v45, %s11392_s21 }
 0x19e   :  { %10162 = vmatpush3.bf16.msra.mxu1 %v12040_v3 }
 0x19f   :  { %10164 = vmatprep.subr.bf16.mxu1 %v12055_v24  ;;  %10134 = vmatpush3.bf16.msra.mxu0 %v12067_v38 }
 0x1a0   :  { %10136 = vmatprep.subr.bf16.mxu0 %v12082_v47 }
 0x1a2   :  { %10166 = vmatpush3.bf16.msra.mxu1 %v12080_v46 }
 0x1a3   :  { %10168 = vmatprep.subr.bf16.mxu1 %v12093_v11  ;;  %10138 = vmatpush3.bf16.msra.mxu0 %v12105_v33 }
 0x1a4   :  { %10172 = vmatprep.subr.bf16.mxu0 %v11795_v30  ;;  %v12126_v30 = vrot.slane %v12122_v61, %v11745_v54 }
 0x1a6   :  { %10170 = vmatpush3.bf16.msra.mxu1 %v12109_v36  ;;  %14889 = vst [vmem:[#allocation22_spill] sm:$0xff] %v12126_v30 }
 0x1a7   :  { %10204 = vmatprep.subr.bf16.mxu1 %v11806_v34 }
 0x1ca   :  { %v9479_v40 = vpop.f32.mrb[4].mxu0 }
 0x1cb   :  { %v9517_v41 = vpop.f32.mrb[4].mxu1  ;;  %v9480_v60 = vpop.f32.mrb[5].mxu0 }
 0x1cc   :  { %v9481_v2 = vadd.f32 %v9480_v60, %v9479_v40  ;;  %v9518_v15 = vpop.f32.mrb[5].mxu1  ;;  %v273_v60 = vld [vmem:[%s14776_s10 + $0x8] sm:$0x7f] }
 0x1cd   :  { %v9519_v18 = vadd.f32 %v9518_v15, %v9517_v41  ;;  %v12159_v15 = vld [vmem:[%s14776_s10 + $0x10] sm:$0x7f] }
 0x1ce   :  { %v515_v25 = vadd.f32 %v9481_v2, %v8621_v45  ;;  %v9482_v49 = vpop.f32.mrb[6].mxu0  ;;  %v275_v2 = vld [vmem:[%s14776_s10 + $0x18] sm:$0x7f] }
 0x1cf   :  { %v9483_v34 = vpop.f32.mrb[7].mxu0  ;;  %v9520_v1 = vpop.f32.mrb[6].mxu1 }
 0x1d0   :  { %v12128_v55 = vadd.f32 %v9519_v18, %v515_v25  ;;  %v9484_v53 = vadd.f32 %v9483_v34, %v9482_v49  ;;  %v9521_v22 = vpop.f32.mrb[7].mxu1  ;;  %v337_v18 = vrot.slane %v273_v60, %v11736_v51  ;;  %v345_v25 = vrot.slane %v275_v2, %v11736_v51 }
 0x1d1   :  { %v9522_v20 = vadd.f32 %v9521_v22, %v9520_v1 }
 0x1d2   :  { %14890 = vst [vmem:[#allocation23_spill] sm:$0xff] %v12128_v55  ;;  %v520_v19 = vadd.f32 %v9484_v53, %v8621_v45  ;;  %v12132_v17 = vadd.f32 %v12126_v30, %v12128_v55  ;;  %v12154_v45 = vld [vmem:[%s14776_s10] sm:$0x7f] }
 0x1d3   :  { %v333_v34 = vrot.slane %v12154_v45, %v11736_v51 }
 0x1d4   :  { %14891 = vst [vmem:[#allocation24_spill] sm:$0xff] %v12132_v17  ;;  %v12134_v40 = vadd.f32 %v9522_v20, %v520_v19  ;;  %1057 = vrot.lane.b32.xlu1 %v12132_v17, %s11391_s11 }
 0x1d6   :  { %14892 = vst [vmem:[#allocation25_spill] sm:$0xff] %v12134_v40  ;;  %v12140_v41 = vadd.f32 %v12126_v30, %v12134_v40 }
 0x1d8   :  { %14893 = vst [vmem:[#allocation26_spill] sm:$0xff] %v12140_v41  ;;  %1059 = vrot.lane.b32.xlu1 %v12140_v41, %s11391_s11 }
 0x223   :  { %v310_v1 = vpop.xlane.xlu1 %309 }
 0x224   :  { %v316_v49 = vmul.f32 0.001953125, %v310_v1  ;;  %v341_v1 = vrot.slane %v12159_v15, %v11736_v51 }
 0x226   :  { %v318_v53 = vadd.f32 1e-05, %v316_v49 }
 0x227   :  { %v315_v22 = vpop.xlane.xlu1 %314 }
 0x228   :  { %11299 = vrsqrt.f32 %v318_v53  ;;  %v317_v19 = vmul.f32 0.001953125, %v315_v22  ;;  %v361_v53 = vrot.slane %v273_v60, %v11745_v54  ;;  %v369_v22 = vrot.slane %v275_v2, %v11745_v54 }
 0x22a   :  { %v319_v20 = vadd.f32 1e-05, %v317_v19  ;;  %v357_v19 = vrot.slane %v12154_v45, %v11745_v54 }
 0x22c   :  { %11301 = vrsqrt.f32 %v319_v20  ;;  %v365_v20 = vrot.slane %v12159_v15, %v11745_v54 }
 0x232   :  { %v11300_v49 = vpop.eup %11299 }
 0x233   :  { %v323_v30 = vmul.f32 %v11300_v49, %v11898_v13  ;;  %v325_v9 = vmul.f32 %v11300_v49, %v11904_v16  ;;  %v322_v6 = vmul.f32 %v11300_v49, %v11895_v12  ;;  %v324_v7 = vmul.f32 %v11300_v49, %v11901_v14 }
 0x235   :  { %v347_v4 = vmul.f32 %v337_v18, %v323_v30  ;;  %v349_v50 = vmul.f32 %v345_v25, %v325_v9  ;;  %v346_v40 = vmul.f32 %v333_v34, %v322_v6  ;;  %v348_v55 = vmul.f32 %v341_v1, %v324_v7 }
 0x236   :  { %v11302_v61 = vpop.eup %11301 }
 0x237   :  { %v371_v51 = vadd.f32 %v361_v53, %v347_v4  ;;  %v373_v41 = vadd.f32 %v369_v22, %v349_v50  ;;  %v370_v17 = vadd.f32 %v357_v19, %v346_v40  ;;  %v372_v36 = vadd.f32 %v365_v20, %v348_v55 }
 0x238   :  { %v327_v33 = vmul.f32 %v11302_v61, %v11916_v27  ;;  %v329_v54 = vmul.f32 %v11302_v61, %v11924_v32  ;;  %v326_v13 = vmul.f32 %v11302_v61, %v11913_v26  ;;  %v328_v16 = vmul.f32 %v11302_v61, %v11919_v28  ;;  %v663_v26 = vpop.permute.xlu0 %662 }
 0x239   :  { %729 = vmatprep.mubr.f32.mxu0 %v371_v51  ;;  %804 = vmatprep.mubr.f32.mxu1 %v373_v41  ;;  %v820_v51 = vrot.slane %v273_v60, 1 }
 0x23a   :  { %730 = vmatmul.mubr.f32.vlgmr.msra.gmra.mrb[8].mxu0 %v370_v17  ;;  %805 = vmatmul.mubr.f32.vlgmr.msra.gmra.mrb[8].mxu1 %v372_v36  ;;  %v351_v9 = vmul.f32 %v337_v18, %v327_v33  ;;  %v353_v6 = vmul.f32 %v345_v25, %v329_v54  ;;  %v350_v7 = vmul.f32 %v333_v34, %v326_v13  ;;  %v822_v17 = vrot.slane %v275_v2, 1  ;;  %v967_v54 = vld [vmem:[%s14767_s1] sm:$0xff] }
 0x23b   :  { %10174 = vmatpush3.bf16.msra.mxu0 %v11808_v35  ;;  %10206 = vmatpush3.bf16.msra.mxu1 %v11820_v39  ;;  %v352_v50 = vmul.f32 %v341_v1, %v328_v16  ;;  %v968_v35 = vld [vmem:[%s14767_s1 + $0x8] sm:$0xff]  ;;  %v819_v39 = vrot.slane %v12154_v45, 1  ;;  %v14903_v33 = vld [vmem:[#allocation25_spill] sm:$0xff] }
 0x23c   :  { %v375_v55 = vadd.f32 %v361_v53, %v351_v9  ;;  %v377_v4 = vadd.f32 %v369_v22, %v353_v6  ;;  %10176 = vmatprep.subr.bf16.mxu0 %v11833_v43  ;;  %10208 = vmatprep.subr.bf16.mxu1 %v11835_v44  ;;  %v374_v12 = vadd.f32 %v357_v19, %v350_v7  ;;  %v821_v43 = vrot.slane %v12159_v15, 1 }
 0x23d   :  { %v376_v14 = vadd.f32 %v365_v20, %v352_v50 }
 0x23e   :  { %734 = vmatprep.mubr.f32.mxu0 %v375_v55  ;;  %809 = vmatprep.mubr.f32.mxu1 %v377_v4 }
 0x23f   :  { %735 = vmatmul.mubr.f32.gmra.mrb[10].mxu0 %v374_v12  ;;  %810 = vmatmul.mubr.f32.gmra.mrb[10].mxu1 %v376_v14 }
 0x240   :  { %10178 = vmatpush3.bf16.msra.mxu0 %v11847_v48  ;;  %10210 = vmatpush3.bf16.msra.mxu1 %v11860_v58  ;;  %v14894_v48 = vld [vmem:[#allocation19_spill] sm:$0xff]  ;;  %v14895_v58 = vld [vmem:[#allocation20_spill] sm:$0xff] }
 0x241   :  { %10180 = vmatprep.subr.bf16.mxu0 %v11862_v59  ;;  %10212 = vmatprep.subr.bf16.mxu1 %v11873_v63  ;;  %v14896_v59 = vld [vmem:[#allocation24_spill] sm:$0xff] }
 0x242   :  { %891 = vmatprep.mubr.f32.mxu0 %v820_v51  ;;  %961 = vmatprep.mubr.f32.mxu1 %v822_v17 }
 0x244   :  { %10182 = vmatpush3.bf16.msra.mxu0 %v11885_v5  ;;  %10214 = vmatpush3.bf16.msra.mxu1 %v11889_v8  ;;  %v14897_v5 = vmov 0.0   ;;  %v14898_v8 = vld [vmem:[#allocation26_spill] sm:$0xff] }
 0x245   :  { %10184 = vmatprep.subr.bf16.mxu0 %v11943_v56  ;;  %10216 = vmatprep.subr.bf16.mxu1 %v11954_v62 }
 0x246   :  { %v1058_v44 = vpop.permute.xlu1 %1057 }
 0x248   :  { %10186 = vmatpush3.bf16.msra.mxu0 %v11956_v0  ;;  %10218 = vmatpush3.bf16.msra.mxu1 %v11965_v10 }
 0x249   :  { %10188 = vmatprep.subr.bf16.mxu0 %v11979_v21  ;;  %10220 = vmatprep.subr.bf16.mxu1 %v11990_v29  ;;  %v14899_v21 = vld [vmem:[#allocation7_spill] sm:$0xff]  ;;  %v14900_v29 = vld [vmem:[#allocation21_spill] sm:$0xff] }
 0x24a   :  { %v1060_v63 = vpop.permute.xlu1 %1059 }
 0x24c   :  { %10190 = vmatpush3.bf16.msra.mxu0 %v11992_v31  ;;  %10222 = vmatpush3.bf16.msra.mxu1 %v12001_v37  ;;  %v12233_v31 = vrot.slane %v14900_v29, %v14899_v21 }
 0x24d   :  { %10192 = vmatprep.subr.bf16.mxu0 %v12015_v42  ;;  %10224 = vmatprep.subr.bf16.mxu1 %v12026_v52 }
 0x24e   :  { %14901 = vst [vmem:[#allocation19_spill] sm:$0xff] %v12233_v31  ;;  %v12254_v36 = vadd.f32 %v12233_v31, %v14903_v33 }
 0x250   :  { %10194 = vmatpush3.bf16.msra.mxu0 %v12028_v57  ;;  %10226 = vmatpush3.bf16.msra.mxu1 %v12040_v3 }
 0x251   :  { %10196 = vmatprep.subr.bf16.mxu0 %v12053_v23  ;;  %10228 = vmatprep.subr.bf16.mxu1 %v12055_v24 }
 0x254   :  { %10198 = vmatpush3.bf16.msra.mxu0 %v12067_v38  ;;  %10230 = vmatpush3.bf16.msra.mxu1 %v12080_v46  ;;  %v14902_v38 = vld [vmem:[#allocation23_spill] sm:$0xff] }
 0x255   :  { %10200 = vmatprep.subr.bf16.mxu0 %v12082_v47  ;;  %10232 = vmatprep.subr.bf16.mxu1 %v12093_v11  ;;  %v12241_v46 = vadd.f32 %v12233_v31, %v14902_v38 }
 0x258   :  { %10202 = vmatpush3.bf16.msra.mxu0 %v14894_v48  ;;  %10234 = vmatpush3.bf16.msra.mxu1 %v14895_v58 }
 0x259   :  { %9935 = vmatprep.subr.mxu0 %v967_v54  ;;  %9940 = vmatprep.subr.mxu1 %v968_v35 }
 0x25b   :  { %892 = vmatmul.mubr.f32.vlgmr.msra.gmra.mrb[12].mxu0 %v819_v39  ;;  %962 = vmatmul.mubr.f32.vlgmr.msra.gmra.mrb[12].mxu1 %v821_v43 }
 0x25c   :  { %9937 = vmatprep.mubr.msk.f32.mxu0 %vm14814_vm1, %v14896_v59  ;;  %9942 = vmatprep.mubr.msk.f32.mxu1 %vm14814_vm1, %v1058_v44 }
 0x25d   :  { %9936 = vmatpush3.msra.mxu0 %v967_v54  ;;  %9941 = vmatpush3.msra.mxu1 %v968_v35 }
 0x25e   :  { %9945 = vmatprep.subr.mxu0 %v14897_v5  ;;  %9950 = vmatprep.subr.mxu1 %v14897_v5 }
 0x25f   :  { %9938 = vmatmul.mubr.msk.f32.vlgmr.msra.gmra.mrb[14].mxu0 %vm14814_vm1, %v14898_v8  ;;  %9943 = vmatmul.mubr.msk.f32.vlgmr.msra.gmra.mrb[14].mxu1 %vm14814_vm1, %v1060_v63 }
 0x260   :  { %9947 = vmatprep.mubr.msk.f32.mxu0 %vm14812_vm2, %v14897_v5  ;;  %9952 = vmatprep.mubr.msk.f32.mxu1 %vm14812_vm2, %v14897_v5 }
 0x30d   :  { %v9555_v27 = vpop.f32.mrb[8].mxu0  ;;  %v9593_v28 = vpop.f32.mrb[8].mxu1 }
 0x30e   :  { %v9556_v32 = vpop.f32.mrb[9].mxu0  ;;  %v9594_v56 = vpop.f32.mrb[9].mxu1 }
 0x30f   :  { %v9557_v62 = vadd.f32 %v9556_v32, %v9555_v27  ;;  %v9595_v0 = vadd.f32 %v9594_v56, %v9593_v28 }
 0x311   :  { %v732_v10 = vadd.f32 %v9557_v62, %v663_v26 }
 0x312   :  { %v9558_v37 = vpop.f32.mrb[10].mxu0  ;;  %v9596_v42 = vpop.f32.mrb[10].mxu1 }
 0x313   :  { %v12235_v52 = vadd.f32 %v9595_v0, %v732_v10  ;;  %v9559_v57 = vpop.f32.mrb[11].mxu0  ;;  %v9597_v3 = vpop.f32.mrb[11].mxu1 }
 0x314   :  { %v9560_v23 = vadd.f32 %v9559_v57, %v9558_v37  ;;  %v9598_v24 = vadd.f32 %v9597_v3, %v9596_v42 }
 0x315   :  { %9946 = vmatpush3.xpose.msk.msra.mxu0 %vm14814_vm1, %v12235_v52 }
 0x316   :  { %v737_v47 = vadd.f32 %v9560_v23, %v663_v26  ;;  %9955 = vmatprep.subr.mxu0 %v14897_v5 }
 0x318   :  { %v12244_v11 = vadd.f32 %v9598_v24, %v737_v47  ;;  %9948 = vmatmul.mubr.msk.f32.vlgmr.msra.gmra.mrb[16].mxu0 %vm14814_vm1, %v12241_v46 }
 0x319   :  { %9957 = vmatprep.mubr.msk.f32.mxu0 %vm14812_vm2, %v14897_v5 }
 0x31a   :  { %9951 = vmatpush3.xpose.msk.msra.mxu1 %vm14814_vm1, %v12244_v11 }
 0x31b   :  { %9960 = vmatprep.subr.mxu1 %v14897_v5 }
 0x31d   :  { %9953 = vmatmul.mubr.msk.f32.vlgmr.msra.gmra.mrb[16].mxu1 %vm14814_vm1, %v12254_v36 }
 0x31e   :  { %9962 = vmatprep.mubr.msk.f32.mxu1 %vm14812_vm2, %v14897_v5  ;;  %vm14817_vm2 = vcmask 523264  }
 0x32e   :  { %v9631_v61 = vpop.f32.mrb[12].mxu0  ;;  %v9666_v30 = vpop.f32.mrb[12].mxu1 }
 0x32f   :  { %v9632_v40 = vpop.f32.mrb[13].mxu0  ;;  %v9667_v41 = vpop.f32.mrb[13].mxu1 }
 0x330   :  { %v9633_v60 = vadd.f32 %v9632_v40, %v9631_v61  ;;  %v9668_v2 = vadd.f32 %v9667_v41, %v9666_v30  ;;  %v14904_v41 = vlaneseq }
 0x332   :  { %v894_v45 = vadd.f32 %v9633_v60, %v663_v26  ;;  %v12261_v15 = vpop.f32.mrb[14].mxu0  ;;  %v12263_v18 = vpop.f32.mrb[14].mxu1  ;;  %v268_v60 = vand.u32 127, %v14904_v41 }
 0x333   :  { %1158 = vrot.lane.b32.xlu0 %v12261_v15, %s11394_s18  ;;  %1146 = vrot.lane.b32.xlu1 %v12261_v15, %s11395_s2  ;;  %v12269_v25 = vpop.f32.mrb[15].mxu0  ;;  %v12271_v34 = vpop.f32.mrb[15].mxu1 }
 0x334   :  { %v964_v1 = vadd.f32 %v9668_v2, %v894_v45  ;;  %v14905_v2 = vld [vmem:[#allocation6_spill] sm:$0xff] }
 0x335   :  { %v269_v45 = vadd.s32 64, %v14905_v2 }
 0x336   :  { %v12324_v49 = vrot.slane %v964_v1, %v14899_v21 }
 0x337   :  { %1187 = vrot.lane.b32.xlu0 %v12261_v15, %s11396_s0  ;;  %1175 = vrot.lane.b32.xlu1 %v12261_v15, %s11397_s8 }
 0x338   :  { %v12328_v53 = vmul.f32 %v12324_v49, %v12254_v36  ;;  %v12332_v22 = vmul.f32 %v12324_v49, %v12241_v46 }
 0x33a   :  { %v1549_v19 = vsel %vm14814_vm1, %v12328_v53, 0.0  ;;  %v1546_v20 = vsel %vm14814_vm1, %v12332_v22, 0.0  ;;  %vm270_vm1 = vcmp.gt.s32.totalorder %v268_v60, %v269_v45 }
 0x33b   :  { %1216 = vrot.lane.b32.xlu0 %v12261_v15, %s11398_s16  ;;  %1204 = vrot.lane.b32.xlu1 %v12261_v15, %s11399_s19 }
 0x33f   :  { %1245 = vrot.lane.b32.xlu0 %v12261_v15, %s11400_s20  ;;  %1233 = vrot.lane.b32.xlu1 %v12261_v15, %s11401_s22 }
 0x343   :  { %1274 = vrot.lane.b32.xlu0 %v12261_v15, %s14840_s23  ;;  %1262 = vrot.lane.b32.xlu1 %v12261_v15, %s14836_s13 }
 0x347   :  { %1291 = vrot.lane.b32.xlu0 %v12261_v15, %s14834_s24  ;;  %1303 = vrot.lane.b32.xlu1 %v12261_v15, %s14832_s26 }
 0x34b   :  { %1320 = vrot.lane.b32.xlu0 %v12261_v15, %s14830_s27  ;;  %1156 = vrot.lane.b32.xlu1 %v12269_v25, %s11394_s18 }
 0x34f   :  { %1173 = vrot.lane.b32.xlu1 %v12269_v25, %s11397_s8  ;;  %1144 = vrot.lane.b32.xlu0 %v12269_v25, %s11395_s2 }
 0x353   :  { %1202 = vrot.lane.b32.xlu1 %v12269_v25, %s11399_s19  ;;  %1185 = vrot.lane.b32.xlu0 %v12269_v25, %s11396_s0 }
 0x357   :  { %1231 = vrot.lane.b32.xlu1 %v12269_v25, %s11401_s22  ;;  %1214 = vrot.lane.b32.xlu0 %v12269_v25, %s11398_s16 }
 0x35b   :  { %1260 = vrot.lane.b32.xlu1 %v12269_v25, %s14836_s13  ;;  %1243 = vrot.lane.b32.xlu0 %v12269_v25, %s11400_s20 }
 0x35f   :  { %1289 = vrot.lane.b32.xlu1 %v12269_v25, %s14834_s24  ;;  %1272 = vrot.lane.b32.xlu0 %v12269_v25, %s14840_s23 }
 0x363   :  { %1318 = vrot.lane.b32.xlu1 %v12269_v25, %s14830_s27  ;;  %1301 = vrot.lane.b32.xlu0 %v12269_v25, %s14832_s26 }
 0x367   :  { %1330 = vrot.lane.b32.xlu0 %v12269_v25, %s14828_s28 }
 0x386   :  { %1550 = vadd.xlane.f32.xlu0 %v1549_v19 }
 0x387   :  { %1547 = vadd.xlane.f32.xlu1 %v1546_v20 }
 0x3a5   :  { %v1159_v7 = vpop.permute.xlu0 %1158  ;;  %v1147_v50 = vpop.permute.xlu1 %1146 }
 0x3a9   :  { %v1188_v55 = vpop.permute.xlu0 %1187  ;;  %v1176_v4 = vpop.permute.xlu1 %1175 }
 0x3aa   :  { %v1199_v19 = vsel %vm1197_vm3, %v1176_v4, %v1188_v55 }
 0x3ad   :  { %v1217_v12 = vpop.permute.xlu0 %1216  ;;  %v1205_v14 = vpop.permute.xlu1 %1204 }
 0x3b1   :  { %v1246_v51 = vpop.permute.xlu0 %1245  ;;  %v1234_v17 = vpop.permute.xlu1 %1233 }
 0x3b5   :  { %v1275_v54 = vpop.permute.xlu0 %1274  ;;  %v1263_v35 = vpop.permute.xlu1 %1262 }
 0x3b9   :  { %v1292_v39 = vpop.permute.xlu0 %1291  ;;  %v1304_v43 = vpop.permute.xlu1 %1303 }
 0x3bd   :  { %v12342_v44 = vpop.permute.xlu0 %1320  ;;  %v1157_v48 = vpop.permute.xlu1 %1156 }
 0x3c1   :  { %v1145_v58 = vpop.permute.xlu0 %1144  ;;  %v1174_v59 = vpop.permute.xlu1 %1173 }
 0x3c2   :  { %v1169_v37 = vsel %vm1168_vm5, %v1145_v58, %v1157_v48  ;;  %v1286_v58 = vsel %vm14815_vm8, %v1263_v35, %v1275_v54 }
 0x3c5   :  { %v1186_v63 = vpop.permute.xlu0 %1185  ;;  %v1203_v8 = vpop.permute.xlu1 %1202 }
 0x3c6   :  { %v1198_v10 = vsel %vm1197_vm3, %v1174_v59, %v1186_v63 }
 0x3c7   :  { %v1348_v23 = vsel %vm1347_vm6, %v1169_v37, %v1198_v10 }
 0x3c9   :  { %v1215_v26 = vpop.permute.xlu0 %1214  ;;  %v1232_v27 = vpop.permute.xlu1 %1231 }
 0x3ca   :  { %v1227_v29 = vsel %vm1226_vm4, %v1203_v8, %v1215_v26 }
 0x3cb   :  { %v1353_v38 = vsel %vm1352_vm10, %v1348_v23, %v1227_v29 }
 0x3cd   :  { %v1244_v28 = vpop.permute.xlu0 %1243  ;;  %v1261_v32 = vpop.permute.xlu1 %1260 }
 0x3ce   :  { %v1256_v42 = vsel %vm1255_vm7, %v1232_v27, %v1244_v28 }
 0x3cf   :  { %v1358_v33 = vsel %vm1357_vm12, %v1353_v38, %v1256_v42 }
 0x3d1   :  { %v1273_v56 = vpop.permute.xlu0 %1272  ;;  %v1290_v62 = vpop.permute.xlu1 %1289 }
 0x3d2   :  { %v1285_v24 = vsel %vm14815_vm8, %v1261_v32, %v1273_v56  ;;  %vm14816_vm8 = vcmask 588800  }
 0x3d3   :  { %v1363_v30 = vsel %vm14821_vm13, %v1358_v33, %v1285_v24 }
 0x3d5   :  { %v1302_v0 = vpop.permute.xlu0 %1301  ;;  %v1319_v57 = vpop.permute.xlu1 %1318 }
 0x3d6   :  { %v1314_v47 = vsel %vm1313_vm11, %v1290_v62, %v1302_v0 }
 0x3d7   :  { %v1368_v1 = vsel %vm14820_vm15, %v1363_v30, %v1314_v47 }
 0x3d9   :  { %v1331_v3 = vpop.permute.xlu0 %1330 }
 0x3da   :  { %v1343_v61 = vsel %vm1342_vm9, %v1319_v57, %v1331_v3 }
 0x3db   :  { %v1373_v20 = vsel %vm14819_vm14, %v1368_v1, %v1343_v61 }
 0x3dc   :  { %v1378_v55 = vsel %vm14818_vm0, %v1373_v20, %v12269_v25 }
 0x3eb   :  { %v1460_v13 = vpop.f32.mrb[16].mxu0 }
 0x3ec   :  { %1554 = vrot.lane.b32.xlu1 %v1460_v13, %s14826_s3  ;;  %v9949_v16 = vpop.f32.mrb[17].mxu0  ;;  %v1228_v13 = vsel %vm1226_vm4, %v1205_v14, %v1217_v12  ;;  %v1315_v12 = vsel %vm1313_vm11, %v1292_v39, %v1304_v43 }
 0x3ed   :  { %v1170_v16 = vsel %vm1168_vm5, %v1147_v50, %v1159_v7  ;;  %v12372_v50 = vsel %vm270_vm1, -1e+30, %v14897_v5  ;;  %vm14907_vm1 = vcmask 64512  }
 0x3ee   :  { %v1349_v48 = vsel %vm1347_vm6, %v1170_v16, %v1199_v19  ;;  %14906 = vst [vmem:[#allocation20_spill] sm:$0xff] %v12372_v50 }
 0x3ef   :  { %v1354_v63 = vsel %vm1352_vm10, %v1349_v48, %v1228_v13 }
 0x3f0   :  { %v1536_v9 = vpop.f32.mrb[16].mxu1  ;;  %1332 = vrot.lane.b32.xlu1 %v12261_v15, %s14828_s28 }
 0x3f1   :  { %1556 = vrot.lane.b32.xlu0 %v1536_v9, %s14826_s3  ;;  %v9954_v6 = vpop.f32.mrb[17].mxu1  ;;  %v1257_v9 = vsel %vm1255_vm7, %v1234_v17, %v1246_v51 }
 0x3f2   :  { %v1359_v7 = vsel %vm1357_vm12, %v1354_v63, %v1257_v9 }
 0x3f3   :  { %v1364_v51 = vsel %vm14821_vm13, %v1359_v7, %v1286_v58 }
 0x3f4   :  { %v1369_v35 = vsel %vm14820_vm15, %v1364_v51, %v1315_v12 }
 0x413   :  { %v1551_v59 = vpop.xlane.xlu0 %1550 }
 0x414   :  { %v1548_v40 = vpop.xlane.xlu1 %1547 }
 0x45e   :  { %v1555_v6 = vpop.permute.xlu1 %1554 }
 0x45f   :  { %v1561_v4 = vsel %vm14817_vm2, %v1548_v40, %v1555_v6 }
 0x460   :  { %v1563_v14 = vadd.f32 %v1561_v4, %v1378_v55 }
 0x462   :  { %v1565_v17 = vmul.f32 0.35355338, %v1563_v14  ;;  %v1333_v54 = vpop.permute.xlu1 %1332 }
 0x463   :  { %v1344_v25 = vsel %vm1342_vm9, %v12342_v44, %v1333_v54  ;;  %v1557_v8 = vpop.permute.xlu0 %1556 }
 0x464   :  { %v1374_v26 = vsel %vm14819_vm14, %v1369_v35, %v1344_v25  ;;  %v1567_v39 = vadd.f32 %v1565_v17, %v12372_v50  ;;  %v1562_v27 = vsel %vm14817_vm2, %v1551_v59, %v1557_v8  ;;  %vm14909_vm2 = vmmov 0  }
 0x465   :  { %v1379_v43 = vsel %vm14818_vm0, %v1374_v26, %v12261_v15  ;;  %vm14910_vm0 = vmmov %vm14907_vm1 }
 0x466   :  { %v1564_v28 = vadd.f32 %v1562_v27, %v1379_v43  ;;  %v1570_v32 = vsel %vm14816_vm8, %v1567_v39, -inf  ;;  %vm14911_vm14 = vmmov %vm14910_vm0 }
 0x467   :  { %1571 = vmax.xlane.f32.xlu1 %v1570_v32  ;;  %vm14914_vm15 = vmmov %vm14910_vm0 }
 0x468   :  { %v1566_v56 = vmul.f32 0.35355338, %v1564_v28 }
 0x46a   :  { %v1568_v62 = vadd.f32 %v1566_v56, %v12372_v50 }
 0x46c   :  { %v1573_v44 = vsel %vm14816_vm8, %v1568_v62, -inf }
 0x46d   :  { %1574 = vmax.xlane.f32.xlu0 %v1573_v44 }
 0x478   :  { %1603 = vrot.lane.b32.xlu1 %v12235_v52, %s11392_s21 }
 0x47c   :  { %1768 = vrot.lane.b32.xlu1 %v12235_v52, %s11391_s11 }
 0x4f4   :  { %v1572_v0 = vpop.xlane.xlu1 %1571 }
 0x4f5   :  { %v1576_v15 = vsub.f32 %v1567_v39, %v1572_v0 }
 0x4f7   :  { %v1578_v10 = vmul.f32 1.442695, %v1576_v15 }
 0x4f8   :  { %v1604_v29 = vpop.permute.xlu1 %1603 }
 0x4f9   :  { %11303 = vpow2.f32 %v1578_v10  ;;  %9956 = vmatpush3.msra.mxu0 %v1604_v29 }
 0x4fa   :  { %v1575_v37 = vpop.xlane.xlu0 %1574  ;;  %9965 = vmatprep.subr.mxu0 %v14897_v5 }
 0x4fb   :  { %v1577_v42 = vsub.f32 %v1568_v62, %v1575_v37 }
 0x4fd   :  { %v1580_v57 = vmul.f32 1.442695, %v1577_v42 }
 0x4ff   :  { %11305 = vpow2.f32 %v1580_v57 }
 0x503   :  { %v11304_v3 = vpop.eup %11303 }
 0x504   :  { %v1582_v23 = vsel %vm14816_vm8, %v11304_v3, 0.0 }
 0x505   :  { %1583 = vadd.xlane.f32.xlu0 %v1582_v23 }
 0x509   :  { %v11306_v24 = vpop.eup %11305 }
 0x50a   :  { %v1585_v38 = vsel %vm14816_vm8, %v11306_v24, 0.0  ;;  %vm14908_vm8 = vmmov %vm14907_vm1 }
 0x50b   :  { %1586 = vadd.xlane.f32.xlu0 %v1585_v38 }
 0x521   :  { %1681 = vrot.lane.b32.xlu0 %v12244_v11, %s11392_s21 }
 0x525   :  { %1766 = vrot.lane.b32.xlu0 %v12241_v46, %s11391_s11 }
 0x529   :  { %1844 = vrot.lane.b32.xlu0 %v12254_v36, %s11391_s11 }
 0x52d   :  { %1926 = vrot.lane.b32.xlu0 %v12328_v53, %s11391_s11 }
 0x592   :  { %v1584_v47 = vpop.xlane.xlu0 %1583 }
 0x593   :  { %11307 = vrcp.f32 %v1584_v47 }
 0x598   :  { %v1587_v33 = vpop.xlane.xlu0 %1586 }
 0x599   :  { %11309 = vrcp.f32 %v1587_v33 }
 0x59c   :  { %v1682_v61 = vpop.permute.xlu0 %1681 }
 0x59d   :  { %v11308_v30 = vpop.eup %11307  ;;  %9961 = vmatpush3.msra.mxu1 %v1682_v61 }
 0x59e   :  { %v12401_v40 = vmul.f32 %v11308_v30, %v11304_v3  ;;  %9970 = vmatprep.subr.mxu1 %v14897_v5 }
 0x5a0   :  { %1601 = vrot.lane.b32.xlu1 %v12401_v40, %s14826_s3  ;;  %v1767_v46 = vpop.permute.xlu0 %1766 }
 0x5a3   :  { %v11310_v41 = vpop.eup %11309 }
 0x5a4   :  { %v1845_v36 = vpop.permute.xlu0 %1844  ;;  %v12406_v60 = vmul.f32 %v11310_v41, %v11306_v24 }
 0x5a6   :  { %1679 = vrot.lane.b32.xlu1 %v12406_v60, %s14826_s3 }
 0x5a8   :  { %v1927_v53 = vpop.permute.xlu0 %1926 }
 0x5a9   :  { %v1933_v45 = vsel %vm14907_vm1, %v1927_v53, 0.0 }
 0x5aa   :  { %1846 = vrot.lane.b32.xlu1 %v12244_v11, %s11391_s11  ;;  %1934 = vadd.xlane.f32.xlu0 %v1933_v45 }
 0x5ae   :  { %1924 = vrot.lane.b32.xlu1 %v12332_v22, %s11391_s11  ;;  %v1769_v22 = vpop.permute.xlu1 %1768 }
 0x5c0   :  { %1148 = vrot.lane.b32.xlu0 %v12271_v34, %s11395_s2 }
 0x5c4   :  { %1189 = vrot.lane.b32.xlu0 %v12271_v34, %s11396_s0 }
 0x5c8   :  { %1218 = vrot.lane.b32.xlu0 %v12271_v34, %s11398_s16 }
 0x5cc   :  { %1247 = vrot.lane.b32.xlu0 %v12271_v34, %s11400_s20 }
 0x5d0   :  { %1276 = vrot.lane.b32.xlu0 %v12271_v34, %s14840_s23 }
 0x5d4   :  { %1162 = vrot.lane.b32.xlu0 %v12263_v18, %s11394_s18 }
 0x5d8   :  { %1191 = vrot.lane.b32.xlu0 %v12263_v18, %s11396_s0 }
 0x5dc   :  { %1305 = vrot.lane.b32.xlu0 %v12271_v34, %s14832_s26 }
 0x5e0   :  { %1220 = vrot.lane.b32.xlu0 %v12263_v18, %s11398_s16 }
 0x5e4   :  { %1334 = vrot.lane.b32.xlu0 %v12271_v34, %s14828_s28 }
 0x5e8   :  { %1249 = vrot.lane.b32.xlu0 %v12263_v18, %s11400_s20 }
 0x5ec   :  { %1278 = vrot.lane.b32.xlu0 %v12263_v18, %s14840_s23 }
 0x5f0   :  { %1295 = vrot.lane.b32.xlu0 %v12263_v18, %s14834_s24 }
 0x5f4   :  { %1324 = vrot.lane.b32.xlu0 %v12263_v18, %s14830_s27 }
 0x612   :  { %v1602_v1 = vpop.permute.xlu1 %1601 }
 0x613   :  { %9958 = vmatmul.mubr.msk.f32.vlgmr.msra.gmra.mrb[18].mxu0 %vm14907_vm1, %v1602_v1  ;;  %vm14912_vm1 = vmmov %vm14910_vm0 }
 0x614   :  { %9966 = vmatpush3.xpose.msk.msra.mxu0 %vm14908_vm8, %v1769_v22  ;;  %9967 = vmatprep.mubr.msk.f32.mxu0 %vm14909_vm2, %v14897_v5  ;;  %vm14913_vm8 = vmmov %vm14910_vm0 }
 0x615   :  { %9975 = vmatprep.subr.mxu0 %v14897_v5 }
 0x617   :  { %9968 = vmatmul.mubr.msk.f32.vlgmr.msra.gmra.mrb[20].mxu0 %vm14910_vm0, %v1767_v46  ;;  %vm14915_vm0 = vcmask 564224  }
 0x618   :  { %v1680_v19 = vpop.permute.xlu1 %1679  ;;  %9977 = vmatprep.mubr.msk.f32.mxu0 %vm14909_vm2, %v14897_v5 }
 0x619   :  { %9963 = vmatmul.mubr.msk.f32.vlgmr.msra.gmra.mrb[18].mxu1 %vm14911_vm14, %v1680_v19  ;;  %vm14916_vm14 = vcmask 1044480  }
 0x61a   :  { %9972 = vmatprep.mubr.msk.f32.mxu1 %vm14909_vm2, %v14897_v5 }
 0x61c   :  { %v1847_v20 = vpop.permute.xlu1 %1846 }
 0x61d   :  { %9971 = vmatpush3.xpose.msk.msra.mxu1 %vm14912_vm1, %v1847_v20  ;;  %vm14918_vm1 = vcmask 1046528  }
 0x61e   :  { %9980 = vmatprep.subr.mxu1 %v14897_v5 }
 0x620   :  { %v1925_v13 = vpop.permute.xlu1 %1924  ;;  %9973 = vmatmul.mubr.msk.f32.vlgmr.msra.gmra.mrb[20].mxu1 %vm14913_vm8, %v1845_v36  ;;  %vm14919_vm8 = vcmask 523264  }
 0x621   :  { %v1930_v16 = vsel %vm14914_vm15, %v1925_v13, 0.0  ;;  %9982 = vmatprep.mubr.msk.f32.mxu1 %vm14909_vm2, %v14897_v5  ;;  %vm14917_vm15 = vcmask 1045504  }
 0x622   :  { %1931 = vadd.xlane.f32.xlu1 %v1930_v16 }
 0x633   :  { %1160 = vrot.lane.b32.xlu1 %v12271_v34, %s11394_s18 }
 0x637   :  { %1177 = vrot.lane.b32.xlu1 %v12271_v34, %s11397_s8  ;;  %v12494_v14 = vpop.xlane.xlu0 %1934 }
 0x63b   :  { %1206 = vrot.lane.b32.xlu1 %v12271_v34, %s11399_s19  ;;  %v1149_v51 = vpop.permute.xlu0 %1148 }
 0x63f   :  { %1235 = vrot.lane.b32.xlu1 %v12271_v34, %s11401_s22  ;;  %v1190_v54 = vpop.permute.xlu0 %1189 }
 0x643   :  { %1264 = vrot.lane.b32.xlu1 %v12271_v34, %s14836_s13  ;;  %v1219_v25 = vpop.permute.xlu0 %1218 }
 0x647   :  { %1150 = vrot.lane.b32.xlu1 %v12263_v18, %s11395_s2  ;;  %v1248_v26 = vpop.permute.xlu0 %1247 }
 0x64b   :  { %1179 = vrot.lane.b32.xlu1 %v12263_v18, %s11397_s8  ;;  %v1277_v43 = vpop.permute.xlu0 %1276 }
 0x64f   :  { %1293 = vrot.lane.b32.xlu1 %v12271_v34, %s14834_s24  ;;  %v1163_v28 = vpop.permute.xlu0 %1162  ;;  %s14988_s24 = smov 70  }
 0x653   :  { %1208 = vrot.lane.b32.xlu1 %v12263_v18, %s11399_s19  ;;  %v1192_v56 = vpop.permute.xlu0 %1191 }
 0x657   :  { %1322 = vrot.lane.b32.xlu1 %v12271_v34, %s14830_s27  ;;  %v1306_v44 = vpop.permute.xlu0 %1305  ;;  %s14993_s27 = smov 64  }
 0x65b   :  { %1237 = vrot.lane.b32.xlu1 %v12263_v18, %s11401_s22  ;;  %v1221_v15 = vpop.permute.xlu0 %1220 }
 0x65f   :  { %1266 = vrot.lane.b32.xlu1 %v12263_v18, %s14836_s13  ;;  %v1335_v29 = vpop.permute.xlu0 %1334  ;;  %s14986_s13 = smov 125  }
 0x663   :  { %1307 = vrot.lane.b32.xlu1 %v12263_v18, %s14832_s26  ;;  %v1250_v42 = vpop.permute.xlu0 %1249  ;;  %s14990_s26 = smov 71  }
 0x667   :  { %v1279_v24 = vpop.permute.xlu0 %1278 }
 0x66b   :  { %v1296_v1 = vpop.permute.xlu0 %1295 }
 0x6af   :  { %v1932_v12 = vpop.xlane.xlu1 %1931 }
 0x6b3   :  { %v1161_v7 = vpop.permute.xlu1 %1160 }
 0x6b4   :  { %v1171_v38 = vsel %vm1168_vm5, %v1149_v51, %v1161_v7 }
 0x6b7   :  { %v1178_v17 = vpop.permute.xlu1 %1177 }
 0x6b8   :  { %v1200_v57 = vsel %vm1197_vm3, %v1178_v17, %v1190_v54  ;;  %v1325_v54 = vpop.permute.xlu0 %1324 }
 0x6b9   :  { %v1350_v33 = vsel %vm1347_vm6, %v1171_v38, %v1200_v57 }
 0x6bb   :  { %v1207_v35 = vpop.permute.xlu1 %1206 }
 0x6bc   :  { %v1229_v23 = vsel %vm1226_vm4, %v1207_v35, %v1219_v25 }
 0x6bd   :  { %v1355_v30 = vsel %vm1352_vm10, %v1350_v33, %v1229_v23 }
 0x6bf   :  { %v1236_v8 = vpop.permute.xlu1 %1235 }
 0x6c0   :  { %v1258_v47 = vsel %vm1255_vm7, %v1236_v8, %v1248_v26 }
 0x6c1   :  { %v1360_v41 = vsel %vm1357_vm12, %v1355_v30, %v1258_v47 }
 0x6c3   :  { %v1265_v39 = vpop.permute.xlu1 %1264 }
 0x6c4   :  { %v1287_v61 = vsel %vm14915_vm0, %v1265_v39, %v1277_v43 }
 0x6c5   :  { %v1365_v53 = vsel %vm14821_vm13, %v1360_v41, %v1287_v61 }
 0x6c7   :  { %v1151_v27 = vpop.permute.xlu1 %1150 }
 0x6cb   :  { %v1180_v32 = vpop.permute.xlu1 %1179 }
 0x6cc   :  { %v1201_v20 = vsel %vm1197_vm3, %v1180_v32, %v1192_v56 }
 0x6cf   :  { %v1294_v62 = vpop.permute.xlu1 %1293 }
 0x6d0   :  { %v1316_v46 = vsel %vm1313_vm11, %v1294_v62, %v1306_v44 }
 0x6d1   :  { %v1370_v22 = vsel %vm14916_vm14, %v1365_v53, %v1316_v46 }
 0x6d3   :  { %v1209_v0 = vpop.permute.xlu1 %1208 }
 0x6d4   :  { %v1230_v13 = vsel %vm1226_vm4, %v1209_v0, %v1221_v15 }
 0x6d7   :  { %v1323_v10 = vpop.permute.xlu1 %1322 }
 0x6d8   :  { %v1345_v36 = vsel %vm1342_vm9, %v1323_v10, %v1335_v29 }
 0x6d9   :  { %v1375_v19 = vsel %vm14917_vm15, %v1370_v22, %v1345_v36 }
 0x6db   :  { %v1238_v37 = vpop.permute.xlu1 %1237 }
 0x6df   :  { %v1267_v3 = vpop.permute.xlu1 %1266 }
 0x6e3   :  { %v1308_v45 = vpop.permute.xlu1 %1307 }
 0x6e4   :  { %v1317_v17 = vsel %vm1313_vm11, %v1296_v1, %v1308_v45 }
 0x6e6   :  { %v12486_v9 = vpop.f32.mrb[18].mxu0 }
 0x6e7   :  { %v9959_v6 = vpop.f32.mrb[19].mxu0 }
 0x6e8   :  { %v1172_v6 = vsel %vm1168_vm5, %v1151_v27, %v1163_v28 }
 0x6ea   :  { %v1840_v48 = vpop.f32.mrb[20].mxu0 }
 0x6eb   :  { %1938 = vrot.lane.b32.xlu1 %v1840_v48, %s14826_s3  ;;  %v9969_v58 = vpop.f32.mrb[21].mxu0  ;;  %v1259_v48 = vsel %vm1255_vm7, %v1238_v37, %v1250_v42 }
 0x6ec   :  { %v12489_v59 = vpop.f32.mrb[18].mxu1  ;;  %v1380_v58 = vsel %vm14918_vm1, %v1375_v19, %v12271_v34  ;;  %vm14920_vm1 = vcmask 588800  }
 0x6ed   :  { %v9964_v55 = vpop.f32.mrb[19].mxu1 }
 0x6ef   :  { %1336 = vrot.lane.b32.xlu1 %v12263_v18, %s14828_s28 }
 0x6f3   :  { %v1918_v4 = vpop.f32.mrb[20].mxu1 }
 0x6f4   :  { %v9974_v63 = vpop.f32.mrb[21].mxu1  ;;  %1940 = vrot.lane.b32.xlu0 %v1918_v4, %s14826_s3  ;;  %v1351_v4 = vsel %vm1347_vm6, %v1172_v6, %v1201_v20  ;;  %v2169_v20 = vld [vmem:[%s14772_s6 + $0x18] sm:$0xff] }
 0x6f5   :  { %v1288_v63 = vsel %vm14915_vm0, %v1267_v3, %v1279_v24  ;;  %v1356_v51 = vsel %vm1352_vm10, %v1351_v4, %v1230_v13  ;;  %vm14922_vm0 = vcmask 523264   ;;  %v2173_v6 = vld [vmem:[%s14772_s6 + $0x38] sm:$0xff] }
 0x6f6   :  { %v1361_v35 = vsel %vm1357_vm12, %v1356_v51, %v1259_v48  ;;  %v1592_v45 = vsel %vm14922_vm0, %v12401_v40, 0.0  ;;  %v2166_v48 = vld [vmem:[%s14772_s6] sm:$0xff] }
 0x6f7   :  { %v1366_v26 = vsel %vm14821_vm13, %v1361_v35, %v1288_v63  ;;  %vm14923_vm13 = vmmov %vm14920_vm1  ;;  %v2168_v63 = vld [vmem:[%s14772_s6 + $0x10] sm:$0xff] }
 0x75d   :  { %v1939_v16 = vpop.permute.xlu1 %1938 }
 0x75e   :  { %v1944_v55 = vsel %vm14919_vm8, %v1932_v12, %v1939_v16  ;;  %v1371_v12 = vsel %vm14916_vm14, %v1366_v26, %v1317_v17  ;;  %vm14921_vm8 = vcmask 1046528   ;;  %vm14925_vm14 = vmmov %vm14920_vm1 }
 0x75f   :  { %v1946_v7 = vadd.f32 %v1944_v55, %v1380_v58  ;;  %v2170_v58 = vld [vmem:[%s14772_s6 + $0x20] sm:$0xff]  ;;  %v10239_v55 = vpack.c.bf16 %v2173_v6, %v2169_v20 }
 0x760   :  { %v10237_v4 = vpack.c.bf16 %v2170_v58, %v2166_v48  ;;  %v14941_v48 = vld [vmem:[#allocation14_spill] sm:$0xff] }
 0x761   :  { %v1948_v25 = vmul.f32 0.35355338, %v1946_v7  ;;  %v1337_v8 = vpop.permute.xlu1 %1336  ;;  %v2172_v7 = vld [vmem:[%s14772_s6 + $0x30] sm:$0xff] }
 0x762   :  { %v1346_v34 = vsel %vm1342_vm9, %v1325_v54, %v1337_v8  ;;  %v10241_v17 = vpack.c.bf16 %v2172_v7, %v2168_v63 }
 0x763   :  { %v1950_v39 = vadd.f32 %v1948_v25, %v12372_v50  ;;  %v1376_v43 = vsel %vm14917_vm15, %v1371_v12, %v1346_v34  ;;  %vm14926_vm15 = vmmov %vm14922_vm0 }
 0x764   :  { %v1381_v32 = vsel %vm14921_vm8, %v1376_v43, %v12263_v18  ;;  %vm14928_vm8 = vmmov %vm14922_vm0 }
 0x765   :  { %v1952_v27 = vsel %vm14920_vm1, %v1950_v39, -inf }
 0x766   :  { %1953 = vmax.xlane.f32.xlu1 %v1952_v27  ;;  %v1941_v28 = vpop.permute.xlu0 %1940 }
 0x767   :  { %v1945_v56 = vsel %vm14922_vm0, %v12494_v14, %v1941_v28 }
 0x768   :  { %v1947_v62 = vadd.f32 %v1945_v56, %v1381_v32 }
 0x76a   :  { %v1949_v44 = vmul.f32 0.35355338, %v1947_v62 }
 0x76c   :  { %v1951_v0 = vadd.f32 %v1949_v44, %v12372_v50 }
 0x76e   :  { %v1955_v15 = vsel %vm14923_vm13, %v1951_v0, -inf  ;;  %vm14924_vm13 = vmmov %vm14920_vm1 }
 0x76f   :  { %1956 = vmax.xlane.f32.xlu0 %v1955_v15  ;;  %vm14927_vm1 = vmmov %vm14922_vm0 }
 0x770   :  { %v1595_v36 = vsel %vm14927_vm1, %v12406_v60, 0.0  ;;  %vm14932_vm1 = vcmask 130048  }
 0x777   :  { %1985 = vrot.lane.b32.xlu1 %v12235_v52, %s14824_s29 }
 0x77b   :  { %2063 = vrot.lane.b32.xlu1 %v12244_v11, %s14824_s29 }
 0x7f3   :  { %v1954_v10 = vpop.xlane.xlu1 %1953 }
 0x7f4   :  { %v1958_v29 = vsub.f32 %v1950_v39, %v1954_v10 }
 0x7f6   :  { %v1960_v18 = vmul.f32 1.442695, %v1958_v29 }
 0x7f7   :  { %v1986_v37 = vpop.permute.xlu1 %1985 }
 0x7f8   :  { %11311 = vpow2.f32 %v1960_v18  ;;  %9976 = vmatpush3.msra.mxu0 %v1986_v37  ;;  %v12598_v37 = vsub.s32 4, %v14905_v2 }
 0x7fa   :  { %14937 = vst [vmem:[#allocation24_spill] sm:$0xff] %v12598_v37 }
 0x7fb   :  { %v2064_v14 = vpop.permute.xlu1 %2063 }
 0x7fc   :  { %9981 = vmatpush3.msra.mxu1 %v2064_v14  ;;  %v1957_v42 = vpop.xlane.xlu0 %1956  ;;  %v12603_v14 = vld [vmem:[%s14776_s10] sm:$0x7f] }
 0x7fd   :  { %v1959_v57 = vsub.f32 %v1951_v0, %v1957_v42  ;;  %10240 = vmatprep.subr.bf16.mxu1 %v10239_v55  ;;  %v2177_v42 = vrot.slane %v12603_v14, %v12598_v37 }
 0x7ff   :  { %v1962_v3 = vmul.f32 1.442695, %v1959_v57  ;;  %v12610_v57 = vld [vmem:[%s14776_s10 + $0x10] sm:$0x7f] }
 0x801   :  { %11313 = vpow2.f32 %v1962_v3  ;;  %v2185_v3 = vrot.slane %v12610_v57, %v12598_v37 }
 0x802   :  { %v11312_v23 = vpop.eup %11311 }
 0x803   :  { %v1964_v24 = vsel %vm14924_vm13, %v11312_v23, 0.0  ;;  %vm14929_vm13 = vcmask 64512  }
 0x804   :  { %1965 = vadd.xlane.f32.xlu0 %v1964_v24  ;;  %vm14934_vm0 = vmmov %vm14929_vm13 }
 0x80b   :  { %v11314_v52 = vpop.eup %11313 }
 0x80c   :  { %v1967_v38 = vsel %vm14925_vm14, %v11314_v52, 0.0  ;;  %vm14930_vm14 = vmmov %vm14929_vm13 }
 0x80d   :  { %1968 = vadd.xlane.f32.xlu0 %v1967_v38 }
 0x891   :  { %v1966_v11 = vpop.xlane.xlu0 %1965 }
 0x892   :  { %11315 = vrcp.f32 %v1966_v11 }
 0x89a   :  { %v1969_v47 = vpop.xlane.xlu0 %1968 }
 0x89b   :  { %11317 = vrcp.f32 %v1969_v47 }
 0x89c   :  { %v11316_v33 = vpop.eup %11315 }
 0x89d   :  { %v1971_v61 = vmul.f32 %v11316_v33, %v11312_v23  ;;  %v12617_v23 = vld [vmem:[%s14776_s10 + $0x8] sm:$0x7f] }
 0x89e   :  { %v2181_v24 = vrot.slane %v12617_v23, %v12598_v37 }
 0x89f   :  { %1983 = vrot.lane.b32.xlu0 %v1971_v61, %s14826_s3  ;;  %v1974_v41 = vsel %vm14926_vm15, %v1971_v61, 0.0  ;;  %vm14931_vm15 = vmmov %vm14929_vm13 }
 0x8a5   :  { %v11318_v30 = vpop.eup %11317 }
 0x8a6   :  { %v1973_v46 = vmul.f32 %v11318_v30, %v11314_v52  ;;  %v12624_v52 = vld [vmem:[%s14776_s10 + $0x18] sm:$0x7f] }
 0x8a7   :  { %v2189_v38 = vrot.slane %v12624_v52, %v12598_v37 }
 0x8a8   :  { %2061 = vrot.lane.b32.xlu1 %v1973_v46, %s14826_s3  ;;  %v1977_v53 = vsel %vm14928_vm8, %v1973_v46, 0.0  ;;  %vm14933_vm8 = vmmov %vm14932_vm1 }
 0x8be   :  { %1975 = vadd.xlane.f32.xlu0 %v1974_v41 }
 0x8c2   :  { %1596 = vadd.xlane.f32.xlu0 %v1595_v36 }
 0x8c6   :  { %1978 = vadd.xlane.f32.xlu0 %v1977_v53 }
 0x8cc   :  { %1593 = vadd.xlane.f32.xlu1 %v1592_v45 }
 0x8dd   :  { %1758 = vrot.lane.b32.xlu1 %v12486_v9, %s14822_s25  ;;  %v2167_v9 = vld [vmem:[%s14772_s6 + $0x8] sm:$0xff] }
 0x8e1   :  { %1760 = vrot.lane.b32.xlu1 %v12489_v59, %s14822_s25  ;;  %v2171_v59 = vld [vmem:[%s14772_s6 + $0x28] sm:$0xff]  ;;  %s15039_s25 = smov 24  }
 0x8e2   :  { %v10235_v16 = vpack.c.bf16 %v2171_v59, %v2167_v9  ;;  %v14940_v59 = vld [vmem:[#allocation12_spill] sm:$0xff] }
 0x8e4   :  { %10236 = vmatprep.subr.bf16.mxu0 %v10235_v16 }
 0x911   :  { %v1984_v22 = vpop.permute.xlu0 %1983 }
 0x912   :  { %9978 = vmatmul.mubr.msk.f32.vlgmr.msra.gmra.mrb[22].mxu0 %vm14929_vm13, %v1984_v22  ;;  %vm14935_vm13 = vmmov %vm14932_vm1 }
 0x913   :  { %2260 = vmatprep.mubr.f32.mxu0 %v14897_v5  ;;  %10238 = vmatpush1.bf16.msra.mxu0 %v10237_v4 }
 0x91a   :  { %v2062_v60 = vpop.permute.xlu1 %2061 }
 0x91b   :  { %9983 = vmatmul.mubr.msk.f32.vlgmr.msra.gmra.mrb[22].mxu1 %vm14930_vm14, %v2062_v60  ;;  %vm14936_vm14 = vmmov %vm14932_vm1  ;;  %v14938_v60 = vld [vmem:[#allocation11_spill] sm:$0xff] }
 0x91c   :  { %2337 = vmatprep.mubr.f32.mxu1 %v14897_v5  ;;  %10242 = vmatpush1.bf16.msra.mxu1 %v10241_v17 }
 0x94b   :  { %v1976_v13 = vpop.xlane.xlu0 %1975 }
 0x94c   :  { %v1980_v27 = vmul.f32 %v1976_v13, %v12324_v49 }
 0x94f   :  { %v1597_v8 = vpop.xlane.xlu0 %1596 }
 0x950   :  { %v1599_v12 = vmul.f32 %v1597_v8, %v12324_v49 }
 0x953   :  { %v1979_v43 = vpop.xlane.xlu0 %1978 }
 0x954   :  { %v1981_v56 = vmul.f32 %v1979_v43, %v12324_v49 }
 0x959   :  { %v1594_v19 = vpop.xlane.xlu1 %1593 }
 0x95a   :  { %v1598_v35 = vmul.f32 %v1594_v19, %v12324_v49  ;;  %v14939_v19 = vld [vmem:[#allocation13_spill] sm:$0xff] }
 0x95d   :  { %v1759_v51 = vpop.permute.xlu1 %1758 }
 0x95e   :  { %v1764_v26 = vadd.f32 %v1759_v51, %v1598_v35 }
 0x961   :  { %v1761_v34 = vpop.permute.xlu1 %1760 }
 0x962   :  { %v1765_v39 = vadd.f32 %v1761_v34, %v1599_v12  ;;  %v14942_v34 = vld [vmem:[#allocation15_spill] sm:$0xff] }
 0x9e5   :  { %v2056_v1 = vpop.f32.mrb[22].mxu0 }
 0x9e6   :  { %2140 = vrot.lane.b32.xlu0 %v2056_v1, %s14838_s30  ;;  %v9979_v40 = vpop.f32.mrb[23].mxu0 }
 0x9ee   :  { %v2134_v54 = vpop.f32.mrb[22].mxu1 }
 0x9ef   :  { %2142 = vrot.lane.b32.xlu1 %v2134_v54, %s14838_s30  ;;  %v9984_v25 = vpop.f32.mrb[23].mxu1 }
 0x9f3   :  { %2150 = vrot.lane.b32.xlu1 %v1764_v26, %s11392_s21 }
 0x9f7   :  { %2152 = vrot.lane.b32.xlu1 %v1765_v39, %s11392_s21  ;;  %v14943_v39 = vld [vmem:[#allocation16_spill] sm:$0xff] }
 0xa58   :  { %v2141_v28 = vpop.permute.xlu0 %2140 }
 0xa59   :  { %v2146_v32 = vadd.f32 %v2141_v28, %v1980_v27  ;;  %v14944_v28 = vld [vmem:[#allocation17_spill] sm:$0xff] }
 0xa5b   :  { %2158 = vrot.lane.b32.xlu0 %v2146_v32, %s11392_s21 }
 0xa61   :  { %v2143_v62 = vpop.permute.xlu1 %2142 }
 0xa62   :  { %v2147_v44 = vadd.f32 %v2143_v62, %v1981_v56  ;;  %v14945_v62 = vld [vmem:[#allocation18_spill] sm:$0xff] }
 0xa64   :  { %2160 = vrot.lane.b32.xlu0 %v2147_v44, %s11392_s21 }
 0xa65   :  { %v2151_v0 = vpop.permute.xlu1 %2150 }
 0xa69   :  { %v2153_v29 = vpop.permute.xlu1 %2152 }
 0xacd   :  { %v2159_v15 = vpop.permute.xlu0 %2158 }
 0xace   :  { %v2164_v10 = vsel %vm14931_vm15, %v2151_v0, %v2159_v15  ;;  %vm14973_vm15 = vmmov %vm14934_vm0 }
 0xacf   :  { %8638 = vmatmul.mubr.msk.f32.vlgmr.msra.gmra.mrb[24].mxu0 %vm14932_vm1, %v2164_v10  ;;  %8640 = vmatmul.mubr.msk.f32.vlgmr.msra.gmra.mrb[24].mxu1 %vm14933_vm8, %v2164_v10  ;;  %v10531_v10 = vld [vmem:[%s14773_s7] ss:$16 sps:$4 sm:$0xff]   ;;  %vm14974_vm1 = vmmov %vm14934_vm0 }
 0xad0   :  { %2266 = vmatprep.mubr.f32.mxu0 %v14897_v5  ;;  %2343 = vmatprep.mubr.f32.mxu1 %v14897_v5  ;;  %vm14977_vm8 = vmmov %vm14934_vm0 }
 0xad6   :  { %v2161_v18 = vpop.permute.xlu0 %2160 }
 0xad7   :  { %v2165_v49 = vsel %vm14934_vm0, %v2153_v29, %v2161_v18  ;;  %v10533_v29 = vld [vmem:[%s14773_s7 + $0x4] ss:$16 sps:$4 sm:$0xff]   ;;  %v10534_v18 = vld [vmem:[%s14773_s7 + $0x8] ss:$16 sps:$4 sm:$0xff]  }
 0xad8   :  { %8639 = vmatmul.mubr.msk.f32.gmra.mrb[26].mxu0 %vm14935_vm13, %v2165_v49  ;;  %8641 = vmatmul.mubr.msk.f32.gmra.mrb[26].mxu1 %vm14936_vm14, %v2165_v49  ;;  %v10536_v49 = vld [vmem:[%s14773_s7 + $0xc] ss:$16 sps:$4 sm:$0xff]   ;;  %vm14978_vm13 = vmmov %vm14934_vm0 }
 0xad9   :  { %3254 = vmatprep.subr.bf16.mxu0 %v10533_v29  ;;  %3340 = vmatprep.subr.bf16.mxu1 %v10536_v49  ;;  %vm14981_vm14 = vmmov %vm14934_vm0 }
 0xada   :  { %3255 = vmatpush1.bf16.msra.mxu0 %v10531_v10  ;;  %3341 = vmatpush1.bf16.msra.mxu1 %v10534_v18 }
 0xba2   :  { %v2262_v11 = vpop.f32.mrb[24].mxu0  ;;  %v2339_v47 = vpop.f32.mrb[24].mxu1 }
 0xba3   :  { %v2263_v33 = vadd.f32 %v2262_v11, %v2177_v42  ;;  %v2340_v61 = vadd.f32 %v2339_v47, %v2185_v3  ;;  %v2264_v30 = vpop.f32.mrb[25].mxu0  ;;  %v2341_v46 = vpop.f32.mrb[25].mxu1  ;;  %v10545_v11 = vld [vmem:[%s14773_s7 + $0x44] ss:$16 sps:$4 sm:$0xff]   ;;  %v10548_v47 = vld [vmem:[%s14773_s7 + $0x4c] ss:$16 sps:$4 sm:$0xff]  }
 0xba4   :  { %v2265_v41 = vadd.f32 %v2264_v30, %v2181_v24  ;;  %v2342_v36 = vadd.f32 %v2341_v46, %v2189_v38  ;;  %v10551_v30 = vld [vmem:[%s14773_s7 + $0x64] ss:$16 sps:$4 sm:$0xff]   ;;  %v10554_v46 = vld [vmem:[%s14773_s7 + $0x6c] ss:$16 sps:$4 sm:$0xff]  }
 0xba5   :  { %v2350_v53 = vmax.f32 %v2263_v33, 0.0  ;;  %v2352_v45 = vmax.f32 %v2340_v61, 0.0  ;;  %v10543_v33 = vld [vmem:[%s14773_s7 + $0x40] ss:$16 sps:$4 sm:$0xff]   ;;  %v10546_v61 = vld [vmem:[%s14773_s7 + $0x48] ss:$16 sps:$4 sm:$0xff]  }
 0xba6   :  { %v2351_v22 = vmax.f32 %v2265_v41, 0.0  ;;  %v2353_v9 = vmax.f32 %v2342_v36, 0.0  ;;  %v10549_v41 = vld [vmem:[%s14773_s7 + $0x60] ss:$16 sps:$4 sm:$0xff]   ;;  %v10552_v36 = vld [vmem:[%s14773_s7 + $0x68] ss:$16 sps:$4 sm:$0xff]  }
 0xba7   :  { %v12629_v1 = vadd.f32 %v2350_v53, %v14938_v60  ;;  %v12635_v20 = vadd.f32 %v2352_v45, %v14940_v59  ;;  %v10557_v53 = vld [vmem:[%s14773_s7 + $0x84] ss:$16 sps:$4 sm:$0xff]   ;;  %v10560_v45 = vld [vmem:[%s14773_s7 + $0x8c] ss:$16 sps:$4 sm:$0xff]   ;;  %v10558_v60 = vld [vmem:[%s14773_s7 + $0x88] ss:$16 sps:$4 sm:$0xff]  }
 0xba8   :  { %v12632_v40 = vadd.f32 %v2351_v22, %v14939_v19  ;;  %v12640_v58 = vadd.f32 %v2353_v9, %v14941_v48  ;;  %v10555_v22 = vld [vmem:[%s14773_s7 + $0x80] ss:$16 sps:$4 sm:$0xff]   ;;  %v10563_v19 = vld [vmem:[%s14773_s7 + $0xa4] ss:$16 sps:$4 sm:$0xff]   ;;  %v10566_v9 = vld [vmem:[%s14773_s7 + $0xac] ss:$16 sps:$4 sm:$0xff]  }
 0xba9   :  { %v10561_v59 = vld [vmem:[%s14773_s7 + $0xa0] ss:$16 sps:$4 sm:$0xff]  }
 0xbaa   :  { %v2366_v13 = vadd.f32 %v12632_v40, %v12629_v1  ;;  %v10567_v48 = vld [vmem:[%s14773_s7 + $0xc0] ss:$16 sps:$4 sm:$0xff]  }
 0xbab   :  { %v2268_v16 = vpop.f32.mrb[26].mxu0  ;;  %v2345_v6 = vpop.f32.mrb[26].mxu1 }
 0xbac   :  { %v2269_v55 = vadd.f32 %v2268_v16, %v2177_v42  ;;  %v2346_v4 = vadd.f32 %v2345_v6, %v2185_v3  ;;  %v2270_v63 = vpop.f32.mrb[27].mxu0  ;;  %v2347_v7 = vpop.f32.mrb[27].mxu1  ;;  %v2367_v51 = vadd.f32 %v2366_v13, %v12635_v20  ;;  %v10539_v42 = vld [vmem:[%s14773_s7 + $0x24] ss:$16 sps:$4 sm:$0xff]   ;;  %v10542_v3 = vld [vmem:[%s14773_s7 + $0x2c] ss:$16 sps:$4 sm:$0xff]  }
 0xbad   :  { %v2271_v17 = vadd.f32 %v2270_v63, %v2181_v24  ;;  %v2348_v54 = vadd.f32 %v2347_v7, %v2189_v38  ;;  %v10537_v24 = vld [vmem:[%s14773_s7 + $0x20] ss:$16 sps:$4 sm:$0xff]   ;;  %3256 = vmatprep.subr.bf16.mxu0 %v10539_v42  ;;  %v10540_v38 = vld [vmem:[%s14773_s7 + $0x28] ss:$16 sps:$4 sm:$0xff]   ;;  %3342 = vmatprep.subr.bf16.mxu1 %v10542_v3  ;;  %v10569_v16 = vld [vmem:[%s14773_s7 + $0xc4] ss:$16 sps:$4 sm:$0xff]  }
 0xbae   :  { %v2354_v35 = vmax.f32 %v2269_v55, 0.0  ;;  %v2368_v25 = vadd.f32 %v2367_v51, %v12640_v58  ;;  %v2356_v8 = vmax.f32 %v2346_v4, 0.0  ;;  %3257 = vmatpush1.bf16.msra.mxu0 %v10537_v24  ;;  %3343 = vmatpush1.bf16.msra.mxu1 %v10540_v38  ;;  %v10564_v13 = vld [vmem:[%s14773_s7 + $0xa8] ss:$16 sps:$4 sm:$0xff]   ;;  %v10572_v6 = vld [vmem:[%s14773_s7 + $0xcc] ss:$16 sps:$4 sm:$0xff]  }
 0xbaf   :  { %v2355_v26 = vmax.f32 %v2271_v17, 0.0  ;;  %v2357_v27 = vmax.f32 %v2348_v54, 0.0  ;;  %3258 = vmatprep.subr.bf16.mxu0 %v10545_v11  ;;  %3344 = vmatprep.subr.bf16.mxu1 %v10548_v47  ;;  %v10570_v55 = vld [vmem:[%s14773_s7 + $0xc8] ss:$16 sps:$4 sm:$0xff]   ;;  %v10575_v4 = vld [vmem:[%s14773_s7 + $0xe4] ss:$16 sps:$4 sm:$0xff]  }
 0xbb0   :  { %v12645_v12 = vadd.f32 %v2354_v35, %v14942_v34  ;;  %2369 = vadd.xlane.f32.xlu1 %v2368_v25  ;;  %v12651_v32 = vadd.f32 %v2356_v8, %v14944_v28  ;;  %v10578_v63 = vld [vmem:[%s14773_s7 + $0xec] ss:$16 sps:$4 sm:$0xff]   ;;  %v10573_v7 = vld [vmem:[%s14773_s7 + $0xe0] ss:$16 sps:$4 sm:$0xff]   ;;  %v10576_v51 = vld [vmem:[%s14773_s7 + $0xe8] ss:$16 sps:$4 sm:$0xff]  }
 0xbb1   :  { %v12648_v43 = vadd.f32 %v2355_v26, %v14943_v39  ;;  %v12656_v44 = vadd.f32 %v2357_v27, %v14945_v62 }
 0xbb2   :  { %3259 = vmatpush1.bf16.msra.mxu0 %v10543_v33  ;;  %3345 = vmatpush1.bf16.msra.mxu1 %v10546_v61 }
 0xbb3   :  { %v2371_v56 = vadd.f32 %v12648_v43, %v12645_v12  ;;  %3260 = vmatprep.subr.bf16.mxu0 %v10551_v30  ;;  %3346 = vmatprep.subr.bf16.mxu1 %v10554_v46  ;;  %v10581_v30 = vld [vmem:[%s14773_s7 + $0x104] ss:$16 sps:$4 sm:$0xff]   ;;  %v10584_v46 = vld [vmem:[%s14773_s7 + $0x10c] ss:$16 sps:$4 sm:$0xff]  }
 0xbb5   :  { %v2372_v0 = vadd.f32 %v2371_v56, %v12651_v32 }
 0xbb6   :  { %3261 = vmatpush1.bf16.msra.mxu0 %v10549_v41  ;;  %3347 = vmatpush1.bf16.msra.mxu1 %v10552_v36  ;;  %v10579_v41 = vld [vmem:[%s14773_s7 + $0x100] ss:$16 sps:$4 sm:$0xff]   ;;  %v10582_v36 = vld [vmem:[%s14773_s7 + $0x108] ss:$16 sps:$4 sm:$0xff]  }
 0xbb7   :  { %v2373_v15 = vadd.f32 %v2372_v0, %v12656_v44  ;;  %3262 = vmatprep.subr.bf16.mxu0 %v10557_v53  ;;  %3348 = vmatprep.subr.bf16.mxu1 %v10560_v45  ;;  %v10585_v53 = vld [vmem:[%s14773_s7 + $0x120] ss:$16 sps:$4 sm:$0xff]   ;;  %v10587_v45 = vld [vmem:[%s14773_s7 + $0x124] ss:$16 sps:$4 sm:$0xff]  }
 0xbb9   :  { %2374 = vadd.xlane.f32.xlu0 %v2373_v15 }
 0xbba   :  { %3263 = vmatpush1.bf16.msra.mxu0 %v10555_v22  ;;  %3349 = vmatpush1.bf16.msra.mxu1 %v10558_v60  ;;  %v10588_v22 = vld [vmem:[%s14773_s7 + $0x128] ss:$16 sps:$4 sm:$0xff]   ;;  %v10590_v60 = vld [vmem:[%s14773_s7 + $0x12c] ss:$16 sps:$4 sm:$0xff]  }
 0xbbb   :  { %3264 = vmatprep.subr.bf16.mxu0 %v10563_v19  ;;  %3350 = vmatprep.subr.bf16.mxu1 %v10566_v9  ;;  %v10593_v19 = vld [vmem:[%s14773_s7 + $0x144] ss:$16 sps:$4 sm:$0xff]   ;;  %v10596_v9 = vld [vmem:[%s14773_s7 + $0x14c] ss:$16 sps:$4 sm:$0xff]  }
 0xbbe   :  { %3265 = vmatpush1.bf16.msra.mxu0 %v10561_v59  ;;  %3351 = vmatpush1.bf16.msra.mxu1 %v10564_v13  ;;  %v10591_v59 = vld [vmem:[%s14773_s7 + $0x140] ss:$16 sps:$4 sm:$0xff]   ;;  %v10594_v13 = vld [vmem:[%s14773_s7 + $0x148] ss:$16 sps:$4 sm:$0xff]  }
 0xbbf   :  { %3266 = vmatprep.subr.bf16.mxu0 %v10569_v16  ;;  %3352 = vmatprep.subr.bf16.mxu1 %v10572_v6  ;;  %v10599_v16 = vld [vmem:[%s14773_s7 + $0x164] ss:$16 sps:$4 sm:$0xff]   ;;  %v10602_v6 = vld [vmem:[%s14773_s7 + $0x16c] ss:$16 sps:$4 sm:$0xff]  }
 0xbc2   :  { %3267 = vmatpush1.bf16.msra.mxu0 %v10567_v48  ;;  %3353 = vmatpush1.bf16.msra.mxu1 %v10570_v55  ;;  %v10597_v48 = vld [vmem:[%s14773_s7 + $0x160] ss:$16 sps:$4 sm:$0xff]   ;;  %v10600_v55 = vld [vmem:[%s14773_s7 + $0x168] ss:$16 sps:$4 sm:$0xff]  }
 0xbc3   :  { %3268 = vmatprep.subr.bf16.mxu0 %v10575_v4  ;;  %3354 = vmatprep.subr.bf16.mxu1 %v10578_v63  ;;  %v10605_v4 = vld [vmem:[%s14773_s7 + $0x184] ss:$16 sps:$4 sm:$0xff]   ;;  %v10608_v63 = vld [vmem:[%s14773_s7 + $0x18c] ss:$16 sps:$4 sm:$0xff]  }
 0xbc6   :  { %3269 = vmatpush1.bf16.msra.mxu0 %v10573_v7  ;;  %3355 = vmatpush1.bf16.msra.mxu1 %v10576_v51  ;;  %v10603_v7 = vld [vmem:[%s14773_s7 + $0x180] ss:$16 sps:$4 sm:$0xff]   ;;  %v10606_v51 = vld [vmem:[%s14773_s7 + $0x188] ss:$16 sps:$4 sm:$0xff]  }
 0xbc7   :  { %3270 = vmatprep.subr.bf16.mxu0 %v10581_v30  ;;  %3356 = vmatprep.subr.bf16.mxu1 %v10584_v46 }
 0xbca   :  { %3271 = vmatpush1.bf16.msra.mxu0 %v10579_v41  ;;  %3357 = vmatpush1.bf16.msra.mxu1 %v10582_v36  ;;  %v14946_v36 = vld [vmem:[#allocation8_spill] sm:$0xff] }
 0xbcb   :  { %3272 = vmatprep.subr.bf16.mxu0 %v10587_v45  ;;  %3358 = vmatprep.subr.bf16.mxu1 %v10590_v60  ;;  %v2421_v45 = vrot.slane %v12603_v14, %v14946_v36 }
 0xbce   :  { %3273 = vmatpush1.bf16.msra.mxu0 %v10585_v53  ;;  %3359 = vmatpush1.bf16.msra.mxu1 %v10588_v22  ;;  %v2425_v53 = vrot.slane %v12617_v23, %v14946_v36 }
 0xbcf   :  { %3274 = vmatprep.subr.bf16.mxu0 %v10593_v19  ;;  %3360 = vmatprep.subr.bf16.mxu1 %v10596_v9  ;;  %v2429_v9 = vrot.slane %v12610_v57, %v14946_v36 }
 0xbd2   :  { %3275 = vmatpush1.bf16.msra.mxu0 %v10591_v59  ;;  %3361 = vmatpush1.bf16.msra.mxu1 %v10594_v13  ;;  %v14947_v59 = vld [vmem:[#allocation10_spill] sm:$0xff] }
 0xbd3   :  { %3276 = vmatprep.subr.bf16.mxu0 %v10599_v16  ;;  %3362 = vmatprep.subr.bf16.mxu1 %v10602_v6  ;;  %v2449_v13 = vrot.slane %v12617_v23, %v14947_v59  ;;  %v2445_v16 = vrot.slane %v12603_v14, %v14947_v59  ;;  %v2433_v6 = vrot.slane %v12624_v52, %v14946_v36 }
 0xbd6   :  { %3277 = vmatpush1.bf16.msra.mxu0 %v10597_v48  ;;  %3363 = vmatpush1.bf16.msra.mxu1 %v10600_v55  ;;  %v2453_v48 = vrot.slane %v12610_v57, %v14947_v59 }
 0xbd7   :  { %3278 = vmatprep.subr.bf16.mxu0 %v10605_v4  ;;  %3364 = vmatprep.subr.bf16.mxu1 %v10608_v63 }
 0xbda   :  { %3279 = vmatpush1.bf16.msra.mxu0 %v10603_v7  ;;  %3365 = vmatpush1.bf16.msra.mxu1 %v10606_v51 }
 0xc3d   :  { %v2370_v17 = vpop.xlane.xlu1 %2369 }
 0xc3e   :  { %v2376_v54 = vmul.f32 0.001953125, %v2370_v17  ;;  %v10611_v17 = vld [vmem:[%s14773_s7 + $0x1a4] ss:$16 sps:$4 sm:$0xff]  }
 0xc3f   :  { %3280 = vmatprep.subr.bf16.mxu0 %v10611_v17 }
 0xc40   :  { %v12757_v35 = vsub.f32 %v12629_v1, %v2376_v54  ;;  %v12760_v25 = vsub.f32 %v12632_v40, %v2376_v54  ;;  %v12763_v8 = vsub.f32 %v12635_v20, %v2376_v54  ;;  %v12766_v26 = vsub.f32 %v12640_v58, %v2376_v54  ;;  %v10614_v54 = vld [vmem:[%s14773_s7 + $0x1ac] ss:$16 sps:$4 sm:$0xff]  }
 0xc41   :  { %3366 = vmatprep.subr.bf16.mxu1 %v10614_v54 }
 0xc42   :  { %v2386_v34 = vmul.f32 %v12757_v35, %v12757_v35  ;;  %v2387_v39 = vmul.f32 %v12760_v25, %v12760_v25  ;;  %v2388_v27 = vmul.f32 %v12763_v8, %v12763_v8  ;;  %v2389_v62 = vmul.f32 %v12766_v26, %v12766_v26 }
 0xc44   :  { %v2394_v28 = vadd.f32 %v2387_v39, %v2386_v34  ;;  %v10609_v34 = vld [vmem:[%s14773_s7 + $0x1a0] ss:$16 sps:$4 sm:$0xff]   ;;  %v10612_v39 = vld [vmem:[%s14773_s7 + $0x1a8] ss:$16 sps:$4 sm:$0xff]  }
 0xc45   :  { %3281 = vmatpush1.bf16.msra.mxu0 %v10609_v34  ;;  %3367 = vmatpush1.bf16.msra.mxu1 %v10612_v39 }
 0xc46   :  { %v2375_v56 = vpop.xlane.xlu0 %2374  ;;  %v2395_v0 = vadd.f32 %v2394_v28, %v2388_v27  ;;  %v10617_v27 = vld [vmem:[%s14773_s7 + $0x1c4] ss:$16 sps:$4 sm:$0xff]   ;;  %v10620_v28 = vld [vmem:[%s14773_s7 + $0x1cc] ss:$16 sps:$4 sm:$0xff]  }
 0xc47   :  { %v2377_v15 = vmul.f32 0.001953125, %v2375_v56  ;;  %v10615_v56 = vld [vmem:[%s14773_s7 + $0x1c0] ss:$16 sps:$4 sm:$0xff]   ;;  %3282 = vmatprep.subr.bf16.mxu0 %v10617_v27  ;;  %3368 = vmatprep.subr.bf16.mxu1 %v10620_v28  ;;  %v2457_v28 = vrot.slane %v12624_v52, %v14947_v59  ;;  %v10635_v52 = vld [vmem:[%s14773_s7 + $0x224] ss:$16 sps:$4 sm:$0xff]  }
 0xc48   :  { %v2396_v10 = vadd.f32 %v2395_v0, %v2389_v62  ;;  %v10618_v62 = vld [vmem:[%s14773_s7 + $0x1c8] ss:$16 sps:$4 sm:$0xff]   ;;  %v10623_v0 = vld [vmem:[%s14773_s7 + $0x1e4] ss:$16 sps:$4 sm:$0xff]  }
 0xc49   :  { %v12777_v29 = vsub.f32 %v12645_v12, %v2377_v15  ;;  %v12780_v18 = vsub.f32 %v12648_v43, %v2377_v15  ;;  %v12783_v49 = vsub.f32 %v12651_v32, %v2377_v15  ;;  %v12786_v42 = vsub.f32 %v12656_v44, %v2377_v15  ;;  %v10626_v15 = vld [vmem:[%s14773_s7 + $0x1ec] ss:$16 sps:$4 sm:$0xff]   ;;  %3283 = vmatpush1.bf16.msra.mxu0 %v10615_v56 }
 0xc4a   :  { %2397 = vadd.xlane.f32.xlu0 %v2396_v10  ;;  %v10621_v10 = vld [vmem:[%s14773_s7 + $0x1e0] ss:$16 sps:$4 sm:$0xff]   ;;  %3369 = vmatpush1.bf16.msra.mxu1 %v10618_v62 }
 0xc4b   :  { %v2390_v3 = vmul.f32 %v12777_v29, %v12777_v29  ;;  %v2391_v24 = vmul.f32 %v12780_v18, %v12780_v18  ;;  %v2392_v38 = vmul.f32 %v12783_v49, %v12783_v49  ;;  %v2393_v47 = vmul.f32 %v12786_v42, %v12786_v42  ;;  %3284 = vmatprep.subr.bf16.mxu0 %v10623_v0 }
 0xc4c   :  { %3370 = vmatprep.subr.bf16.mxu1 %v10626_v15 }
 0xc4d   :  { %v2399_v11 = vadd.f32 %v2391_v24, %v2390_v3  ;;  %v10624_v3 = vld [vmem:[%s14773_s7 + $0x1e8] ss:$16 sps:$4 sm:$0xff]   ;;  %3285 = vmatpush1.bf16.msra.mxu0 %v10621_v10  ;;  %v10629_v24 = vld [vmem:[%s14773_s7 + $0x204] ss:$16 sps:$4 sm:$0xff]  }
 0xc4e   :  { %3371 = vmatpush1.bf16.msra.mxu1 %v10624_v3  ;;  %3297 = vmatprep.subr.bf16.mxu0 %v10629_v24  ;;  %v10638_v24 = vld [vmem:[%s14773_s7 + $0x22c] ss:$16 sps:$4 sm:$0xff]  }
 0xc4f   :  { %v2400_v33 = vadd.f32 %v2399_v11, %v2392_v38  ;;  %v10632_v38 = vld [vmem:[%s14773_s7 + $0x20c] ss:$16 sps:$4 sm:$0xff]  }
 0xc50   :  { %3383 = vmatprep.subr.bf16.mxu1 %v10632_v38 }
 0xc51   :  { %v2401_v61 = vadd.f32 %v2400_v33, %v2393_v47 }
 0xc53   :  { %2402 = vadd.xlane.f32.xlu0 %v2401_v61 }
 0xcd7   :  { %v2398_v11 = vpop.xlane.xlu0 %2397 }
 0xcd8   :  { %v2404_v47 = vmul.f32 0.001953125, %v2398_v11  ;;  %v10633_v11 = vld [vmem:[%s14773_s7 + $0x220] ss:$16 sps:$4 sm:$0xff]  }
 0xcda   :  { %v2406_v33 = vadd.f32 1e-05, %v2404_v47  ;;  %v10636_v47 = vld [vmem:[%s14773_s7 + $0x228] ss:$16 sps:$4 sm:$0xff]  }
 0xcdc   :  { %11319 = vrsqrt.f32 %v2406_v33  ;;  %v10641_v33 = vld [vmem:[%s14773_s7 + $0x244] ss:$16 sps:$4 sm:$0xff]  }
 0xce0   :  { %v2403_v61 = vpop.xlane.xlu0 %2402 }
 0xce1   :  { %v2405_v30 = vmul.f32 0.001953125, %v2403_v61  ;;  %v10644_v61 = vld [vmem:[%s14773_s7 + $0x24c] ss:$16 sps:$4 sm:$0xff]  }
 0xce3   :  { %v2407_v46 = vadd.f32 1e-05, %v2405_v30  ;;  %v10639_v30 = vld [vmem:[%s14773_s7 + $0x240] ss:$16 sps:$4 sm:$0xff]  }
 0xce5   :  { %11321 = vrsqrt.f32 %v2407_v46  ;;  %v10642_v46 = vld [vmem:[%s14773_s7 + $0x248] ss:$16 sps:$4 sm:$0xff]  }
 0xce6   :  { %v11320_v41 = vpop.eup %11319 }
 0xce7   :  { %v2411_v22 = vmul.f32 %v11320_v41, %v12760_v25  ;;  %v2410_v60 = vmul.f32 %v11320_v41, %v12757_v35  ;;  %v2412_v19 = vmul.f32 %v11320_v41, %v12763_v8  ;;  %v2413_v8 = vmul.f32 %v11320_v41, %v12766_v26  ;;  %v10647_v41 = vld [vmem:[%s14773_s7 + $0x264] ss:$16 sps:$4 sm:$0xff]  }
 0xce9   :  { %v2435_v55 = vmul.f32 %v2425_v53, %v2411_v22  ;;  %v2434_v35 = vmul.f32 %v2421_v45, %v2410_v60  ;;  %v2436_v4 = vmul.f32 %v2429_v9, %v2412_v19  ;;  %v2437_v27 = vmul.f32 %v2433_v6, %v2413_v8  ;;  %v10648_v22 = vld [vmem:[%s14773_s7 + $0x268] ss:$16 sps:$4 sm:$0xff]   ;;  %v10653_v60 = vld [vmem:[%s14773_s7 + $0x284] ss:$16 sps:$4 sm:$0xff]   ;;  %v10656_v19 = vld [vmem:[%s14773_s7 + $0x28c] ss:$16 sps:$4 sm:$0xff]  }
 0xcea   :  { %v10663_v8 = vld [vmem:[%s14773_s7 + $0x2c0] ss:$16 sps:$4 sm:$0xff]  }
 0xceb   :  { %v2459_v39 = vadd.f32 %v2449_v13, %v2435_v55  ;;  %v2458_v57 = vadd.f32 %v2445_v16, %v2434_v35  ;;  %v2460_v62 = vadd.f32 %v2453_v48, %v2436_v4  ;;  %v2461_v3 = vadd.f32 %v2457_v28, %v2437_v27  ;;  %v10665_v55 = vld [vmem:[%s14773_s7 + $0x2c4] ss:$16 sps:$4 sm:$0xff]   ;;  %v10668_v35 = vld [vmem:[%s14773_s7 + $0x2cc] ss:$16 sps:$4 sm:$0xff]   ;;  %v10666_v4 = vld [vmem:[%s14773_s7 + $0x2c8] ss:$16 sps:$4 sm:$0xff]  }
 0xcec   :  { %v10681_v27 = vld [vmem:[%s14773_s7 + $0x320] ss:$16 sps:$4 sm:$0xff]  }
 0xcef   :  { %v11322_v25 = vpop.eup %11321 }
 0xcf0   :  { %v2415_v63 = vmul.f32 %v11322_v25, %v12780_v18  ;;  %v2414_v7 = vmul.f32 %v11322_v25, %v12777_v29  ;;  %v2417_v23 = vmul.f32 %v11322_v25, %v12786_v42  ;;  %v2416_v14 = vmul.f32 %v11322_v25, %v12783_v49  ;;  %v10627_v49 = vld [vmem:[%s14773_s7 + $0x200] ss:$16 sps:$4 sm:$0xff]   ;;  %v10630_v42 = vld [vmem:[%s14773_s7 + $0x208] ss:$16 sps:$4 sm:$0xff]  }
 0xcf1   :  { %v10660_v25 = vld [vmem:[%s14773_s7 + $0x2a8] ss:$16 sps:$4 sm:$0xff]  }
 0xcf2   :  { %v2439_v51 = vmul.f32 %v2425_v53, %v2415_v63  ;;  %v2438_v17 = vmul.f32 %v2421_v45, %v2414_v7  ;;  %v2441_v54 = vmul.f32 %v2433_v6, %v2417_v23  ;;  %v2440_v34 = vmul.f32 %v2429_v9, %v2416_v14  ;;  %v10650_v53 = vld [vmem:[%s14773_s7 + $0x26c] ss:$16 sps:$4 sm:$0xff]   ;;  %v10645_v45 = vld [vmem:[%s14773_s7 + $0x260] ss:$16 sps:$4 sm:$0xff]   ;;  %v10671_v63 = vld [vmem:[%s14773_s7 + $0x2e4] ss:$16 sps:$4 sm:$0xff]  }
 0xcf3   :  { %v10651_v9 = vld [vmem:[%s14773_s7 + $0x280] ss:$16 sps:$4 sm:$0xff]   ;;  %v10662_v6 = vld [vmem:[%s14773_s7 + $0x2ac] ss:$16 sps:$4 sm:$0xff]   ;;  %v10672_v14 = vld [vmem:[%s14773_s7 + $0x2e8] ss:$16 sps:$4 sm:$0xff]  }
 0xcf4   :  { %v2463_v26 = vadd.f32 %v2449_v13, %v2439_v51  ;;  %v2462_v56 = vadd.f32 %v2445_v16, %v2438_v17  ;;  %v2464_v18 = vadd.f32 %v2453_v48, %v2440_v34  ;;  %v2465_v0 = vadd.f32 %v2457_v28, %v2441_v54  ;;  %v10654_v13 = vld [vmem:[%s14773_s7 + $0x288] ss:$16 sps:$4 sm:$0xff]   ;;  %v10659_v16 = vld [vmem:[%s14773_s7 + $0x2a4] ss:$16 sps:$4 sm:$0xff]   ;;  %v10657_v48 = vld [vmem:[%s14773_s7 + $0x2a0] ss:$16 sps:$4 sm:$0xff]  }
 0xcf5   :  { %v10674_v7 = vld [vmem:[%s14773_s7 + $0x2ec] ss:$16 sps:$4 sm:$0xff]   ;;  %v10669_v23 = vld [vmem:[%s14773_s7 + $0x2e0] ss:$16 sps:$4 sm:$0xff]   ;;  %v10677_v51 = vld [vmem:[%s14773_s7 + $0x304] ss:$16 sps:$4 sm:$0xff]  }
 0xcf6   :  { %v2467_v29 = vpack.c.bf16 %v2463_v26, %v2459_v39  ;;  %v2466_v15 = vpack.c.bf16 %v2462_v56, %v2458_v57  ;;  %v12928_v10 = vpack.c.bf16 %v2464_v18, %v2460_v62  ;;  %v2469_v38 = vpack.c.bf16 %v2465_v0, %v2461_v3  ;;  %v10680_v17 = vld [vmem:[%s14773_s7 + $0x30c] ss:$16 sps:$4 sm:$0xff]   ;;  %v10675_v54 = vld [vmem:[%s14773_s7 + $0x300] ss:$16 sps:$4 sm:$0xff]   ;;  %v10678_v34 = vld [vmem:[%s14773_s7 + $0x308] ss:$16 sps:$4 sm:$0xff]  }
 0xcf7   :  { %v10683_v39 = vld [vmem:[%s14773_s7 + $0x324] ss:$16 sps:$4 sm:$0xff]   ;;  %v10686_v57 = vld [vmem:[%s14773_s7 + $0x32c] ss:$16 sps:$4 sm:$0xff]   ;;  %v10684_v28 = vld [vmem:[%s14773_s7 + $0x328] ss:$16 sps:$4 sm:$0xff]  }
 0xcf8   :  { %3286 = vmatprep.mubr.bf16.mxu0 %v2467_v29  ;;  %3372 = vmatprep.mubr.bf16.mxu1 %v2467_v29  ;;  %v10689_v26 = vld [vmem:[%s14773_s7 + $0x344] ss:$16 sps:$4 sm:$0xff]   ;;  %v10692_v56 = vld [vmem:[%s14773_s7 + $0x34c] ss:$16 sps:$4 sm:$0xff]   ;;  %v10687_v62 = vld [vmem:[%s14773_s7 + $0x340] ss:$16 sps:$4 sm:$0xff]  }
 0xcf9   :  { %3287 = vmatmul.mubr.bf16.vlgmr.msra.gmra.mrb[28].mxu0 %v2466_v15  ;;  %3373 = vmatmul.mubr.bf16.vlgmr.msra.gmra.mrb[28].mxu1 %v2466_v15  ;;  %v10690_v18 = vld [vmem:[%s14773_s7 + $0x348] ss:$16 sps:$4 sm:$0xff]   ;;  %v10695_v0 = vld [vmem:[%s14773_s7 + $0x364] ss:$16 sps:$4 sm:$0xff]   ;;  %v10698_v29 = vld [vmem:[%s14773_s7 + $0x36c] ss:$16 sps:$4 sm:$0xff]  }
 0xcfa   :  { %3298 = vmatpush1.bf16.msra.mxu0 %v10627_v49  ;;  %3384 = vmatpush1.bf16.msra.mxu1 %v10630_v42  ;;  %v10693_v49 = vld [vmem:[%s14773_s7 + $0x360] ss:$16 sps:$4 sm:$0xff]   ;;  %v10696_v42 = vld [vmem:[%s14773_s7 + $0x368] ss:$16 sps:$4 sm:$0xff]   ;;  %v10701_v15 = vld [vmem:[%s14773_s7 + $0x384] ss:$16 sps:$4 sm:$0xff]  }
 0xcfb   :  { %3329 = vmatprep.mubr.bf16.mxu0 %v2469_v38  ;;  %3415 = vmatprep.mubr.bf16.mxu1 %v2469_v38  ;;  %v10704_v3 = vld [vmem:[%s14773_s7 + $0x38c] ss:$16 sps:$4 sm:$0xff]   ;;  %v10707_v38 = vld [vmem:[%s14773_s7 + $0x3a4] ss:$16 sps:$4 sm:$0xff]  }
 0xcfc   :  { %3299 = vmatprep.subr.bf16.mxu0 %v10635_v52  ;;  %3385 = vmatprep.subr.bf16.mxu1 %v10638_v24  ;;  %v10699_v52 = vld [vmem:[%s14773_s7 + $0x380] ss:$16 sps:$4 sm:$0xff]   ;;  %v10702_v24 = vld [vmem:[%s14773_s7 + $0x388] ss:$16 sps:$4 sm:$0xff]  }
 0xcfe   :  { %3300 = vmatpush1.bf16.msra.mxu0 %v10633_v11  ;;  %3386 = vmatpush1.bf16.msra.mxu1 %v10636_v47  ;;  %v10710_v11 = vld [vmem:[%s14773_s7 + $0x3ac] ss:$16 sps:$4 sm:$0xff]   ;;  %v10705_v47 = vld [vmem:[%s14773_s7 + $0x3a0] ss:$16 sps:$4 sm:$0xff]  }
 0xcff   :  { %3301 = vmatprep.subr.bf16.mxu0 %v10641_v33  ;;  %3387 = vmatprep.subr.bf16.mxu1 %v10644_v61  ;;  %v10708_v33 = vld [vmem:[%s14773_s7 + $0x3a8] ss:$16 sps:$4 sm:$0xff]   ;;  %v10713_v61 = vld [vmem:[%s14773_s7 + $0x3c4] ss:$16 sps:$4 sm:$0xff]  }
 0xd02   :  { %3302 = vmatpush1.bf16.msra.mxu0 %v10639_v30  ;;  %3388 = vmatpush1.bf16.msra.mxu1 %v10642_v46  ;;  %v10716_v30 = vld [vmem:[%s14773_s7 + $0x3cc] ss:$16 sps:$4 sm:$0xff]   ;;  %v10711_v46 = vld [vmem:[%s14773_s7 + $0x3c0] ss:$16 sps:$4 sm:$0xff]  }
 0xd03   :  { %3303 = vmatprep.subr.bf16.mxu0 %v10647_v41  ;;  %3389 = vmatprep.subr.bf16.mxu1 %v10650_v53  ;;  %v10714_v41 = vld [vmem:[%s14773_s7 + $0x3c8] ss:$16 sps:$4 sm:$0xff]   ;;  %v10719_v53 = vld [vmem:[%s14773_s7 + $0x3e4] ss:$16 sps:$4 sm:$0xff]  }
 0xd06   :  { %3304 = vmatpush1.bf16.msra.mxu0 %v10645_v45  ;;  %3390 = vmatpush1.bf16.msra.mxu1 %v10648_v22  ;;  %v10722_v45 = vld [vmem:[%s14773_s7 + $0x3ec] ss:$16 sps:$4 sm:$0xff]   ;;  %v10717_v22 = vld [vmem:[%s14773_s7 + $0x3e0] ss:$16 sps:$4 sm:$0xff]  }
 0xd07   :  { %3305 = vmatprep.subr.bf16.mxu0 %v10653_v60  ;;  %3391 = vmatprep.subr.bf16.mxu1 %v10656_v19  ;;  %v10720_v60 = vld [vmem:[%s14773_s7 + $0x3e8] ss:$16 sps:$4 sm:$0xff]  }
 0xd08   :  { %v10725_v19 = vld [vmem:[#allocation3 + $0x4] ss:$16 sps:$4 sm:$0xff]  }
 0xd0a   :  { %3306 = vmatpush1.bf16.msra.mxu0 %v10651_v9  ;;  %3392 = vmatpush1.bf16.msra.mxu1 %v10654_v13  ;;  %v10728_v9 = vld [vmem:[#allocation3 + $0xc] ss:$16 sps:$4 sm:$0xff]   ;;  %v10723_v13 = vld [vmem:[#allocation3] ss:$16 sps:$4 sm:$0xff]  }
 0xd0b   :  { %3307 = vmatprep.subr.bf16.mxu0 %v10659_v16  ;;  %3393 = vmatprep.subr.bf16.mxu1 %v10662_v6  ;;  %v10726_v16 = vld [vmem:[#allocation3 + $0x8] ss:$16 sps:$4 sm:$0xff]   ;;  %v10731_v6 = vld [vmem:[#allocation3 + $0x24] ss:$16 sps:$4 sm:$0xff]  }
 0xd0e   :  { %3308 = vmatpush1.bf16.msra.mxu0 %v10657_v48  ;;  %3394 = vmatpush1.bf16.msra.mxu1 %v10660_v25  ;;  %v10734_v48 = vld [vmem:[#allocation3 + $0x2c] ss:$16 sps:$4 sm:$0xff]   ;;  %v10729_v25 = vld [vmem:[#allocation3 + $0x20] ss:$16 sps:$4 sm:$0xff]  }
 0xd0f   :  { %3309 = vmatprep.subr.bf16.mxu0 %v10665_v55  ;;  %3395 = vmatprep.subr.bf16.mxu1 %v10668_v35  ;;  %v10732_v55 = vld [vmem:[#allocation3 + $0x28] ss:$16 sps:$4 sm:$0xff]   ;;  %v10737_v35 = vld [vmem:[#allocation3 + $0x44] ss:$16 sps:$4 sm:$0xff]  }
 0xd12   :  { %3310 = vmatpush1.bf16.msra.mxu0 %v10663_v8  ;;  %3396 = vmatpush1.bf16.msra.mxu1 %v10666_v4  ;;  %v10740_v8 = vld [vmem:[#allocation3 + $0x4c] ss:$16 sps:$4 sm:$0xff]   ;;  %v10735_v4 = vld [vmem:[#allocation3 + $0x40] ss:$16 sps:$4 sm:$0xff]  }
 0xd13   :  { %3311 = vmatprep.subr.bf16.mxu0 %v10671_v63  ;;  %3397 = vmatprep.subr.bf16.mxu1 %v10674_v7  ;;  %v10738_v63 = vld [vmem:[#allocation3 + $0x48] ss:$16 sps:$4 sm:$0xff]   ;;  %v10743_v7 = vld [vmem:[#allocation3 + $0x64] ss:$16 sps:$4 sm:$0xff]  }
 0xd16   :  { %3312 = vmatpush1.bf16.msra.mxu0 %v10669_v23  ;;  %3398 = vmatpush1.bf16.msra.mxu1 %v10672_v14  ;;  %v10746_v23 = vld [vmem:[#allocation3 + $0x6c] ss:$16 sps:$4 sm:$0xff]   ;;  %v10741_v14 = vld [vmem:[#allocation3 + $0x60] ss:$16 sps:$4 sm:$0xff]  }
 0xd17   :  { %3313 = vmatprep.subr.bf16.mxu0 %v10677_v51  ;;  %3399 = vmatprep.subr.bf16.mxu1 %v10680_v17  ;;  %v10749_v51 = vld [vmem:[#allocation3 + $0x84] ss:$16 sps:$4 sm:$0xff]   ;;  %v10752_v17 = vld [vmem:[#allocation3 + $0x8c] ss:$16 sps:$4 sm:$0xff]  }
 0xd1a   :  { %3314 = vmatpush1.bf16.msra.mxu0 %v10675_v54  ;;  %3400 = vmatpush1.bf16.msra.mxu1 %v10678_v34  ;;  %v10747_v54 = vld [vmem:[#allocation3 + $0x80] ss:$16 sps:$4 sm:$0xff]   ;;  %v10750_v34 = vld [vmem:[#allocation3 + $0x88] ss:$16 sps:$4 sm:$0xff]  }
 0xd1b   :  { %3315 = vmatprep.subr.bf16.mxu0 %v10683_v39  ;;  %3401 = vmatprep.subr.bf16.mxu1 %v10686_v57  ;;  %v10755_v39 = vld [vmem:[#allocation3 + $0xa4] ss:$16 sps:$4 sm:$0xff]   ;;  %v10758_v57 = vld [vmem:[#allocation3 + $0xac] ss:$16 sps:$4 sm:$0xff]  }
 0xd1e   :  { %3316 = vmatpush1.bf16.msra.mxu0 %v10681_v27  ;;  %3402 = vmatpush1.bf16.msra.mxu1 %v10684_v28  ;;  %v10753_v27 = vld [vmem:[#allocation3 + $0xa0] ss:$16 sps:$4 sm:$0xff]   ;;  %v10756_v28 = vld [vmem:[#allocation3 + $0xa8] ss:$16 sps:$4 sm:$0xff]  }
 0xd1f   :  { %3317 = vmatprep.subr.bf16.mxu0 %v10689_v26  ;;  %3403 = vmatprep.subr.bf16.mxu1 %v10692_v56  ;;  %v10761_v26 = vld [vmem:[#allocation3 + $0xc4] ss:$16 sps:$4 sm:$0xff]   ;;  %v10764_v56 = vld [vmem:[#allocation3 + $0xcc] ss:$16 sps:$4 sm:$0xff]  }
 0xd22   :  { %3318 = vmatpush1.bf16.msra.mxu0 %v10687_v62  ;;  %3404 = vmatpush1.bf16.msra.mxu1 %v10690_v18  ;;  %v10759_v62 = vld [vmem:[#allocation3 + $0xc0] ss:$16 sps:$4 sm:$0xff]   ;;  %v10762_v18 = vld [vmem:[#allocation3 + $0xc8] ss:$16 sps:$4 sm:$0xff]  }
 0xd23   :  { %3319 = vmatprep.subr.bf16.mxu0 %v10695_v0  ;;  %3405 = vmatprep.subr.bf16.mxu1 %v10698_v29  ;;  %v10767_v0 = vld [vmem:[#allocation3 + $0xe4] ss:$16 sps:$4 sm:$0xff]   ;;  %v10770_v29 = vld [vmem:[#allocation3 + $0xec] ss:$16 sps:$4 sm:$0xff]  }
 0xd26   :  { %3320 = vmatpush1.bf16.msra.mxu0 %v10693_v49  ;;  %3406 = vmatpush1.bf16.msra.mxu1 %v10696_v42  ;;  %v10765_v49 = vld [vmem:[#allocation3 + $0xe0] ss:$16 sps:$4 sm:$0xff]   ;;  %v10768_v42 = vld [vmem:[#allocation3 + $0xe8] ss:$16 sps:$4 sm:$0xff]  }
 0xd27   :  { %3321 = vmatprep.subr.bf16.mxu0 %v10701_v15  ;;  %3407 = vmatprep.subr.bf16.mxu1 %v10704_v3  ;;  %v10773_v15 = vld [vmem:[#allocation3 + $0x104] ss:$16 sps:$4 sm:$0xff]   ;;  %v10776_v3 = vld [vmem:[#allocation3 + $0x10c] ss:$16 sps:$4 sm:$0xff]  }
 0xd2a   :  { %3322 = vmatpush1.bf16.msra.mxu0 %v10699_v52  ;;  %3408 = vmatpush1.bf16.msra.mxu1 %v10702_v24  ;;  %v10771_v52 = vld [vmem:[#allocation3 + $0x100] ss:$16 sps:$4 sm:$0xff]   ;;  %v10774_v24 = vld [vmem:[#allocation3 + $0x108] ss:$16 sps:$4 sm:$0xff]  }
 0xd2b   :  { %3323 = vmatprep.subr.bf16.mxu0 %v10707_v38  ;;  %3409 = vmatprep.subr.bf16.mxu1 %v10710_v11  ;;  %v10779_v38 = vld [vmem:[#allocation3 + $0x124] ss:$16 sps:$4 sm:$0xff]   ;;  %v10782_v11 = vld [vmem:[#allocation3 + $0x12c] ss:$16 sps:$4 sm:$0xff]  }
 0xd2e   :  { %3324 = vmatpush1.bf16.msra.mxu0 %v10705_v47  ;;  %3410 = vmatpush1.bf16.msra.mxu1 %v10708_v33  ;;  %v10777_v47 = vld [vmem:[#allocation3 + $0x120] ss:$16 sps:$4 sm:$0xff]   ;;  %v10780_v33 = vld [vmem:[#allocation3 + $0x128] ss:$16 sps:$4 sm:$0xff]  }
 0xd2f   :  { %3325 = vmatprep.subr.bf16.mxu0 %v10713_v61  ;;  %3411 = vmatprep.subr.bf16.mxu1 %v10716_v30  ;;  %v10785_v61 = vld [vmem:[#allocation3 + $0x144] ss:$16 sps:$4 sm:$0xff]   ;;  %v10788_v30 = vld [vmem:[#allocation3 + $0x14c] ss:$16 sps:$4 sm:$0xff]  }
 0xd32   :  { %3326 = vmatpush1.bf16.msra.mxu0 %v10711_v46  ;;  %3412 = vmatpush1.bf16.msra.mxu1 %v10714_v41  ;;  %v10783_v46 = vld [vmem:[#allocation3 + $0x140] ss:$16 sps:$4 sm:$0xff]   ;;  %v10786_v41 = vld [vmem:[#allocation3 + $0x148] ss:$16 sps:$4 sm:$0xff]  }
 0xd33   :  { %3327 = vmatprep.subr.bf16.mxu0 %v10719_v53  ;;  %3413 = vmatprep.subr.bf16.mxu1 %v10722_v45  ;;  %v10791_v53 = vld [vmem:[#allocation3 + $0x164] ss:$16 sps:$4 sm:$0xff]   ;;  %v10794_v45 = vld [vmem:[#allocation3 + $0x16c] ss:$16 sps:$4 sm:$0xff]  }
 0xd36   :  { %3328 = vmatpush1.bf16.msra.mxu0 %v10717_v22  ;;  %3414 = vmatpush1.bf16.msra.mxu1 %v10720_v60  ;;  %v10789_v22 = vld [vmem:[#allocation3 + $0x160] ss:$16 sps:$4 sm:$0xff]   ;;  %v10792_v60 = vld [vmem:[#allocation3 + $0x168] ss:$16 sps:$4 sm:$0xff]  }
 0xd37   :  { %4222 = vmatprep.subr.bf16.mxu0 %v10725_v19  ;;  %4308 = vmatprep.subr.bf16.mxu1 %v10728_v9  ;;  %v10797_v19 = vld [vmem:[#allocation3 + $0x184] ss:$16 sps:$4 sm:$0xff]   ;;  %v10800_v9 = vld [vmem:[#allocation3 + $0x18c] ss:$16 sps:$4 sm:$0xff]  }
 0xd39   :  { %3330 = vmatmul.mubr.bf16.vlgmr.msra.gmra.mrb[28].mxu0 %v12928_v10  ;;  %3416 = vmatmul.mubr.bf16.vlgmr.msra.gmra.mrb[28].mxu1 %v12928_v10  ;;  %v10744_v10 = vld [vmem:[#allocation3 + $0x68] ss:$16 sps:$4 sm:$0xff]  }
 0xd3a   :  { %4223 = vmatpush1.bf16.msra.mxu0 %v10723_v13  ;;  %4309 = vmatpush1.bf16.msra.mxu1 %v10726_v16  ;;  %v10795_v13 = vld [vmem:[#allocation3 + $0x180] ss:$16 sps:$4 sm:$0xff]   ;;  %v10798_v16 = vld [vmem:[#allocation3 + $0x188] ss:$16 sps:$4 sm:$0xff]  }
 0xd3b   :  { %4224 = vmatprep.subr.bf16.mxu0 %v10731_v6  ;;  %4310 = vmatprep.subr.bf16.mxu1 %v10734_v48  ;;  %v10803_v6 = vld [vmem:[#allocation3 + $0x1a4] ss:$16 sps:$4 sm:$0xff]   ;;  %v10806_v48 = vld [vmem:[#allocation3 + $0x1ac] ss:$16 sps:$4 sm:$0xff]  }
 0xd3e   :  { %4225 = vmatpush1.bf16.msra.mxu0 %v10729_v25  ;;  %4311 = vmatpush1.bf16.msra.mxu1 %v10732_v55  ;;  %v10801_v25 = vld [vmem:[#allocation3 + $0x1a0] ss:$16 sps:$4 sm:$0xff]   ;;  %v10804_v55 = vld [vmem:[#allocation3 + $0x1a8] ss:$16 sps:$4 sm:$0xff]  }
 0xd3f   :  { %4226 = vmatprep.subr.bf16.mxu0 %v10737_v35  ;;  %4312 = vmatprep.subr.bf16.mxu1 %v10740_v8  ;;  %v10809_v35 = vld [vmem:[#allocation3 + $0x1c4] ss:$16 sps:$4 sm:$0xff]   ;;  %v10812_v8 = vld [vmem:[#allocation3 + $0x1cc] ss:$16 sps:$4 sm:$0xff]  }
 0xd42   :  { %4227 = vmatpush1.bf16.msra.mxu0 %v10735_v4  ;;  %4313 = vmatpush1.bf16.msra.mxu1 %v10738_v63  ;;  %v10807_v4 = vld [vmem:[#allocation3 + $0x1c0] ss:$16 sps:$4 sm:$0xff]   ;;  %v10810_v63 = vld [vmem:[#allocation3 + $0x1c8] ss:$16 sps:$4 sm:$0xff]  }
 0xd43   :  { %4228 = vmatprep.subr.bf16.mxu0 %v10743_v7  ;;  %4314 = vmatprep.subr.bf16.mxu1 %v10746_v23  ;;  %v10815_v7 = vld [vmem:[#allocation3 + $0x1e4] ss:$16 sps:$4 sm:$0xff]   ;;  %v10818_v23 = vld [vmem:[#allocation3 + $0x1ec] ss:$16 sps:$4 sm:$0xff]  }
 0xd46   :  { %4229 = vmatpush1.bf16.msra.mxu0 %v10741_v14  ;;  %4315 = vmatpush1.bf16.msra.mxu1 %v10744_v10  ;;  %v10813_v14 = vld [vmem:[#allocation3 + $0x1e0] ss:$16 sps:$4 sm:$0xff]   ;;  %v10816_v10 = vld [vmem:[#allocation3 + $0x1e8] ss:$16 sps:$4 sm:$0xff]  }
 0xd47   :  { %4230 = vmatprep.subr.bf16.mxu0 %v10749_v51  ;;  %4316 = vmatprep.subr.bf16.mxu1 %v10752_v17  ;;  %v10821_v51 = vld [vmem:[#allocation3 + $0x204] ss:$16 sps:$4 sm:$0xff]   ;;  %v10824_v17 = vld [vmem:[#allocation3 + $0x20c] ss:$16 sps:$4 sm:$0xff]  }
 0xd4a   :  { %4231 = vmatpush1.bf16.msra.mxu0 %v10747_v54  ;;  %4317 = vmatpush1.bf16.msra.mxu1 %v10750_v34  ;;  %v13113_v54 = vsub.s32 5, %v14905_v2  ;;  %v13118_v34 = vld [vmem:[%s14776_s10] sm:$0x7f] }
 0xd4b   :  { %4232 = vmatprep.subr.bf16.mxu0 %v10755_v39  ;;  %4318 = vmatprep.subr.bf16.mxu1 %v10758_v57  ;;  %v13125_v57 = vld [vmem:[%s14776_s10 + $0x10] sm:$0x7f] }
 0xd4c   :  { %14948 = vst [vmem:[#allocation26_spill] sm:$0xff] %v13113_v54  ;;  %v2601_v39 = vrot.slane %v13118_v34, %v13113_v54 }
 0xd4e   :  { %4233 = vmatpush1.bf16.msra.mxu0 %v10753_v27  ;;  %4319 = vmatpush1.bf16.msra.mxu1 %v10756_v28  ;;  %v2609_v27 = vrot.slane %v13125_v57, %v13113_v54  ;;  %v13132_v28 = vld [vmem:[%s14776_s10 + $0x8] sm:$0x7f] }
 0xd4f   :  { %4234 = vmatprep.subr.bf16.mxu0 %v10761_v26  ;;  %4320 = vmatprep.subr.bf16.mxu1 %v10764_v56  ;;  %v2605_v26 = vrot.slane %v13132_v28, %v13113_v54  ;;  %v13139_v56 = vld [vmem:[%s14776_s10 + $0x18] sm:$0x7f] }
 0xd52   :  { %4235 = vmatpush1.bf16.msra.mxu0 %v10759_v62  ;;  %4321 = vmatpush1.bf16.msra.mxu1 %v10762_v18  ;;  %v2613_v62 = vrot.slane %v13139_v56, %v13113_v54 }
 0xd53   :  { %4236 = vmatprep.subr.bf16.mxu0 %v10767_v0  ;;  %4322 = vmatprep.subr.bf16.mxu1 %v10770_v29 }
 0xd56   :  { %4237 = vmatpush1.bf16.msra.mxu0 %v10765_v49  ;;  %4323 = vmatpush1.bf16.msra.mxu1 %v10768_v42 }
 0xd57   :  { %4238 = vmatprep.subr.bf16.mxu0 %v10773_v15  ;;  %4324 = vmatprep.subr.bf16.mxu1 %v10776_v3 }
 0xd5a   :  { %4239 = vmatpush1.bf16.msra.mxu0 %v10771_v52  ;;  %4325 = vmatpush1.bf16.msra.mxu1 %v10774_v24 }
 0xd5b   :  { %4240 = vmatprep.subr.bf16.mxu0 %v10779_v38  ;;  %4326 = vmatprep.subr.bf16.mxu1 %v10782_v11 }
 0xd5e   :  { %4241 = vmatpush1.bf16.msra.mxu0 %v10777_v47  ;;  %4327 = vmatpush1.bf16.msra.mxu1 %v10780_v33 }
 0xd5f   :  { %4242 = vmatprep.subr.bf16.mxu0 %v10785_v61  ;;  %4328 = vmatprep.subr.bf16.mxu1 %v10788_v30 }
 0xd62   :  { %4243 = vmatpush1.bf16.msra.mxu0 %v10783_v46  ;;  %4329 = vmatpush1.bf16.msra.mxu1 %v10786_v41 }
 0xd63   :  { %4244 = vmatprep.subr.bf16.mxu0 %v10791_v53  ;;  %4330 = vmatprep.subr.bf16.mxu1 %v10794_v45 }
 0xd66   :  { %4245 = vmatpush1.bf16.msra.mxu0 %v10789_v22  ;;  %4331 = vmatpush1.bf16.msra.mxu1 %v10792_v60 }
 0xd67   :  { %4246 = vmatprep.subr.bf16.mxu0 %v10797_v19  ;;  %4332 = vmatprep.subr.bf16.mxu1 %v10800_v9 }
 0xd6a   :  { %4247 = vmatpush1.bf16.msra.mxu0 %v10795_v13  ;;  %4333 = vmatpush1.bf16.msra.mxu1 %v10798_v16 }
 0xd6b   :  { %4248 = vmatprep.subr.bf16.mxu0 %v10803_v6  ;;  %4334 = vmatprep.subr.bf16.mxu1 %v10806_v48 }
 0xd6e   :  { %4249 = vmatpush1.bf16.msra.mxu0 %v10801_v25  ;;  %4335 = vmatpush1.bf16.msra.mxu1 %v10804_v55  ;;  %v10819_v55 = vld [vmem:[#allocation3 + $0x200] ss:$16 sps:$4 sm:$0xff]  }
 0xd6f   :  { %4250 = vmatprep.subr.bf16.mxu0 %v10809_v35  ;;  %4336 = vmatprep.subr.bf16.mxu1 %v10812_v8  ;;  %v10822_v35 = vld [vmem:[#allocation3 + $0x208] ss:$16 sps:$4 sm:$0xff]   ;;  %v10827_v8 = vld [vmem:[#allocation3 + $0x224] ss:$16 sps:$4 sm:$0xff]  }
 0xd72   :  { %4251 = vmatpush1.bf16.msra.mxu0 %v10807_v4  ;;  %4337 = vmatpush1.bf16.msra.mxu1 %v10810_v63  ;;  %v10830_v4 = vld [vmem:[#allocation3 + $0x22c] ss:$16 sps:$4 sm:$0xff]   ;;  %v10825_v63 = vld [vmem:[#allocation3 + $0x220] ss:$16 sps:$4 sm:$0xff]  }
 0xd73   :  { %4252 = vmatprep.subr.bf16.mxu0 %v10815_v7  ;;  %4338 = vmatprep.subr.bf16.mxu1 %v10818_v23  ;;  %v10828_v7 = vld [vmem:[#allocation3 + $0x228] ss:$16 sps:$4 sm:$0xff]   ;;  %v10833_v23 = vld [vmem:[#allocation3 + $0x244] ss:$16 sps:$4 sm:$0xff]  }
 0xd76   :  { %4253 = vmatpush1.bf16.msra.mxu0 %v10813_v14  ;;  %4339 = vmatpush1.bf16.msra.mxu1 %v10816_v10  ;;  %v10836_v14 = vld [vmem:[#allocation3 + $0x24c] ss:$16 sps:$4 sm:$0xff]   ;;  %v10831_v10 = vld [vmem:[#allocation3 + $0x240] ss:$16 sps:$4 sm:$0xff]  }
 0xd77   :  { %4265 = vmatprep.subr.bf16.mxu0 %v10821_v51  ;;  %4351 = vmatprep.subr.bf16.mxu1 %v10824_v17  ;;  %v10834_v51 = vld [vmem:[#allocation3 + $0x248] ss:$16 sps:$4 sm:$0xff]   ;;  %v10839_v17 = vld [vmem:[#allocation3 + $0x264] ss:$16 sps:$4 sm:$0xff]  }
 0xe0c   :  { %v3331_v18 = vpop.f32.mrb[28].mxu0  ;;  %v3417_v0 = vpop.f32.mrb[28].mxu1 }
 0xe0d   :  { %v10443_v29 = vadd.f32 %v3331_v18, %v2601_v39  ;;  %v10447_v49 = vadd.f32 %v3417_v0, %v2609_v27  ;;  %v3333_v42 = vpop.f32.mrb[29].mxu0  ;;  %v3419_v15 = vpop.f32.mrb[29].mxu1  ;;  %v10848_v18 = vld [vmem:[#allocation3 + $0x28c] ss:$16 sps:$4 sm:$0xff]   ;;  %v10843_v0 = vld [vmem:[#allocation3 + $0x280] ss:$16 sps:$4 sm:$0xff]  }
 0xe0e   :  { %v10444_v3 = vadd.f32 %v3333_v42, %v2605_v26  ;;  %v10448_v52 = vadd.f32 %v3419_v15, %v2613_v62  ;;  %v3335_v24 = vpop.f32.mrb[30].mxu0  ;;  %v3421_v38 = vpop.f32.mrb[30].mxu1  ;;  %v10854_v42 = vld [vmem:[#allocation3 + $0x2ac] ss:$16 sps:$4 sm:$0xff]   ;;  %v10849_v15 = vld [vmem:[#allocation3 + $0x2a0] ss:$16 sps:$4 sm:$0xff]  }
 0xe0f   :  { %v10445_v11 = vadd.f32 %v3335_v24, %v2601_v39  ;;  %v10449_v47 = vadd.f32 %v3421_v38, %v2609_v27  ;;  %v3337_v33 = vpop.f32.mrb[31].mxu0  ;;  %v3423_v61 = vpop.f32.mrb[31].mxu1  ;;  %v3426_v41 = vmax.f32 %v10443_v29, 0.0  ;;  %v3428_v53 = vmax.f32 %v10447_v49, 0.0  ;;  %v10842_v39 = vld [vmem:[#allocation3 + $0x26c] ss:$16 sps:$4 sm:$0xff]  }
 0xe10   :  { %v10446_v30 = vadd.f32 %v3337_v33, %v2605_v26  ;;  %v10450_v46 = vadd.f32 %v3423_v61, %v2613_v62  ;;  %v3427_v60 = vmax.f32 %v10444_v3, 0.0  ;;  %v3429_v19 = vmax.f32 %v10448_v52, 0.0  ;;  %v10837_v27 = vld [vmem:[#allocation3 + $0x260] ss:$16 sps:$4 sm:$0xff]   ;;  %v10840_v26 = vld [vmem:[#allocation3 + $0x268] ss:$16 sps:$4 sm:$0xff]  }
 0xe11   :  { %v3430_v45 = vmax.f32 %v10445_v11, 0.0  ;;  %v3432_v22 = vmax.f32 %v10449_v47, 0.0  ;;  %v10845_v62 = vld [vmem:[#allocation3 + $0x284] ss:$16 sps:$4 sm:$0xff]   ;;  %v10846_v29 = vld [vmem:[#allocation3 + $0x288] ss:$16 sps:$4 sm:$0xff]  }
 0xe12   :  { %v3431_v9 = vmax.f32 %v10446_v30, 0.0  ;;  %v3433_v13 = vmax.f32 %v10450_v46, 0.0  ;;  %v10851_v49 = vld [vmem:[#allocation3 + $0x2a4] ss:$16 sps:$4 sm:$0xff]   ;;  %v10852_v3 = vld [vmem:[#allocation3 + $0x2a8] ss:$16 sps:$4 sm:$0xff]  }
 0xe13   :  { %v3434_v16 = vpack.c.bf16 %v3430_v45, %v3426_v41  ;;  %v13143_v6 = vpack.c.bf16 %v3432_v22, %v3428_v53  ;;  %v10857_v52 = vld [vmem:[#allocation3 + $0x2c4] ss:$16 sps:$4 sm:$0xff]   ;;  %v10860_v24 = vld [vmem:[#allocation3 + $0x2cc] ss:$16 sps:$4 sm:$0xff]   ;;  %v10855_v38 = vld [vmem:[#allocation3 + $0x2c0] ss:$16 sps:$4 sm:$0xff]  }
 0xe14   :  { %v3435_v48 = vpack.c.bf16 %v3431_v9, %v3427_v60  ;;  %v3437_v25 = vpack.c.bf16 %v3433_v13, %v3429_v19  ;;  %v10858_v11 = vld [vmem:[#allocation3 + $0x2c8] ss:$16 sps:$4 sm:$0xff]   ;;  %v10863_v47 = vld [vmem:[#allocation3 + $0x2e4] ss:$16 sps:$4 sm:$0xff]   ;;  %v10866_v33 = vld [vmem:[#allocation3 + $0x2ec] ss:$16 sps:$4 sm:$0xff]  }
 0xe15   :  { %v10861_v61 = vld [vmem:[#allocation3 + $0x2e0] ss:$16 sps:$4 sm:$0xff]   ;;  %v10864_v30 = vld [vmem:[#allocation3 + $0x2e8] ss:$16 sps:$4 sm:$0xff]   ;;  %v10869_v46 = vld [vmem:[#allocation3 + $0x304] ss:$16 sps:$4 sm:$0xff]  }
 0xe16   :  { %4254 = vmatprep.mubr.bf16.mxu0 %v3435_v48  ;;  %4340 = vmatprep.mubr.bf16.mxu1 %v3435_v48  ;;  %v10872_v41 = vld [vmem:[#allocation3 + $0x30c] ss:$16 sps:$4 sm:$0xff]   ;;  %v10867_v53 = vld [vmem:[#allocation3 + $0x300] ss:$16 sps:$4 sm:$0xff]   ;;  %v10870_v45 = vld [vmem:[#allocation3 + $0x308] ss:$16 sps:$4 sm:$0xff]  }
 0xe17   :  { %4255 = vmatmul.mubr.bf16.vlgmr.msra.gmra.mrb[32].mxu0 %v3434_v16  ;;  %4341 = vmatmul.mubr.bf16.vlgmr.msra.gmra.mrb[32].mxu1 %v3434_v16  ;;  %v10875_v22 = vld [vmem:[#allocation3 + $0x324] ss:$16 sps:$4 sm:$0xff]   ;;  %v10878_v60 = vld [vmem:[#allocation3 + $0x32c] ss:$16 sps:$4 sm:$0xff]   ;;  %v10873_v19 = vld [vmem:[#allocation3 + $0x320] ss:$16 sps:$4 sm:$0xff]  }
 0xe18   :  { %4266 = vmatpush1.bf16.msra.mxu0 %v10819_v55  ;;  %4352 = vmatpush1.bf16.msra.mxu1 %v10822_v35  ;;  %v10876_v9 = vld [vmem:[#allocation3 + $0x328] ss:$16 sps:$4 sm:$0xff]   ;;  %v10881_v13 = vld [vmem:[#allocation3 + $0x344] ss:$16 sps:$4 sm:$0xff]   ;;  %v10884_v16 = vld [vmem:[#allocation3 + $0x34c] ss:$16 sps:$4 sm:$0xff]  }
 0xe19   :  { %4297 = vmatprep.mubr.bf16.mxu0 %v3437_v25  ;;  %4383 = vmatprep.mubr.bf16.mxu1 %v3437_v25  ;;  %v10879_v48 = vld [vmem:[#allocation3 + $0x340] ss:$16 sps:$4 sm:$0xff]   ;;  %v10882_v25 = vld [vmem:[#allocation3 + $0x348] ss:$16 sps:$4 sm:$0xff]   ;;  %v10887_v55 = vld [vmem:[#allocation3 + $0x364] ss:$16 sps:$4 sm:$0xff]  }
 0xe1a   :  { %4267 = vmatprep.subr.bf16.mxu0 %v10827_v8  ;;  %4353 = vmatprep.subr.bf16.mxu1 %v10830_v4  ;;  %v10890_v35 = vld [vmem:[#allocation3 + $0x36c] ss:$16 sps:$4 sm:$0xff]   ;;  %v10885_v8 = vld [vmem:[#allocation3 + $0x360] ss:$16 sps:$4 sm:$0xff]   ;;  %v10888_v4 = vld [vmem:[#allocation3 + $0x368] ss:$16 sps:$4 sm:$0xff]  }
 0xe1c   :  { %4268 = vmatpush1.bf16.msra.mxu0 %v10825_v63  ;;  %4354 = vmatpush1.bf16.msra.mxu1 %v10828_v7  ;;  %v10893_v63 = vld [vmem:[#allocation3 + $0x384] ss:$16 sps:$4 sm:$0xff]   ;;  %v10896_v7 = vld [vmem:[#allocation3 + $0x38c] ss:$16 sps:$4 sm:$0xff]  }
 0xe1d   :  { %4269 = vmatprep.subr.bf16.mxu0 %v10833_v23  ;;  %4355 = vmatprep.subr.bf16.mxu1 %v10836_v14  ;;  %v10891_v23 = vld [vmem:[#allocation3 + $0x380] ss:$16 sps:$4 sm:$0xff]   ;;  %v10894_v14 = vld [vmem:[#allocation3 + $0x388] ss:$16 sps:$4 sm:$0xff]  }
 0xe20   :  { %4270 = vmatpush1.bf16.msra.mxu0 %v10831_v10  ;;  %4356 = vmatpush1.bf16.msra.mxu1 %v10834_v51  ;;  %v10899_v10 = vld [vmem:[#allocation3 + $0x3a4] ss:$16 sps:$4 sm:$0xff]   ;;  %v10902_v51 = vld [vmem:[#allocation3 + $0x3ac] ss:$16 sps:$4 sm:$0xff]  }
 0xe21   :  { %4271 = vmatprep.subr.bf16.mxu0 %v10839_v17  ;;  %4357 = vmatprep.subr.bf16.mxu1 %v10842_v39  ;;  %v10897_v17 = vld [vmem:[#allocation3 + $0x3a0] ss:$16 sps:$4 sm:$0xff]   ;;  %v10900_v39 = vld [vmem:[#allocation3 + $0x3a8] ss:$16 sps:$4 sm:$0xff]  }
 0xe24   :  { %4272 = vmatpush1.bf16.msra.mxu0 %v10837_v27  ;;  %4358 = vmatpush1.bf16.msra.mxu1 %v10840_v26  ;;  %v10905_v27 = vld [vmem:[#allocation3 + $0x3c4] ss:$16 sps:$4 sm:$0xff]   ;;  %v10908_v26 = vld [vmem:[#allocation3 + $0x3cc] ss:$16 sps:$4 sm:$0xff]  }
 0xe25   :  { %4273 = vmatprep.subr.bf16.mxu0 %v10845_v62  ;;  %4359 = vmatprep.subr.bf16.mxu1 %v10848_v18  ;;  %v10903_v62 = vld [vmem:[#allocation3 + $0x3c0] ss:$16 sps:$4 sm:$0xff]   ;;  %v10906_v18 = vld [vmem:[#allocation3 + $0x3c8] ss:$16 sps:$4 sm:$0xff]  }
 0xe28   :  { %4274 = vmatpush1.bf16.msra.mxu0 %v10843_v0  ;;  %4360 = vmatpush1.bf16.msra.mxu1 %v10846_v29  ;;  %v10911_v0 = vld [vmem:[#allocation3 + $0x3e4] ss:$16 sps:$4 sm:$0xff]   ;;  %v10914_v29 = vld [vmem:[#allocation3 + $0x3ec] ss:$16 sps:$4 sm:$0xff]  }
 0xe29   :  { %4275 = vmatprep.subr.bf16.mxu0 %v10851_v49  ;;  %4361 = vmatprep.subr.bf16.mxu1 %v10854_v42  ;;  %v8919_v49 = vld [vmem:[%s14770_s4 + $0x280] sm:$0xff]  ;;  %v8920_v42 = vld [vmem:[%s14770_s4 + $0x288] sm:$0xff] }
 0xe2c   :  { %4276 = vmatpush1.bf16.msra.mxu0 %v10849_v15  ;;  %4362 = vmatpush1.bf16.msra.mxu1 %v10852_v3  ;;  %v8951_v15 = vld [vmem:[%s14770_s4 + $0x380] sm:$0xff]  ;;  %v8952_v3 = vld [vmem:[%s14770_s4 + $0x388] sm:$0xff] }
 0xe2d   :  { %4277 = vmatprep.subr.bf16.mxu0 %v10857_v52  ;;  %4363 = vmatprep.subr.bf16.mxu1 %v10860_v24  ;;  %v10909_v52 = vld [vmem:[#allocation3 + $0x3e0] ss:$16 sps:$4 sm:$0xff]   ;;  %v10912_v24 = vld [vmem:[#allocation3 + $0x3e8] ss:$16 sps:$4 sm:$0xff]  }
 0xe30   :  { %4278 = vmatpush1.bf16.msra.mxu0 %v10855_v38  ;;  %4364 = vmatpush1.bf16.msra.mxu1 %v10858_v11  ;;  %v8903_v38 = vld [vmem:[%s14770_s4 + $0x200] sm:$0xff]  ;;  %v8904_v11 = vld [vmem:[%s14770_s4 + $0x208] sm:$0xff] }
 0xe31   :  { %4279 = vmatprep.subr.bf16.mxu0 %v10863_v47  ;;  %4365 = vmatprep.subr.bf16.mxu1 %v10866_v33  ;;  %v10243_v47 = vpack.c.bf16 %v8920_v42, %v8919_v49  ;;  %v10275_v33 = vpack.c.bf16 %v8952_v3, %v8951_v15  ;;  %v8910_v49 = vld [vmem:[%s14770_s4 + $0x238] sm:$0xff]  ;;  %v8941_v3 = vld [vmem:[%s14770_s4 + $0x330] sm:$0xff] }
 0xe34   :  { %4280 = vmatpush1.bf16.msra.mxu0 %v10861_v61  ;;  %4366 = vmatpush1.bf16.msra.mxu1 %v10864_v30  ;;  %v8935_v61 = vld [vmem:[%s14770_s4 + $0x300] sm:$0xff]  ;;  %v8936_v30 = vld [vmem:[%s14770_s4 + $0x308] sm:$0xff] }
 0xe35   :  { %4281 = vmatprep.subr.bf16.mxu0 %v10869_v46  ;;  %4367 = vmatprep.subr.bf16.mxu1 %v10872_v41  ;;  %v8921_v46 = vld [vmem:[%s14770_s4 + $0x290] sm:$0xff]  ;;  %v8922_v41 = vld [vmem:[%s14770_s4 + $0x298] sm:$0xff] }
 0xe38   :  { %4282 = vmatpush1.bf16.msra.mxu0 %v10867_v53  ;;  %4368 = vmatpush1.bf16.msra.mxu1 %v10870_v45  ;;  %v8953_v53 = vld [vmem:[%s14770_s4 + $0x390] sm:$0xff]  ;;  %v8954_v45 = vld [vmem:[%s14770_s4 + $0x398] sm:$0xff] }
 0xe39   :  { %4283 = vmatprep.subr.bf16.mxu0 %v10875_v22  ;;  %4369 = vmatprep.subr.bf16.mxu1 %v10878_v60  ;;  %v10245_v22 = vpack.c.bf16 %v8904_v11, %v8903_v38  ;;  %v10277_v60 = vpack.c.bf16 %v8936_v30, %v8935_v61  ;;  %v8928_v38 = vld [vmem:[%s14770_s4 + $0x2c8] sm:$0xff]  ;;  %v8959_v11 = vld [vmem:[%s14770_s4 + $0x3c0] sm:$0xff] }
 0xe3a   :  { %v8911_v30 = vld [vmem:[%s14770_s4 + $0x240] sm:$0xff] }
 0xe3c   :  { %4284 = vmatpush1.bf16.msra.mxu0 %v10873_v19  ;;  %4370 = vmatpush1.bf16.msra.mxu1 %v10876_v9  ;;  %v8905_v19 = vld [vmem:[%s14770_s4 + $0x210] sm:$0xff]  ;;  %v8906_v9 = vld [vmem:[%s14770_s4 + $0x218] sm:$0xff] }
 0xe3d   :  { %4285 = vmatprep.subr.bf16.mxu0 %v10881_v13  ;;  %4371 = vmatprep.subr.bf16.mxu1 %v10884_v16  ;;  %v10247_v13 = vpack.c.bf16 %v8922_v41, %v8921_v46  ;;  %v10279_v16 = vpack.c.bf16 %v8954_v45, %v8953_v53  ;;  %v8912_v46 = vld [vmem:[%s14770_s4 + $0x248] sm:$0xff]  ;;  %v8943_v45 = vld [vmem:[%s14770_s4 + $0x340] sm:$0xff] }
 0xe40   :  { %4286 = vmatpush1.bf16.msra.mxu0 %v10879_v48  ;;  %4372 = vmatpush1.bf16.msra.mxu1 %v10882_v25  ;;  %v8937_v48 = vld [vmem:[%s14770_s4 + $0x310] sm:$0xff]  ;;  %v8938_v25 = vld [vmem:[%s14770_s4 + $0x318] sm:$0xff] }
 0xe41   :  { %4287 = vmatprep.subr.bf16.mxu0 %v10887_v55  ;;  %4373 = vmatprep.subr.bf16.mxu1 %v10890_v35  ;;  %v8923_v55 = vld [vmem:[%s14770_s4 + $0x2a0] sm:$0xff]  ;;  %v8924_v35 = vld [vmem:[%s14770_s4 + $0x2a8] sm:$0xff] }
 0xe44   :  { %4288 = vmatpush1.bf16.msra.mxu0 %v10885_v8  ;;  %4374 = vmatpush1.bf16.msra.mxu1 %v10888_v4  ;;  %v8955_v8 = vld [vmem:[%s14770_s4 + $0x3a0] sm:$0xff]  ;;  %v8956_v4 = vld [vmem:[%s14770_s4 + $0x3a8] sm:$0xff] }
 0xe45   :  { %4289 = vmatprep.subr.bf16.mxu0 %v10893_v63  ;;  %4375 = vmatprep.subr.bf16.mxu1 %v10896_v7  ;;  %v10249_v63 = vpack.c.bf16 %v8906_v9, %v8905_v19  ;;  %v10281_v7 = vpack.c.bf16 %v8938_v25, %v8937_v48  ;;  %v8930_v19 = vld [vmem:[%s14770_s4 + $0x2d8] sm:$0xff]  ;;  %v8961_v9 = vld [vmem:[%s14770_s4 + $0x3d0] sm:$0xff] }
 0xe46   :  { %v8913_v25 = vld [vmem:[%s14770_s4 + $0x250] sm:$0xff] }
 0xe48   :  { %4290 = vmatpush1.bf16.msra.mxu0 %v10891_v23  ;;  %4376 = vmatpush1.bf16.msra.mxu1 %v10894_v14  ;;  %v8907_v23 = vld [vmem:[%s14770_s4 + $0x220] sm:$0xff]  ;;  %v8908_v14 = vld [vmem:[%s14770_s4 + $0x228] sm:$0xff] }
 0xe49   :  { %4291 = vmatprep.subr.bf16.mxu0 %v10899_v10  ;;  %4377 = vmatprep.subr.bf16.mxu1 %v10902_v51  ;;  %v10251_v10 = vpack.c.bf16 %v8924_v35, %v8923_v55  ;;  %v10283_v51 = vpack.c.bf16 %v8956_v4, %v8955_v8  ;;  %v8914_v8 = vld [vmem:[%s14770_s4 + $0x258] sm:$0xff]  ;;  %v8945_v4 = vld [vmem:[%s14770_s4 + $0x350] sm:$0xff] }
 0xe4c   :  { %4292 = vmatpush1.bf16.msra.mxu0 %v10897_v17  ;;  %4378 = vmatpush1.bf16.msra.mxu1 %v10900_v39  ;;  %v8940_v17 = vld [vmem:[%s14770_s4 + $0x328] sm:$0xff]  ;;  %v8925_v39 = vld [vmem:[%s14770_s4 + $0x2b0] sm:$0xff] }
 0xe4d   :  { %4293 = vmatprep.subr.bf16.mxu0 %v10905_v27  ;;  %4379 = vmatprep.subr.bf16.mxu1 %v10908_v26  ;;  %v8926_v27 = vld [vmem:[%s14770_s4 + $0x2b8] sm:$0xff]  ;;  %v8957_v26 = vld [vmem:[%s14770_s4 + $0x3b0] sm:$0xff] }
 0xe4e   :  { %v10255_v42 = vpack.c.bf16 %v8926_v27, %v8925_v39  ;;  %v8915_v39 = vld [vmem:[%s14770_s4 + $0x260] sm:$0xff]  ;;  %v8916_v27 = vld [vmem:[%s14770_s4 + $0x268] sm:$0xff] }
 0xe50   :  { %4294 = vmatpush1.bf16.msra.mxu0 %v10903_v62  ;;  %4380 = vmatpush1.bf16.msra.mxu1 %v10906_v18  ;;  %v8958_v62 = vld [vmem:[%s14770_s4 + $0x3b8] sm:$0xff]  ;;  %v10253_v18 = vpack.c.bf16 %v8908_v14, %v8907_v23  ;;  %v8931_v14 = vld [vmem:[%s14770_s4 + $0x2e0] sm:$0xff] }
 0xe51   :  { %4295 = vmatprep.subr.bf16.mxu0 %v10911_v0  ;;  %4381 = vmatprep.subr.bf16.mxu1 %v10914_v29  ;;  %v8909_v29 = vld [vmem:[%s14770_s4 + $0x230] sm:$0xff]  ;;  %v10287_v15 = vpack.c.bf16 %v8958_v62, %v8957_v26  ;;  %v10269_v62 = vpack.c.bf16 %v8916_v27, %v8915_v39 }
 0xe54   :  { %4296 = vmatpush1.bf16.msra.mxu0 %v10909_v52  ;;  %4382 = vmatpush1.bf16.msra.mxu1 %v10912_v24  ;;  %v8942_v52 = vld [vmem:[%s14770_s4 + $0x338] sm:$0xff]  ;;  %v8927_v24 = vld [vmem:[%s14770_s4 + $0x2c0] sm:$0xff] }
 0xe55   :  { %10244 = vmatprep.subr.bf16.mxu0 %v10243_v47  ;;  %10276 = vmatprep.subr.bf16.mxu1 %v10275_v33  ;;  %v8960_v47 = vld [vmem:[%s14770_s4 + $0x3c8] sm:$0xff]  ;;  %v10257_v33 = vpack.c.bf16 %v8910_v49, %v8909_v29  ;;  %v10289_v61 = vpack.c.bf16 %v8942_v52, %v8941_v3  ;;  %v10259_v41 = vpack.c.bf16 %v8928_v38, %v8927_v24  ;;  %v8933_v49 = vld [vmem:[%s14770_s4 + $0x2f0] sm:$0xff]  ;;  %v8966_v52 = vld [vmem:[%s14770_s4 + $0x3f8] sm:$0xff] }
 0xe56   :  { %v10291_v53 = vpack.c.bf16 %v8960_v47, %v8959_v11  ;;  %v8917_v24 = vld [vmem:[%s14770_s4 + $0x270] sm:$0xff]  ;;  %v8918_v38 = vld [vmem:[%s14770_s4 + $0x278] sm:$0xff] }
 0xe57   :  { %4298 = vmatmul.mubr.bf16.vlgmr.msra.gmra.mrb[32].mxu0 %v13143_v6  ;;  %4384 = vmatmul.mubr.bf16.vlgmr.msra.gmra.mrb[32].mxu1 %v13143_v6  ;;  %v8939_v6 = vld [vmem:[%s14770_s4 + $0x320] sm:$0xff]  ;;  %v10273_v47 = vpack.c.bf16 %v8918_v38, %v8917_v24  ;;  %v8969_v24 = vld [vmem:[%s14771_s5 + $0x208] sm:$0xff] }
 0xe58   :  { %10246 = vmatpush3.bf16.msra.mxu0 %v10245_v22  ;;  %10278 = vmatpush3.bf16.msra.mxu1 %v10277_v60  ;;  %v10285_v0 = vpack.c.bf16 %v8940_v17, %v8939_v6  ;;  %v8944_v22 = vld [vmem:[%s14770_s4 + $0x348] sm:$0xff]  ;;  %v8929_v60 = vld [vmem:[%s14770_s4 + $0x2d0] sm:$0xff] }
 0xe59   :  { %10248 = vmatprep.subr.bf16.mxu0 %v10247_v13  ;;  %10280 = vmatprep.subr.bf16.mxu1 %v10279_v16  ;;  %v8962_v13 = vld [vmem:[%s14770_s4 + $0x3d8] sm:$0xff]  ;;  %v10261_v16 = vpack.c.bf16 %v8912_v46, %v8911_v30  ;;  %v10293_v48 = vpack.c.bf16 %v8944_v22, %v8943_v45  ;;  %v10263_v55 = vpack.c.bf16 %v8930_v19, %v8929_v60  ;;  %v8964_v17 = vld [vmem:[%s14770_s4 + $0x3e8] sm:$0xff]  ;;  %v13340_v46 = vsub.s32 6, %v14905_v2 }
 0xe5a   :  { %v10295_v35 = vpack.c.bf16 %v8962_v13, %v8961_v9 }
 0xe5b   :  { %14949 = vst [vmem:[#allocation21_spill] sm:$0xff] %v13340_v46  ;;  %v3573_v45 = vrot.slane %v13132_v28, %v13340_v46  ;;  %v3581_v22 = vrot.slane %v13139_v56, %v13340_v46 }
 0xe5c   :  { %10250 = vmatpush3.bf16.msra.mxu0 %v10249_v63  ;;  %10282 = vmatpush3.bf16.msra.mxu1 %v10281_v7  ;;  %v8946_v63 = vld [vmem:[%s14770_s4 + $0x358] sm:$0xff]  ;;  %v10265_v7 = vpack.c.bf16 %v8914_v8, %v8913_v25 }
 0xe5d   :  { %10252 = vmatprep.subr.bf16.mxu0 %v10251_v10  ;;  %10284 = vmatprep.subr.bf16.mxu1 %v10283_v51  ;;  %v10297_v23 = vpack.c.bf16 %v8946_v63, %v8945_v4  ;;  %v8932_v10 = vld [vmem:[%s14770_s4 + $0x2e8] sm:$0xff]  ;;  %v8963_v51 = vld [vmem:[%s14770_s4 + $0x3e0] sm:$0xff] }
 0xe5e   :  { %v10267_v6 = vpack.c.bf16 %v8932_v10, %v8931_v14  ;;  %v10299_v26 = vpack.c.bf16 %v8964_v17, %v8963_v51 }
 0xe60   :  { %10254 = vmatpush3.bf16.msra.mxu0 %v10253_v18  ;;  %10286 = vmatpush3.bf16.msra.mxu1 %v10285_v0  ;;  %v8947_v18 = vld [vmem:[%s14770_s4 + $0x360] sm:$0xff]  ;;  %v8948_v0 = vld [vmem:[%s14770_s4 + $0x368] sm:$0xff] }
 0xe61   :  { %10256 = vmatprep.subr.bf16.mxu0 %v10255_v42  ;;  %10288 = vmatprep.subr.bf16.mxu1 %v10287_v15  ;;  %v10301_v29 = vpack.c.bf16 %v8948_v0, %v8947_v18  ;;  %v8934_v42 = vld [vmem:[%s14770_s4 + $0x2f8] sm:$0xff]  ;;  %v8965_v15 = vld [vmem:[%s14770_s4 + $0x3f0] sm:$0xff] }
 0xe62   :  { %v10271_v3 = vpack.c.bf16 %v8934_v42, %v8933_v49  ;;  %v10303_v11 = vpack.c.bf16 %v8966_v52, %v8965_v15  ;;  %v8985_v49 = vld [vmem:[%s14771_s5 + $0x288] sm:$0xff]  ;;  %v9016_v42 = vld [vmem:[%s14771_s5 + $0x380] sm:$0xff] }
 0xe63   :  { %v8968_v52 = vld [vmem:[%s14771_s5 + $0x200] sm:$0xff] }
 0xe64   :  { %10258 = vmatpush3.bf16.msra.mxu0 %v10257_v33  ;;  %10290 = vmatpush3.bf16.msra.mxu1 %v10289_v61  ;;  %v8949_v33 = vld [vmem:[%s14770_s4 + $0x370] sm:$0xff]  ;;  %v8950_v61 = vld [vmem:[%s14770_s4 + $0x378] sm:$0xff] }
 0xe65   :  { %10260 = vmatprep.subr.bf16.mxu0 %v10259_v41  ;;  %10292 = vmatprep.subr.bf16.mxu1 %v10291_v53  ;;  %v10305_v30 = vpack.c.bf16 %v8950_v61, %v8949_v33  ;;  %v3569_v41 = vrot.slane %v13118_v34, %v13340_v46  ;;  %v3577_v53 = vrot.slane %v13125_v57, %v13340_v46  ;;  %v9001_v33 = vld [vmem:[%s14771_s5 + $0x308] sm:$0xff]  ;;  %v8986_v61 = vld [vmem:[%s14771_s5 + $0x290] sm:$0xff] }
 0xe66   :  { %v9014_v46 = vld [vmem:[%s14771_s5 + $0x370] sm:$0xff] }
 0xe68   :  { %10262 = vmatpush3.bf16.msra.mxu0 %v10261_v16  ;;  %10294 = vmatpush3.bf16.msra.mxu1 %v10293_v48 }
 0xe69   :  { %10264 = vmatprep.subr.bf16.mxu0 %v10263_v55  ;;  %10296 = vmatprep.subr.bf16.mxu1 %v10295_v35 }
 0xe6c   :  { %10266 = vmatpush3.bf16.msra.mxu0 %v10265_v7  ;;  %10298 = vmatpush3.bf16.msra.mxu1 %v10297_v23 }
 0xe6d   :  { %10268 = vmatprep.subr.bf16.mxu0 %v10267_v6  ;;  %10300 = vmatprep.subr.bf16.mxu1 %v10299_v26 }
 0xe70   :  { %10270 = vmatpush3.bf16.msra.mxu0 %v10269_v62  ;;  %10302 = vmatpush3.bf16.msra.mxu1 %v10301_v29  ;;  %v8984_v29 = vld [vmem:[%s14771_s5 + $0x280] sm:$0xff] }
 0xe71   :  { %10272 = vmatprep.subr.bf16.mxu0 %v10271_v3  ;;  %10304 = vmatprep.subr.bf16.mxu1 %v10303_v11  ;;  %v13399_v15 = vpack.c.bf16 %v8985_v49, %v8984_v29  ;;  %v9017_v3 = vld [vmem:[%s14771_s5 + $0x388] sm:$0xff]  ;;  %v13412_v11 = vpack.c.bf16 %v8969_v24, %v8968_v52 }
 0xe72   :  { %v13410_v38 = vpack.c.bf16 %v9017_v3, %v9016_v42 }
 0xe74   :  { %10274 = vmatpush3.bf16.msra.mxu0 %v10273_v47  ;;  %10306 = vmatpush3.bf16.msra.mxu1 %v10305_v30  ;;  %v9000_v47 = vld [vmem:[%s14771_s5 + $0x300] sm:$0xff] }
 0xe75   :  { %10308 = vmatprep.subr.bf16.mxu0 %v13399_v15  ;;  %v13424_v30 = vpack.c.bf16 %v9001_v33, %v9000_v47  ;;  %10340 = vmatprep.subr.bf16.mxu1 %v13410_v38 }
 0xf2a   :  { %v4299_v60 = vpop.f32.mrb[32].mxu0  ;;  %v4385_v19 = vpop.f32.mrb[32].mxu1 }
 0xf2b   :  { %v10451_v9 = vadd.f32 %v4299_v60, %v3569_v41  ;;  %v10455_v13 = vadd.f32 %v4385_v19, %v3577_v53  ;;  %v4301_v16 = vpop.f32.mrb[33].mxu0  ;;  %v4387_v48 = vpop.f32.mrb[33].mxu1  ;;  %v8970_v19 = vld [vmem:[%s14771_s5 + $0x210] sm:$0xff] }
 0xf2c   :  { %v10452_v2 = vadd.f32 %v4301_v16, %v3573_v45  ;;  %v10456_v25 = vadd.f32 %v4387_v48, %v3581_v22  ;;  %v4303_v55 = vpop.f32.mrb[34].mxu0  ;;  %v4389_v35 = vpop.f32.mrb[34].mxu1  ;;  %v9003_v48 = vld [vmem:[%s14771_s5 + $0x318] sm:$0xff] }
 0xf2d   :  { %v4394_v34 = vmax.f32 %v10451_v9, 0.0  ;;  %v4396_v8 = vmax.f32 %v10455_v13, 0.0  ;;  %v10453_v4 = vadd.f32 %v4303_v55, %v3569_v41  ;;  %v10457_v57 = vadd.f32 %v4389_v35, %v3577_v53  ;;  %v4305_v63 = vpop.f32.mrb[35].mxu0  ;;  %v4391_v7 = vpop.f32.mrb[35].mxu1  ;;  %v8987_v41 = vld [vmem:[%s14771_s5 + $0x298] sm:$0xff]  ;;  %v9018_v53 = vld [vmem:[%s14771_s5 + $0x390] sm:$0xff] }
 0xf2e   :  { %v4395_v28 = vmax.f32 %v10452_v2, 0.0  ;;  %v4397_v23 = vmax.f32 %v10456_v25, 0.0  ;;  %v10454_v14 = vadd.f32 %v4305_v63, %v3573_v45  ;;  %v10458_v56 = vadd.f32 %v4391_v7, %v3581_v22  ;;  %v9019_v45 = vld [vmem:[%s14771_s5 + $0x398] sm:$0xff]  ;;  %v9002_v13 = vld [vmem:[%s14771_s5 + $0x310] sm:$0xff]  ;;  %v8988_v2 = vld [vmem:[%s14771_s5 + $0x2a0] sm:$0xff] }
 0xf2f   :  { %v13351_v10 = vadd.f32 %v4394_v34, %v12629_v1  ;;  %v4398_v51 = vmax.f32 %v10453_v4, 0.0  ;;  %v4400_v6 = vmax.f32 %v10457_v57, 0.0  ;;  %v13360_v62 = vadd.f32 %v4396_v8, %v12635_v20  ;;  %v8971_v9 = vld [vmem:[%s14771_s5 + $0x218] sm:$0xff]  ;;  %v8989_v25 = vld [vmem:[%s14771_s5 + $0x2a8] sm:$0xff]  ;;  %v9020_v34 = vld [vmem:[%s14771_s5 + $0x3a0] sm:$0xff] }
 0xf30   :  { %v13354_v17 = vadd.f32 %v4395_v28, %v12632_v40  ;;  %v13357_v39 = vadd.f32 %v4397_v23, %v12640_v58  ;;  %v4399_v27 = vmax.f32 %v10454_v14, 0.0  ;;  %v4401_v26 = vmax.f32 %v10458_v56, 0.0  ;;  %v9021_v8 = vld [vmem:[%s14771_s5 + $0x3a8] sm:$0xff]  ;;  %v8972_v4 = vld [vmem:[%s14771_s5 + $0x220] sm:$0xff] }
 0xf31   :  { %14950 = vst [vmem:[#allocation23_spill] sm:$0xff] %v13351_v10  ;;  %14953 = vst [vmem:[#allocation11_spill] sm:$0xff] %v13360_v62  ;;  %v13363_v18 = vadd.f32 %v4398_v51, %v12645_v12  ;;  %v13378_v20 = vadd.f32 %v4400_v6, %v12651_v32  ;;  %v13437_v22 = vpack.c.bf16 %v8987_v41, %v8986_v61  ;;  %v8973_v63 = vld [vmem:[%s14771_s5 + $0x228] sm:$0xff]  ;;  %v9004_v7 = vld [vmem:[%s14771_s5 + $0x320] sm:$0xff] }
 0xf32   :  { %14951 = vst [vmem:[#allocation25_spill] sm:$0xff] %v13354_v17  ;;  %14952 = vst [vmem:[#allocation6_spill] sm:$0xff] %v13357_v39  ;;  %v13366_v0 = vadd.f32 %v4399_v27, %v12648_v43  ;;  %v13369_v1 = vadd.f32 %v4401_v26, %v12656_v44  ;;  %4652 = vmatprep.mubr.f32.mxu0 %v13354_v17  ;;  %4727 = vmatprep.mubr.f32.mxu1 %v13357_v39  ;;  %v9005_v28 = vld [vmem:[%s14771_s5 + $0x328] sm:$0xff] }
 0xf33   :  { %14954 = vst [vmem:[#allocation13_spill] sm:$0xff] %v13363_v18  ;;  %v4417_v40 = vadd.f32 %v13354_v17, %v13351_v10  ;;  %4653 = vmatmul.mubr.f32.vlgmr.msra.gmra.mrb[36].mxu0 %v13351_v10  ;;  %4728 = vmatmul.mubr.f32.vlgmr.msra.gmra.mrb[36].mxu1 %v13360_v62  ;;  %14957 = vst [vmem:[#allocation15_spill] sm:$0xff] %v13378_v20  ;;  %v13439_v60 = vpack.c.bf16 %v9019_v45, %v9018_v53 }
 0xf34   :  { %14955 = vst [vmem:[#allocation12_spill] sm:$0xff] %v13366_v0  ;;  %14956 = vst [vmem:[#allocation14_spill] sm:$0xff] %v13369_v1  ;;  %4657 = vmatprep.mubr.f32.mxu0 %v13366_v0  ;;  %4732 = vmatprep.mubr.f32.mxu1 %v13369_v1  ;;  %v4422_v12 = vadd.f32 %v13366_v0, %v13363_v18  ;;  %v13451_v16 = vpack.c.bf16 %v8971_v9, %v8970_v19 }
 0xf35   :  { %v4418_v58 = vadd.f32 %v4417_v40, %v13360_v62  ;;  %10310 = vmatpush3.bf16.msra.mxu0 %v13412_v11  ;;  %10342 = vmatpush3.bf16.msra.mxu1 %v13424_v30  ;;  %v13464_v55 = vpack.c.bf16 %v9003_v48, %v9002_v13  ;;  %v13466_v35 = vpack.c.bf16 %v8989_v25, %v8988_v2  ;;  %v9022_v48 = vld [vmem:[%s14771_s5 + $0x3b0] sm:$0xff]  ;;  %v9023_v2 = vld [vmem:[%s14771_s5 + $0x3b8] sm:$0xff] }
 0xf36   :  { %v4423_v44 = vadd.f32 %v4422_v12, %v13378_v20  ;;  %10312 = vmatprep.subr.bf16.mxu0 %v13437_v22  ;;  %10344 = vmatprep.subr.bf16.mxu1 %v13439_v60  ;;  %v13477_v57 = vpack.c.bf16 %v9021_v8, %v9020_v34  ;;  %v13489_v23 = vpack.c.bf16 %v8973_v63, %v8972_v4  ;;  %v8990_v25 = vld [vmem:[%s14771_s5 + $0x2b0] sm:$0xff]  ;;  %v8991_v8 = vld [vmem:[%s14771_s5 + $0x2b8] sm:$0xff] }
 0xf37   :  { %v4419_v43 = vadd.f32 %v4418_v58, %v13357_v39  ;;  %4658 = vmatmul.mubr.f32.gmra.mrb[38].mxu0 %v13363_v18  ;;  %4733 = vmatmul.mubr.f32.gmra.mrb[38].mxu1 %v13378_v20  ;;  %v13493_v14 = vpack.c.bf16 %v9005_v28, %v9004_v7  ;;  %v13547_v34 = vpack.c.bf16 %v9023_v2, %v9022_v48  ;;  %v8974_v4 = vld [vmem:[%s14771_s5 + $0x230] sm:$0xff]  ;;  %v8975_v63 = vld [vmem:[%s14771_s5 + $0x238] sm:$0xff] }
 0xf38   :  { %v4424_v32 = vadd.f32 %v4423_v44, %v13369_v1  ;;  %v13558_v7 = vpack.c.bf16 %v8991_v8, %v8990_v25  ;;  %v13560_v28 = vpack.c.bf16 %v8975_v63, %v8974_v4  ;;  %v9026_v48 = vld [vmem:[%s14771_s5 + $0x3d0] sm:$0xff]  ;;  %v9027_v25 = vld [vmem:[%s14771_s5 + $0x3d8] sm:$0xff] }
 0xf39   :  { %4420 = vadd.xlane.f32.xlu1 %v4419_v43  ;;  %10314 = vmatpush3.bf16.msra.mxu0 %v13451_v16  ;;  %v8978_v8 = vld [vmem:[%s14771_s5 + $0x250] sm:$0xff]  ;;  %v8979_v4 = vld [vmem:[%s14771_s5 + $0x258] sm:$0xff]  ;;  %v13636_v63 = vpack.c.bf16 %v9027_v25, %v9026_v48  ;;  %v9012_v48 = vld [vmem:[%s14771_s5 + $0x360] sm:$0xff] }
 0xf3a   :  { %4425 = vadd.xlane.f32.xlu0 %v4424_v32  ;;  %10346 = vmatpush3.bf16.msra.mxu1 %v13464_v55  ;;  %v9013_v25 = vld [vmem:[%s14771_s5 + $0x368] sm:$0xff] }
 0xf3b   :  { %10316 = vmatprep.subr.bf16.mxu0 %v13466_v35  ;;  %10348 = vmatprep.subr.bf16.mxu1 %v13477_v57 }
 0xf3d   :  { %10318 = vmatpush3.bf16.msra.mxu0 %v13489_v23 }
 0xf3e   :  { %10350 = vmatpush3.bf16.msra.mxu1 %v13493_v14  ;;  %10320 = vmatprep.subr.bf16.mxu0 %v13558_v7 }
 0xf3f   :  { %10352 = vmatprep.subr.bf16.mxu1 %v13547_v34 }
 0xf41   :  { %10322 = vmatpush3.bf16.msra.mxu0 %v13560_v28 }
 0xfc6   :  { %v4421_v56 = vpop.xlane.xlu1 %4420 }
 0xfc7   :  { %v4427_v51 = vmul.f32 0.001953125, %v4421_v56  ;;  %v4426_v6 = vpop.xlane.xlu0 %4425  ;;  %v9006_v56 = vld [vmem:[%s14771_s5 + $0x330] sm:$0xff] }
 0xfc8   :  { %v4428_v40 = vmul.f32 0.001953125, %v4426_v6  ;;  %v13571_v6 = vld [vmem:[%s14775_s9 + $0x1] ss:$0 sm:$0xff]  ;;  %s14987_s9 = smov 126  }
 0xfc9   :  { %v13499_v27 = vsub.f32 %v13351_v10, %v4427_v51  ;;  %v13502_v26 = vsub.f32 %v13354_v17, %v4427_v51  ;;  %v13505_v58 = vsub.f32 %v13360_v62, %v4427_v51  ;;  %v13519_v29 = vsub.f32 %v13357_v39, %v4427_v51  ;;  %v9007_v51 = vld [vmem:[%s14771_s5 + $0x338] sm:$0xff]  ;;  %v14961_v39 = vld [vmem:[#allocation22_spill] sm:$0xff] }
 0xfca   :  { %v13508_v12 = vsub.f32 %v13363_v18, %v4428_v40  ;;  %v13511_v43 = vsub.f32 %v13366_v0, %v4428_v40  ;;  %v13514_v44 = vsub.f32 %v13378_v20, %v4428_v40  ;;  %v13524_v42 = vsub.f32 %v13369_v1, %v4428_v40 }
 0xfcb   :  { %v4437_v32 = vmul.f32 %v13499_v27, %v13499_v27  ;;  %v4438_v49 = vmul.f32 %v13502_v26, %v13502_v26  ;;  %v4439_v24 = vmul.f32 %v13505_v58, %v13505_v58  ;;  %v4440_v41 = vmul.f32 %v13519_v29, %v13519_v29 }
 0xfcc   :  { %v4441_v3 = vmul.f32 %v13508_v12, %v13508_v12  ;;  %v4442_v52 = vmul.f32 %v13511_v43, %v13511_v43  ;;  %v4443_v33 = vmul.f32 %v13514_v44, %v13514_v44  ;;  %v4444_v45 = vmul.f32 %v13524_v42, %v13524_v42 }
 0xfcd   :  { %v4445_v47 = vadd.f32 %v4438_v49, %v4437_v32  ;;  %v13574_v40 = vpack.c.bf16 %v9007_v51, %v9006_v56  ;;  %v8992_v32 = vld [vmem:[%s14771_s5 + $0x2c0] sm:$0xff]  ;;  %v8993_v49 = vld [vmem:[%s14771_s5 + $0x2c8] sm:$0xff]  ;;  %v13638_v56 = vpack.c.bf16 %v8979_v4, %v8978_v8  ;;  %v9010_v51 = vld [vmem:[%s14771_s5 + $0x350] sm:$0xff] }
 0xfce   :  { %v4450_v61 = vadd.f32 %v4442_v52, %v4441_v3  ;;  %v9024_v3 = vld [vmem:[%s14771_s5 + $0x3c0] sm:$0xff]  ;;  %v13589_v52 = vpack.c.bf16 %v8993_v49, %v8992_v32  ;;  %v9011_v32 = vld [vmem:[%s14771_s5 + $0x358] sm:$0xff]  ;;  %v8998_v8 = vld [vmem:[%s14771_s5 + $0x2f0] sm:$0xff] }
 0xfcf   :  { %v4446_v53 = vadd.f32 %v4445_v47, %v4439_v24  ;;  %v9025_v24 = vld [vmem:[%s14771_s5 + $0x3c8] sm:$0xff]  ;;  %v8976_v47 = vld [vmem:[%s14771_s5 + $0x240] sm:$0xff]  ;;  %10354 = vmatpush3.bf16.msra.mxu1 %v13574_v40  ;;  %v8999_v4 = vld [vmem:[%s14771_s5 + $0x2f8] sm:$0xff] }
 0xfd0   :  { %v4451_v19 = vadd.f32 %v4450_v61, %v4443_v33  ;;  %v8977_v33 = vld [vmem:[%s14771_s5 + $0x248] sm:$0xff]  ;;  %v13601_v61 = vpack.c.bf16 %v9025_v24, %v9024_v3  ;;  %10324 = vmatprep.subr.bf16.mxu0 %v13589_v52  ;;  %v8996_v49 = vld [vmem:[%s14771_s5 + $0x2e0] sm:$0xff]  ;;  %v13651_v3 = vpack.c.bf16 %v9011_v32, %v9010_v51  ;;  %v9030_v32 = vld [vmem:[%s14771_s5 + $0x3f0] sm:$0xff] }
 0xfd1   :  { %v4447_v9 = vadd.f32 %v4446_v53, %v4440_v41  ;;  %v13603_v41 = vpack.c.bf16 %v8977_v33, %v8976_v47  ;;  %v9008_v53 = vld [vmem:[%s14771_s5 + $0x340] sm:$0xff]  ;;  %v8997_v24 = vld [vmem:[%s14771_s5 + $0x2e8] sm:$0xff] }
 0xfd2   :  { %v4452_v13 = vadd.f32 %v4451_v19, %v4444_v45  ;;  %v9009_v45 = vld [vmem:[%s14771_s5 + $0x348] sm:$0xff]  ;;  %10356 = vmatprep.subr.bf16.mxu1 %v13601_v61  ;;  %v9028_v47 = vld [vmem:[%s14771_s5 + $0x3e0] sm:$0xff] }
 0xfd3   :  { %4448 = vadd.xlane.f32.xlu1 %v4447_v9  ;;  %v13612_v19 = vpack.c.bf16 %v9009_v45, %v9008_v53  ;;  %v8994_v9 = vld [vmem:[%s14771_s5 + $0x2d0] sm:$0xff]  ;;  %10326 = vmatpush3.bf16.msra.mxu0 %v13603_v41  ;;  %v9029_v33 = vld [vmem:[%s14771_s5 + $0x3e8] sm:$0xff]  ;;  %v13663_v53 = vpack.c.bf16 %v8997_v24, %v8996_v49  ;;  %v9031_v49 = vld [vmem:[%s14771_s5 + $0x3f8] sm:$0xff]  ;;  %v13696_v24 = vpack.c.bf16 %v9013_v25, %v9012_v48 }
 0xfd4   :  { %4453 = vadd.xlane.f32.xlu0 %v4452_v13  ;;  %v8995_v13 = vld [vmem:[%s14771_s5 + $0x2d8] sm:$0xff]  ;;  %v13665_v45 = vpack.c.bf16 %v9029_v33, %v9028_v47  ;;  %v13698_v47 = vpack.c.bf16 %v8999_v4, %v8998_v8  ;;  %v8982_v33 = vld [vmem:[%s14771_s5 + $0x270] sm:$0xff] }
 0xfd5   :  { %v13624_v2 = vpack.c.bf16 %v8995_v13, %v8994_v9  ;;  %10358 = vmatpush3.bf16.msra.mxu1 %v13612_v19  ;;  %v8980_v9 = vld [vmem:[%s14771_s5 + $0x260] sm:$0xff]  ;;  %v8981_v13 = vld [vmem:[%s14771_s5 + $0x268] sm:$0xff]  ;;  %v9015_v48 = vld [vmem:[%s14771_s5 + $0x378] sm:$0xff] }
 0xfd6   :  { %10360 = vmatprep.subr.bf16.mxu1 %v13636_v63  ;;  %v13686_v51 = vpack.c.bf16 %v8981_v13, %v8980_v9  ;;  %v8983_v9 = vld [vmem:[%s14771_s5 + $0x278] sm:$0xff]  ;;  %v13707_v13 = vpack.c.bf16 %v9031_v49, %v9030_v32  ;;  %v13720_v8 = vpack.c.bf16 %v9015_v48, %v9014_v46  ;;  %s14989_s5 = smov 127  }
 0xfd7   :  { %10328 = vmatprep.subr.bf16.mxu0 %v13624_v2  ;;  %v13716_v25 = vpack.c.bf16 %v8983_v9, %v8982_v33 }
 0xfd8   :  { %10330 = vmatpush3.bf16.msra.mxu0 %v13638_v56  ;;  %14959 = vst [vmem:[#allocation17_spill] sm:$0xff] %v13720_v8 }
 0xfd9   :  { %10362 = vmatpush3.bf16.msra.mxu1 %v13651_v3  ;;  %10332 = vmatprep.subr.bf16.mxu0 %v13663_v53  ;;  %14958 = vst [vmem:[#allocation16_spill] sm:$0xff] %v13716_v25 }
 0xfda   :  { %10364 = vmatprep.subr.bf16.mxu1 %v13665_v45 }
 0xfdc   :  { %10334 = vmatpush3.bf16.msra.mxu0 %v13686_v51 }
 0xfdd   :  { %10366 = vmatpush3.bf16.msra.mxu1 %v13696_v24  ;;  %10336 = vmatprep.subr.bf16.mxu0 %v13698_v47 }
 0xfde   :  { %10368 = vmatprep.subr.bf16.mxu1 %v13707_v13 }
 0xfe0   :  { %10338 = vmatpush3.bf16.msra.mxu0 %v13716_v25 }
 0xfe1   :  { %10370 = vmatpush3.bf16.msra.mxu1 %v13720_v8  ;;  %10372 = vmatprep.subr.bf16.mxu0 %v13399_v15 }
 0xfe2   :  { %10404 = vmatprep.subr.bf16.mxu1 %v13410_v38 }
 0xfe4   :  { %4803 = vrot.lane.b32.xlu1 %v13571_v6, %s11392_s21 }
0x1006   :  { %v9723_v4 = vpop.f32.mrb[36].mxu0  ;;  %v9761_v32 = vpop.f32.mrb[36].mxu1 }
0x1007   :  { %v9724_v49 = vpop.f32.mrb[37].mxu0  ;;  %v9762_v33 = vpop.f32.mrb[37].mxu1 }
0x1008   :  { %v9725_v9 = vadd.f32 %v9724_v49, %v9723_v4  ;;  %v9763_v54 = vadd.f32 %v9762_v33, %v9761_v32 }
0x100a   :  { %v4655_v59 = vadd.f32 %v9725_v9, %v13571_v6  ;;  %v9726_v46 = vpop.f32.mrb[38].mxu0  ;;  %v9764_v48 = vpop.f32.mrb[38].mxu1 }
0x100b   :  { %v9727_v36 = vpop.f32.mrb[39].mxu0  ;;  %v9765_v1 = vpop.f32.mrb[39].mxu1 }
0x100c   :  { %v13728_v20 = vadd.f32 %v9763_v54, %v4655_v59  ;;  %v9728_v0 = vadd.f32 %v9727_v36, %v9726_v46  ;;  %v9766_v18 = vadd.f32 %v9765_v1, %v9764_v48 }
0x100e   :  { %14960 = vst [vmem:[#allocation18_spill] sm:$0xff] %v13728_v20  ;;  %v13732_v15 = vadd.f32 %v13728_v20, %v14961_v39  ;;  %v4660_v38 = vadd.f32 %v9728_v0, %v13571_v6  ;;  %v13754_v0 = vld [vmem:[%s14776_s10 + $0x20] sm:$0x7f]  ;;  %v13759_v6 = vld [vmem:[%s14776_s10 + $0x30] sm:$0x7f] }
0x100f   :  { %14965 = vst [vmem:[#allocation29_spill] sm:$0xff] %v13754_v0  ;;  %14966 = vst [vmem:[#allocation30_spill] sm:$0xff] %v13759_v6  ;;  %v4472_v46 = vrot.slane %v13754_v0, %v14899_v21  ;;  %v4480_v48 = vrot.slane %v13759_v6, %v14899_v21 }
0x1010   :  { %14962 = vst [vmem:[#allocation22_spill] sm:$0xff] %v13732_v15  ;;  %v13735_v62 = vadd.f32 %v9766_v18, %v4660_v38  ;;  %5194 = vrot.lane.b32.xlu0 %v13732_v15, %s11391_s11  ;;  %v8899_v18 = vld [vmem:[%s14776_s10 + $0x28] sm:$0x7f] }
0x1011   :  { %v4476_v33 = vrot.slane %v8899_v18, %v14899_v21 }
0x1012   :  { %14963 = vst [vmem:[#allocation27_spill] sm:$0xff] %v13735_v62  ;;  %v13741_v4 = vadd.f32 %v13735_v62, %v14961_v39  ;;  %v8901_v39 = vld [vmem:[%s14776_s10 + $0x38] sm:$0x7f] }
0x1013   :  { %v4484_v9 = vrot.slane %v8901_v39, %v14899_v21 }
0x1014   :  { %14964 = vst [vmem:[#allocation28_spill] sm:$0xff] %v13741_v4  ;;  %5196 = vrot.lane.b32.xlu1 %v13741_v4, %s11391_s11 }
0x1060   :  { %v4449_v36 = vpop.xlane.xlu1 %4448 }
0x1061   :  { %v4455_v59 = vmul.f32 0.001953125, %v4449_v36  ;;  %v4454_v54 = vpop.xlane.xlu0 %4453  ;;  %v14967_v36 = vld [vmem:[#allocation9_spill] sm:$0xff] }
0x1062   :  { %v4456_v1 = vmul.f32 0.001953125, %v4454_v54  ;;  %v4508_v54 = vrot.slane %v8901_v39, %v14967_v36 }
0x1063   :  { %v4457_v32 = vadd.f32 1e-05, %v4455_v59  ;;  %v4500_v59 = vrot.slane %v8899_v18, %v14967_v36 }
0x1064   :  { %v4458_v49 = vadd.f32 1e-05, %v4456_v1  ;;  %v4496_v1 = vrot.slane %v13754_v0, %v14967_v36 }
0x1065   :  { %11323 = vrsqrt.f32 %v4457_v32  ;;  %v4504_v32 = vrot.slane %v13759_v6, %v14967_v36 }
0x1066   :  { %11325 = vrsqrt.f32 %v4458_v49 }
0x106f   :  { %v11324_v38 = vpop.eup %11323 }
0x1070   :  { %v11326_v49 = vpop.eup %11325  ;;  %v4462_v17 = vmul.f32 %v11324_v38, %v13502_v26  ;;  %v4464_v10 = vmul.f32 %v11324_v38, %v13519_v29  ;;  %v4461_v37 = vmul.f32 %v11324_v38, %v13499_v27  ;;  %v4463_v50 = vmul.f32 %v11324_v38, %v13505_v58 }
0x1071   :  { %v4466_v21 = vmul.f32 %v11326_v49, %v13511_v43  ;;  %v4468_v62 = vmul.f32 %v11326_v49, %v13524_v42  ;;  %v4465_v20 = vmul.f32 %v11326_v49, %v13508_v12  ;;  %v4467_v31 = vmul.f32 %v11326_v49, %v13514_v44 }
0x1072   :  { %v4486_v4 = vmul.f32 %v4476_v33, %v4462_v17  ;;  %v4488_v5 = vmul.f32 %v4484_v9, %v4464_v10  ;;  %v4485_v36 = vmul.f32 %v4472_v46, %v4461_v37  ;;  %v4487_v15 = vmul.f32 %v4480_v48, %v4463_v50  ;;  %v9033_v10 = vld [vmem:[%s14767_s1 + $0x18] sm:$0xff] }
0x1073   :  { %v4490_v8 = vmul.f32 %v4476_v33, %v4466_v21  ;;  %v4492_v26 = vmul.f32 %v4484_v9, %v4468_v62  ;;  %v4489_v38 = vmul.f32 %v4472_v46, %v4465_v20  ;;  %v4491_v43 = vmul.f32 %v4480_v48, %v4467_v31  ;;  %v9032_v31 = vld [vmem:[%s14767_s1 + $0x10] sm:$0xff]  ;;  %v14968_v17 = vld [vmem:[#allocation29_spill] sm:$0xff]  ;;  %v14969_v20 = vld [vmem:[#allocation30_spill] sm:$0xff]  ;;  %s14985_s1 = smov 69  }
0x1074   :  { %v4510_v25 = vadd.f32 %v4500_v59, %v4486_v4  ;;  %v4512_v29 = vadd.f32 %v4508_v54, %v4488_v5  ;;  %v4509_v6 = vadd.f32 %v4496_v1, %v4485_v36  ;;  %v4511_v27 = vadd.f32 %v4504_v32, %v4487_v15  ;;  %v14991_v48 = vld [vmem:[#allocation7_spill] sm:$0xff] }
0x1075   :  { %v4514_v0 = vadd.f32 %v4500_v59, %v4490_v8  ;;  %v4516_v58 = vadd.f32 %v4508_v54, %v4492_v26  ;;  %v4513_v21 = vadd.f32 %v4496_v1, %v4489_v38  ;;  %v4515_v50 = vadd.f32 %v4504_v32, %v4491_v43 }
0x1076   :  { %4870 = vmatprep.mubr.f32.mxu0 %v4510_v25  ;;  %4945 = vmatprep.mubr.f32.mxu1 %v4512_v29  ;;  %v4961_v5 = vrot.slane %v8899_v18, 1  ;;  %v4963_v37 = vrot.slane %v8901_v39, 1  ;;  %v4960_v62 = vrot.slane %v14968_v17, 1 }
0x1077   :  { %4871 = vmatmul.mubr.f32.vlgmr.msra.gmra.mrb[40].mxu0 %v4509_v6  ;;  %4946 = vmatmul.mubr.f32.vlgmr.msra.gmra.mrb[40].mxu1 %v4511_v27 }
0x1078   :  { %10374 = vmatpush3.bf16.msra.mxu0 %v13412_v11  ;;  %10406 = vmatpush3.bf16.msra.mxu1 %v13424_v30  ;;  %v4962_v11 = vrot.slane %v14969_v20, 1  ;;  %v4804_v30 = vpop.permute.xlu1 %4803 }
0x1079   :  { %4875 = vmatprep.mubr.f32.mxu0 %v4514_v0  ;;  %4950 = vmatprep.mubr.f32.mxu1 %v4516_v58 }
0x107a   :  { %10376 = vmatprep.subr.bf16.mxu0 %v13437_v22  ;;  %10408 = vmatprep.subr.bf16.mxu1 %v13439_v60  ;;  %v14970_v22 = vld [vmem:[#allocation16_spill] sm:$0xff]  ;;  %v14971_v60 = vld [vmem:[#allocation17_spill] sm:$0xff] }
0x107b   :  { %4876 = vmatmul.mubr.f32.gmra.mrb[42].mxu0 %v4513_v21  ;;  %4951 = vmatmul.mubr.f32.gmra.mrb[42].mxu1 %v4515_v50 }
0x107c   :  { %10378 = vmatpush3.bf16.msra.mxu0 %v13451_v16  ;;  %10410 = vmatpush3.bf16.msra.mxu1 %v13464_v55  ;;  %v14972_v55 = vld [vmem:[#allocation22_spill] sm:$0xff] }
0x107d   :  { %10380 = vmatprep.subr.bf16.mxu0 %v13466_v35  ;;  %10412 = vmatprep.subr.bf16.mxu1 %v13477_v57  ;;  %v14975_v57 = vmov 0.0  }
0x107e   :  { %5032 = vmatprep.mubr.f32.mxu0 %v4961_v5  ;;  %5102 = vmatprep.mubr.f32.mxu1 %v4963_v37 }
0x1080   :  { %10382 = vmatpush3.bf16.msra.mxu0 %v13489_v23  ;;  %10414 = vmatpush3.bf16.msra.mxu1 %v13493_v14  ;;  %v14976_v23 = vld [vmem:[#allocation28_spill] sm:$0xff] }
0x1081   :  { %10384 = vmatprep.subr.bf16.mxu0 %v13558_v7  ;;  %10416 = vmatprep.subr.bf16.mxu1 %v13547_v34 }
0x1082   :  { %v5195_v16 = vpop.permute.xlu0 %5194 }
0x1084   :  { %10386 = vmatpush3.bf16.msra.mxu0 %v13560_v28  ;;  %10418 = vmatpush3.bf16.msra.mxu1 %v13574_v40 }
0x1085   :  { %10388 = vmatprep.subr.bf16.mxu0 %v13589_v52  ;;  %10420 = vmatprep.subr.bf16.mxu1 %v13601_v61 }
0x1086   :  { %v5197_v35 = vpop.permute.xlu1 %5196 }
0x1088   :  { %10390 = vmatpush3.bf16.msra.mxu0 %v13603_v41  ;;  %10422 = vmatpush3.bf16.msra.mxu1 %v13612_v19 }
0x1089   :  { %10392 = vmatprep.subr.bf16.mxu0 %v13624_v2  ;;  %10424 = vmatprep.subr.bf16.mxu1 %v13636_v63 }
0x108c   :  { %10394 = vmatpush3.bf16.msra.mxu0 %v13638_v56  ;;  %10426 = vmatpush3.bf16.msra.mxu1 %v13651_v3  ;;  %v14979_v3 = vld [vmem:[#allocation19_spill] sm:$0xff] }
0x108d   :  { %10396 = vmatprep.subr.bf16.mxu0 %v13663_v53  ;;  %10428 = vmatprep.subr.bf16.mxu1 %v13665_v45  ;;  %v14980_v53 = vld [vmem:[#allocation18_spill] sm:$0xff] }
0x108e   :  { %v13837_v45 = vadd.f32 %v14980_v53, %v14979_v3 }
0x1090   :  { %10398 = vmatpush3.bf16.msra.mxu0 %v13686_v51  ;;  %10430 = vmatpush3.bf16.msra.mxu1 %v13696_v24  ;;  %v14983_v24 = vld [vmem:[#allocation27_spill] sm:$0xff] }
0x1091   :  { %10400 = vmatprep.subr.bf16.mxu0 %v13698_v47  ;;  %10432 = vmatprep.subr.bf16.mxu1 %v13707_v13  ;;  %v13850_v47 = vadd.f32 %v14983_v24, %v14979_v3 }
0x1094   :  { %10402 = vmatpush3.bf16.msra.mxu0 %v14970_v22  ;;  %10434 = vmatpush3.bf16.msra.mxu1 %v14971_v60 }
0x1095   :  { %9985 = vmatprep.subr.mxu0 %v9032_v31  ;;  %9990 = vmatprep.subr.mxu1 %v9033_v10 }
0x1097   :  { %5033 = vmatmul.mubr.f32.vlgmr.msra.gmra.mrb[44].mxu0 %v4960_v62  ;;  %5103 = vmatmul.mubr.f32.vlgmr.msra.gmra.mrb[44].mxu1 %v4962_v11 }
0x1098   :  { %9987 = vmatprep.mubr.msk.f32.mxu0 %vm14973_vm15, %v14972_v55  ;;  %9992 = vmatprep.mubr.msk.f32.mxu1 %vm14974_vm1, %v5195_v16  ;;  %vm14982_vm15 = vmmov %vm14934_vm0 }
0x1099   :  { %9986 = vmatpush3.msra.mxu0 %v9032_v31  ;;  %9991 = vmatpush3.msra.mxu1 %v9033_v10  ;;  %vm14984_vm1 = vmmov %vm14934_vm0 }
0x109a   :  { %9995 = vmatprep.subr.mxu0 %v14975_v57  ;;  %10000 = vmatprep.subr.mxu1 %v14975_v57 }
0x109b   :  { %9988 = vmatmul.mubr.msk.f32.vlgmr.msra.gmra.mrb[46].mxu0 %vm14977_vm8, %v14976_v23  ;;  %9993 = vmatmul.mubr.msk.f32.vlgmr.msra.gmra.mrb[46].mxu1 %vm14934_vm0, %v5197_v35  ;;  %vm14992_vm8 = vmmov %vm14934_vm0 }
0x109c   :  { %9997 = vmatprep.mubr.msk.f32.mxu0 %vm14909_vm2, %v14975_v57  ;;  %10002 = vmatprep.mubr.msk.f32.mxu1 %vm14909_vm2, %v14975_v57 }
0x114a   :  { %v9799_v14 = vpop.f32.mrb[40].mxu0  ;;  %v9837_v12 = vpop.f32.mrb[40].mxu1 }
0x114b   :  { %v9800_v44 = vpop.f32.mrb[41].mxu0  ;;  %v9838_v42 = vpop.f32.mrb[41].mxu1 }
0x114c   :  { %v9801_v34 = vadd.f32 %v9800_v44, %v9799_v14  ;;  %v9839_v7 = vadd.f32 %v9838_v42, %v9837_v12 }
0x114e   :  { %v4873_v28 = vadd.f32 %v9801_v34, %v4804_v30  ;;  %v9802_v40 = vpop.f32.mrb[42].mxu0  ;;  %v9840_v52 = vpop.f32.mrb[42].mxu1 }
0x114f   :  { %v9803_v61 = vpop.f32.mrb[43].mxu0  ;;  %v9841_v41 = vpop.f32.mrb[43].mxu1 }
0x1150   :  { %v13831_v19 = vadd.f32 %v9839_v7, %v4873_v28  ;;  %v9804_v2 = vadd.f32 %v9803_v61, %v9802_v40  ;;  %v9842_v63 = vadd.f32 %v9841_v41, %v9840_v52 }
0x1152   :  { %v4878_v56 = vadd.f32 %v9804_v2, %v4804_v30  ;;  %9996 = vmatpush3.xpose.msk.msra.mxu0 %vm14978_vm13, %v13831_v19  ;;  %vm14994_vm13 = vcmask 564224  }
0x1153   :  { %10005 = vmatprep.subr.mxu0 %v14975_v57 }
0x1154   :  { %v13840_v51 = vadd.f32 %v9842_v63, %v4878_v56 }
0x1155   :  { %9998 = vmatmul.mubr.msk.f32.vlgmr.msra.gmra.mrb[48].mxu0 %vm14981_vm14, %v13837_v45  ;;  %vm14995_vm14 = vcmask 1043456  }
0x1156   :  { %10001 = vmatpush3.xpose.msk.msra.mxu1 %vm14982_vm15, %v13840_v51  ;;  %10007 = vmatprep.mubr.msk.f32.mxu0 %vm14909_vm2, %v14975_v57  ;;  %vm14996_vm15 = vcmask 1044480  }
0x1157   :  { %10010 = vmatprep.subr.mxu1 %v14975_v57 }
0x1159   :  { %10003 = vmatmul.mubr.msk.f32.vlgmr.msra.gmra.mrb[48].mxu1 %vm14984_vm1, %v13850_v47  ;;  %vm14997_vm1 = vcmask 1045504  }
0x115a   :  { %10012 = vmatprep.mubr.msk.f32.mxu1 %vm14909_vm2, %v14975_v57 }
0x116a   :  { %v9875_v13 = vpop.f32.mrb[44].mxu0  ;;  %v9910_v25 = vpop.f32.mrb[44].mxu1 }
0x116b   :  { %v9876_v8 = vpop.f32.mrb[45].mxu0  ;;  %v9911_v15 = vpop.f32.mrb[45].mxu1 }
0x116c   :  { %v9877_v4 = vadd.f32 %v9876_v8, %v9875_v13  ;;  %v9912_v18 = vadd.f32 %v9911_v15, %v9910_v25 }
0x116e   :  { %v5035_v39 = vadd.f32 %v9877_v4, %v4804_v30  ;;  %v13857_v0 = vpop.f32.mrb[46].mxu0  ;;  %v13859_v6 = vpop.f32.mrb[46].mxu1 }
0x116f   :  { %5295 = vrot.lane.b32.xlu1 %v13857_v0, %s11394_s18  ;;  %5283 = vrot.lane.b32.xlu0 %v13857_v0, %s11395_s2  ;;  %v13865_v33 = vpop.f32.mrb[47].mxu0  ;;  %v13867_v9 = vpop.f32.mrb[47].mxu1 }
0x1170   :  { %v5105_v46 = vadd.f32 %v9912_v18, %v5035_v39 }
0x1172   :  { %v13920_v36 = vrot.slane %v5105_v46, %v14991_v48 }
0x1173   :  { %5323 = vrot.lane.b32.xlu1 %v13857_v0, %s11396_s0  ;;  %5311 = vrot.lane.b32.xlu0 %v13857_v0, %s11397_s8 }
0x1174   :  { %v13924_v59 = vmul.f32 %v13920_v36, %v13850_v47  ;;  %v13930_v1 = vmul.f32 %v13920_v36, %v13837_v45 }
0x1176   :  { %v5668_v54 = vsel %vm14992_vm8, %v13924_v59, 0.0  ;;  %v5665_v32 = vsel %vm14934_vm0, %v13930_v1, 0.0  ;;  %vm14998_vm8 = vmmov %vm14994_vm13  ;;  %vm14999_vm0 = vcmask 1046528  }
0x1177   :  { %5351 = vrot.lane.b32.xlu1 %v13857_v0, %s11398_s16  ;;  %5339 = vrot.lane.b32.xlu0 %v13857_v0, %s11399_s19 }
0x117b   :  { %5379 = vrot.lane.b32.xlu1 %v13857_v0, %s11400_s20  ;;  %5367 = vrot.lane.b32.xlu0 %v13857_v0, %s11401_s22 }
0x117f   :  { %5407 = vrot.lane.b32.xlu1 %v13857_v0, %s14985_s1  ;;  %5395 = vrot.lane.b32.xlu0 %v13857_v0, %s14986_s13 }
0x1183   :  { %5423 = vrot.lane.b32.xlu1 %v13857_v0, %s14987_s9  ;;  %5435 = vrot.lane.b32.xlu0 %v13857_v0, %s14988_s24 }
0x1187   :  { %5451 = vrot.lane.b32.xlu1 %v13857_v0, %s14989_s5  ;;  %5281 = vrot.lane.b32.xlu0 %v13865_v33, %s11395_s2 }
0x118b   :  { %5293 = vrot.lane.b32.xlu1 %v13865_v33, %s11394_s18  ;;  %5337 = vrot.lane.b32.xlu0 %v13865_v33, %s11399_s19 }
0x118f   :  { %5309 = vrot.lane.b32.xlu1 %v13865_v33, %s11397_s8  ;;  %5365 = vrot.lane.b32.xlu0 %v13865_v33, %s11401_s22 }
0x1193   :  { %5321 = vrot.lane.b32.xlu1 %v13865_v33, %s11396_s0  ;;  %5393 = vrot.lane.b32.xlu0 %v13865_v33, %s14986_s13 }
0x1197   :  { %5349 = vrot.lane.b32.xlu1 %v13865_v33, %s11398_s16  ;;  %5421 = vrot.lane.b32.xlu0 %v13865_v33, %s14987_s9 }
0x119b   :  { %5377 = vrot.lane.b32.xlu1 %v13865_v33, %s11400_s20  ;;  %5449 = vrot.lane.b32.xlu0 %v13865_v33, %s14989_s5 }
0x119f   :  { %5405 = vrot.lane.b32.xlu1 %v13865_v33, %s14985_s1 }
0x11a3   :  { %5433 = vrot.lane.b32.xlu1 %v13865_v33, %s14988_s24 }
0x11a7   :  { %5461 = vrot.lane.b32.xlu1 %v13865_v33, %s14990_s26 }
0x11ba   :  { %5669 = vadd.xlane.f32.xlu0 %v5668_v54 }
0x11cb   :  { %5666 = vadd.xlane.f32.xlu1 %v5665_v32 }
0x11e1   :  { %v5296_v58 = vpop.permute.xlu1 %5295  ;;  %v5284_v21 = vpop.permute.xlu0 %5283 }
0x11e2   :  { %v5306_v39 = vsel %vm1168_vm5, %v5284_v21, %v5296_v58 }
0x11e5   :  { %v5324_v38 = vpop.permute.xlu1 %5323  ;;  %v5312_v5 = vpop.permute.xlu0 %5311 }
0x11e6   :  { %v5334_v15 = vsel %vm1197_vm3, %v5312_v5, %v5324_v38 }
0x11e9   :  { %v5352_v43 = vpop.permute.xlu1 %5351  ;;  %v5340_v31 = vpop.permute.xlu0 %5339 }
0x11ea   :  { %v5362_v18 = vsel %vm1226_vm4, %v5340_v31, %v5352_v43 }
0x11ed   :  { %v5380_v50 = vpop.permute.xlu1 %5379  ;;  %v5368_v17 = vpop.permute.xlu0 %5367 }
0x11ee   :  { %v5390_v46 = vsel %vm1255_vm7, %v5368_v17, %v5380_v50 }
0x11f1   :  { %v5408_v37 = vpop.permute.xlu1 %5407  ;;  %v5396_v20 = vpop.permute.xlu0 %5395 }
0x11f5   :  { %v5424_v10 = vpop.permute.xlu1 %5423  ;;  %v5436_v30 = vpop.permute.xlu0 %5435 }
0x11f6   :  { %v5446_v5 = vsel %vm1313_vm11, %v5424_v10, %v5436_v30 }
0x11f9   :  { %v5452_v62 = vpop.permute.xlu1 %5451  ;;  %v5282_v60 = vpop.permute.xlu0 %5281 }
0x11fd   :  { %v5294_v11 = vpop.permute.xlu1 %5293  ;;  %v5338_v55 = vpop.permute.xlu0 %5337 }
0x11fe   :  { %v5305_v40 = vsel %vm1168_vm5, %v5282_v60, %v5294_v11 }
0x1201   :  { %v5310_v22 = vpop.permute.xlu1 %5309  ;;  %v5366_v23 = vpop.permute.xlu0 %5365 }
0x1205   :  { %v5322_v16 = vpop.permute.xlu1 %5321  ;;  %v5394_v12 = vpop.permute.xlu0 %5393 }
0x1206   :  { %v5333_v7 = vsel %vm1197_vm3, %v5310_v22, %v5322_v16 }
0x1207   :  { %v5477_v2 = vsel %vm1347_vm6, %v5305_v40, %v5333_v7 }
0x1209   :  { %v5350_v35 = vpop.permute.xlu1 %5349  ;;  %v5422_v42 = vpop.permute.xlu0 %5421 }
0x120a   :  { %v5361_v28 = vsel %vm1226_vm4, %v5338_v55, %v5350_v35 }
0x120b   :  { %v5481_v56 = vsel %vm1352_vm10, %v5477_v2, %v5361_v28 }
0x120d   :  { %v5378_v14 = vpop.permute.xlu1 %5377  ;;  %v5450_v52 = vpop.permute.xlu0 %5449 }
0x120e   :  { %v5389_v61 = vsel %vm1255_vm7, %v5366_v23, %v5378_v14 }
0x120f   :  { %v5485_v53 = vsel %vm1357_vm12, %v5481_v56, %v5389_v61 }
0x1211   :  { %v5406_v44 = vpop.permute.xlu1 %5405 }
0x1212   :  { %v5417_v63 = vsel %vm14994_vm13, %v5394_v12, %v5406_v44  ;;  %vm15000_vm13 = vcmask 523264  }
0x1213   :  { %v5489_v13 = vsel %vm14995_vm14, %v5485_v53, %v5417_v63 }
0x1215   :  { %v5434_v34 = vpop.permute.xlu1 %5433 }
0x1216   :  { %v5445_v3 = vsel %vm1313_vm11, %v5422_v42, %v5434_v34 }
0x1217   :  { %v5493_v8 = vsel %vm14996_vm15, %v5489_v13, %v5445_v3 }
0x1219   :  { %v5462_v41 = vpop.permute.xlu1 %5461 }
0x121a   :  { %v5473_v24 = vsel %vm1342_vm9, %v5450_v52, %v5462_v41 }
0x121b   :  { %v5497_v4 = vsel %vm14997_vm1, %v5493_v8, %v5473_v24 }
0x1228   :  { %v5579_v49 = vpop.f32.mrb[48].mxu0 }
0x1229   :  { %5673 = vrot.lane.b32.xlu0 %v5579_v49, %s14993_s27  ;;  %v9999_v26 = vpop.f32.mrb[49].mxu0  ;;  %v5478_v49 = vsel %vm1347_vm6, %v5306_v39, %v5334_v15 }
0x122a   :  { %v5418_v26 = vsel %vm14998_vm8, %v5396_v20, %v5408_v37  ;;  %v5482_v38 = vsel %vm1352_vm10, %v5478_v49, %v5362_v18  ;;  %v15001_v20 = vld [vmem:[#allocation20_spill] sm:$0xff]  ;;  %vm15002_vm8 = vmmov %vm14999_vm0 }
0x122b   :  { %v5486_v58 = vsel %vm1357_vm12, %v5482_v38, %v5390_v46 }
0x122c   :  { %v5655_v29 = vpop.f32.mrb[48].mxu1  ;;  %v5490_v21 = vsel %vm14995_vm14, %v5486_v58, %v5418_v26 }
0x122d   :  { %5463 = vrot.lane.b32.xlu0 %v13857_v0, %s14990_s26  ;;  %5675 = vrot.lane.b32.xlu1 %v5655_v29, %s14993_s27  ;;  %v10004_v27 = vpop.f32.mrb[49].mxu1  ;;  %v5501_v29 = vsel %vm14999_vm0, %v5497_v4, %v13865_v33  ;;  %v5494_v11 = vsel %vm14996_vm15, %v5490_v21, %v5446_v5  ;;  %vm15003_vm0 = vmmov %vm15000_vm13 }
0x1247   :  { %v5670_v25 = vpop.xlane.xlu0 %5669 }
0x1258   :  { %v5667_v54 = vpop.xlane.xlu1 %5666 }
0x129b   :  { %v5674_v32 = vpop.permute.xlu0 %5673 }
0x129c   :  { %v5679_v27 = vsel %vm15000_vm13, %v5667_v54, %v5674_v32  ;;  %vm15004_vm13 = vcmask 588800  }
0x129d   :  { %v5681_v43 = vadd.f32 %v5679_v27, %v5501_v29  ;;  %vm15005_vm14 = vmmov %vm15004_vm13 }
0x129e   :  { %vm15006_vm15 = vmmov %vm15004_vm13 }
0x129f   :  { %v5683_v50 = vmul.f32 0.35355338, %v5681_v43  ;;  %v5464_v31 = vpop.permute.xlu0 %5463  ;;  %v5676_v17 = vpop.permute.xlu1 %5675 }
0x12a0   :  { %v5474_v37 = vsel %vm1342_vm9, %v5452_v62, %v5464_v31  ;;  %v5680_v10 = vsel %vm15003_vm0, %v5670_v25, %v5676_v17 }
0x12a1   :  { %v5498_v33 = vsel %vm14997_vm1, %v5494_v11, %v5474_v37  ;;  %v5685_v22 = vadd.f32 %v5683_v50, %v15001_v20  ;;  %vm15007_vm1 = vmmov %vm15004_vm13 }
0x12a2   :  { %v5502_v60 = vsel %vm15002_vm8, %v5498_v33, %v13857_v0  ;;  %vm15008_vm8 = vcmask 64512  }
0x12a3   :  { %v5682_v30 = vadd.f32 %v5680_v10, %v5502_v60  ;;  %v5687_v16 = vsel %vm15004_vm13, %v5685_v22, -inf  ;;  %vm15009_vm0 = vmmov %vm15008_vm8 }
0x12a4   :  { %5688 = vmax.xlane.f32.xlu0 %v5687_v16  ;;  %vm15010_vm13 = vmmov %vm15009_vm0 }
0x12a5   :  { %v5684_v55 = vmul.f32 0.35355338, %v5682_v30 }
0x12a7   :  { %v5686_v35 = vadd.f32 %v5684_v55, %v15001_v20 }
0x12a9   :  { %v5690_v23 = vsel %vm15005_vm14, %v5686_v35, -inf  ;;  %vm15011_vm14 = vmmov %vm15009_vm0 }
0x12aa   :  { %5691 = vmax.xlane.f32.xlu1 %v5690_v23 }
0x12bb   :  { %5798 = vrot.lane.b32.xlu1 %v13840_v51, %s11392_s21 }
0x12bf   :  { %5885 = vrot.lane.b32.xlu1 %v13831_v19, %s11391_s11 }
0x1331   :  { %v5689_v62 = vpop.xlane.xlu0 %5688 }
0x1332   :  { %v5693_v0 = vsub.f32 %v5685_v22, %v5689_v62 }
0x1334   :  { %v5695_v14 = vmul.f32 1.442695, %v5693_v0 }
0x1336   :  { %11327 = vpow2.f32 %v5695_v14 }
0x1337   :  { %v5692_v12 = vpop.xlane.xlu1 %5691 }
0x1338   :  { %v5694_v44 = vsub.f32 %v5686_v35, %v5692_v12 }
0x133a   :  { %v5697_v42 = vmul.f32 1.442695, %v5694_v44 }
0x133b   :  { %v5799_v34 = vpop.permute.xlu1 %5798 }
0x133c   :  { %11329 = vpow2.f32 %v5697_v42  ;;  %10011 = vmatpush3.msra.mxu1 %v5799_v34 }
0x133d   :  { %10020 = vmatprep.subr.mxu1 %v14975_v57 }
0x133f   :  { %v5886_v24 = vpop.permute.xlu1 %5885 }
0x1340   :  { %v11328_v7 = vpop.eup %11327 }
0x1341   :  { %v5699_v28 = vsel %vm15006_vm15, %v11328_v7, 0.0  ;;  %vm15012_vm15 = vmmov %vm15009_vm0 }
0x1342   :  { %5700 = vadd.xlane.f32.xlu0 %v5699_v28 }
0x1346   :  { %v11330_v40 = vpop.eup %11329 }
0x1347   :  { %v5702_v52 = vsel %vm15007_vm1, %v11330_v40, 0.0  ;;  %vm15013_vm1 = vmmov %vm15009_vm0 }
0x1348   :  { %5703 = vadd.xlane.f32.xlu0 %v5702_v52 }
0x135e   :  { %5720 = vrot.lane.b32.xlu0 %v13831_v19, %s11392_s21 }
0x13cf   :  { %v5701_v61 = vpop.xlane.xlu0 %5700 }
0x13d0   :  { %11331 = vrcp.f32 %v5701_v61 }
0x13d5   :  { %v5704_v41 = vpop.xlane.xlu0 %5703 }
0x13d6   :  { %11333 = vrcp.f32 %v5704_v41 }
0x13d9   :  { %v5721_v2 = vpop.permute.xlu0 %5720 }
0x13da   :  { %v11332_v63 = vpop.eup %11331  ;;  %10006 = vmatpush3.msra.mxu0 %v5721_v2 }
0x13db   :  { %v13983_v56 = vmul.f32 %v11332_v63, %v11328_v7  ;;  %10015 = vmatprep.subr.mxu0 %v14975_v57 }
0x13dd   :  { %5718 = vrot.lane.b32.xlu1 %v13983_v56, %s14993_s27 }
0x13e0   :  { %v11334_v3 = vpop.eup %11333 }
0x13e1   :  { %5883 = vrot.lane.b32.xlu1 %v13837_v45, %s11391_s11  ;;  %v13990_v53 = vmul.f32 %v11334_v3, %v11330_v40 }
0x13e3   :  { %5796 = vrot.lane.b32.xlu0 %v13990_v53, %s14993_s27 }
0x13e5   :  { %5961 = vrot.lane.b32.xlu1 %v13850_v47, %s11391_s11 }
0x13e7   :  { %5963 = vrot.lane.b32.xlu0 %v13840_v51, %s11391_s11 }
0x13e9   :  { %6043 = vrot.lane.b32.xlu1 %v13924_v59, %s11391_s11 }
0x13eb   :  { %6041 = vrot.lane.b32.xlu0 %v13930_v1, %s11391_s11  ;;  %s15029_s11 = smov 104  }
0x144f   :  { %v5719_v13 = vpop.permute.xlu1 %5718 }
0x1450   :  { %10008 = vmatmul.mubr.msk.f32.vlgmr.msra.gmra.mrb[50].mxu0 %vm15008_vm8, %v5719_v13  ;;  %vm15014_vm8 = vmmov %vm15009_vm0 }
0x1451   :  { %10016 = vmatpush3.xpose.msk.msra.mxu0 %vm15009_vm0, %v5886_v24  ;;  %10017 = vmatprep.mubr.msk.f32.mxu0 %vm14909_vm2, %v14975_v57 }
0x1452   :  { %10025 = vmatprep.subr.mxu0 %v14975_v57 }
0x1453   :  { %v5884_v45 = vpop.permute.xlu1 %5883 }
0x1454   :  { %10018 = vmatmul.mubr.msk.f32.vlgmr.msra.gmra.mrb[52].mxu0 %vm15010_vm13, %v5884_v45  ;;  %vm15016_vm13 = vcmask 1043456  }
0x1455   :  { %v5797_v47 = vpop.permute.xlu0 %5796  ;;  %10027 = vmatprep.mubr.msk.f32.mxu0 %vm14909_vm2, %v14975_v57 }
0x1456   :  { %10013 = vmatmul.mubr.msk.f32.vlgmr.msra.gmra.mrb[50].mxu1 %vm15011_vm14, %v5797_v47  ;;  %vm15017_vm14 = vcmask 1044480  }
0x1457   :  { %v5962_v59 = vpop.permute.xlu1 %5961  ;;  %10022 = vmatprep.mubr.msk.f32.mxu1 %vm14909_vm2, %v14975_v57 }
0x1459   :  { %v5964_v1 = vpop.permute.xlu0 %5963 }
0x145a   :  { %10021 = vmatpush3.xpose.msk.msra.mxu1 %vm15012_vm15, %v5964_v1  ;;  %vm15018_vm15 = vcmask 1045504  }
0x145b   :  { %v6044_v25 = vpop.permute.xlu1 %6043  ;;  %10030 = vmatprep.subr.mxu1 %v14975_v57 }
0x145c   :  { %v6050_v8 = vsel %vm15013_vm1, %v6044_v25, 0.0  ;;  %vm15019_vm1 = vcmask 1046528  }
0x145d   :  { %v6042_v15 = vpop.permute.xlu0 %6041  ;;  %10023 = vmatmul.mubr.msk.f32.vlgmr.msra.gmra.mrb[52].mxu1 %vm15014_vm8, %v5962_v59  ;;  %6051 = vadd.xlane.f32.xlu1 %v6050_v8  ;;  %vm15020_vm8 = vcmask 523264  }
0x145e   :  { %v6047_v4 = vsel %vm15009_vm0, %v6042_v15, 0.0  ;;  %10032 = vmatprep.mubr.msk.f32.mxu1 %vm14909_vm2, %v14975_v57  ;;  %vm15015_vm2 = vcmask 564224  }
0x145f   :  { %6048 = vadd.xlane.f32.xlu0 %v6047_v4  ;;  %vm15021_vm0 = vmmov %vm15015_vm2 }
0x146e   :  { %5297 = vrot.lane.b32.xlu1 %v13867_v9, %s11394_s18 }
0x1472   :  { %5325 = vrot.lane.b32.xlu1 %v13867_v9, %s11396_s0 }
0x1475   :  { %5285 = vrot.lane.b32.xlu0 %v13867_v9, %s11395_s2 }
0x1476   :  { %5353 = vrot.lane.b32.xlu1 %v13867_v9, %s11398_s16 }
0x1479   :  { %5313 = vrot.lane.b32.xlu0 %v13867_v9, %s11397_s8 }
0x147a   :  { %5381 = vrot.lane.b32.xlu1 %v13867_v9, %s11400_s20 }
0x147d   :  { %5341 = vrot.lane.b32.xlu0 %v13867_v9, %s11399_s19 }
0x147e   :  { %5409 = vrot.lane.b32.xlu1 %v13867_v9, %s14985_s1 }
0x1481   :  { %5369 = vrot.lane.b32.xlu0 %v13867_v9, %s11401_s22 }
0x1482   :  { %5299 = vrot.lane.b32.xlu1 %v13859_v6, %s11394_s18  ;;  %s15035_s18 = smov 16  }
0x1485   :  { %5397 = vrot.lane.b32.xlu0 %v13867_v9, %s14986_s13 }
0x1486   :  { %5327 = vrot.lane.b32.xlu1 %v13859_v6, %s11396_s0 }
0x1489   :  { %5287 = vrot.lane.b32.xlu0 %v13859_v6, %s11395_s2 }
0x148a   :  { %5437 = vrot.lane.b32.xlu1 %v13867_v9, %s14988_s24 }
0x148d   :  { %5315 = vrot.lane.b32.xlu0 %v13859_v6, %s11397_s8 }
0x148e   :  { %5355 = vrot.lane.b32.xlu1 %v13859_v6, %s11398_s16 }
0x1491   :  { %5425 = vrot.lane.b32.xlu0 %v13867_v9, %s14987_s9 }
0x1492   :  { %5465 = vrot.lane.b32.xlu1 %v13867_v9, %s14990_s26 }
0x1495   :  { %5343 = vrot.lane.b32.xlu0 %v13859_v6, %s11399_s19 }
0x1496   :  { %5383 = vrot.lane.b32.xlu1 %v13859_v6, %s11400_s20 }
0x1499   :  { %5453 = vrot.lane.b32.xlu0 %v13867_v9, %s14989_s5 }
0x149a   :  { %5411 = vrot.lane.b32.xlu1 %v13859_v6, %s14985_s1 }
0x149d   :  { %5371 = vrot.lane.b32.xlu0 %v13859_v6, %s11401_s22 }
0x149e   :  { %5427 = vrot.lane.b32.xlu1 %v13859_v6, %s14987_s9 }
0x14a1   :  { %5399 = vrot.lane.b32.xlu0 %v13859_v6, %s14986_s13 }
0x14a2   :  { %5455 = vrot.lane.b32.xlu1 %v13859_v6, %s14989_s5 }
0x14a5   :  { %5439 = vrot.lane.b32.xlu0 %v13859_v6, %s14988_s24 }
0x14ea   :  { %v14082_v38 = vpop.xlane.xlu1 %6051 }
0x14ec   :  { %v6049_v27 = vpop.xlane.xlu0 %6048 }
0x14ee   :  { %v5298_v43 = vpop.permute.xlu1 %5297 }
0x14f0   :  { %v5286_v5 = vpop.permute.xlu0 %5285 }
0x14f1   :  { %v5307_v7 = vsel %vm1168_vm5, %v5286_v5, %v5298_v43 }
0x14f2   :  { %v5326_v21 = vpop.permute.xlu1 %5325 }
0x14f4   :  { %v5314_v58 = vpop.permute.xlu0 %5313 }
0x14f5   :  { %v5335_v44 = vsel %vm1197_vm3, %v5314_v58, %v5326_v21 }
0x14f6   :  { %v5354_v31 = vpop.permute.xlu1 %5353  ;;  %v5479_v52 = vsel %vm1347_vm6, %v5307_v7, %v5335_v44 }
0x14f8   :  { %v5342_v50 = vpop.permute.xlu0 %5341 }
0x14f9   :  { %v5363_v34 = vsel %vm1226_vm4, %v5342_v50, %v5354_v31 }
0x14fa   :  { %v5382_v11 = vpop.permute.xlu1 %5381  ;;  %v5483_v41 = vsel %vm1352_vm10, %v5479_v52, %v5363_v34 }
0x14fc   :  { %v5370_v17 = vpop.permute.xlu0 %5369 }
0x14fd   :  { %v5391_v28 = vsel %vm1255_vm7, %v5370_v17, %v5382_v11 }
0x14fe   :  { %v5410_v33 = vpop.permute.xlu1 %5409  ;;  %v5487_v63 = vsel %vm1357_vm12, %v5483_v41, %v5391_v28 }
0x1500   :  { %v5398_v37 = vpop.permute.xlu0 %5397 }
0x1501   :  { %v5419_v61 = vsel %vm15015_vm2, %v5398_v37, %v5410_v33 }
0x1502   :  { %v5300_v60 = vpop.permute.xlu1 %5299  ;;  %v5491_v24 = vsel %vm15016_vm13, %v5487_v63, %v5419_v61 }
0x1504   :  { %v5288_v22 = vpop.permute.xlu0 %5287 }
0x1505   :  { %v5308_v15 = vsel %vm1168_vm5, %v5288_v22, %v5300_v60  ;;  %vm15024_vm5 = vmmov %vm15018_vm15 }
0x1506   :  { %v5328_v30 = vpop.permute.xlu1 %5327 }
0x1508   :  { %v5316_v10 = vpop.permute.xlu0 %5315 }
0x1509   :  { %v5336_v1 = vsel %vm1197_vm3, %v5316_v10, %v5328_v30  ;;  %vm15022_vm3 = vmmov %vm15016_vm13 }
0x150a   :  { %v5438_v55 = vpop.permute.xlu1 %5437  ;;  %vm15032_vm13 = vmmov %vm15020_vm8 }
0x150c   :  { %v5426_v16 = vpop.permute.xlu0 %5425 }
0x150d   :  { %v5447_v2 = vsel %vm1313_vm11, %v5426_v16, %v5438_v55 }
0x150e   :  { %v5356_v23 = vpop.permute.xlu1 %5355  ;;  %v5495_v45 = vsel %vm15017_vm14, %v5491_v24, %v5447_v2 }
0x1510   :  { %v5344_v35 = vpop.permute.xlu0 %5343 }
0x1511   :  { %v5364_v25 = vsel %vm1226_vm4, %v5344_v35, %v5356_v23  ;;  %vm15023_vm4 = vmmov %vm15017_vm14 }
0x1512   :  { %v5466_v0 = vpop.permute.xlu1 %5465  ;;  %vm15033_vm14 = vmmov %vm15020_vm8 }
0x1513   :  { %v5712_v34 = vsel %vm15033_vm14, %v13990_v53, 0.0 }
0x1514   :  { %v5454_v62 = vpop.permute.xlu0 %5453 }
0x1515   :  { %v5475_v3 = vsel %vm1342_vm9, %v5454_v62, %v5466_v0 }
0x1516   :  { %v5384_v12 = vpop.permute.xlu1 %5383  ;;  %v5499_v47 = vsel %vm15018_vm15, %v5495_v45, %v5475_v3  ;;  %vm15034_vm15 = vmmov %vm15020_vm8 }
0x1518   :  { %v5372_v14 = vpop.permute.xlu0 %5371 }
0x1519   :  { %v5392_v4 = vsel %vm1255_vm7, %v5372_v14, %v5384_v12  ;;  %vm15025_vm7 = vcmask 588800  }
0x151a   :  { %v5412_v40 = vpop.permute.xlu1 %5411  ;;  %vm15031_vm2 = vmmov %vm15025_vm7 }
0x151c   :  { %v5400_v42 = vpop.permute.xlu0 %5399 }
0x151e   :  { %v5428_v59 = vpop.permute.xlu1 %5427 }
0x1520   :  { %v5440_v13 = vpop.permute.xlu0 %5439 }
0x1521   :  { %v5448_v5 = vsel %vm1313_vm11, %v5428_v59, %v5440_v13  ;;  %vm15027_vm11 = vmmov %vm15020_vm8 }
0x1522   :  { %v5456_v58 = vpop.permute.xlu1 %5455 }
0x1523   :  { %v14074_v18 = vpop.f32.mrb[50].mxu0 }
0x1524   :  { %v10009_v39 = vpop.f32.mrb[51].mxu0 }
0x1525   :  { %v5503_v39 = vsel %vm15019_vm1, %v5499_v47, %v13867_v9 }
0x1527   :  { %v5957_v46 = vpop.f32.mrb[52].mxu0 }
0x1528   :  { %6055 = vrot.lane.b32.xlu0 %v5957_v46, %s14993_s27  ;;  %v10019_v54 = vpop.f32.mrb[53].mxu0 }
0x1529   :  { %v14077_v32 = vpop.f32.mrb[50].mxu1  ;;  %v5480_v54 = vsel %vm1347_vm6, %v5308_v15, %v5336_v1  ;;  %v9055_v15 = vld [vmem:[%s14772_s6 + $0x68] sm:$0xff] }
0x152a   :  { %v10014_v49 = vpop.f32.mrb[51].mxu1 }
0x152b   :  { %v5420_v49 = vsel %vm15021_vm0, %v5400_v42, %v5412_v40 }
0x152c   :  { %5467 = vrot.lane.b32.xlu0 %v13859_v6, %s14990_s26 }
0x1530   :  { %v6035_v26 = vpop.f32.mrb[52].mxu1 }
0x1531   :  { %v10024_v29 = vpop.f32.mrb[53].mxu1  ;;  %6057 = vrot.lane.b32.xlu1 %v6035_v26, %s14993_s27 }
0x1532   :  { %v5484_v29 = vsel %vm1352_vm10, %v5480_v54, %v5364_v25  ;;  %vm15026_vm10 = vmmov %vm15019_vm1  ;;  %v9057_v54 = vld [vmem:[%s14772_s6 + $0x78] sm:$0xff] }
0x1533   :  { %v5488_v43 = vsel %vm1357_vm12, %v5484_v29, %v5392_v4  ;;  %vm15030_vm12 = vmmov %vm15025_vm7  ;;  %v9053_v4 = vld [vmem:[%s14772_s6 + $0x58] sm:$0xff] }
0x1534   :  { %v5492_v31 = vsel %vm15022_vm3, %v5488_v43, %v5420_v49  ;;  %vm15036_vm1 = vmmov %vm15020_vm8  ;;  %v9050_v49 = vld [vmem:[%s14772_s6 + $0x40] sm:$0xff] }
0x159a   :  { %v6056_v8 = vpop.permute.xlu0 %6055 }
0x159b   :  { %v6061_v46 = vsel %vm15020_vm8, %v6049_v27, %v6056_v8  ;;  %v5496_v27 = vsel %vm15023_vm4, %v5492_v31, %v5448_v5  ;;  %vm15037_vm8 = vcmask 64512   ;;  %v9051_v8 = vld [vmem:[%s14772_s6 + $0x48] sm:$0xff]  ;;  %v10439_v5 = vpack.c.bf16 %v9057_v54, %v9053_v4 }
0x159c   :  { %v6063_v26 = vadd.f32 %v6061_v46, %v5503_v39  ;;  %vm15038_vm0 = vmmov %vm15037_vm8  ;;  %v10435_v46 = vpack.c.bf16 %v9055_v15, %v9051_v8  ;;  %vm15041_vm4 = vcmask 130048  }
0x159d   :  { %vm15040_vm3 = vmmov %vm15038_vm0 }
0x159e   :  { %v6065_v21 = vmul.f32 0.35355338, %v6063_v26  ;;  %v5468_v50 = vpop.permute.xlu0 %5467  ;;  %v9054_v26 = vld [vmem:[%s14772_s6 + $0x60] sm:$0xff] }
0x159f   :  { %v5476_v9 = vsel %vm1342_vm9, %v5456_v58, %v5468_v50  ;;  %vm15028_vm9 = vmmov %vm15025_vm7  ;;  %v10437_v43 = vpack.c.bf16 %v9054_v26, %v9050_v49  ;;  %v9052_v58 = vld [vmem:[%s14772_s6 + $0x50] sm:$0xff] }
0x15a0   :  { %v6067_v17 = vadd.f32 %v6065_v21, %v15001_v20  ;;  %v5500_v11 = vsel %vm15024_vm5, %v5496_v27, %v5476_v9  ;;  %v9056_v21 = vld [vmem:[%s14772_s6 + $0x70] sm:$0xff]  ;;  %vm15042_vm5 = vmmov %vm15041_vm4 }
0x15a1   :  { %v5504_v22 = vsel %vm15026_vm10, %v5500_v11, %v13859_v6  ;;  %v10441_v50 = vpack.c.bf16 %v9056_v21, %v9052_v58  ;;  %vm15044_vm10 = vmmov %vm15041_vm4 }
0x15a2   :  { %v6069_v37 = vsel %vm15025_vm7, %v6067_v17, -inf  ;;  %vm15043_vm7 = vmmov %vm15038_vm0 }
0x15a3   :  { %6070 = vmax.xlane.f32.xlu0 %v6069_v37  ;;  %v6058_v33 = vpop.permute.xlu1 %6057 }
0x15a4   :  { %v6062_v60 = vsel %vm15027_vm11, %v14082_v38, %v6058_v33  ;;  %vm15045_vm11 = vmmov %vm15041_vm4 }
0x15a5   :  { %v6064_v10 = vadd.f32 %v6062_v60, %v5504_v22 }
0x15a7   :  { %v6066_v30 = vmul.f32 0.35355338, %v6064_v10 }
0x15a9   :  { %v6068_v16 = vadd.f32 %v6066_v30, %v15001_v20 }
0x15ab   :  { %v6072_v55 = vsel %vm15028_vm9, %v6068_v16, -inf  ;;  %vm8580_vm9 = vcmask 1047559  }
0x15ac   :  { %6073 = vmax.xlane.f32.xlu1 %v6072_v55 }
0x15bd   :  { %6180 = vrot.lane.b32.xlu1 %v13840_v51, %s15029_s11  ;;  %v5709_v51 = vsel %vm15032_vm13, %v13983_v56, 0.0 }
0x1630   :  { %v6071_v35 = vpop.xlane.xlu0 %6070 }
0x1631   :  { %v6075_v23 = vsub.f32 %v6067_v17, %v6071_v35  ;;  %v14188_v35 = vld [vmem:[%s14776_s10 + $0x20] sm:$0x7f] }
0x1633   :  { %v6077_v62 = vmul.f32 1.442695, %v6075_v23  ;;  %v15046_v23 = vld [vmem:[#allocation24_spill] sm:$0xff] }
0x1635   :  { %11335 = vpow2.f32 %v6077_v62  ;;  %v6295_v62 = vrot.slane %v14188_v35, %v15046_v23 }
0x1639   :  { %v6074_v0 = vpop.xlane.xlu1 %6073 }
0x163a   :  { %v6076_v14 = vsub.f32 %v6068_v16, %v6074_v0 }
0x163c   :  { %v6079_v6 = vmul.f32 1.442695, %v6076_v14  ;;  %v14202_v14 = vld [vmem:[%s14776_s10 + $0x28] sm:$0x7f] }
0x163d   :  { %v6181_v12 = vpop.permute.xlu1 %6180 }
0x163e   :  { %11337 = vpow2.f32 %v6079_v6  ;;  %10031 = vmatpush3.msra.mxu1 %v6181_v12  ;;  %v6299_v6 = vrot.slane %v14202_v14, %v15046_v23  ;;  %v14209_v12 = vld [vmem:[%s14776_s10 + $0x38] sm:$0x7f] }
0x163f   :  { %v11336_v38 = vpop.eup %11335  ;;  %10440 = vmatprep.subr.bf16.mxu1 %v10439_v5 }
0x1640   :  { %v6081_v44 = vsel %vm15030_vm12, %v11336_v38, 0.0  ;;  %vm8608_vm12 = vcmask 7175  }
0x1641   :  { %6082 = vadd.xlane.f32.xlu0 %v6081_v44 }
0x1648   :  { %v11338_v20 = vpop.eup %11337 }
0x1649   :  { %v6084_v42 = vsel %vm15031_vm2, %v11338_v20, 0.0  ;;  %vm8610_vm2 = vcmask 0  }
0x164a   :  { %6085 = vadd.xlane.f32.xlu0 %v6084_v42 }
0x1660   :  { %6102 = vrot.lane.b32.xlu0 %v13831_v19, %s15029_s11 }
0x167f   :  { %5710 = vadd.xlane.f32.xlu0 %v5709_v51 }
0x1683   :  { %5713 = vadd.xlane.f32.xlu0 %v5712_v34 }
0x16ce   :  { %v6083_v7 = vpop.xlane.xlu0 %6082 }
0x16cf   :  { %11339 = vrcp.f32 %v6083_v7 }
0x16d7   :  { %v6086_v28 = vpop.xlane.xlu0 %6085 }
0x16d8   :  { %11341 = vrcp.f32 %v6086_v28 }
0x16d9   :  { %v11340_v40 = vpop.eup %11339 }
0x16da   :  { %v6088_v52 = vmul.f32 %v11340_v40, %v11336_v38  ;;  %v6307_v38 = vrot.slane %v14209_v12, %v15046_v23 }
0x16db   :  { %v6103_v61 = vpop.permute.xlu0 %6102 }
0x16dc   :  { %6100 = vrot.lane.b32.xlu1 %v6088_v52, %s14993_s27  ;;  %10026 = vmatpush3.msra.mxu0 %v6103_v61  ;;  %v6091_v53 = vsel %vm15036_vm1, %v6088_v52, 0.0 }
0x16dd   :  { %10436 = vmatprep.subr.bf16.mxu0 %v10435_v46 }
0x16e2   :  { %v11342_v41 = vpop.eup %11341 }
0x16e3   :  { %v6090_v19 = vmul.f32 %v11342_v41, %v11338_v20 }
0x16e5   :  { %6178 = vrot.lane.b32.xlu1 %v6090_v19, %s14993_s27  ;;  %v6094_v56 = vsel %vm15034_vm15, %v6090_v19, 0.0  ;;  %v15047_v19 = vld [vmem:[#allocation23_spill] sm:$0xff] }
0x16e6   :  { %6095 = vadd.xlane.f32.xlu0 %v6094_v56 }
0x16fc   :  { %5875 = vrot.lane.b32.xlu0 %v14074_v18, %s15035_s18 }
0x1709   :  { %6092 = vadd.xlane.f32.xlu1 %v6091_v53  ;;  %v15048_v53 = vld [vmem:[#allocation25_spill] sm:$0xff] }
0x170c   :  { %v5711_v3 = vpop.xlane.xlu0 %5710 }
0x170d   :  { %v5715_v18 = vmul.f32 %v5711_v3, %v13920_v36  ;;  %v15049_v3 = vld [vmem:[#allocation11_spill] sm:$0xff] }
0x1710   :  { %v5714_v24 = vpop.xlane.xlu0 %5713 }
0x1711   :  { %v5716_v59 = vmul.f32 %v5714_v24, %v13920_v36 }
0x171a   :  { %5877 = vrot.lane.b32.xlu1 %v14077_v32, %s15035_s18 }
0x174e   :  { %v6101_v2 = vpop.permute.xlu1 %6100 }
0x174f   :  { %10028 = vmatmul.mubr.msk.f32.vlgmr.msra.gmra.mrb[54].mxu0 %vm15037_vm8, %v6101_v2 }
0x1750   :  { %6378 = vmatprep.mubr.f32.mxu0 %v14975_v57  ;;  %10438 = vmatpush1.bf16.msra.mxu0 %v10437_v43  ;;  %v15052_v43 = vld [vmem:[#allocation12_spill] sm:$0xff] }
0x1757   :  { %v6179_v63 = vpop.permute.xlu1 %6178 }
0x1758   :  { %10033 = vmatmul.mubr.msk.f32.vlgmr.msra.gmra.mrb[54].mxu1 %vm15038_vm0, %v6179_v63 }
0x1759   :  { %6455 = vmatprep.mubr.f32.mxu1 %v14975_v57  ;;  %10442 = vmatpush1.bf16.msra.mxu1 %v10441_v50  ;;  %v15053_v50 = vld [vmem:[#allocation15_spill] sm:$0xff] }
0x1773   :  { %v6096_v13 = vpop.xlane.xlu0 %6095 }
0x1774   :  { %v6098_v37 = vmul.f32 %v6096_v13, %v13920_v36 }
0x1777   :  { %v5876_v45 = vpop.permute.xlu0 %5875 }
0x1778   :  { %v5881_v47 = vadd.f32 %v5876_v45, %v5715_v18 }
0x177a   :  { %6267 = vrot.lane.b32.xlu0 %v5881_v47, %s11392_s21  ;;  %v15050_v47 = vld [vmem:[#allocation6_spill] sm:$0xff] }
0x1796   :  { %v6093_v32 = vpop.xlane.xlu1 %6092 }
0x1797   :  { %v6097_v27 = vmul.f32 %v6093_v32, %v13920_v36 }
0x179a   :  { %v5878_v1 = vpop.permute.xlu1 %5877 }
0x179b   :  { %v5882_v25 = vadd.f32 %v5878_v1, %v5716_v59 }
0x179d   :  { %6269 = vrot.lane.b32.xlu0 %v5882_v25, %s11392_s21 }
0x17ec   :  { %v6268_v60 = vpop.permute.xlu0 %6267 }
0x180f   :  { %v6270_v16 = vpop.permute.xlu0 %6269 }
0x1822   :  { %v6173_v39 = vpop.f32.mrb[54].mxu0 }
0x1823   :  { %6257 = vrot.lane.b32.xlu1 %v6173_v39, %s15039_s25  ;;  %v10029_v29 = vpop.f32.mrb[55].mxu0 }
0x1824   :  { %v15051_v29 = vld [vmem:[#allocation13_spill] sm:$0xff] }
0x182b   :  { %v6251_v31 = vpop.f32.mrb[54].mxu1 }
0x182c   :  { %6259 = vrot.lane.b32.xlu1 %v6251_v31, %s15039_s25  ;;  %v10034_v9 = vpop.f32.mrb[55].mxu1 }
0x1895   :  { %v6258_v17 = vpop.permute.xlu1 %6257 }
0x1896   :  { %v6263_v11 = vadd.f32 %v6258_v17, %v6097_v27  ;;  %v15054_v27 = vld [vmem:[#allocation14_spill] sm:$0xff] }
0x1898   :  { %6275 = vrot.lane.b32.xlu1 %v6263_v11, %s11392_s21 }
0x189e   :  { %v6260_v33 = vpop.permute.xlu1 %6259 }
0x189f   :  { %v6264_v22 = vadd.f32 %v6260_v33, %v6098_v37  ;;  %v10915_v33 = vld [vmem:[%s14773_s7 + $0x400] ss:$16 sps:$4 sm:$0xff]  }
0x18a1   :  { %6277 = vrot.lane.b32.xlu1 %v6264_v22, %s11392_s21  ;;  %v10917_v22 = vld [vmem:[%s14773_s7 + $0x404] ss:$16 sps:$4 sm:$0xff]  }
0x18a2   :  { %7373 = vmatprep.subr.bf16.mxu0 %v10917_v22 }
0x190a   :  { %v6276_v10 = vpop.permute.xlu1 %6275 }
0x190b   :  { %v6281_v30 = vsel %vm15040_vm3, %v6268_v60, %v6276_v10  ;;  %v10918_v60 = vld [vmem:[%s14773_s7 + $0x408] ss:$16 sps:$4 sm:$0xff]   ;;  %v10920_v10 = vld [vmem:[%s14773_s7 + $0x40c] ss:$16 sps:$4 sm:$0xff]  }
0x190c   :  { %9058 = vmatmul.mubr.msk.f32.vlgmr.msra.gmra.mrb[56].mxu0 %vm15041_vm4, %v6281_v30  ;;  %9060 = vmatmul.mubr.msk.f32.vlgmr.msra.gmra.mrb[56].mxu1 %vm15042_vm5, %v6281_v30  ;;  %v10923_v30 = vld [vmem:[%s14773_s7 + $0x424] ss:$16 sps:$4 sm:$0xff]  }
0x190d   :  { %6384 = vmatprep.mubr.f32.mxu0 %v14975_v57  ;;  %6461 = vmatprep.mubr.f32.mxu1 %v14975_v57  ;;  %v14195_v57 = vld [vmem:[%s14776_s10 + $0x30] sm:$0x7f] }
0x190e   :  { %v6303_v0 = vrot.slane %v14195_v57, %v15046_v23  ;;  %7459 = vmatprep.subr.bf16.mxu1 %v10920_v10  ;;  %7374 = vmatpush1.bf16.msra.mxu0 %v10915_v33  ;;  %v10929_v23 = vld [vmem:[%s14773_s7 + $0x444] ss:$16 sps:$4 sm:$0xff]  }
0x190f   :  { %7460 = vmatpush1.bf16.msra.mxu1 %v10918_v60  ;;  %7375 = vmatprep.subr.bf16.mxu0 %v10923_v30 }
0x1913   :  { %v6278_v55 = vpop.permute.xlu1 %6277 }
0x1914   :  { %v6282_v36 = vsel %vm15043_vm7, %v6270_v16, %v6278_v55  ;;  %v10926_v16 = vld [vmem:[%s14773_s7 + $0x42c] ss:$16 sps:$4 sm:$0xff]   ;;  %v10921_v55 = vld [vmem:[%s14773_s7 + $0x420] ss:$16 sps:$4 sm:$0xff]  }
0x1915   :  { %9059 = vmatmul.mubr.msk.f32.gmra.mrb[58].mxu0 %vm15044_vm10, %v6282_v36  ;;  %9061 = vmatmul.mubr.msk.f32.gmra.mrb[58].mxu1 %vm15045_vm11, %v6282_v36  ;;  %v10924_v36 = vld [vmem:[%s14773_s7 + $0x428] ss:$16 sps:$4 sm:$0xff]  }
0x1916   :  { %7461 = vmatprep.subr.bf16.mxu1 %v10926_v16  ;;  %7376 = vmatpush1.bf16.msra.mxu0 %v10921_v55 }
0x1917   :  { %7462 = vmatpush1.bf16.msra.mxu1 %v10924_v36  ;;  %7377 = vmatprep.subr.bf16.mxu0 %v10929_v23  ;;  %v10965_v36 = vld [vmem:[%s14773_s7 + $0x504] ss:$16 sps:$4 sm:$0xff]   ;;  %v10968_v23 = vld [vmem:[%s14773_s7 + $0x50c] ss:$16 sps:$4 sm:$0xff]  }
0x19df   :  { %v6380_v44 = vpop.f32.mrb[56].mxu0  ;;  %v6457_v20 = vpop.f32.mrb[56].mxu1 }
0x19e0   :  { %v6381_v42 = vadd.f32 %v6380_v44, %v6295_v62  ;;  %v6458_v51 = vadd.f32 %v6457_v20, %v6303_v0  ;;  %v6382_v34 = vpop.f32.mrb[57].mxu0  ;;  %v6459_v7 = vpop.f32.mrb[57].mxu1  ;;  %v10938_v44 = vld [vmem:[%s14773_s7 + $0x46c] ss:$16 sps:$4 sm:$0xff]   ;;  %v10933_v20 = vld [vmem:[%s14773_s7 + $0x460] ss:$16 sps:$4 sm:$0xff]  }
0x19e1   :  { %v6383_v28 = vadd.f32 %v6382_v34, %v6299_v6  ;;  %v6460_v40 = vadd.f32 %v6459_v7, %v6307_v38  ;;  %v10944_v34 = vld [vmem:[%s14773_s7 + $0x48c] ss:$16 sps:$4 sm:$0xff]   ;;  %v10939_v7 = vld [vmem:[%s14773_s7 + $0x480] ss:$16 sps:$4 sm:$0xff]  }
0x19e2   :  { %v6468_v52 = vmax.f32 %v6381_v42, 0.0  ;;  %v6470_v61 = vmax.f32 %v6458_v51, 0.0  ;;  %v10936_v42 = vld [vmem:[%s14773_s7 + $0x468] ss:$16 sps:$4 sm:$0xff]   ;;  %v10941_v51 = vld [vmem:[%s14773_s7 + $0x484] ss:$16 sps:$4 sm:$0xff]  }
0x19e3   :  { %v6469_v41 = vmax.f32 %v6383_v28, 0.0  ;;  %v6471_v63 = vmax.f32 %v6460_v40, 0.0  ;;  %v10942_v28 = vld [vmem:[%s14773_s7 + $0x488] ss:$16 sps:$4 sm:$0xff]   ;;  %v10947_v40 = vld [vmem:[%s14773_s7 + $0x4a4] ss:$16 sps:$4 sm:$0xff]  }
0x19e4   :  { %v14214_v56 = vadd.f32 %v6468_v52, %v15047_v19  ;;  %v14220_v24 = vadd.f32 %v6470_v61, %v15049_v3  ;;  %v10950_v52 = vld [vmem:[%s14773_s7 + $0x4ac] ss:$16 sps:$4 sm:$0xff]   ;;  %v10945_v61 = vld [vmem:[%s14773_s7 + $0x4a0] ss:$16 sps:$4 sm:$0xff]   ;;  %v10953_v19 = vld [vmem:[%s14773_s7 + $0x4c4] ss:$16 sps:$4 sm:$0xff]  }
0x19e5   :  { %v14217_v2 = vadd.f32 %v6469_v41, %v15048_v53  ;;  %v14225_v32 = vadd.f32 %v6471_v63, %v15050_v47  ;;  %v10948_v41 = vld [vmem:[%s14773_s7 + $0x4a8] ss:$16 sps:$4 sm:$0xff]   ;;  %v10956_v53 = vld [vmem:[%s14773_s7 + $0x4cc] ss:$16 sps:$4 sm:$0xff]   ;;  %v10951_v63 = vld [vmem:[%s14773_s7 + $0x4c0] ss:$16 sps:$4 sm:$0xff]  }
0x19e6   :  { %v10954_v3 = vld [vmem:[%s14773_s7 + $0x4c8] ss:$16 sps:$4 sm:$0xff]  }
0x19e7   :  { %v6484_v13 = vadd.f32 %v14217_v2, %v14214_v56  ;;  %v10960_v47 = vld [vmem:[%s14773_s7 + $0x4e8] ss:$16 sps:$4 sm:$0xff]  }
0x19e8   :  { %v6386_v18 = vpop.f32.mrb[58].mxu0  ;;  %v6463_v45 = vpop.f32.mrb[58].mxu1 }
0x19e9   :  { %v6387_v59 = vadd.f32 %v6386_v18, %v6295_v62  ;;  %v6464_v1 = vadd.f32 %v6463_v45, %v6303_v0  ;;  %v6388_v25 = vpop.f32.mrb[59].mxu0  ;;  %v6465_v8 = vpop.f32.mrb[59].mxu1  ;;  %v6485_v15 = vadd.f32 %v6484_v13, %v14220_v24  ;;  %v10932_v62 = vld [vmem:[%s14773_s7 + $0x44c] ss:$16 sps:$4 sm:$0xff]   ;;  %v10927_v0 = vld [vmem:[%s14773_s7 + $0x440] ss:$16 sps:$4 sm:$0xff]  }
0x19ea   :  { %v6389_v4 = vadd.f32 %v6388_v25, %v6299_v6  ;;  %v6466_v39 = vadd.f32 %v6465_v8, %v6307_v38  ;;  %v10930_v6 = vld [vmem:[%s14773_s7 + $0x448] ss:$16 sps:$4 sm:$0xff]   ;;  %v10935_v38 = vld [vmem:[%s14773_s7 + $0x464] ss:$16 sps:$4 sm:$0xff]   ;;  %7463 = vmatprep.subr.bf16.mxu1 %v10932_v62  ;;  %7378 = vmatpush1.bf16.msra.mxu0 %v10927_v0  ;;  %v10962_v18 = vld [vmem:[%s14773_s7 + $0x4ec] ss:$16 sps:$4 sm:$0xff]  }
0x19eb   :  { %v6472_v46 = vmax.f32 %v6387_v59, 0.0  ;;  %v6486_v54 = vadd.f32 %v6485_v15, %v14225_v32  ;;  %v6474_v49 = vmax.f32 %v6464_v1, 0.0  ;;  %7464 = vmatpush1.bf16.msra.mxu1 %v10930_v6  ;;  %7379 = vmatprep.subr.bf16.mxu0 %v10935_v38  ;;  %v10959_v13 = vld [vmem:[%s14773_s7 + $0x4e4] ss:$16 sps:$4 sm:$0xff]   ;;  %v10957_v45 = vld [vmem:[%s14773_s7 + $0x4e0] ss:$16 sps:$4 sm:$0xff]  }
0x19ec   :  { %v6473_v26 = vmax.f32 %v6389_v4, 0.0  ;;  %v6475_v21 = vmax.f32 %v6466_v39, 0.0  ;;  %7465 = vmatprep.subr.bf16.mxu1 %v10938_v44  ;;  %v10963_v62 = vld [vmem:[%s14773_s7 + $0x500] ss:$16 sps:$4 sm:$0xff]   ;;  %v10966_v0 = vld [vmem:[%s14773_s7 + $0x508] ss:$16 sps:$4 sm:$0xff]  }
0x19ed   :  { %v14230_v5 = vadd.f32 %v6472_v46, %v15051_v29  ;;  %6487 = vadd.xlane.f32.xlu0 %v6486_v54  ;;  %v14236_v31 = vadd.f32 %v6474_v49, %v15053_v50  ;;  %v10971_v6 = vld [vmem:[%s14773_s7 + $0x524] ss:$16 sps:$4 sm:$0xff]   ;;  %v10974_v38 = vld [vmem:[%s14773_s7 + $0x52c] ss:$16 sps:$4 sm:$0xff]   ;;  %v10969_v44 = vld [vmem:[%s14773_s7 + $0x520] ss:$16 sps:$4 sm:$0xff]  }
0x19ee   :  { %v14233_v58 = vadd.f32 %v6473_v26, %v15052_v43  ;;  %v14241_v17 = vadd.f32 %v6475_v21, %v15054_v27  ;;  %7380 = vmatpush1.bf16.msra.mxu0 %v10933_v20  ;;  %v10972_v20 = vld [vmem:[%s14773_s7 + $0x528] ss:$16 sps:$4 sm:$0xff]  }
0x19ef   :  { %7466 = vmatpush1.bf16.msra.mxu1 %v10936_v42  ;;  %7381 = vmatprep.subr.bf16.mxu0 %v10941_v51  ;;  %v10977_v42 = vld [vmem:[%s14773_s7 + $0x544] ss:$16 sps:$4 sm:$0xff]   ;;  %v10980_v51 = vld [vmem:[%s14773_s7 + $0x54c] ss:$16 sps:$4 sm:$0xff]  }
0x19f0   :  { %v6489_v9 = vadd.f32 %v14233_v58, %v14230_v5  ;;  %7467 = vmatprep.subr.bf16.mxu1 %v10944_v34  ;;  %v10975_v34 = vld [vmem:[%s14773_s7 + $0x540] ss:$16 sps:$4 sm:$0xff]  }
0x19f2   :  { %v6490_v11 = vadd.f32 %v6489_v9, %v14236_v31  ;;  %7382 = vmatpush1.bf16.msra.mxu0 %v10939_v7  ;;  %v10978_v7 = vld [vmem:[%s14773_s7 + $0x548] ss:$16 sps:$4 sm:$0xff]  }
0x19f3   :  { %7468 = vmatpush1.bf16.msra.mxu1 %v10942_v28  ;;  %7383 = vmatprep.subr.bf16.mxu0 %v10947_v40  ;;  %v10983_v28 = vld [vmem:[%s14773_s7 + $0x564] ss:$16 sps:$4 sm:$0xff]   ;;  %v10986_v40 = vld [vmem:[%s14773_s7 + $0x56c] ss:$16 sps:$4 sm:$0xff]  }
0x19f4   :  { %v6491_v37 = vadd.f32 %v6490_v11, %v14241_v17  ;;  %7469 = vmatprep.subr.bf16.mxu1 %v10950_v52  ;;  %v10981_v52 = vld [vmem:[%s14773_s7 + $0x560] ss:$16 sps:$4 sm:$0xff]  }
0x19f6   :  { %6492 = vadd.xlane.f32.xlu1 %v6491_v37  ;;  %7384 = vmatpush1.bf16.msra.mxu0 %v10945_v61  ;;  %v10984_v61 = vld [vmem:[%s14773_s7 + $0x568] ss:$16 sps:$4 sm:$0xff]  }
0x19f7   :  { %7470 = vmatpush1.bf16.msra.mxu1 %v10948_v41  ;;  %7385 = vmatprep.subr.bf16.mxu0 %v10953_v19  ;;  %v10989_v41 = vld [vmem:[%s14773_s7 + $0x584] ss:$16 sps:$4 sm:$0xff]   ;;  %v10987_v19 = vld [vmem:[%s14773_s7 + $0x580] ss:$16 sps:$4 sm:$0xff]  }
0x19f8   :  { %7471 = vmatprep.subr.bf16.mxu1 %v10956_v53  ;;  %v10990_v53 = vld [vmem:[%s14773_s7 + $0x588] ss:$16 sps:$4 sm:$0xff]  }
0x19fa   :  { %7386 = vmatpush1.bf16.msra.mxu0 %v10951_v63  ;;  %v10992_v63 = vld [vmem:[%s14773_s7 + $0x58c] ss:$16 sps:$4 sm:$0xff]  }
0x19fb   :  { %7472 = vmatpush1.bf16.msra.mxu1 %v10954_v3  ;;  %7387 = vmatprep.subr.bf16.mxu0 %v10959_v13  ;;  %v10995_v3 = vld [vmem:[%s14773_s7 + $0x5a4] ss:$16 sps:$4 sm:$0xff]   ;;  %v10998_v13 = vld [vmem:[%s14773_s7 + $0x5ac] ss:$16 sps:$4 sm:$0xff]  }
0x19fc   :  { %7473 = vmatprep.subr.bf16.mxu1 %v10962_v18  ;;  %v10993_v18 = vld [vmem:[%s14773_s7 + $0x5a0] ss:$16 sps:$4 sm:$0xff]  }
0x19fe   :  { %7388 = vmatpush1.bf16.msra.mxu0 %v10957_v45  ;;  %v10996_v45 = vld [vmem:[%s14773_s7 + $0x5a8] ss:$16 sps:$4 sm:$0xff]  }
0x19ff   :  { %7474 = vmatpush1.bf16.msra.mxu1 %v10960_v47  ;;  %7389 = vmatprep.subr.bf16.mxu0 %v10965_v36  ;;  %v11001_v47 = vld [vmem:[%s14773_s7 + $0x5c4] ss:$16 sps:$4 sm:$0xff]  }
0x1a00   :  { %7475 = vmatprep.subr.bf16.mxu1 %v10968_v23 }
0x1a02   :  { %7390 = vmatpush1.bf16.msra.mxu0 %v10963_v62 }
0x1a03   :  { %7476 = vmatpush1.bf16.msra.mxu1 %v10966_v0  ;;  %7391 = vmatprep.subr.bf16.mxu0 %v10971_v6 }
0x1a04   :  { %7477 = vmatprep.subr.bf16.mxu1 %v10974_v38  ;;  %v15056_v38 = vld [vmem:[#allocation10_spill] sm:$0xff] }
0x1a06   :  { %7392 = vmatpush1.bf16.msra.mxu0 %v10969_v44  ;;  %v6567_v44 = vrot.slane %v14202_v14, %v15056_v38 }
0x1a07   :  { %7478 = vmatpush1.bf16.msra.mxu1 %v10972_v20  ;;  %7393 = vmatprep.subr.bf16.mxu0 %v10977_v42  ;;  %v6563_v20 = vrot.slane %v14188_v35, %v15056_v38 }
0x1a08   :  { %7479 = vmatprep.subr.bf16.mxu1 %v10980_v51  ;;  %v6571_v51 = vrot.slane %v14195_v57, %v15056_v38 }
0x1a0a   :  { %7394 = vmatpush1.bf16.msra.mxu0 %v10975_v34 }
0x1a0b   :  { %7480 = vmatpush1.bf16.msra.mxu1 %v10978_v7  ;;  %7395 = vmatprep.subr.bf16.mxu0 %v10983_v28 }
0x1a0c   :  { %7481 = vmatprep.subr.bf16.mxu1 %v10986_v40 }
0x1a0e   :  { %7396 = vmatpush1.bf16.msra.mxu0 %v10981_v52 }
0x1a0f   :  { %7482 = vmatpush1.bf16.msra.mxu1 %v10984_v61  ;;  %7397 = vmatprep.subr.bf16.mxu0 %v10989_v41 }
0x1a10   :  { %7483 = vmatprep.subr.bf16.mxu1 %v10992_v63 }
0x1a12   :  { %7398 = vmatpush1.bf16.msra.mxu0 %v10987_v19 }
0x1a13   :  { %7484 = vmatpush1.bf16.msra.mxu1 %v10990_v53  ;;  %7399 = vmatprep.subr.bf16.mxu0 %v10995_v3  ;;  %v6575_v3 = vrot.slane %v14209_v12, %v15056_v38 }
0x1a14   :  { %7485 = vmatprep.subr.bf16.mxu1 %v10998_v13 }
0x1a16   :  { %7400 = vmatpush1.bf16.msra.mxu0 %v10993_v18 }
0x1a17   :  { %7486 = vmatpush1.bf16.msra.mxu1 %v10996_v45  ;;  %7401 = vmatprep.subr.bf16.mxu0 %v11001_v47 }
0x1a7a   :  { %v6488_v59 = vpop.xlane.xlu0 %6487 }
0x1a7b   :  { %v6494_v1 = vmul.f32 0.001953125, %v6488_v59  ;;  %v11004_v59 = vld [vmem:[%s14773_s7 + $0x5cc] ss:$16 sps:$4 sm:$0xff]  }
0x1a7c   :  { %7487 = vmatprep.subr.bf16.mxu1 %v11004_v59 }
0x1a7d   :  { %v14342_v25 = vsub.f32 %v14214_v56, %v6494_v1  ;;  %v14345_v8 = vsub.f32 %v14217_v2, %v6494_v1  ;;  %v14348_v15 = vsub.f32 %v14220_v24, %v6494_v1  ;;  %v14351_v4 = vsub.f32 %v14225_v32, %v6494_v1  ;;  %v10999_v1 = vld [vmem:[%s14773_s7 + $0x5c0] ss:$16 sps:$4 sm:$0xff]  }
0x1a7e   :  { %7402 = vmatpush1.bf16.msra.mxu0 %v10999_v1 }
0x1a7f   :  { %v6504_v39 = vmul.f32 %v14342_v25, %v14342_v25  ;;  %v6505_v46 = vmul.f32 %v14345_v8, %v14345_v8  ;;  %v6506_v54 = vmul.f32 %v14348_v15, %v14348_v15  ;;  %v6507_v29 = vmul.f32 %v14351_v4, %v14351_v4 }
0x1a81   :  { %v6512_v49 = vadd.f32 %v6505_v46, %v6504_v39  ;;  %v11002_v39 = vld [vmem:[%s14773_s7 + $0x5c8] ss:$16 sps:$4 sm:$0xff]   ;;  %v11007_v46 = vld [vmem:[%s14773_s7 + $0x5e4] ss:$16 sps:$4 sm:$0xff]  }
0x1a82   :  { %7488 = vmatpush1.bf16.msra.mxu1 %v11002_v39  ;;  %7403 = vmatprep.subr.bf16.mxu0 %v11007_v46  ;;  %v11022_v39 = vld [vmem:[%s14773_s7 + $0x62c] ss:$16 sps:$4 sm:$0xff]  }
0x1a83   :  { %v6493_v26 = vpop.xlane.xlu1 %6492  ;;  %v6513_v43 = vadd.f32 %v6512_v49, %v6506_v54  ;;  %v11010_v54 = vld [vmem:[%s14773_s7 + $0x5ec] ss:$16 sps:$4 sm:$0xff]   ;;  %v11005_v49 = vld [vmem:[%s14773_s7 + $0x5e0] ss:$16 sps:$4 sm:$0xff]  }
0x1a84   :  { %v6495_v21 = vmul.f32 0.001953125, %v6493_v26  ;;  %v11008_v26 = vld [vmem:[%s14773_s7 + $0x5e8] ss:$16 sps:$4 sm:$0xff]   ;;  %7489 = vmatprep.subr.bf16.mxu1 %v11010_v54  ;;  %7404 = vmatpush1.bf16.msra.mxu0 %v11005_v49  ;;  %v11017_v54 = vld [vmem:[%s14773_s7 + $0x620] ss:$16 sps:$4 sm:$0xff]  }
0x1a85   :  { %v6514_v50 = vadd.f32 %v6513_v43, %v6507_v29  ;;  %v11013_v29 = vld [vmem:[%s14773_s7 + $0x604] ss:$16 sps:$4 sm:$0xff]   ;;  %v11016_v43 = vld [vmem:[%s14773_s7 + $0x60c] ss:$16 sps:$4 sm:$0xff]   ;;  %v11020_v49 = vld [vmem:[%s14773_s7 + $0x628] ss:$16 sps:$4 sm:$0xff]  }
0x1a86   :  { %v14362_v9 = vsub.f32 %v14230_v5, %v6495_v21  ;;  %v14365_v27 = vsub.f32 %v14233_v58, %v6495_v21  ;;  %v14368_v11 = vsub.f32 %v14236_v31, %v6495_v21  ;;  %v14371_v37 = vsub.f32 %v14241_v17, %v6495_v21  ;;  %7490 = vmatpush1.bf16.msra.mxu1 %v11008_v26  ;;  %v11025_v26 = vld [vmem:[%s14773_s7 + $0x644] ss:$16 sps:$4 sm:$0xff]  }
0x1a87   :  { %6515 = vadd.xlane.f32.xlu0 %v6514_v50  ;;  %7416 = vmatprep.subr.bf16.mxu0 %v11013_v29  ;;  %v11028_v29 = vld [vmem:[%s14773_s7 + $0x64c] ss:$16 sps:$4 sm:$0xff]  }
0x1a88   :  { %v6508_v33 = vmul.f32 %v14362_v9, %v14362_v9  ;;  %v6509_v22 = vmul.f32 %v14365_v27, %v14365_v27  ;;  %v6510_v60 = vmul.f32 %v14368_v11, %v14368_v11  ;;  %v6511_v30 = vmul.f32 %v14371_v37, %v14371_v37  ;;  %7502 = vmatprep.subr.bf16.mxu1 %v11016_v43  ;;  %v11023_v43 = vld [vmem:[%s14773_s7 + $0x640] ss:$16 sps:$4 sm:$0xff]  }
0x1a8a   :  { %v6517_v10 = vadd.f32 %v6509_v22, %v6508_v33 }
0x1a8c   :  { %v6518_v16 = vadd.f32 %v6517_v10, %v6510_v60 }
0x1a8e   :  { %v6519_v55 = vadd.f32 %v6518_v16, %v6511_v30  ;;  %v15055_v16 = vld [vmem:[#allocation8_spill] sm:$0xff] }
0x1a8f   :  { %v6539_v36 = vrot.slane %v14188_v35, %v15055_v16  ;;  %v6547_v6 = vrot.slane %v14195_v57, %v15055_v16  ;;  %v6551_v42 = vrot.slane %v14209_v12, %v15055_v16  ;;  %v11019_v12 = vld [vmem:[%s14773_s7 + $0x624] ss:$16 sps:$4 sm:$0xff]  }
0x1a90   :  { %6520 = vadd.xlane.f32.xlu0 %v6519_v55  ;;  %v6543_v55 = vrot.slane %v14202_v14, %v15055_v16 }
0x1b14   :  { %v6516_v21 = vpop.xlane.xlu0 %6515 }
0x1b15   :  { %v6522_v50 = vmul.f32 0.001953125, %v6516_v21  ;;  %v11026_v21 = vld [vmem:[%s14773_s7 + $0x648] ss:$16 sps:$4 sm:$0xff]  }
0x1b17   :  { %v6524_v33 = vadd.f32 1e-05, %v6522_v50  ;;  %v11031_v50 = vld [vmem:[%s14773_s7 + $0x664] ss:$16 sps:$4 sm:$0xff]  }
0x1b19   :  { %11343 = vrsqrt.f32 %v6524_v33  ;;  %v11034_v33 = vld [vmem:[%s14773_s7 + $0x66c] ss:$16 sps:$4 sm:$0xff]  }
0x1b1d   :  { %v6521_v22 = vpop.xlane.xlu0 %6520 }
0x1b1e   :  { %v6523_v60 = vmul.f32 0.001953125, %v6521_v22  ;;  %v11029_v22 = vld [vmem:[%s14773_s7 + $0x660] ss:$16 sps:$4 sm:$0xff]  }
0x1b20   :  { %v6525_v10 = vadd.f32 1e-05, %v6523_v60  ;;  %v11032_v60 = vld [vmem:[%s14773_s7 + $0x668] ss:$16 sps:$4 sm:$0xff]  }
0x1b22   :  { %11345 = vrsqrt.f32 %v6525_v10  ;;  %v11037_v10 = vld [vmem:[%s14773_s7 + $0x684] ss:$16 sps:$4 sm:$0xff]  }
0x1b23   :  { %v11344_v30 = vpop.eup %11343 }
0x1b24   :  { %v6529_v23 = vmul.f32 %v11344_v30, %v14345_v8  ;;  %v6528_v62 = vmul.f32 %v11344_v30, %v14342_v25  ;;  %v6530_v0 = vmul.f32 %v11344_v30, %v14348_v15  ;;  %v6531_v15 = vmul.f32 %v11344_v30, %v14351_v4  ;;  %v11040_v30 = vld [vmem:[%s14773_s7 + $0x68c] ss:$16 sps:$4 sm:$0xff]  }
0x1b26   :  { %v6553_v34 = vmul.f32 %v6543_v55, %v6529_v23  ;;  %v6552_v25 = vmul.f32 %v6539_v36, %v6528_v62  ;;  %v6554_v7 = vmul.f32 %v6547_v6, %v6530_v0  ;;  %v6555_v63 = vmul.f32 %v6551_v42, %v6531_v15  ;;  %v11043_v23 = vld [vmem:[%s14773_s7 + $0x6a4] ss:$16 sps:$4 sm:$0xff]   ;;  %v11046_v62 = vld [vmem:[%s14773_s7 + $0x6ac] ss:$16 sps:$4 sm:$0xff]   ;;  %v11041_v0 = vld [vmem:[%s14773_s7 + $0x6a0] ss:$16 sps:$4 sm:$0xff]  }
0x1b27   :  { %v11056_v15 = vld [vmem:[%s14773_s7 + $0x6e8] ss:$16 sps:$4 sm:$0xff]  }
0x1b28   :  { %v6577_v53 = vadd.f32 %v6567_v44, %v6553_v34  ;;  %v6576_v57 = vadd.f32 %v6563_v20, %v6552_v25  ;;  %v6578_v18 = vadd.f32 %v6571_v51, %v6554_v7  ;;  %v6579_v1 = vadd.f32 %v6575_v3, %v6555_v63  ;;  %v11058_v34 = vld [vmem:[%s14773_s7 + $0x6ec] ss:$16 sps:$4 sm:$0xff]   ;;  %v11053_v25 = vld [vmem:[%s14773_s7 + $0x6e0] ss:$16 sps:$4 sm:$0xff]   ;;  %v11061_v7 = vld [vmem:[%s14773_s7 + $0x704] ss:$16 sps:$4 sm:$0xff]  }
0x1b29   :  { %v11074_v63 = vld [vmem:[%s14773_s7 + $0x748] ss:$16 sps:$4 sm:$0xff]  }
0x1b2c   :  { %v11346_v8 = vpop.eup %11345 }
0x1b2d   :  { %v6533_v28 = vmul.f32 %v11346_v8, %v14365_v27  ;;  %v6532_v40 = vmul.f32 %v11346_v8, %v14362_v9  ;;  %v6535_v14 = vmul.f32 %v11346_v8, %v14371_v37  ;;  %v6534_v35 = vmul.f32 %v11346_v8, %v14368_v11  ;;  %v11011_v11 = vld [vmem:[%s14773_s7 + $0x600] ss:$16 sps:$4 sm:$0xff]   ;;  %v11014_v37 = vld [vmem:[%s14773_s7 + $0x608] ss:$16 sps:$4 sm:$0xff]   ;;  %v11055_v8 = vld [vmem:[%s14773_s7 + $0x6e4] ss:$16 sps:$4 sm:$0xff]  }
0x1b2f   :  { %v6557_v52 = vmul.f32 %v6543_v55, %v6533_v28  ;;  %v6556_v61 = vmul.f32 %v6539_v36, %v6532_v40  ;;  %v6559_v41 = vmul.f32 %v6551_v42, %v6535_v14  ;;  %v6558_v19 = vmul.f32 %v6547_v6, %v6534_v35  ;;  %v11035_v55 = vld [vmem:[%s14773_s7 + $0x680] ss:$16 sps:$4 sm:$0xff]   ;;  %v11038_v36 = vld [vmem:[%s14773_s7 + $0x688] ss:$16 sps:$4 sm:$0xff]   ;;  %v11064_v28 = vld [vmem:[%s14773_s7 + $0x70c] ss:$16 sps:$4 sm:$0xff]  }
0x1b30   :  { %v11044_v6 = vld [vmem:[%s14773_s7 + $0x6a8] ss:$16 sps:$4 sm:$0xff]   ;;  %v11047_v42 = vld [vmem:[%s14773_s7 + $0x6c0] ss:$16 sps:$4 sm:$0xff]   ;;  %v11067_v35 = vld [vmem:[%s14773_s7 + $0x724] ss:$16 sps:$4 sm:$0xff]  }
0x1b31   :  { %v6581_v4 = vadd.f32 %v6567_v44, %v6557_v52  ;;  %v6580_v13 = vadd.f32 %v6563_v20, %v6556_v61  ;;  %v6582_v27 = vadd.f32 %v6571_v51, %v6558_v19  ;;  %v6583_v45 = vadd.f32 %v6575_v3, %v6559_v41  ;;  %v11049_v44 = vld [vmem:[%s14773_s7 + $0x6c4] ss:$16 sps:$4 sm:$0xff]   ;;  %v11052_v20 = vld [vmem:[%s14773_s7 + $0x6cc] ss:$16 sps:$4 sm:$0xff]   ;;  %v11050_v51 = vld [vmem:[%s14773_s7 + $0x6c8] ss:$16 sps:$4 sm:$0xff]  }
0x1b32   :  { %v11059_v40 = vld [vmem:[%s14773_s7 + $0x700] ss:$16 sps:$4 sm:$0xff]   ;;  %v11062_v14 = vld [vmem:[%s14773_s7 + $0x708] ss:$16 sps:$4 sm:$0xff]   ;;  %v11070_v52 = vld [vmem:[%s14773_s7 + $0x72c] ss:$16 sps:$4 sm:$0xff]  }
0x1b33   :  { %v6585_v9 = vpack.c.bf16 %v6581_v4, %v6577_v53  ;;  %v6584_v47 = vpack.c.bf16 %v6580_v13, %v6576_v57  ;;  %v14513_v59 = vpack.c.bf16 %v6582_v27, %v6578_v18  ;;  %v6587_v46 = vpack.c.bf16 %v6583_v45, %v6579_v1  ;;  %v11065_v61 = vld [vmem:[%s14773_s7 + $0x720] ss:$16 sps:$4 sm:$0xff]   ;;  %v11068_v41 = vld [vmem:[%s14773_s7 + $0x728] ss:$16 sps:$4 sm:$0xff]   ;;  %v11073_v19 = vld [vmem:[%s14773_s7 + $0x744] ss:$16 sps:$4 sm:$0xff]  }
0x1b34   :  { %v11076_v53 = vld [vmem:[%s14773_s7 + $0x74c] ss:$16 sps:$4 sm:$0xff]   ;;  %v11071_v57 = vld [vmem:[%s14773_s7 + $0x740] ss:$16 sps:$4 sm:$0xff]   ;;  %v11079_v3 = vld [vmem:[%s14773_s7 + $0x764] ss:$16 sps:$4 sm:$0xff]  }
0x1b35   :  { %7405 = vmatprep.mubr.bf16.mxu0 %v6585_v9  ;;  %7491 = vmatprep.mubr.bf16.mxu1 %v6585_v9  ;;  %v11082_v4 = vld [vmem:[%s14773_s7 + $0x76c] ss:$16 sps:$4 sm:$0xff]   ;;  %v11077_v13 = vld [vmem:[%s14773_s7 + $0x760] ss:$16 sps:$4 sm:$0xff]   ;;  %v11080_v18 = vld [vmem:[%s14773_s7 + $0x768] ss:$16 sps:$4 sm:$0xff]  }
0x1b36   :  { %7406 = vmatmul.mubr.bf16.vlgmr.msra.gmra.mrb[60].mxu0 %v6584_v47  ;;  %7492 = vmatmul.mubr.bf16.vlgmr.msra.gmra.mrb[60].mxu1 %v6584_v47  ;;  %v11085_v27 = vld [vmem:[%s14773_s7 + $0x784] ss:$16 sps:$4 sm:$0xff]   ;;  %v11088_v45 = vld [vmem:[%s14773_s7 + $0x78c] ss:$16 sps:$4 sm:$0xff]   ;;  %v11083_v9 = vld [vmem:[%s14773_s7 + $0x780] ss:$16 sps:$4 sm:$0xff]  }
0x1b37   :  { %7417 = vmatpush1.bf16.msra.mxu0 %v11011_v11  ;;  %7503 = vmatpush1.bf16.msra.mxu1 %v11014_v37  ;;  %v11086_v11 = vld [vmem:[%s14773_s7 + $0x788] ss:$16 sps:$4 sm:$0xff]   ;;  %v11091_v37 = vld [vmem:[%s14773_s7 + $0x7a4] ss:$16 sps:$4 sm:$0xff]   ;;  %v11094_v47 = vld [vmem:[%s14773_s7 + $0x7ac] ss:$16 sps:$4 sm:$0xff]  }
0x1b38   :  { %7448 = vmatprep.mubr.bf16.mxu0 %v6587_v46  ;;  %7534 = vmatprep.mubr.bf16.mxu1 %v6587_v46  ;;  %v11089_v1 = vld [vmem:[%s14773_s7 + $0x7a0] ss:$16 sps:$4 sm:$0xff]   ;;  %v11100_v46 = vld [vmem:[%s14773_s7 + $0x7cc] ss:$16 sps:$4 sm:$0xff]  }
0x1b39   :  { %7418 = vmatprep.subr.bf16.mxu0 %v11019_v12  ;;  %7504 = vmatprep.subr.bf16.mxu1 %v11022_v39  ;;  %v11092_v12 = vld [vmem:[%s14773_s7 + $0x7a8] ss:$16 sps:$4 sm:$0xff]   ;;  %v11097_v39 = vld [vmem:[%s14773_s7 + $0x7c4] ss:$16 sps:$4 sm:$0xff]  }
0x1b3b   :  { %7419 = vmatpush1.bf16.msra.mxu0 %v11017_v54  ;;  %7505 = vmatpush1.bf16.msra.mxu1 %v11020_v49  ;;  %v11095_v54 = vld [vmem:[%s14773_s7 + $0x7c0] ss:$16 sps:$4 sm:$0xff]   ;;  %v11098_v49 = vld [vmem:[%s14773_s7 + $0x7c8] ss:$16 sps:$4 sm:$0xff]  }
0x1b3c   :  { %7420 = vmatprep.subr.bf16.mxu0 %v11025_v26  ;;  %7506 = vmatprep.subr.bf16.mxu1 %v11028_v29  ;;  %v11103_v26 = vld [vmem:[%s14773_s7 + $0x7e4] ss:$16 sps:$4 sm:$0xff]   ;;  %v11106_v29 = vld [vmem:[%s14773_s7 + $0x7ec] ss:$16 sps:$4 sm:$0xff]  }
0x1b3f   :  { %7421 = vmatpush1.bf16.msra.mxu0 %v11023_v43  ;;  %7507 = vmatpush1.bf16.msra.mxu1 %v11026_v21  ;;  %v11101_v43 = vld [vmem:[%s14773_s7 + $0x7e0] ss:$16 sps:$4 sm:$0xff]   ;;  %v11104_v21 = vld [vmem:[%s14773_s7 + $0x7e8] ss:$16 sps:$4 sm:$0xff]  }
0x1b40   :  { %7422 = vmatprep.subr.bf16.mxu0 %v11031_v50  ;;  %7508 = vmatprep.subr.bf16.mxu1 %v11034_v33  ;;  %v11109_v50 = vld [vmem:[#allocation3 + $0x404] ss:$16 sps:$4 sm:$0xff]   ;;  %v11112_v33 = vld [vmem:[#allocation3 + $0x40c] ss:$16 sps:$4 sm:$0xff]  }
0x1b43   :  { %7423 = vmatpush1.bf16.msra.mxu0 %v11029_v22  ;;  %7509 = vmatpush1.bf16.msra.mxu1 %v11032_v60  ;;  %v11107_v22 = vld [vmem:[#allocation3 + $0x400] ss:$16 sps:$4 sm:$0xff]   ;;  %v11110_v60 = vld [vmem:[#allocation3 + $0x408] ss:$16 sps:$4 sm:$0xff]  }
0x1b44   :  { %7424 = vmatprep.subr.bf16.mxu0 %v11037_v10  ;;  %7510 = vmatprep.subr.bf16.mxu1 %v11040_v30  ;;  %v11115_v10 = vld [vmem:[#allocation3 + $0x424] ss:$16 sps:$4 sm:$0xff]   ;;  %v11118_v30 = vld [vmem:[#allocation3 + $0x42c] ss:$16 sps:$4 sm:$0xff]  }
0x1b47   :  { %7425 = vmatpush1.bf16.msra.mxu0 %v11035_v55  ;;  %7511 = vmatpush1.bf16.msra.mxu1 %v11038_v36  ;;  %v11113_v55 = vld [vmem:[#allocation3 + $0x420] ss:$16 sps:$4 sm:$0xff]   ;;  %v11116_v36 = vld [vmem:[#allocation3 + $0x428] ss:$16 sps:$4 sm:$0xff]  }
0x1b48   :  { %7426 = vmatprep.subr.bf16.mxu0 %v11043_v23  ;;  %7512 = vmatprep.subr.bf16.mxu1 %v11046_v62  ;;  %v11121_v23 = vld [vmem:[#allocation3 + $0x444] ss:$16 sps:$4 sm:$0xff]   ;;  %v11124_v62 = vld [vmem:[#allocation3 + $0x44c] ss:$16 sps:$4 sm:$0xff]  }
0x1b4b   :  { %7427 = vmatpush1.bf16.msra.mxu0 %v11041_v0  ;;  %7513 = vmatpush1.bf16.msra.mxu1 %v11044_v6  ;;  %v11119_v0 = vld [vmem:[#allocation3 + $0x440] ss:$16 sps:$4 sm:$0xff]   ;;  %v11122_v6 = vld [vmem:[#allocation3 + $0x448] ss:$16 sps:$4 sm:$0xff]  }
0x1b4c   :  { %7428 = vmatprep.subr.bf16.mxu0 %v11049_v44  ;;  %7514 = vmatprep.subr.bf16.mxu1 %v11052_v20  ;;  %v11127_v44 = vld [vmem:[#allocation3 + $0x464] ss:$16 sps:$4 sm:$0xff]   ;;  %v11130_v20 = vld [vmem:[#allocation3 + $0x46c] ss:$16 sps:$4 sm:$0xff]  }
0x1b4f   :  { %7429 = vmatpush1.bf16.msra.mxu0 %v11047_v42  ;;  %7515 = vmatpush1.bf16.msra.mxu1 %v11050_v51  ;;  %v11125_v42 = vld [vmem:[#allocation3 + $0x460] ss:$16 sps:$4 sm:$0xff]   ;;  %v11133_v51 = vld [vmem:[#allocation3 + $0x484] ss:$16 sps:$4 sm:$0xff]  }
0x1b50   :  { %7430 = vmatprep.subr.bf16.mxu0 %v11055_v8  ;;  %7516 = vmatprep.subr.bf16.mxu1 %v11058_v34  ;;  %v11136_v8 = vld [vmem:[#allocation3 + $0x48c] ss:$16 sps:$4 sm:$0xff]   ;;  %v11131_v34 = vld [vmem:[#allocation3 + $0x480] ss:$16 sps:$4 sm:$0xff]  }
0x1b53   :  { %7431 = vmatpush1.bf16.msra.mxu0 %v11053_v25  ;;  %7517 = vmatpush1.bf16.msra.mxu1 %v11056_v15  ;;  %v11134_v25 = vld [vmem:[#allocation3 + $0x488] ss:$16 sps:$4 sm:$0xff]   ;;  %v11139_v15 = vld [vmem:[#allocation3 + $0x4a4] ss:$16 sps:$4 sm:$0xff]  }
0x1b54   :  { %7432 = vmatprep.subr.bf16.mxu0 %v11061_v7  ;;  %7518 = vmatprep.subr.bf16.mxu1 %v11064_v28  ;;  %v11142_v7 = vld [vmem:[#allocation3 + $0x4ac] ss:$16 sps:$4 sm:$0xff]   ;;  %v11137_v28 = vld [vmem:[#allocation3 + $0x4a0] ss:$16 sps:$4 sm:$0xff]  }
0x1b57   :  { %7433 = vmatpush1.bf16.msra.mxu0 %v11059_v40  ;;  %7519 = vmatpush1.bf16.msra.mxu1 %v11062_v14  ;;  %v11140_v40 = vld [vmem:[#allocation3 + $0x4a8] ss:$16 sps:$4 sm:$0xff]   ;;  %v11145_v14 = vld [vmem:[#allocation3 + $0x4c4] ss:$16 sps:$4 sm:$0xff]  }
0x1b58   :  { %7434 = vmatprep.subr.bf16.mxu0 %v11067_v35  ;;  %7520 = vmatprep.subr.bf16.mxu1 %v11070_v52  ;;  %v11148_v35 = vld [vmem:[#allocation3 + $0x4cc] ss:$16 sps:$4 sm:$0xff]   ;;  %v11143_v52 = vld [vmem:[#allocation3 + $0x4c0] ss:$16 sps:$4 sm:$0xff]  }
0x1b5b   :  { %7435 = vmatpush1.bf16.msra.mxu0 %v11065_v61  ;;  %7521 = vmatpush1.bf16.msra.mxu1 %v11068_v41  ;;  %v11146_v61 = vld [vmem:[#allocation3 + $0x4c8] ss:$16 sps:$4 sm:$0xff]   ;;  %v11151_v41 = vld [vmem:[#allocation3 + $0x4e4] ss:$16 sps:$4 sm:$0xff]  }
0x1b5c   :  { %7436 = vmatprep.subr.bf16.mxu0 %v11073_v19  ;;  %7522 = vmatprep.subr.bf16.mxu1 %v11076_v53  ;;  %v11154_v19 = vld [vmem:[#allocation3 + $0x4ec] ss:$16 sps:$4 sm:$0xff]   ;;  %v11149_v53 = vld [vmem:[#allocation3 + $0x4e0] ss:$16 sps:$4 sm:$0xff]  }
0x1b5f   :  { %7437 = vmatpush1.bf16.msra.mxu0 %v11071_v57  ;;  %7523 = vmatpush1.bf16.msra.mxu1 %v11074_v63  ;;  %v11152_v57 = vld [vmem:[#allocation3 + $0x4e8] ss:$16 sps:$4 sm:$0xff]   ;;  %v11157_v63 = vld [vmem:[#allocation3 + $0x504] ss:$16 sps:$4 sm:$0xff]  }
0x1b60   :  { %7438 = vmatprep.subr.bf16.mxu0 %v11079_v3  ;;  %7524 = vmatprep.subr.bf16.mxu1 %v11082_v4  ;;  %v11160_v3 = vld [vmem:[#allocation3 + $0x50c] ss:$16 sps:$4 sm:$0xff]   ;;  %v11155_v4 = vld [vmem:[#allocation3 + $0x500] ss:$16 sps:$4 sm:$0xff]  }
0x1b63   :  { %7439 = vmatpush1.bf16.msra.mxu0 %v11077_v13  ;;  %7525 = vmatpush1.bf16.msra.mxu1 %v11080_v18  ;;  %v11158_v13 = vld [vmem:[#allocation3 + $0x508] ss:$16 sps:$4 sm:$0xff]   ;;  %v11163_v18 = vld [vmem:[#allocation3 + $0x524] ss:$16 sps:$4 sm:$0xff]  }
0x1b64   :  { %7440 = vmatprep.subr.bf16.mxu0 %v11085_v27  ;;  %7526 = vmatprep.subr.bf16.mxu1 %v11088_v45  ;;  %v11166_v27 = vld [vmem:[#allocation3 + $0x52c] ss:$16 sps:$4 sm:$0xff]   ;;  %v11161_v45 = vld [vmem:[#allocation3 + $0x520] ss:$16 sps:$4 sm:$0xff]  }
0x1b67   :  { %7441 = vmatpush1.bf16.msra.mxu0 %v11083_v9  ;;  %7527 = vmatpush1.bf16.msra.mxu1 %v11086_v11  ;;  %v11164_v9 = vld [vmem:[#allocation3 + $0x528] ss:$16 sps:$4 sm:$0xff]   ;;  %v11169_v11 = vld [vmem:[#allocation3 + $0x544] ss:$16 sps:$4 sm:$0xff]  }
0x1b68   :  { %7442 = vmatprep.subr.bf16.mxu0 %v11091_v37  ;;  %7528 = vmatprep.subr.bf16.mxu1 %v11094_v47  ;;  %v11172_v37 = vld [vmem:[#allocation3 + $0x54c] ss:$16 sps:$4 sm:$0xff]   ;;  %v11167_v47 = vld [vmem:[#allocation3 + $0x540] ss:$16 sps:$4 sm:$0xff]  }
0x1b6b   :  { %7443 = vmatpush1.bf16.msra.mxu0 %v11089_v1  ;;  %7529 = vmatpush1.bf16.msra.mxu1 %v11092_v12  ;;  %v11170_v1 = vld [vmem:[#allocation3 + $0x548] ss:$16 sps:$4 sm:$0xff]   ;;  %v11175_v12 = vld [vmem:[#allocation3 + $0x564] ss:$16 sps:$4 sm:$0xff]  }
0x1b6c   :  { %7444 = vmatprep.subr.bf16.mxu0 %v11097_v39  ;;  %7530 = vmatprep.subr.bf16.mxu1 %v11100_v46  ;;  %v11178_v39 = vld [vmem:[#allocation3 + $0x56c] ss:$16 sps:$4 sm:$0xff]   ;;  %v11173_v46 = vld [vmem:[#allocation3 + $0x560] ss:$16 sps:$4 sm:$0xff]  }
0x1b6f   :  { %7445 = vmatpush1.bf16.msra.mxu0 %v11095_v54  ;;  %7531 = vmatpush1.bf16.msra.mxu1 %v11098_v49  ;;  %v11176_v54 = vld [vmem:[#allocation3 + $0x568] ss:$16 sps:$4 sm:$0xff]   ;;  %v11181_v49 = vld [vmem:[#allocation3 + $0x584] ss:$16 sps:$4 sm:$0xff]  }
0x1b70   :  { %7446 = vmatprep.subr.bf16.mxu0 %v11103_v26  ;;  %7532 = vmatprep.subr.bf16.mxu1 %v11106_v29  ;;  %v11184_v26 = vld [vmem:[#allocation3 + $0x58c] ss:$16 sps:$4 sm:$0xff]   ;;  %v11179_v29 = vld [vmem:[#allocation3 + $0x580] ss:$16 sps:$4 sm:$0xff]  }
0x1b73   :  { %7447 = vmatpush1.bf16.msra.mxu0 %v11101_v43  ;;  %7533 = vmatpush1.bf16.msra.mxu1 %v11104_v21  ;;  %v11182_v43 = vld [vmem:[#allocation3 + $0x588] ss:$16 sps:$4 sm:$0xff]   ;;  %v11187_v21 = vld [vmem:[#allocation3 + $0x5a4] ss:$16 sps:$4 sm:$0xff]  }
0x1b74   :  { %8342 = vmatprep.subr.bf16.mxu0 %v11109_v50  ;;  %8428 = vmatprep.subr.bf16.mxu1 %v11112_v33  ;;  %v11190_v50 = vld [vmem:[#allocation3 + $0x5ac] ss:$16 sps:$4 sm:$0xff]   ;;  %v11185_v33 = vld [vmem:[#allocation3 + $0x5a0] ss:$16 sps:$4 sm:$0xff]  }
0x1b76   :  { %7449 = vmatmul.mubr.bf16.vlgmr.msra.gmra.mrb[60].mxu0 %v14513_v59  ;;  %7535 = vmatmul.mubr.bf16.vlgmr.msra.gmra.mrb[60].mxu1 %v14513_v59  ;;  %v11128_v59 = vld [vmem:[#allocation3 + $0x468] ss:$16 sps:$4 sm:$0xff]  }
0x1b77   :  { %8343 = vmatpush1.bf16.msra.mxu0 %v11107_v22  ;;  %8429 = vmatpush1.bf16.msra.mxu1 %v11110_v60  ;;  %v11188_v22 = vld [vmem:[#allocation3 + $0x5a8] ss:$16 sps:$4 sm:$0xff]   ;;  %v11193_v60 = vld [vmem:[#allocation3 + $0x5c4] ss:$16 sps:$4 sm:$0xff]  }
0x1b78   :  { %8344 = vmatprep.subr.bf16.mxu0 %v11115_v10  ;;  %8430 = vmatprep.subr.bf16.mxu1 %v11118_v30  ;;  %v11196_v10 = vld [vmem:[#allocation3 + $0x5cc] ss:$16 sps:$4 sm:$0xff]   ;;  %v11191_v30 = vld [vmem:[#allocation3 + $0x5c0] ss:$16 sps:$4 sm:$0xff]  }
0x1b7b   :  { %8345 = vmatpush1.bf16.msra.mxu0 %v11113_v55  ;;  %8431 = vmatpush1.bf16.msra.mxu1 %v11116_v36  ;;  %v11194_v55 = vld [vmem:[#allocation3 + $0x5c8] ss:$16 sps:$4 sm:$0xff]   ;;  %v11199_v36 = vld [vmem:[#allocation3 + $0x5e4] ss:$16 sps:$4 sm:$0xff]  }
0x1b7c   :  { %8346 = vmatprep.subr.bf16.mxu0 %v11121_v23  ;;  %8432 = vmatprep.subr.bf16.mxu1 %v11124_v62  ;;  %v11202_v23 = vld [vmem:[#allocation3 + $0x5ec] ss:$16 sps:$4 sm:$0xff]   ;;  %v11197_v62 = vld [vmem:[#allocation3 + $0x5e0] ss:$16 sps:$4 sm:$0xff]  }
0x1b7f   :  { %8347 = vmatpush1.bf16.msra.mxu0 %v11119_v0  ;;  %8433 = vmatpush1.bf16.msra.mxu1 %v11122_v6  ;;  %v11200_v0 = vld [vmem:[#allocation3 + $0x5e8] ss:$16 sps:$4 sm:$0xff]   ;;  %v11205_v6 = vld [vmem:[#allocation3 + $0x604] ss:$16 sps:$4 sm:$0xff]  }
0x1b80   :  { %8348 = vmatprep.subr.bf16.mxu0 %v11127_v44  ;;  %8434 = vmatprep.subr.bf16.mxu1 %v11130_v20  ;;  %v11208_v44 = vld [vmem:[#allocation3 + $0x60c] ss:$16 sps:$4 sm:$0xff]  }
0x1b81   :  { %v14700_v20 = vld [vmem:[%s14776_s10 + $0x20] sm:$0x7f] }
0x1b83   :  { %8349 = vmatpush1.bf16.msra.mxu0 %v11125_v42  ;;  %8435 = vmatpush1.bf16.msra.mxu1 %v11128_v59  ;;  %v15057_v42 = vld [vmem:[#allocation26_spill] sm:$0xff] }
0x1b84   :  { %8350 = vmatprep.subr.bf16.mxu0 %v11133_v51  ;;  %8436 = vmatprep.subr.bf16.mxu1 %v11136_v8  ;;  %v6720_v59 = vrot.slane %v14700_v20, %v15057_v42  ;;  %v14707_v51 = vld [vmem:[%s14776_s10 + $0x30] sm:$0x7f] }
0x1b85   :  { %v6728_v8 = vrot.slane %v14707_v51, %v15057_v42 }
0x1b87   :  { %8351 = vmatpush1.bf16.msra.mxu0 %v11131_v34  ;;  %8437 = vmatpush1.bf16.msra.mxu1 %v11134_v25  ;;  %v14714_v34 = vld [vmem:[%s14776_s10 + $0x28] sm:$0x7f] }
0x1b88   :  { %8352 = vmatprep.subr.bf16.mxu0 %v11139_v15  ;;  %8438 = vmatprep.subr.bf16.mxu1 %v11142_v7  ;;  %v6724_v25 = vrot.slane %v14714_v34, %v15057_v42  ;;  %v14721_v15 = vld [vmem:[%s14776_s10 + $0x38] sm:$0x7f] }
0x1b89   :  { %v6732_v7 = vrot.slane %v14721_v15, %v15057_v42  ;;  %v11227_v42 = vld [vmem:[#allocation3 + $0x680] ss:$16 sps:$4 sm:$0xff]  }
0x1b8b   :  { %8353 = vmatpush1.bf16.msra.mxu0 %v11137_v28  ;;  %8439 = vmatpush1.bf16.msra.mxu1 %v11140_v40 }
0x1b8c   :  { %8354 = vmatprep.subr.bf16.mxu0 %v11145_v14  ;;  %8440 = vmatprep.subr.bf16.mxu1 %v11148_v35 }
0x1b8f   :  { %8355 = vmatpush1.bf16.msra.mxu0 %v11143_v52  ;;  %8441 = vmatpush1.bf16.msra.mxu1 %v11146_v61 }
0x1b90   :  { %8356 = vmatprep.subr.bf16.mxu0 %v11151_v41  ;;  %8442 = vmatprep.subr.bf16.mxu1 %v11154_v19 }
0x1b93   :  { %8357 = vmatpush1.bf16.msra.mxu0 %v11149_v53  ;;  %8443 = vmatpush1.bf16.msra.mxu1 %v11152_v57 }
0x1b94   :  { %8358 = vmatprep.subr.bf16.mxu0 %v11157_v63  ;;  %8444 = vmatprep.subr.bf16.mxu1 %v11160_v3 }
0x1b97   :  { %8359 = vmatpush1.bf16.msra.mxu0 %v11155_v4  ;;  %8445 = vmatpush1.bf16.msra.mxu1 %v11158_v13 }
0x1b98   :  { %8360 = vmatprep.subr.bf16.mxu0 %v11163_v18  ;;  %8446 = vmatprep.subr.bf16.mxu1 %v11166_v27 }
0x1b9b   :  { %8361 = vmatpush1.bf16.msra.mxu0 %v11161_v45  ;;  %8447 = vmatpush1.bf16.msra.mxu1 %v11164_v9 }
0x1b9c   :  { %8362 = vmatprep.subr.bf16.mxu0 %v11169_v11  ;;  %8448 = vmatprep.subr.bf16.mxu1 %v11172_v37 }
0x1b9f   :  { %8363 = vmatpush1.bf16.msra.mxu0 %v11167_v47  ;;  %8449 = vmatpush1.bf16.msra.mxu1 %v11170_v1 }
0x1ba0   :  { %8364 = vmatprep.subr.bf16.mxu0 %v11175_v12  ;;  %8450 = vmatprep.subr.bf16.mxu1 %v11178_v39 }
0x1ba3   :  { %8365 = vmatpush1.bf16.msra.mxu0 %v11173_v46  ;;  %8451 = vmatpush1.bf16.msra.mxu1 %v11176_v54 }
0x1ba4   :  { %8366 = vmatprep.subr.bf16.mxu0 %v11181_v49  ;;  %8452 = vmatprep.subr.bf16.mxu1 %v11184_v26 }
0x1ba7   :  { %8367 = vmatpush1.bf16.msra.mxu0 %v11179_v29  ;;  %8453 = vmatpush1.bf16.msra.mxu1 %v11182_v43  ;;  %v11203_v29 = vld [vmem:[#allocation3 + $0x600] ss:$16 sps:$4 sm:$0xff]   ;;  %v11206_v43 = vld [vmem:[#allocation3 + $0x608] ss:$16 sps:$4 sm:$0xff]  }
0x1ba8   :  { %8368 = vmatprep.subr.bf16.mxu0 %v11187_v21  ;;  %8454 = vmatprep.subr.bf16.mxu1 %v11190_v50  ;;  %v11211_v21 = vld [vmem:[#allocation3 + $0x624] ss:$16 sps:$4 sm:$0xff]   ;;  %v11214_v50 = vld [vmem:[#allocation3 + $0x62c] ss:$16 sps:$4 sm:$0xff]  }
0x1bab   :  { %8369 = vmatpush1.bf16.msra.mxu0 %v11185_v33  ;;  %8455 = vmatpush1.bf16.msra.mxu1 %v11188_v22  ;;  %v11209_v33 = vld [vmem:[#allocation3 + $0x620] ss:$16 sps:$4 sm:$0xff]   ;;  %v11212_v22 = vld [vmem:[#allocation3 + $0x628] ss:$16 sps:$4 sm:$0xff]  }
0x1bac   :  { %8370 = vmatprep.subr.bf16.mxu0 %v11193_v60  ;;  %8456 = vmatprep.subr.bf16.mxu1 %v11196_v10  ;;  %v11217_v60 = vld [vmem:[#allocation3 + $0x644] ss:$16 sps:$4 sm:$0xff]   ;;  %v11220_v10 = vld [vmem:[#allocation3 + $0x64c] ss:$16 sps:$4 sm:$0xff]  }
0x1baf   :  { %8371 = vmatpush1.bf16.msra.mxu0 %v11191_v30  ;;  %8457 = vmatpush1.bf16.msra.mxu1 %v11194_v55  ;;  %v11215_v30 = vld [vmem:[#allocation3 + $0x640] ss:$16 sps:$4 sm:$0xff]   ;;  %v11218_v55 = vld [vmem:[#allocation3 + $0x648] ss:$16 sps:$4 sm:$0xff]  }
0x1bb0   :  { %8372 = vmatprep.subr.bf16.mxu0 %v11199_v36  ;;  %8458 = vmatprep.subr.bf16.mxu1 %v11202_v23  ;;  %v11223_v36 = vld [vmem:[#allocation3 + $0x664] ss:$16 sps:$4 sm:$0xff]   ;;  %v11226_v23 = vld [vmem:[#allocation3 + $0x66c] ss:$16 sps:$4 sm:$0xff]  }
0x1bb3   :  { %8373 = vmatpush1.bf16.msra.mxu0 %v11197_v62  ;;  %8459 = vmatpush1.bf16.msra.mxu1 %v11200_v0  ;;  %v11221_v62 = vld [vmem:[#allocation3 + $0x660] ss:$16 sps:$4 sm:$0xff]   ;;  %v11224_v0 = vld [vmem:[#allocation3 + $0x668] ss:$16 sps:$4 sm:$0xff]  }
0x1bb4   :  { %8385 = vmatprep.subr.bf16.mxu0 %v11205_v6  ;;  %8471 = vmatprep.subr.bf16.mxu1 %v11208_v44  ;;  %v11229_v6 = vld [vmem:[#allocation3 + $0x684] ss:$16 sps:$4 sm:$0xff]   ;;  %v11232_v44 = vld [vmem:[#allocation3 + $0x68c] ss:$16 sps:$4 sm:$0xff]  }
0x1c49   :  { %v7450_v28 = vpop.f32.mrb[60].mxu0  ;;  %v7536_v40 = vpop.f32.mrb[60].mxu1 }
0x1c4a   :  { %v10459_v14 = vadd.f32 %v7450_v28, %v6720_v59  ;;  %v10463_v35 = vadd.f32 %v7536_v40, %v6728_v8  ;;  %v7452_v52 = vpop.f32.mrb[61].mxu0  ;;  %v7538_v61 = vpop.f32.mrb[61].mxu1  ;;  %v11236_v28 = vld [vmem:[#allocation3 + $0x6a8] ss:$16 sps:$4 sm:$0xff]   ;;  %v11241_v40 = vld [vmem:[#allocation3 + $0x6c4] ss:$16 sps:$4 sm:$0xff]  }
0x1c4b   :  { %v10460_v41 = vadd.f32 %v7452_v52, %v6724_v25  ;;  %v10464_v19 = vadd.f32 %v7538_v61, %v6732_v7  ;;  %v7454_v53 = vpop.f32.mrb[62].mxu0  ;;  %v7540_v57 = vpop.f32.mrb[62].mxu1  ;;  %v11242_v52 = vld [vmem:[#allocation3 + $0x6c8] ss:$16 sps:$4 sm:$0xff]   ;;  %v11247_v61 = vld [vmem:[#allocation3 + $0x6e4] ss:$16 sps:$4 sm:$0xff]  }
0x1c4c   :  { %v10461_v63 = vadd.f32 %v7454_v53, %v6720_v59  ;;  %v10465_v3 = vadd.f32 %v7540_v57, %v6728_v8  ;;  %v7456_v4 = vpop.f32.mrb[63].mxu0  ;;  %v7542_v13 = vpop.f32.mrb[63].mxu1  ;;  %v7545_v45 = vmax.f32 %v10459_v14, 0.0  ;;  %v7547_v9 = vmax.f32 %v10463_v35, 0.0  ;;  %v11230_v59 = vld [vmem:[#allocation3 + $0x688] ss:$16 sps:$4 sm:$0xff]  }
0x1c4d   :  { %v10462_v18 = vadd.f32 %v7456_v4, %v6724_v25  ;;  %v10466_v27 = vadd.f32 %v7542_v13, %v6732_v7  ;;  %v7546_v47 = vmax.f32 %v10460_v41, 0.0  ;;  %v7548_v1 = vmax.f32 %v10464_v19, 0.0  ;;  %v11235_v8 = vld [vmem:[#allocation3 + $0x6a4] ss:$16 sps:$4 sm:$0xff]   ;;  %v11238_v25 = vld [vmem:[#allocation3 + $0x6ac] ss:$16 sps:$4 sm:$0xff]  }
0x1c4e   :  { %v7549_v11 = vmax.f32 %v10461_v63, 0.0  ;;  %v7551_v37 = vmax.f32 %v10465_v3, 0.0  ;;  %v11233_v7 = vld [vmem:[#allocation3 + $0x6a0] ss:$16 sps:$4 sm:$0xff]   ;;  %v11244_v14 = vld [vmem:[#allocation3 + $0x6cc] ss:$16 sps:$4 sm:$0xff]  }
0x1c4f   :  { %v7550_v12 = vmax.f32 %v10462_v18, 0.0  ;;  %v7552_v39 = vmax.f32 %v10466_v27, 0.0  ;;  %v11239_v35 = vld [vmem:[#allocation3 + $0x6c0] ss:$16 sps:$4 sm:$0xff]   ;;  %v11250_v41 = vld [vmem:[#allocation3 + $0x6ec] ss:$16 sps:$4 sm:$0xff]  }
0x1c50   :  { %v7553_v46 = vpack.c.bf16 %v7549_v11, %v7545_v45  ;;  %v14725_v54 = vpack.c.bf16 %v7551_v37, %v7547_v9  ;;  %v11245_v19 = vld [vmem:[#allocation3 + $0x6e0] ss:$16 sps:$4 sm:$0xff]   ;;  %v11248_v53 = vld [vmem:[#allocation3 + $0x6e8] ss:$16 sps:$4 sm:$0xff]   ;;  %v11253_v57 = vld [vmem:[#allocation3 + $0x704] ss:$16 sps:$4 sm:$0xff]  }
0x1c51   :  { %v7554_v49 = vpack.c.bf16 %v7550_v12, %v7546_v47  ;;  %v7556_v26 = vpack.c.bf16 %v7552_v39, %v7548_v1  ;;  %v11256_v63 = vld [vmem:[#allocation3 + $0x70c] ss:$16 sps:$4 sm:$0xff]   ;;  %v11251_v3 = vld [vmem:[#allocation3 + $0x700] ss:$16 sps:$4 sm:$0xff]   ;;  %v11254_v4 = vld [vmem:[#allocation3 + $0x708] ss:$16 sps:$4 sm:$0xff]  }
0x1c52   :  { %v11259_v13 = vld [vmem:[#allocation3 + $0x724] ss:$16 sps:$4 sm:$0xff]   ;;  %v11262_v18 = vld [vmem:[#allocation3 + $0x72c] ss:$16 sps:$4 sm:$0xff]   ;;  %v11257_v27 = vld [vmem:[#allocation3 + $0x720] ss:$16 sps:$4 sm:$0xff]  }
0x1c53   :  { %8374 = vmatprep.mubr.bf16.mxu0 %v7554_v49  ;;  %8460 = vmatprep.mubr.bf16.mxu1 %v7554_v49  ;;  %v11260_v45 = vld [vmem:[#allocation3 + $0x728] ss:$16 sps:$4 sm:$0xff]   ;;  %v11265_v9 = vld [vmem:[#allocation3 + $0x744] ss:$16 sps:$4 sm:$0xff]   ;;  %v11268_v11 = vld [vmem:[#allocation3 + $0x74c] ss:$16 sps:$4 sm:$0xff]  }
0x1c54   :  { %8375 = vmatmul.mubr.bf16.vlgmr.msra.gmra.mrb[64].mxu0 %v7553_v46  ;;  %8461 = vmatmul.mubr.bf16.vlgmr.msra.gmra.mrb[64].mxu1 %v7553_v46  ;;  %v11263_v37 = vld [vmem:[#allocation3 + $0x740] ss:$16 sps:$4 sm:$0xff]   ;;  %v11266_v47 = vld [vmem:[#allocation3 + $0x748] ss:$16 sps:$4 sm:$0xff]   ;;  %v11271_v1 = vld [vmem:[#allocation3 + $0x764] ss:$16 sps:$4 sm:$0xff]  }
0x1c55   :  { %8386 = vmatpush1.bf16.msra.mxu0 %v11203_v29  ;;  %8472 = vmatpush1.bf16.msra.mxu1 %v11206_v43  ;;  %v11274_v12 = vld [vmem:[#allocation3 + $0x76c] ss:$16 sps:$4 sm:$0xff]   ;;  %v11269_v39 = vld [vmem:[#allocation3 + $0x760] ss:$16 sps:$4 sm:$0xff]   ;;  %v11272_v46 = vld [vmem:[#allocation3 + $0x768] ss:$16 sps:$4 sm:$0xff]  }
0x1c56   :  { %8417 = vmatprep.mubr.bf16.mxu0 %v7556_v26  ;;  %8503 = vmatprep.mubr.bf16.mxu1 %v7556_v26  ;;  %v11277_v49 = vld [vmem:[#allocation3 + $0x784] ss:$16 sps:$4 sm:$0xff]   ;;  %v11280_v26 = vld [vmem:[#allocation3 + $0x78c] ss:$16 sps:$4 sm:$0xff]   ;;  %v11275_v29 = vld [vmem:[#allocation3 + $0x780] ss:$16 sps:$4 sm:$0xff]  }
0x1c57   :  { %8387 = vmatprep.subr.bf16.mxu0 %v11211_v21  ;;  %8473 = vmatprep.subr.bf16.mxu1 %v11214_v50  ;;  %v11278_v43 = vld [vmem:[#allocation3 + $0x788] ss:$16 sps:$4 sm:$0xff]   ;;  %v11283_v21 = vld [vmem:[#allocation3 + $0x7a4] ss:$16 sps:$4 sm:$0xff]   ;;  %v11286_v50 = vld [vmem:[#allocation3 + $0x7ac] ss:$16 sps:$4 sm:$0xff]  }
0x1c59   :  { %8388 = vmatpush1.bf16.msra.mxu0 %v11209_v33  ;;  %8474 = vmatpush1.bf16.msra.mxu1 %v11212_v22  ;;  %v11281_v33 = vld [vmem:[#allocation3 + $0x7a0] ss:$16 sps:$4 sm:$0xff]   ;;  %v11284_v22 = vld [vmem:[#allocation3 + $0x7a8] ss:$16 sps:$4 sm:$0xff]  }
0x1c5a   :  { %8389 = vmatprep.subr.bf16.mxu0 %v11217_v60  ;;  %8475 = vmatprep.subr.bf16.mxu1 %v11220_v10  ;;  %v11289_v60 = vld [vmem:[#allocation3 + $0x7c4] ss:$16 sps:$4 sm:$0xff]   ;;  %v11292_v10 = vld [vmem:[#allocation3 + $0x7cc] ss:$16 sps:$4 sm:$0xff]  }
0x1c5d   :  { %8390 = vmatpush1.bf16.msra.mxu0 %v11215_v30  ;;  %8476 = vmatpush1.bf16.msra.mxu1 %v11218_v55  ;;  %v11287_v30 = vld [vmem:[#allocation3 + $0x7c0] ss:$16 sps:$4 sm:$0xff]   ;;  %v11290_v55 = vld [vmem:[#allocation3 + $0x7c8] ss:$16 sps:$4 sm:$0xff]  }
0x1c5e   :  { %8391 = vmatprep.subr.bf16.mxu0 %v11223_v36  ;;  %8477 = vmatprep.subr.bf16.mxu1 %v11226_v23  ;;  %v11295_v36 = vld [vmem:[#allocation3 + $0x7e4] ss:$16 sps:$4 sm:$0xff]   ;;  %v11298_v23 = vld [vmem:[#allocation3 + $0x7ec] ss:$16 sps:$4 sm:$0xff]  }
0x1c61   :  { %8392 = vmatpush1.bf16.msra.mxu0 %v11221_v62  ;;  %8478 = vmatpush1.bf16.msra.mxu1 %v11224_v0  ;;  %v11293_v62 = vld [vmem:[#allocation3 + $0x7e0] ss:$16 sps:$4 sm:$0xff]   ;;  %v11296_v0 = vld [vmem:[#allocation3 + $0x7e8] ss:$16 sps:$4 sm:$0xff]  }
0x1c62   :  { %8393 = vmatprep.subr.bf16.mxu0 %v11229_v6  ;;  %8479 = vmatprep.subr.bf16.mxu1 %v11232_v44  ;;  %v15058_v6 = vld [vmem:[#allocation21_spill] sm:$0xff] }
0x1c63   :  { %v7689_v44 = vrot.slane %v14700_v20, %v15058_v6 }
0x1c65   :  { %8394 = vmatpush1.bf16.msra.mxu0 %v11227_v42  ;;  %8480 = vmatpush1.bf16.msra.mxu1 %v11230_v59  ;;  %v8530_v42 = vld [vmem:[%s14778_s12] sm:$0xf]  ;;  %v7697_v59 = vrot.slane %v14707_v51, %v15058_v6 }
0x1c66   :  { %8395 = vmatprep.subr.bf16.mxu0 %v11235_v8  ;;  %8481 = vmatprep.subr.bf16.mxu1 %v11238_v25  ;;  %v7693_v8 = vrot.slane %v14714_v34, %v15058_v6  ;;  %v7701_v25 = vrot.slane %v14721_v15, %v15058_v6  ;;  %v8543_v20 = vrot.slane %v8530_v42, %v15055_v16 }
0x1c67   :  { %v8547_v34 = vrot.slane %v8530_v42, %v15056_v38 }
0x1c69   :  { %8396 = vmatpush1.bf16.msra.mxu0 %v11233_v7  ;;  %8482 = vmatpush1.bf16.msra.mxu1 %v11236_v28  ;;  %v8535_v28 = vrot.slane %v8530_v42, %v14991_v48 }
0x1c6a   :  { %8397 = vmatprep.subr.bf16.mxu0 %v11241_v40  ;;  %8483 = vmatprep.subr.bf16.mxu1 %v11244_v14 }
0x1c6d   :  { %8398 = vmatpush1.bf16.msra.mxu0 %v11239_v35  ;;  %8484 = vmatpush1.bf16.msra.mxu1 %v11242_v52  ;;  %v15059_v52 = vld [vmem:[#allocation9_spill] sm:$0xff] }
0x1c6e   :  { %8399 = vmatprep.subr.bf16.mxu0 %v11247_v61  ;;  %8485 = vmatprep.subr.bf16.mxu1 %v11250_v41  ;;  %v8539_v61 = vrot.slane %v8530_v42, %v15059_v52 }
0x1c71   :  { %8400 = vmatpush1.bf16.msra.mxu0 %v11245_v19  ;;  %8486 = vmatpush1.bf16.msra.mxu1 %v11248_v53 }
0x1c72   :  { %8401 = vmatprep.subr.bf16.mxu0 %v11253_v57  ;;  %8487 = vmatprep.subr.bf16.mxu1 %v11256_v63 }
0x1c75   :  { %8402 = vmatpush1.bf16.msra.mxu0 %v11251_v3  ;;  %8488 = vmatpush1.bf16.msra.mxu1 %v11254_v4 }
0x1c76   :  { %8403 = vmatprep.subr.bf16.mxu0 %v11259_v13  ;;  %8489 = vmatprep.subr.bf16.mxu1 %v11262_v18 }
0x1c79   :  { %8404 = vmatpush1.bf16.msra.mxu0 %v11257_v27  ;;  %8490 = vmatpush1.bf16.msra.mxu1 %v11260_v45 }
0x1c7a   :  { %8405 = vmatprep.subr.bf16.mxu0 %v11265_v9  ;;  %8491 = vmatprep.subr.bf16.mxu1 %v11268_v11 }
0x1c7d   :  { %8406 = vmatpush1.bf16.msra.mxu0 %v11263_v37  ;;  %8492 = vmatpush1.bf16.msra.mxu1 %v11266_v47 }
0x1c7e   :  { %8407 = vmatprep.subr.bf16.mxu0 %v11271_v1  ;;  %8493 = vmatprep.subr.bf16.mxu1 %v11274_v12 }
0x1c81   :  { %8408 = vmatpush1.bf16.msra.mxu0 %v11269_v39  ;;  %8494 = vmatpush1.bf16.msra.mxu1 %v11272_v46 }
0x1c82   :  { %8409 = vmatprep.subr.bf16.mxu0 %v11277_v49  ;;  %8495 = vmatprep.subr.bf16.mxu1 %v11280_v26 }
0x1c85   :  { %8410 = vmatpush1.bf16.msra.mxu0 %v11275_v29  ;;  %8496 = vmatpush1.bf16.msra.mxu1 %v11278_v43 }
0x1c86   :  { %8411 = vmatprep.subr.bf16.mxu0 %v11283_v21  ;;  %8497 = vmatprep.subr.bf16.mxu1 %v11286_v50 }
0x1c89   :  { %8412 = vmatpush1.bf16.msra.mxu0 %v11281_v33  ;;  %8498 = vmatpush1.bf16.msra.mxu1 %v11284_v22 }
0x1c8a   :  { %8413 = vmatprep.subr.bf16.mxu0 %v11289_v60  ;;  %8499 = vmatprep.subr.bf16.mxu1 %v11292_v10 }
0x1c8d   :  { %8414 = vmatpush1.bf16.msra.mxu0 %v11287_v30  ;;  %8500 = vmatpush1.bf16.msra.mxu1 %v11290_v55 }
0x1c8e   :  { %8415 = vmatprep.subr.bf16.mxu0 %v11295_v36  ;;  %8501 = vmatprep.subr.bf16.mxu1 %v11298_v23 }
0x1c91   :  { %8416 = vmatpush1.bf16.msra.mxu0 %v11293_v62  ;;  %8502 = vmatpush1.bf16.msra.mxu1 %v11296_v0 }
0x1c94   :  { %8418 = vmatmul.mubr.bf16.vlgmr.msra.gmra.mrb[64].mxu0 %v14725_v54  ;;  %8504 = vmatmul.mubr.bf16.vlgmr.msra.gmra.mrb[64].mxu1 %v14725_v54 }
0x1d67   :  { %v8419_v7 = vpop.f32.mrb[64].mxu0  ;;  %v8505_v54 = vpop.f32.mrb[64].mxu1 }
0x1d68   :  { %v10467_v40 = vadd.f32 %v8419_v7, %v7689_v44  ;;  %v10471_v14 = vadd.f32 %v8505_v54, %v7697_v59  ;;  %v8421_v35 = vpop.f32.mrb[65].mxu0  ;;  %v8507_v41 = vpop.f32.mrb[65].mxu1 }
0x1d69   :  { %v10468_v51 = vadd.f32 %v8421_v35, %v7693_v8  ;;  %v10472_v19 = vadd.f32 %v8507_v41, %v7701_v25  ;;  %v8423_v53 = vpop.f32.mrb[66].mxu0  ;;  %v8509_v57 = vpop.f32.mrb[66].mxu1 }
0x1d6a   :  { %v8514_v15 = vmax.f32 %v10467_v40, 0.0  ;;  %v8516_v63 = vmax.f32 %v10471_v14, 0.0  ;;  %v10469_v3 = vadd.f32 %v8423_v53, %v7689_v44  ;;  %v10473_v48 = vadd.f32 %v8509_v57, %v7697_v59  ;;  %v8425_v4 = vpop.f32.mrb[67].mxu0  ;;  %v8511_v13 = vpop.f32.mrb[67].mxu1 }
0x1d6b   :  { %v8515_v18 = vmax.f32 %v10468_v51, 0.0  ;;  %v8517_v27 = vmax.f32 %v10472_v19, 0.0  ;;  %v10470_v16 = vadd.f32 %v8425_v4, %v7693_v8  ;;  %v10474_v45 = vadd.f32 %v8511_v13, %v7701_v25  ;;  %v9446_v25 = vld [vmem:[#allocation2] ss:$0 sm:$0xff] }
0x1d6c   :  { %v8522_v9 = vadd.f32 %v8514_v15, %v14214_v56  ;;  %v8524_v11 = vadd.f32 %v8516_v63, %v14220_v24  ;;  %v8518_v37 = vmax.f32 %v10469_v3, 0.0  ;;  %v8520_v47 = vmax.f32 %v10473_v48, 0.0 }
0x1d6d   :  { %v8523_v38 = vadd.f32 %v8515_v18, %v14217_v2  ;;  %v8525_v1 = vadd.f32 %v8517_v27, %v14225_v32  ;;  %v8519_v12 = vmax.f32 %v10470_v16, 0.0  ;;  %v8521_v39 = vmax.f32 %v10474_v45, 0.0 }
0x1d6e   :  { %v8552_v46 = vmul.f32 %v8535_v28, %v8522_v9  ;;  %v8526_v49 = vadd.f32 %v8518_v37, %v14230_v5  ;;  %v8528_v26 = vadd.f32 %v8520_v47, %v14236_v31  ;;  %v8554_v29 = vmul.f32 %v8543_v20, %v8524_v11 }
0x1d6f   :  { %v8553_v43 = vmul.f32 %v8539_v61, %v8523_v38  ;;  %v8527_v21 = vadd.f32 %v8519_v12, %v14233_v58  ;;  %v8529_v56 = vadd.f32 %v8521_v39, %v14241_v17  ;;  %v8555_v32 = vmul.f32 %v8547_v34, %v8525_v1 }
0x1d70   :  { %v8581_v24 = vsel %vm8580_vm9, %v8552_v46, 0.0  ;;  %v8556_v50 = vmul.f32 %v8535_v28, %v8526_v49  ;;  %v8558_v33 = vmul.f32 %v8543_v20, %v8528_v26  ;;  %v8584_v31 = vsel %vm8580_vm9, %v8554_v29, 0.0 }
0x1d71   :  { %v8582_v2 = vsel %vm8580_vm9, %v8553_v43, 0.0  ;;  %v8557_v22 = vmul.f32 %v8539_v61, %v8527_v21  ;;  %v8559_v60 = vmul.f32 %v8547_v34, %v8529_v56  ;;  %v8586_v62 = vsel %vm8580_vm9, %v8555_v32, 0.0 }
0x1d72   :  { %v8568_v10 = vrot.slane %v8556_v50, 7  ;;  %v8583_v30 = vadd.f32 %v8582_v2, %v8581_v24  ;;  %v8570_v5 = vrot.slane %v8558_v33, 7 }
0x1d73   :  { %v8569_v55 = vrot.slane %v8557_v22, 7  ;;  %v8571_v23 = vrot.slane %v8559_v60, 7 }
0x1d74   :  { %v8590_v36 = vsel %vm1347_vm6, %v8568_v10, 0.0  ;;  %v8585_v58 = vadd.f32 %v8584_v31, %v8583_v30  ;;  %v8593_v44 = vsel %vm1347_vm6, %v8570_v5, 0.0 }
0x1d75   :  { %v8591_v17 = vsel %vm1347_vm6, %v8569_v55, 0.0  ;;  %v8595_v59 = vsel %vm1347_vm6, %v8571_v23, 0.0 }
0x1d76   :  { %v8587_v0 = vadd.f32 %v8586_v62, %v8585_v58  ;;  %v8592_v6 = vadd.f32 %v8591_v17, %v8590_v36 }
0x1d78   :  { %8588 = vadd.xlane.f32.xlu0 %v8587_v0  ;;  %v8594_v42 = vadd.f32 %v8593_v44, %v8592_v6 }
0x1d7a   :  { %v8596_v8 = vadd.f32 %v8595_v59, %v8594_v42 }
0x1d7c   :  { %8597 = vadd.xlane.f32.xlu1 %v8596_v8 }
0x1e05   :  { %v8589_v7 = vpop.xlane.xlu0 %8588 }
0x1e06   :  { %v8606_v28 = vadd.f32 %v9446_v25, %v8589_v7 }
0x1e08   :  { %8609 = vst.msk [vmem:[%s14780_s14 - $0x7] sm:$0x80] %vm8608_vm12, %v8606_v28 }
0x1e09   :  { %v8598_v54 = vpop.xlane.xlu1 %8597 }
0x1e0a   :  { %v8607_v40 = vadd.f32 %v9446_v25, %v8598_v54 }
0x1e0c   :  { %8611 = vst.msk [vmem:[%s14780_s14 + $0x1] sm:$0x1] %vm8610_vm2, %v8607_v40 }
0x1e0d   :  { %8616 = vsyncpa [#allocation4], 1 }

</bundles_post_ra>
